<compile_context>
chip_gen: v6e
topology: v6e:2x2x1
jax: 0.10.0
libtpu: 0.0.40
codegen_flags: <defaults>
</compile_context>

<pallas_src>
import functools

import jax
import jax.numpy as jnp
from jax import lax
from jax.experimental import pallas as pl
from jax.experimental.pallas import tpu as pltpu

# ---------------- config (small shapes consistent with the module) -----------
B, N = 2, 8            # batch, num queries
D = 64                 # content_dim == query_dim == feat_channels
G = 2                  # n_groups
P = 16                 # in_points
OP = 32                # out_points
C = D // G             # eff_in_dim == eff_out_dim
M_PARAMS = C * C       # channel-mixing parameters per group
S_PARAMS = OP * P      # spatial-mixing parameters per group
TOTAL = M_PARAMS + S_PARAMS
OFF_DIM = G * P * 3    # sampling-offset generator output width
GP = G * P             # sample points per query
H = W = 16             # feature map spatial size
HW = H * W
STRIDE = 8.0
EPS = 1e-5             # matches torch.nn.functional.layer_norm / nn.LayerNorm


def _onehot_dtype():
    """bf16 one-hot accumulation on v6e/v7x, f32 on v5e and older (no bf16 VALU)."""
    try:
        kind = jax.devices()[0].device_kind.lower()
    except Exception:
        return jnp.float32
    if ("v6" in kind) or ("v7" in kind) or ("7x" in kind):
        return jnp.bfloat16
    return jnp.float32


def _ln_last2(t):
    # F.layer_norm over the last two dims (no affine), batched over dim 0.
    mean = jnp.mean(jnp.mean(t, axis=-1, keepdims=True), axis=-2, keepdims=True)
    var = jnp.mean(jnp.mean(jnp.square(t - mean), axis=-1, keepdims=True),
                   axis=-2, keepdims=True)
    return (t - mean) * lax.rsqrt(var + EPS)


# ---------------- the single fused kernel -------------------------------------
def _fused_kernel(corner_ref, feat_ref, m_ref, s_ref, q_ref, w_out_ref,
                  b_out_ref, gamma_ref, beta_ref, o_ref, flat_scr,
                  *, onehot_dtype):
    # (a) bilinear sampling as a one-hot-weighted matmul on the MXU (no gather)
    cr = corner_ref[0]                                     # [N, GP, 8] f32
    pix = lax.broadcasted_iota(jnp.int32, (N, GP, HW), 2)
    wmat = jnp.zeros((N, GP, HW), onehot_dtype)
    for c4 in range(4):                                    # static unroll
        idx_c = cr[:, :, c4:c4 + 1].astype(jnp.int32)      # [N, GP, 1]
        wgt_c = cr[:, :, 4 + c4:5 + c4].astype(onehot_dtype)
        wmat = wmat + jnp.where(pix == idx_c, wgt_c, jnp.zeros_like(wgt_c))
    feat = feat_ref[0].astype(jnp.bfloat16)                # [HW, D]
    # one lane-aligned (N*GP, HW) @ (HW, D) MXU matmul (leading-dim merge is free)
    sampled = jnp.dot(wmat.reshape(N * GP, HW).astype(jnp.bfloat16), feat,
                      preferred_element_type=jnp.float32)  # [N*GP, D] f32
    sampled = sampled.reshape(N, GP, D)                    # free split

    # (b) adaptive channel + spatial mixing, batched over the N queries,
    #     unrolled over the G groups; results scattered into a flat scratch.
    for g in range(G):                                     # static unroll (G=2)
        xg = sampled[:, g * P:(g + 1) * P, g * C:(g + 1) * C]      # [N, P, C]
        mg = m_ref[0, g]                                   # [N, C, C] bf16
        sg = s_ref[0, g]                                   # [N, OP, P] bf16
        t = jnp.einsum('npc,ncd->npd', xg.astype(jnp.bfloat16), mg,
                       preferred_element_type=jnp.float32)
        t = jnp.maximum(_ln_last2(t), 0.0)                 # LayerNorm + ReLU
        u = jnp.einsum('nop,npc->noc', sg, t.astype(jnp.bfloat16),
                       preferred_element_type=jnp.float32)
        u = jnp.maximum(_ln_last2(u), 0.0)                 # [N, OP, C] f32
        # scatter OP rows into the flat (N, G*OP*C) scratch ((g,o,c)-major,
        # matching the out_proj weight ordering) so out_proj is one K=2048 dot.
        for o in range(OP):
            col = (g * OP + o) * C
            flat_scr[:, col:col + C] = u[:, o, :]

    # (c) out_proj (single K=2048 MXU matmul) + bias + residual + affine LN
    flat = flat_scr[...].astype(jnp.bfloat16)              # [N, G*OP*C]
    out = jnp.dot(flat, w_out_ref[...], preferred_element_type=jnp.float32)
    out = out + b_out_ref[...] + q_ref[0]
    mean = jnp.mean(out, axis=-1, keepdims=True)
    var = jnp.mean(jnp.square(out - mean), axis=-1, keepdims=True)
    out = (out - mean) * lax.rsqrt(var + EPS)
    o_ref[0] = (out * gamma_ref[...] + beta_ref[...]).astype(o_ref.dtype)


def pallas_fused_forward(corner, feat_flat, m_all, s_all, query_feat,
                         w_out, b_out, gamma, beta):
    Bq = query_feat.shape[0]
    onehot_dt = _onehot_dtype()
    kernel = functools.partial(_fused_kernel, onehot_dtype=onehot_dt)

    flops = (2 * Bq * (N * GP) * HW * D
             + 2 * Bq * N * G * (P * C * C + OP * P * C)
             + 2 * Bq * N * (G * OP * C) * D)
    bytes_accessed = (corner.size * 4 + feat_flat.size * 4 + m_all.size * 2
                      + s_all.size * 2 + query_feat.size * 4 + w_out.size * 2
                      + 3 * D * 4 + Bq * N * D * 4)
    cost = pl.CostEstimate(flops=flops, transcendentals=Bq * N * (2 * G + 1),
                           bytes_accessed=bytes_accessed)

    return pl.pallas_call(
        kernel,
        out_shape=jax.ShapeDtypeStruct((Bq, N, D), jnp.float32),
        grid_spec=pltpu.PrefetchScalarGridSpec(
            num_scalar_prefetch=0,
            grid=(Bq,),
            in_specs=[
                pl.BlockSpec((1, N, GP, 8), lambda b: (b, 0, 0, 0)),
                pl.BlockSpec((1, HW, D), lambda b: (b, 0, 0)),
                pl.BlockSpec((1, G, N, C, C), lambda b: (b, 0, 0, 0, 0)),
                pl.BlockSpec((1, G, N, OP, P), lambda b: (b, 0, 0, 0, 0)),
                pl.BlockSpec((1, N, D), lambda b: (b, 0, 0)),
                pl.BlockSpec((G * OP * C, D), lambda b: (0, 0)),
                pl.BlockSpec((1, D), lambda b: (0, 0)),
                pl.BlockSpec((1, D), lambda b: (0, 0)),
                pl.BlockSpec((1, D), lambda b: (0, 0)),
            ],
            out_specs=pl.BlockSpec((1, N, D), lambda b: (b, 0, 0)),
            scratch_shapes=[pltpu.VMEM((N, G * OP * C), jnp.float32)],
        ),
        compiler_params=pltpu.CompilerParams(dimension_semantics=("parallel",)),
        cost_estimate=cost,
    )(corner, feat_flat, m_all, s_all, query_feat, w_out,
      b_out.reshape(1, D), gamma.reshape(1, D), beta.reshape(1, D))


# ---------------- plain-JAX glue (tiny, layout-hostile pre-kernel work) -------
def make_sample_points(offset, num_group, xyzr):
    Bq, L, _ = offset.shape
    offset = offset.reshape(Bq, L, 1, num_group, 3)
    roi_cc = xyzr[..., :2]
    scale = 2.0 ** xyzr[..., 2:3]
    ratio = 2.0 ** jnp.concatenate(
        [xyzr[..., 3:4] * -0.5, xyzr[..., 3:4] * 0.5], axis=-1)
    roi_wh = scale * ratio
    offset_xy = offset[..., :2] * roi_wh.reshape(Bq, L, 1, 1, 2)
    sample_xy = roi_cc.reshape(Bq, L, 1, 1, 2) + offset_xy
    roi_lvl = xyzr[..., 2:3].reshape(Bq, L, 1, 1, 1)
    sample_lvl = roi_lvl + offset[..., 2:3]
    return jnp.concatenate([sample_xy, sample_lvl], axis=-1)  # [B, L, 1, GP, 3]


def bilinear_corner_table(sample_points, stride, Hf, Wf):
    # TODO(synk): reference `sampling_3d` (multi-level F.grid_sample with level
    # interpolation weights / zero padding) was not provided; this is a
    # single-level bilinear sampler with border clamping.  The gather itself
    # runs inside the Pallas kernel as a one-hot-weighted MXU matmul.
    Bq, Lq = sample_points.shape[0], sample_points.shape[1]
    xy = sample_points[..., :2].reshape(Bq, Lq, -1, 2)     # [B, N, GP, 2]
    xs = xy[..., 0] / stride - 0.5
    ys = xy[..., 1] / stride - 0.5
    x0f = jnp.floor(xs)
    y0f = jnp.floor(ys)
    dx = xs - x0f
    dy = ys - y0f
    x0 = jnp.clip(x0f, 0.0, Wf - 1.0)
    x1 = jnp.clip(x0f + 1.0, 0.0, Wf - 1.0)
    y0 = jnp.clip(y0f, 0.0, Hf - 1.0)
    y1 = jnp.clip(y0f + 1.0, 0.0, Hf - 1.0)
    idx = jnp.stack([y0 * Wf + x0, y0 * Wf + x1,
                     y1 * Wf + x0, y1 * Wf + x1], axis=-1)          # exact ints
    wgt = jnp.stack([(1.0 - dy) * (1.0 - dx), (1.0 - dy) * dx,
                     dy * (1.0 - dx), dy * dx], axis=-1)
    # pack indices + weights into one lane-denser array: [B, N, GP, 8]
    return jnp.concatenate([idx, wgt], axis=-1).astype(jnp.float32)


def adaptive_sampling_mixing_forward(feat, query_feat, query_xyzr,
                                     featmap_strides, params):
    Bq, Nq, Dq = query_feat.shape
    q2d = query_feat.reshape(Bq * Nq, Dq)

    # 1) fused offset + mixing-parameter generator matmul (tiny, stays in XLA:
    #    the per-query (C,C)/(OP,P) matrix formation is a lane->sublane
    #    relayout that XLA does for free and Mosaic cannot express cleanly).
    w_cat = jnp.concatenate([params["w_off"], params["w_param"]], axis=1)
    b_cat = jnp.concatenate([params["b_off"], params["b_param"]], axis=0)
    gen = q2d @ w_cat + b_cat                               # [BN, 96 + 3072]
    offset = gen[:, :OFF_DIM].reshape(Bq, Nq, OFF_DIM)
    mix = gen[:, OFF_DIM:].reshape(Bq, Nq, G, TOTAL)
    m_all = jnp.transpose(mix[..., :M_PARAMS].reshape(Bq, Nq, G, C, C),
                          (0, 2, 1, 3, 4)).astype(jnp.bfloat16)   # [B,G,N,C,C]
    s_all = jnp.transpose(mix[..., M_PARAMS:].reshape(Bq, Nq, G, OP, P),
                          (0, 2, 1, 3, 4)).astype(jnp.bfloat16)   # [B,G,N,OP,P]

    # 2) sample points + packed bilinear corner table (tiny elementwise glue)
    sample_xyz = make_sample_points(offset, GP, query_xyzr)
    corner = bilinear_corner_table(sample_xyz, featmap_strides[0], H, W)

    # 3) single fused kernel: sampling + mixing + out_proj + residual + norm
    feat_flat = feat.reshape(Bq, H * W, Dq)
    w_out = params["w_out"].astype(jnp.bfloat16)            # [G*OP*C, D]
    out = pallas_fused_forward(corner, feat_flat, m_all, s_all, query_feat,
                               w_out, params["b_out"],
                               params["ln_gamma"], params["ln_beta"])
    return out                                              # [B, N, D]


# ---------------- main ---------------------------------------------------------
if __name__ == "__main__":
    key = jax.random.PRNGKey(0)
    ks = jax.random.split(key, 12)

    # inputs
    feat = jax.random.normal(ks[0], (B, H, W, D), jnp.float32)       # NHWC
    query_feat = jax.random.normal(ks[1], (B, N, D), jnp.float32)
    cx = jax.random.uniform(ks[2], (B, N, 1), minval=32.0, maxval=96.0)
    cy = jax.random.uniform(ks[3], (B, N, 1), minval=32.0, maxval=96.0)
    z = jnp.full((B, N, 1), 3.0, jnp.float32)
    r = jnp.zeros((B, N, 1), jnp.float32)
    query_xyzr = jnp.concatenate([cx, cy, z, r], axis=-1)            # [B, N, 4]
    featmap_strides = [STRIDE]

    # deterministic parameter init (shapes from the module __init__)
    s = 0.02
    params = dict(
        w_off=s * jax.random.normal(ks[4], (D, OFF_DIM), jnp.float32),
        b_off=s * jax.random.normal(ks[5], (OFF_DIM,), jnp.float32),
        w_param=s * jax.random.normal(ks[6], (D, G * TOTAL), jnp.float32),
        b_param=s * jax.random.normal(ks[7], (G * TOTAL,), jnp.float32),
        w_out=s * jax.random.normal(ks[8], (G * OP * C, D), jnp.float32),
        b_out=s * jax.random.normal(ks[9], (D,), jnp.float32),
        ln_gamma=jnp.ones((D,), jnp.float32),
        ln_beta=jnp.zeros((D,), jnp.float32),
    )

    fwd = jax.jit(adaptive_sampling_mixing_forward)
    out = fwd(feat, query_feat, query_xyzr, featmap_strides, params)
    out = jax.block_until_ready(out)
    assert out.shape == (B, N, D) and bool(jnp.all(jnp.isfinite(out)))
    print("KERNEL_OK")
</pallas_src>

<mosaic_0001>
module attributes {stable_mosaic.version = 11 : i64} {
  func.func @_fused_kernel(%arg0: i32, %arg1: memref<1x8x32x8xf32, #tpu.memory_space<vmem>>, %arg2: memref<1x256x64xf32, #tpu.memory_space<vmem>>, %arg3: memref<1x2x8x32x32xbf16, #tpu.memory_space<vmem>>, %arg4: memref<1x2x8x32x16xbf16, #tpu.memory_space<vmem>>, %arg5: memref<1x8x64xf32, #tpu.memory_space<vmem>>, %arg6: memref<2048x64xbf16, #tpu.memory_space<vmem>>, %arg7: memref<1x64xf32, #tpu.memory_space<vmem>>, %arg8: memref<1x64xf32, #tpu.memory_space<vmem>>, %arg9: memref<1x64xf32, #tpu.memory_space<vmem>>, %arg10: memref<1x8x64xf32, #tpu.memory_space<vmem>>, %arg11: memref<8x2048xf32, #tpu.memory_space<vmem>>) attributes {dimension_semantics = [#tpu.dimension_semantics<parallel>], iteration_bounds = array<i64: 2>, scalar_prefetch = 0 : i64, scratch_operands = 1 : i64, tpu.core_type = #tpu.core_type<tc>, window_params = [{transform_indices = @transform_0, window_bounds = array<i64: 1, 8, 32, 8>}, {transform_indices = @transform_1, window_bounds = array<i64: 1, 256, 64>}, {transform_indices = @transform_2, window_bounds = array<i64: 1, 2, 8, 32, 32>}, {transform_indices = @transform_3, window_bounds = array<i64: 1, 2, 8, 32, 16>}, {transform_indices = @transform_4, window_bounds = array<i64: 1, 8, 64>}, {pipeline_mode = #tpu.pipeline_mode<synchronous>, transform_indices = @transform_5, window_bounds = array<i64: 2048, 64>}, {pipeline_mode = #tpu.pipeline_mode<synchronous>, transform_indices = @transform_6, window_bounds = array<i64: 1, 64>}, {pipeline_mode = #tpu.pipeline_mode<synchronous>, transform_indices = @transform_7, window_bounds = array<i64: 1, 64>}, {pipeline_mode = #tpu.pipeline_mode<synchronous>, transform_indices = @transform_8, window_bounds = array<i64: 1, 64>}, {transform_indices = @transform_9, window_bounds = array<i64: 1, 8, 64>}]} {
    %c0 = arith.constant 0 : index
    %c0_0 = arith.constant 0 : index
    %c0_1 = arith.constant 0 : index
    %c0_2 = arith.constant 0 : index
    %0 = vector.load %arg1[%c0, %c0_0, %c0_1, %c0_2] : memref<1x8x32x8xf32, #tpu.memory_space<vmem>>, vector<1x8x32x8xf32>
    %1 = vector.shape_cast %0 : vector<1x8x32x8xf32> to vector<8x32x8xf32>
    %2 = tpu.iota {dimensions = array<i32: 2>} : vector<8x32x256xi32>
    %cst = arith.constant 0.000000e+00 : f32
    %3 = vector.broadcast %cst : f32 to vector<8x32x256xf32>
    %4 = vector.extract_strided_slice %1 {offsets = [0, 0, 0], sizes = [8, 32, 1], strides = [1, 1, 1]} : vector<8x32x8xf32> to vector<8x32x1xf32>
    %5 = arith.fptosi %4 : vector<8x32x1xf32> to vector<8x32x1xi32>
    %6 = vector.extract_strided_slice %1 {offsets = [0, 0, 4], sizes = [8, 32, 1], strides = [1, 1, 1]} : vector<8x32x8xf32> to vector<8x32x1xf32>
    %7 = vector.broadcast %5 : vector<8x32x1xi32> to vector<8x32x256xi32>
    %8 = arith.cmpi eq, %2, %7 : vector<8x32x256xi32>
    %cst_3 = arith.constant 0.000000e+00 : f32
    %9 = vector.broadcast %cst_3 : f32 to vector<8x32x1xf32>
    %10 = vector.shape_cast %6 : vector<8x32x1xf32> to vector<8x32x1xf32>
    %11 = vector.broadcast %10 : vector<8x32x1xf32> to vector<8x32x256xf32>
    %12 = vector.shape_cast %9 : vector<8x32x1xf32> to vector<8x32x1xf32>
    %13 = vector.broadcast %12 : vector<8x32x1xf32> to vector<8x32x256xf32>
    %14 = arith.select %8, %11, %13 : vector<8x32x256xi1>, vector<8x32x256xf32>
    %15 = arith.addf %3, %14 : vector<8x32x256xf32>
    %16 = vector.extract_strided_slice %1 {offsets = [0, 0, 1], sizes = [8, 32, 1], strides = [1, 1, 1]} : vector<8x32x8xf32> to vector<8x32x1xf32>
    %17 = arith.fptosi %16 : vector<8x32x1xf32> to vector<8x32x1xi32>
    %18 = vector.extract_strided_slice %1 {offsets = [0, 0, 5], sizes = [8, 32, 1], strides = [1, 1, 1]} : vector<8x32x8xf32> to vector<8x32x1xf32>
    %19 = vector.broadcast %17 : vector<8x32x1xi32> to vector<8x32x256xi32>
    %20 = arith.cmpi eq, %2, %19 : vector<8x32x256xi32>
    %cst_4 = arith.constant 0.000000e+00 : f32
    %21 = vector.broadcast %cst_4 : f32 to vector<8x32x1xf32>
    %22 = vector.shape_cast %18 : vector<8x32x1xf32> to vector<8x32x1xf32>
    %23 = vector.broadcast %22 : vector<8x32x1xf32> to vector<8x32x256xf32>
    %24 = vector.shape_cast %21 : vector<8x32x1xf32> to vector<8x32x1xf32>
    %25 = vector.broadcast %24 : vector<8x32x1xf32> to vector<8x32x256xf32>
    %26 = arith.select %20, %23, %25 : vector<8x32x256xi1>, vector<8x32x256xf32>
    %27 = arith.addf %15, %26 : vector<8x32x256xf32>
    %28 = vector.extract_strided_slice %1 {offsets = [0, 0, 2], sizes = [8, 32, 1], strides = [1, 1, 1]} : vector<8x32x8xf32> to vector<8x32x1xf32>
    %29 = arith.fptosi %28 : vector<8x32x1xf32> to vector<8x32x1xi32>
    %30 = vector.extract_strided_slice %1 {offsets = [0, 0, 6], sizes = [8, 32, 1], strides = [1, 1, 1]} : vector<8x32x8xf32> to vector<8x32x1xf32>
    %31 = vector.broadcast %29 : vector<8x32x1xi32> to vector<8x32x256xi32>
    %32 = arith.cmpi eq, %2, %31 : vector<8x32x256xi32>
    %cst_5 = arith.constant 0.000000e+00 : f32
    %33 = vector.broadcast %cst_5 : f32 to vector<8x32x1xf32>
    %34 = vector.shape_cast %30 : vector<8x32x1xf32> to vector<8x32x1xf32>
    %35 = vector.broadcast %34 : vector<8x32x1xf32> to vector<8x32x256xf32>
    %36 = vector.shape_cast %33 : vector<8x32x1xf32> to vector<8x32x1xf32>
    %37 = vector.broadcast %36 : vector<8x32x1xf32> to vector<8x32x256xf32>
    %38 = arith.select %32, %35, %37 : vector<8x32x256xi1>, vector<8x32x256xf32>
    %39 = arith.addf %27, %38 : vector<8x32x256xf32>
    %40 = vector.extract_strided_slice %1 {offsets = [0, 0, 3], sizes = [8, 32, 1], strides = [1, 1, 1]} : vector<8x32x8xf32> to vector<8x32x1xf32>
    %41 = arith.fptosi %40 : vector<8x32x1xf32> to vector<8x32x1xi32>
    %42 = vector.extract_strided_slice %1 {offsets = [0, 0, 7], sizes = [8, 32, 1], strides = [1, 1, 1]} : vector<8x32x8xf32> to vector<8x32x1xf32>
    %43 = vector.broadcast %41 : vector<8x32x1xi32> to vector<8x32x256xi32>
    %44 = arith.cmpi eq, %2, %43 : vector<8x32x256xi32>
    %cst_6 = arith.constant 0.000000e+00 : f32
    %45 = vector.broadcast %cst_6 : f32 to vector<8x32x1xf32>
    %46 = vector.shape_cast %42 : vector<8x32x1xf32> to vector<8x32x1xf32>
    %47 = vector.broadcast %46 : vector<8x32x1xf32> to vector<8x32x256xf32>
    %48 = vector.shape_cast %45 : vector<8x32x1xf32> to vector<8x32x1xf32>
    %49 = vector.broadcast %48 : vector<8x32x1xf32> to vector<8x32x256xf32>
    %50 = arith.select %44, %47, %49 : vector<8x32x256xi1>, vector<8x32x256xf32>
    %51 = arith.addf %39, %50 : vector<8x32x256xf32>
    %c0_7 = arith.constant 0 : index
    %c0_8 = arith.constant 0 : index
    %c0_9 = arith.constant 0 : index
    %52 = vector.load %arg2[%c0_7, %c0_8, %c0_9] : memref<1x256x64xf32, #tpu.memory_space<vmem>>, vector<1x256x64xf32>
    %53 = vector.shape_cast %52 : vector<1x256x64xf32> to vector<256x64xf32>
    %54 = arith.truncf %53 : vector<256x64xf32> to vector<256x64xbf16>
    %55 = vector.shape_cast %51 : vector<8x32x256xf32> to vector<256x256xf32>
    %56 = arith.truncf %55 : vector<256x256xf32> to vector<256x256xbf16>
    %cst_10 = arith.constant dense<0.000000e+00> : vector<256x64xf32>
    %57 = tpu.matmul %56, %54, %cst_10 {dimension_numbers = #tpu.dot_dimension_numbers<[1], [0], [0], [1], [0, 0, 1, 1], [], []>} : vector<256x256xbf16>, vector<256x64xbf16>, vector<256x64xf32> -> vector<256x64xf32>
    %58 = vector.shape_cast %57 : vector<256x64xf32> to vector<8x32x64xf32>
    %59 = vector.extract_strided_slice %58 {offsets = [0, 0, 0], sizes = [8, 16, 32], strides = [1, 1, 1]} : vector<8x32x64xf32> to vector<8x16x32xf32>
    %c0_11 = arith.constant 0 : index
    %c0_12 = arith.constant 0 : index
    %c0_13 = arith.constant 0 : index
    %c0_14 = arith.constant 0 : index
    %c0_15 = arith.constant 0 : index
    %60 = vector.load %arg3[%c0_11, %c0_12, %c0_13, %c0_14, %c0_15] : memref<1x2x8x32x32xbf16, #tpu.memory_space<vmem>>, vector<1x1x8x32x32xbf16>
    %61 = vector.shape_cast %60 : vector<1x1x8x32x32xbf16> to vector<8x32x32xbf16>
    %c0_16 = arith.constant 0 : index
    %c0_17 = arith.constant 0 : index
    %c0_18 = arith.constant 0 : index
    %c0_19 = arith.constant 0 : index
    %c0_20 = arith.constant 0 : index
    %62 = vector.load %arg4[%c0_16, %c0_17, %c0_18, %c0_19, %c0_20] : memref<1x2x8x32x16xbf16, #tpu.memory_space<vmem>>, vector<1x1x8x32x16xbf16>
    %63 = vector.shape_cast %62 : vector<1x1x8x32x16xbf16> to vector<8x32x16xbf16>
    %64 = arith.truncf %59 : vector<8x16x32xf32> to vector<8x16x32xbf16>
    "tpu.trace_start"() <{level = 10 : i32, message = "npc,ncd->npd"}> : () -> ()
    %cst_21 = arith.constant dense<0.000000e+00> : vector<8x16x32xf32>
    %65 = tpu.matmul %64, %61, %cst_21 {dimension_numbers = #tpu.dot_dimension_numbers<[2], [1], [1], [2], [0, 0, 0, 1, 1, 2], [0], [0]>} : vector<8x16x32xbf16>, vector<8x32x32xbf16>, vector<8x16x32xf32> -> vector<8x16x32xf32>
    "tpu.trace_stop"() : () -> ()
    %cst_22 = arith.constant dense<0.000000e+00> : vector<8x16xf32>
    %66 = vector.multi_reduction <add>, %65, %cst_22 [2] : vector<8x16x32xf32> to vector<8x16xf32>
    %67 = vector.shape_cast %66 : vector<8x16xf32> to vector<8x16x1xf32>
    %cst_23 = arith.constant 3.200000e+01 : f32
    %68 = vector.broadcast %cst_23 : f32 to vector<8x16x1xf32>
    %69 = arith.divf %67, %68 : vector<8x16x1xf32>
    %cst_24 = arith.constant dense<0.000000e+00> : vector<8x1xf32>
    %70 = vector.multi_reduction <add>, %69, %cst_24 [1] : vector<8x16x1xf32> to vector<8x1xf32>
    %71 = vector.shape_cast %70 : vector<8x1xf32> to vector<8x1x1xf32>
    %cst_25 = arith.constant 1.600000e+01 : f32
    %72 = vector.broadcast %cst_25 : f32 to vector<8x1x1xf32>
    %73 = arith.divf %71, %72 : vector<8x1x1xf32>
    %74 = vector.broadcast %73 : vector<8x1x1xf32> to vector<8x16x32xf32>
    %75 = arith.subf %65, %74 : vector<8x16x32xf32>
    %76 = arith.mulf %75, %75 : vector<8x16x32xf32>
    %cst_26 = arith.constant dense<0.000000e+00> : vector<8x16xf32>
    %77 = vector.multi_reduction <add>, %76, %cst_26 [2] : vector<8x16x32xf32> to vector<8x16xf32>
    %78 = vector.shape_cast %77 : vector<8x16xf32> to vector<8x16x1xf32>
    %cst_27 = arith.constant 3.200000e+01 : f32
    %79 = vector.broadcast %cst_27 : f32 to vector<8x16x1xf32>
    %80 = arith.divf %78, %79 : vector<8x16x1xf32>
    %cst_28 = arith.constant dense<0.000000e+00> : vector<8x1xf32>
    %81 = vector.multi_reduction <add>, %80, %cst_28 [1] : vector<8x16x1xf32> to vector<8x1xf32>
    %82 = vector.shape_cast %81 : vector<8x1xf32> to vector<8x1x1xf32>
    %cst_29 = arith.constant 1.600000e+01 : f32
    %83 = vector.broadcast %cst_29 : f32 to vector<8x1x1xf32>
    %84 = arith.divf %82, %83 : vector<8x1x1xf32>
    %85 = vector.broadcast %73 : vector<8x1x1xf32> to vector<8x16x32xf32>
    %86 = arith.subf %65, %85 : vector<8x16x32xf32>
    %cst_30 = arith.constant 9.99999974E-6 : f32
    %87 = vector.broadcast %cst_30 : f32 to vector<8x1x1xf32>
    %88 = arith.addf %84, %87 : vector<8x1x1xf32>
    %89 = math.rsqrt %88 : vector<8x1x1xf32>
    %90 = vector.broadcast %89 : vector<8x1x1xf32> to vector<8x16x32xf32>
    %91 = arith.mulf %86, %90 : vector<8x16x32xf32>
    %cst_31 = arith.constant 0.000000e+00 : f32
    %92 = vector.broadcast %cst_31 : f32 to vector<8x16x32xf32>
    %93 = arith.maximumf %91, %92 : vector<8x16x32xf32>
    %94 = arith.truncf %93 : vector<8x16x32xf32> to vector<8x16x32xbf16>
    "tpu.trace_start"() <{level = 10 : i32, message = "nop,npc->noc"}> : () -> ()
    %cst_32 = arith.constant dense<0.000000e+00> : vector<8x32x32xf32>
    %95 = tpu.matmul %63, %94, %cst_32 {dimension_numbers = #tpu.dot_dimension_numbers<[2], [1], [1], [2], [0, 0, 0, 1, 1, 2], [0], [0]>} : vector<8x32x16xbf16>, vector<8x16x32xbf16>, vector<8x32x32xf32> -> vector<8x32x32xf32>
    "tpu.trace_stop"() : () -> ()
    %cst_33 = arith.constant dense<0.000000e+00> : vector<8x32xf32>
    %96 = vector.multi_reduction <add>, %95, %cst_33 [2] : vector<8x32x32xf32> to vector<8x32xf32>
    %97 = vector.shape_cast %96 : vector<8x32xf32> to vector<8x32x1xf32>
    %cst_34 = arith.constant 3.200000e+01 : f32
    %98 = vector.broadcast %cst_34 : f32 to vector<8x32x1xf32>
    %99 = arith.divf %97, %98 : vector<8x32x1xf32>
    %cst_35 = arith.constant dense<0.000000e+00> : vector<8x1xf32>
    %100 = vector.multi_reduction <add>, %99, %cst_35 [1] : vector<8x32x1xf32> to vector<8x1xf32>
    %101 = vector.shape_cast %100 : vector<8x1xf32> to vector<8x1x1xf32>
    %cst_36 = arith.constant 3.200000e+01 : f32
    %102 = vector.broadcast %cst_36 : f32 to vector<8x1x1xf32>
    %103 = arith.divf %101, %102 : vector<8x1x1xf32>
    %104 = vector.broadcast %103 : vector<8x1x1xf32> to vector<8x32x32xf32>
    %105 = arith.subf %95, %104 : vector<8x32x32xf32>
    %106 = arith.mulf %105, %105 : vector<8x32x32xf32>
    %cst_37 = arith.constant dense<0.000000e+00> : vector<8x32xf32>
    %107 = vector.multi_reduction <add>, %106, %cst_37 [2] : vector<8x32x32xf32> to vector<8x32xf32>
    %108 = vector.shape_cast %107 : vector<8x32xf32> to vector<8x32x1xf32>
    %cst_38 = arith.constant 3.200000e+01 : f32
    %109 = vector.broadcast %cst_38 : f32 to vector<8x32x1xf32>
    %110 = arith.divf %108, %109 : vector<8x32x1xf32>
    %cst_39 = arith.constant dense<0.000000e+00> : vector<8x1xf32>
    %111 = vector.multi_reduction <add>, %110, %cst_39 [1] : vector<8x32x1xf32> to vector<8x1xf32>
    %112 = vector.shape_cast %111 : vector<8x1xf32> to vector<8x1x1xf32>
    %cst_40 = arith.constant 3.200000e+01 : f32
    %113 = vector.broadcast %cst_40 : f32 to vector<8x1x1xf32>
    %114 = arith.divf %112, %113 : vector<8x1x1xf32>
    %115 = vector.broadcast %103 : vector<8x1x1xf32> to vector<8x32x32xf32>
    %116 = arith.subf %95, %115 : vector<8x32x32xf32>
    %cst_41 = arith.constant 9.99999974E-6 : f32
    %117 = vector.broadcast %cst_41 : f32 to vector<8x1x1xf32>
    %118 = arith.addf %114, %117 : vector<8x1x1xf32>
    %119 = math.rsqrt %118 : vector<8x1x1xf32>
    %120 = vector.broadcast %119 : vector<8x1x1xf32> to vector<8x32x32xf32>
    %121 = arith.mulf %116, %120 : vector<8x32x32xf32>
    %cst_42 = arith.constant 0.000000e+00 : f32
    %122 = vector.broadcast %cst_42 : f32 to vector<8x32x32xf32>
    %123 = arith.maximumf %121, %122 : vector<8x32x32xf32>
    %124 = vector.extract_strided_slice %123 {offsets = [0, 0, 0], sizes = [8, 1, 32], strides = [1, 1, 1]} : vector<8x32x32xf32> to vector<8x1x32xf32>
    %125 = vector.shape_cast %124 : vector<8x1x32xf32> to vector<8x32xf32>
    %c0_43 = arith.constant 0 : index
    %c0_44 = arith.constant 0 : index
    %126 = vector.load %arg11[%c0_43, %c0_44] : memref<8x2048xf32, #tpu.memory_space<vmem>>, vector<8x32xf32>
    tpu.vector_store %arg11[%c0_43, %c0_44], %125 {strides = array<i32>} : memref<8x2048xf32, #tpu.memory_space<vmem>>, vector<8x32xf32>,
    %127 = vector.extract_strided_slice %123 {offsets = [0, 1, 0], sizes = [8, 1, 32], strides = [1, 1, 1]} : vector<8x32x32xf32> to vector<8x1x32xf32>
    %128 = vector.shape_cast %127 : vector<8x1x32xf32> to vector<8x32xf32>
    %c0_45 = arith.constant 0 : index
    %c32 = arith.constant 32 : index
    %129 = vector.load %arg11[%c0_45, %c32] : memref<8x2048xf32, #tpu.memory_space<vmem>>, vector<8x32xf32>
    tpu.vector_store %arg11[%c0_45, %c32], %128 {strides = array<i32>} : memref<8x2048xf32, #tpu.memory_space<vmem>>, vector<8x32xf32>,
    %130 = vector.extract_strided_slice %123 {offsets = [0, 2, 0], sizes = [8, 1, 32], strides = [1, 1, 1]} : vector<8x32x32xf32> to vector<8x1x32xf32>
    %131 = vector.shape_cast %130 : vector<8x1x32xf32> to vector<8x32xf32>
    %c0_46 = arith.constant 0 : index
    %c64 = arith.constant 64 : index
    %132 = vector.load %arg11[%c0_46, %c64] : memref<8x2048xf32, #tpu.memory_space<vmem>>, vector<8x32xf32>
    tpu.vector_store %arg11[%c0_46, %c64], %131 {strides = array<i32>} : memref<8x2048xf32, #tpu.memory_space<vmem>>, vector<8x32xf32>,
    %133 = vector.extract_strided_slice %123 {offsets = [0, 3, 0], sizes = [8, 1, 32], strides = [1, 1, 1]} : vector<8x32x32xf32> to vector<8x1x32xf32>
    %134 = vector.shape_cast %133 : vector<8x1x32xf32> to vector<8x32xf32>
    %c0_47 = arith.constant 0 : index
    %c96 = arith.constant 96 : index
    %135 = vector.load %arg11[%c0_47, %c96] : memref<8x2048xf32, #tpu.memory_space<vmem>>, vector<8x32xf32>
    tpu.vector_store %arg11[%c0_47, %c96], %134 {strides = array<i32>} : memref<8x2048xf32, #tpu.memory_space<vmem>>, vector<8x32xf32>,
    %136 = vector.extract_strided_slice %123 {offsets = [0, 4, 0], sizes = [8, 1, 32], strides = [1, 1, 1]} : vector<8x32x32xf32> to vector<8x1x32xf32>
    %137 = vector.shape_cast %136 : vector<8x1x32xf32> to vector<8x32xf32>
    %c0_48 = arith.constant 0 : index
    %c128 = arith.constant 128 : index
    %138 = vector.load %arg11[%c0_48, %c128] : memref<8x2048xf32, #tpu.memory_space<vmem>>, vector<8x32xf32>
    tpu.vector_store %arg11[%c0_48, %c128], %137 {strides = array<i32>} : memref<8x2048xf32, #tpu.memory_space<vmem>>, vector<8x32xf32>,
    %139 = vector.extract_strided_slice %123 {offsets = [0, 5, 0], sizes = [8, 1, 32], strides = [1, 1, 1]} : vector<8x32x32xf32> to vector<8x1x32xf32>
    %140 = vector.shape_cast %139 : vector<8x1x32xf32> to vector<8x32xf32>
    %c0_49 = arith.constant 0 : index
    %c160 = arith.constant 160 : index
    %141 = vector.load %arg11[%c0_49, %c160] : memref<8x2048xf32, #tpu.memory_space<vmem>>, vector<8x32xf32>
    tpu.vector_store %arg11[%c0_49, %c160], %140 {strides = array<i32>} : memref<8x2048xf32, #tpu.memory_space<vmem>>, vector<8x32xf32>,
    %142 = vector.extract_strided_slice %123 {offsets = [0, 6, 0], sizes = [8, 1, 32], strides = [1, 1, 1]} : vector<8x32x32xf32> to vector<8x1x32xf32>
    %143 = vector.shape_cast %142 : vector<8x1x32xf32> to vector<8x32xf32>
    %c0_50 = arith.constant 0 : index
    %c192 = arith.constant 192 : index
    %144 = vector.load %arg11[%c0_50, %c192] : memref<8x2048xf32, #tpu.memory_space<vmem>>, vector<8x32xf32>
    tpu.vector_store %arg11[%c0_50, %c192], %143 {strides = array<i32>} : memref<8x2048xf32, #tpu.memory_space<vmem>>, vector<8x32xf32>,
    %145 = vector.extract_strided_slice %123 {offsets = [0, 7, 0], sizes = [8, 1, 32], strides = [1, 1, 1]} : vector<8x32x32xf32> to vector<8x1x32xf32>
    %146 = vector.shape_cast %145 : vector<8x1x32xf32> to vector<8x32xf32>
    %c0_51 = arith.constant 0 : index
    %c224 = arith.constant 224 : index
    %147 = vector.load %arg11[%c0_51, %c224] : memref<8x2048xf32, #tpu.memory_space<vmem>>, vector<8x32xf32>
    tpu.vector_store %arg11[%c0_51, %c224], %146 {strides = array<i32>} : memref<8x2048xf32, #tpu.memory_space<vmem>>, vector<8x32xf32>,
    %148 = vector.extract_strided_slice %123 {offsets = [0, 8, 0], sizes = [8, 1, 32], strides = [1, 1, 1]} : vector<8x32x32xf32> to vector<8x1x32xf32>
    %149 = vector.shape_cast %148 : vector<8x1x32xf32> to vector<8x32xf32>
    %c0_52 = arith.constant 0 : index
    %c256 = arith.constant 256 : index
    %150 = vector.load %arg11[%c0_52, %c256] : memref<8x2048xf32, #tpu.memory_space<vmem>>, vector<8x32xf32>
    tpu.vector_store %arg11[%c0_52, %c256], %149 {strides = array<i32>} : memref<8x2048xf32, #tpu.memory_space<vmem>>, vector<8x32xf32>,
    %151 = vector.extract_strided_slice %123 {offsets = [0, 9, 0], sizes = [8, 1, 32], strides = [1, 1, 1]} : vector<8x32x32xf32> to vector<8x1x32xf32>
    %152 = vector.shape_cast %151 : vector<8x1x32xf32> to vector<8x32xf32>
    %c0_53 = arith.constant 0 : index
    %c288 = arith.constant 288 : index
    %153 = vector.load %arg11[%c0_53, %c288] : memref<8x2048xf32, #tpu.memory_space<vmem>>, vector<8x32xf32>
    tpu.vector_store %arg11[%c0_53, %c288], %152 {strides = array<i32>} : memref<8x2048xf32, #tpu.memory_space<vmem>>, vector<8x32xf32>,
    %154 = vector.extract_strided_slice %123 {offsets = [0, 10, 0], sizes = [8, 1, 32], strides = [1, 1, 1]} : vector<8x32x32xf32> to vector<8x1x32xf32>
    %155 = vector.shape_cast %154 : vector<8x1x32xf32> to vector<8x32xf32>
    %c0_54 = arith.constant 0 : index
    %c320 = arith.constant 320 : index
    %156 = vector.load %arg11[%c0_54, %c320] : memref<8x2048xf32, #tpu.memory_space<vmem>>, vector<8x32xf32>
    tpu.vector_store %arg11[%c0_54, %c320], %155 {strides = array<i32>} : memref<8x2048xf32, #tpu.memory_space<vmem>>, vector<8x32xf32>,
    %157 = vector.extract_strided_slice %123 {offsets = [0, 11, 0], sizes = [8, 1, 32], strides = [1, 1, 1]} : vector<8x32x32xf32> to vector<8x1x32xf32>
    %158 = vector.shape_cast %157 : vector<8x1x32xf32> to vector<8x32xf32>
    %c0_55 = arith.constant 0 : index
    %c352 = arith.constant 352 : index
    %159 = vector.load %arg11[%c0_55, %c352] : memref<8x2048xf32, #tpu.memory_space<vmem>>, vector<8x32xf32>
    tpu.vector_store %arg11[%c0_55, %c352], %158 {strides = array<i32>} : memref<8x2048xf32, #tpu.memory_space<vmem>>, vector<8x32xf32>,
    %160 = vector.extract_strided_slice %123 {offsets = [0, 12, 0], sizes = [8, 1, 32], strides = [1, 1, 1]} : vector<8x32x32xf32> to vector<8x1x32xf32>
    %161 = vector.shape_cast %160 : vector<8x1x32xf32> to vector<8x32xf32>
    %c0_56 = arith.constant 0 : index
    %c384 = arith.constant 384 : index
    %162 = vector.load %arg11[%c0_56, %c384] : memref<8x2048xf32, #tpu.memory_space<vmem>>, vector<8x32xf32>
    tpu.vector_store %arg11[%c0_56, %c384], %161 {strides = array<i32>} : memref<8x2048xf32, #tpu.memory_space<vmem>>, vector<8x32xf32>,
    %163 = vector.extract_strided_slice %123 {offsets = [0, 13, 0], sizes = [8, 1, 32], strides = [1, 1, 1]} : vector<8x32x32xf32> to vector<8x1x32xf32>
    %164 = vector.shape_cast %163 : vector<8x1x32xf32> to vector<8x32xf32>
    %c0_57 = arith.constant 0 : index
    %c416 = arith.constant 416 : index
    %165 = vector.load %arg11[%c0_57, %c416] : memref<8x2048xf32, #tpu.memory_space<vmem>>, vector<8x32xf32>
    tpu.vector_store %arg11[%c0_57, %c416], %164 {strides = array<i32>} : memref<8x2048xf32, #tpu.memory_space<vmem>>, vector<8x32xf32>,
    %166 = vector.extract_strided_slice %123 {offsets = [0, 14, 0], sizes = [8, 1, 32], strides = [1, 1, 1]} : vector<8x32x32xf32> to vector<8x1x32xf32>
    %167 = vector.shape_cast %166 : vector<8x1x32xf32> to vector<8x32xf32>
    %c0_58 = arith.constant 0 : index
    %c448 = arith.constant 448 : index
    %168 = vector.load %arg11[%c0_58, %c448] : memref<8x2048xf32, #tpu.memory_space<vmem>>, vector<8x32xf32>
    tpu.vector_store %arg11[%c0_58, %c448], %167 {strides = array<i32>} : memref<8x2048xf32, #tpu.memory_space<vmem>>, vector<8x32xf32>,
    %169 = vector.extract_strided_slice %123 {offsets = [0, 15, 0], sizes = [8, 1, 32], strides = [1, 1, 1]} : vector<8x32x32xf32> to vector<8x1x32xf32>
    %170 = vector.shape_cast %169 : vector<8x1x32xf32> to vector<8x32xf32>
    %c0_59 = arith.constant 0 : index
    %c480 = arith.constant 480 : index
    %171 = vector.load %arg11[%c0_59, %c480] : memref<8x2048xf32, #tpu.memory_space<vmem>>, vector<8x32xf32>
    tpu.vector_store %arg11[%c0_59, %c480], %170 {strides = array<i32>} : memref<8x2048xf32, #tpu.memory_space<vmem>>, vector<8x32xf32>,
    %172 = vector.extract_strided_slice %123 {offsets = [0, 16, 0], sizes = [8, 1, 32], strides = [1, 1, 1]} : vector<8x32x32xf32> to vector<8x1x32xf32>
    %173 = vector.shape_cast %172 : vector<8x1x32xf32> to vector<8x32xf32>
    %c0_60 = arith.constant 0 : index
    %c512 = arith.constant 512 : index
    %174 = vector.load %arg11[%c0_60, %c512] : memref<8x2048xf32, #tpu.memory_space<vmem>>, vector<8x32xf32>
    tpu.vector_store %arg11[%c0_60, %c512], %173 {strides = array<i32>} : memref<8x2048xf32, #tpu.memory_space<vmem>>, vector<8x32xf32>,
    %175 = vector.extract_strided_slice %123 {offsets = [0, 17, 0], sizes = [8, 1, 32], strides = [1, 1, 1]} : vector<8x32x32xf32> to vector<8x1x32xf32>
    %176 = vector.shape_cast %175 : vector<8x1x32xf32> to vector<8x32xf32>
    %c0_61 = arith.constant 0 : index
    %c544 = arith.constant 544 : index
    %177 = vector.load %arg11[%c0_61, %c544] : memref<8x2048xf32, #tpu.memory_space<vmem>>, vector<8x32xf32>
    tpu.vector_store %arg11[%c0_61, %c544], %176 {strides = array<i32>} : memref<8x2048xf32, #tpu.memory_space<vmem>>, vector<8x32xf32>,
    %178 = vector.extract_strided_slice %123 {offsets = [0, 18, 0], sizes = [8, 1, 32], strides = [1, 1, 1]} : vector<8x32x32xf32> to vector<8x1x32xf32>
    %179 = vector.shape_cast %178 : vector<8x1x32xf32> to vector<8x32xf32>
    %c0_62 = arith.constant 0 : index
    %c576 = arith.constant 576 : index
    %180 = vector.load %arg11[%c0_62, %c576] : memref<8x2048xf32, #tpu.memory_space<vmem>>, vector<8x32xf32>
    tpu.vector_store %arg11[%c0_62, %c576], %179 {strides = array<i32>} : memref<8x2048xf32, #tpu.memory_space<vmem>>, vector<8x32xf32>,
    %181 = vector.extract_strided_slice %123 {offsets = [0, 19, 0], sizes = [8, 1, 32], strides = [1, 1, 1]} : vector<8x32x32xf32> to vector<8x1x32xf32>
    %182 = vector.shape_cast %181 : vector<8x1x32xf32> to vector<8x32xf32>
    %c0_63 = arith.constant 0 : index
    %c608 = arith.constant 608 : index
    %183 = vector.load %arg11[%c0_63, %c608] : memref<8x2048xf32, #tpu.memory_space<vmem>>, vector<8x32xf32>
    tpu.vector_store %arg11[%c0_63, %c608], %182 {strides = array<i32>} : memref<8x2048xf32, #tpu.memory_space<vmem>>, vector<8x32xf32>,
    %184 = vector.extract_strided_slice %123 {offsets = [0, 20, 0], sizes = [8, 1, 32], strides = [1, 1, 1]} : vector<8x32x32xf32> to vector<8x1x32xf32>
    %185 = vector.shape_cast %184 : vector<8x1x32xf32> to vector<8x32xf32>
    %c0_64 = arith.constant 0 : index
    %c640 = arith.constant 640 : index
    %186 = vector.load %arg11[%c0_64, %c640] : memref<8x2048xf32, #tpu.memory_space<vmem>>, vector<8x32xf32>
    tpu.vector_store %arg11[%c0_64, %c640], %185 {strides = array<i32>} : memref<8x2048xf32, #tpu.memory_space<vmem>>, vector<8x32xf32>,
    %187 = vector.extract_strided_slice %123 {offsets = [0, 21, 0], sizes = [8, 1, 32], strides = [1, 1, 1]} : vector<8x32x32xf32> to vector<8x1x32xf32>
    %188 = vector.shape_cast %187 : vector<8x1x32xf32> to vector<8x32xf32>
    %c0_65 = arith.constant 0 : index
    %c672 = arith.constant 672 : index
    %189 = vector.load %arg11[%c0_65, %c672] : memref<8x2048xf32, #tpu.memory_space<vmem>>, vector<8x32xf32>
    tpu.vector_store %arg11[%c0_65, %c672], %188 {strides = array<i32>} : memref<8x2048xf32, #tpu.memory_space<vmem>>, vector<8x32xf32>,
    %190 = vector.extract_strided_slice %123 {offsets = [0, 22, 0], sizes = [8, 1, 32], strides = [1, 1, 1]} : vector<8x32x32xf32> to vector<8x1x32xf32>
    %191 = vector.shape_cast %190 : vector<8x1x32xf32> to vector<8x32xf32>
    %c0_66 = arith.constant 0 : index
    %c704 = arith.constant 704 : index
    %192 = vector.load %arg11[%c0_66, %c704] : memref<8x2048xf32, #tpu.memory_space<vmem>>, vector<8x32xf32>
    tpu.vector_store %arg11[%c0_66, %c704], %191 {strides = array<i32>} : memref<8x2048xf32, #tpu.memory_space<vmem>>, vector<8x32xf32>,
    %193 = vector.extract_strided_slice %123 {offsets = [0, 23, 0], sizes = [8, 1, 32], strides = [1, 1, 1]} : vector<8x32x32xf32> to vector<8x1x32xf32>
    %194 = vector.shape_cast %193 : vector<8x1x32xf32> to vector<8x32xf32>
    %c0_67 = arith.constant 0 : index
    %c736 = arith.constant 736 : index
    %195 = vector.load %arg11[%c0_67, %c736] : memref<8x2048xf32, #tpu.memory_space<vmem>>, vector<8x32xf32>
    tpu.vector_store %arg11[%c0_67, %c736], %194 {strides = array<i32>} : memref<8x2048xf32, #tpu.memory_space<vmem>>, vector<8x32xf32>,
    %196 = vector.extract_strided_slice %123 {offsets = [0, 24, 0], sizes = [8, 1, 32], strides = [1, 1, 1]} : vector<8x32x32xf32> to vector<8x1x32xf32>
    %197 = vector.shape_cast %196 : vector<8x1x32xf32> to vector<8x32xf32>
    %c0_68 = arith.constant 0 : index
    %c768 = arith.constant 768 : index
    %198 = vector.load %arg11[%c0_68, %c768] : memref<8x2048xf32, #tpu.memory_space<vmem>>, vector<8x32xf32>
    tpu.vector_store %arg11[%c0_68, %c768], %197 {strides = array<i32>} : memref<8x2048xf32, #tpu.memory_space<vmem>>, vector<8x32xf32>,
    %199 = vector.extract_strided_slice %123 {offsets = [0, 25, 0], sizes = [8, 1, 32], strides = [1, 1, 1]} : vector<8x32x32xf32> to vector<8x1x32xf32>
    %200 = vector.shape_cast %199 : vector<8x1x32xf32> to vector<8x32xf32>
    %c0_69 = arith.constant 0 : index
    %c800 = arith.constant 800 : index
    %201 = vector.load %arg11[%c0_69, %c800] : memref<8x2048xf32, #tpu.memory_space<vmem>>, vector<8x32xf32>
    tpu.vector_store %arg11[%c0_69, %c800], %200 {strides = array<i32>} : memref<8x2048xf32, #tpu.memory_space<vmem>>, vector<8x32xf32>,
    %202 = vector.extract_strided_slice %123 {offsets = [0, 26, 0], sizes = [8, 1, 32], strides = [1, 1, 1]} : vector<8x32x32xf32> to vector<8x1x32xf32>
    %203 = vector.shape_cast %202 : vector<8x1x32xf32> to vector<8x32xf32>
    %c0_70 = arith.constant 0 : index
    %c832 = arith.constant 832 : index
    %204 = vector.load %arg11[%c0_70, %c832] : memref<8x2048xf32, #tpu.memory_space<vmem>>, vector<8x32xf32>
    tpu.vector_store %arg11[%c0_70, %c832], %203 {strides = array<i32>} : memref<8x2048xf32, #tpu.memory_space<vmem>>, vector<8x32xf32>,
    %205 = vector.extract_strided_slice %123 {offsets = [0, 27, 0], sizes = [8, 1, 32], strides = [1, 1, 1]} : vector<8x32x32xf32> to vector<8x1x32xf32>
    %206 = vector.shape_cast %205 : vector<8x1x32xf32> to vector<8x32xf32>
    %c0_71 = arith.constant 0 : index
    %c864 = arith.constant 864 : index
    %207 = vector.load %arg11[%c0_71, %c864] : memref<8x2048xf32, #tpu.memory_space<vmem>>, vector<8x32xf32>
    tpu.vector_store %arg11[%c0_71, %c864], %206 {strides = array<i32>} : memref<8x2048xf32, #tpu.memory_space<vmem>>, vector<8x32xf32>,
    %208 = vector.extract_strided_slice %123 {offsets = [0, 28, 0], sizes = [8, 1, 32], strides = [1, 1, 1]} : vector<8x32x32xf32> to vector<8x1x32xf32>
    %209 = vector.shape_cast %208 : vector<8x1x32xf32> to vector<8x32xf32>
    %c0_72 = arith.constant 0 : index
    %c896 = arith.constant 896 : index
    %210 = vector.load %arg11[%c0_72, %c896] : memref<8x2048xf32, #tpu.memory_space<vmem>>, vector<8x32xf32>
    tpu.vector_store %arg11[%c0_72, %c896], %209 {strides = array<i32>} : memref<8x2048xf32, #tpu.memory_space<vmem>>, vector<8x32xf32>,
    %211 = vector.extract_strided_slice %123 {offsets = [0, 29, 0], sizes = [8, 1, 32], strides = [1, 1, 1]} : vector<8x32x32xf32> to vector<8x1x32xf32>
    %212 = vector.shape_cast %211 : vector<8x1x32xf32> to vector<8x32xf32>
    %c0_73 = arith.constant 0 : index
    %c928 = arith.constant 928 : index
    %213 = vector.load %arg11[%c0_73, %c928] : memref<8x2048xf32, #tpu.memory_space<vmem>>, vector<8x32xf32>
    tpu.vector_store %arg11[%c0_73, %c928], %212 {strides = array<i32>} : memref<8x2048xf32, #tpu.memory_space<vmem>>, vector<8x32xf32>,
    %214 = vector.extract_strided_slice %123 {offsets = [0, 30, 0], sizes = [8, 1, 32], strides = [1, 1, 1]} : vector<8x32x32xf32> to vector<8x1x32xf32>
    %215 = vector.shape_cast %214 : vector<8x1x32xf32> to vector<8x32xf32>
    %c0_74 = arith.constant 0 : index
    %c960 = arith.constant 960 : index
    %216 = vector.load %arg11[%c0_74, %c960] : memref<8x2048xf32, #tpu.memory_space<vmem>>, vector<8x32xf32>
    tpu.vector_store %arg11[%c0_74, %c960], %215 {strides = array<i32>} : memref<8x2048xf32, #tpu.memory_space<vmem>>, vector<8x32xf32>,
    %217 = vector.extract_strided_slice %123 {offsets = [0, 31, 0], sizes = [8, 1, 32], strides = [1, 1, 1]} : vector<8x32x32xf32> to vector<8x1x32xf32>
    %218 = vector.shape_cast %217 : vector<8x1x32xf32> to vector<8x32xf32>
    %c0_75 = arith.constant 0 : index
    %c992 = arith.constant 992 : index
    %219 = vector.load %arg11[%c0_75, %c992] : memref<8x2048xf32, #tpu.memory_space<vmem>>, vector<8x32xf32>
    tpu.vector_store %arg11[%c0_75, %c992], %218 {strides = array<i32>} : memref<8x2048xf32, #tpu.memory_space<vmem>>, vector<8x32xf32>,
    %220 = vector.extract_strided_slice %58 {offsets = [0, 16, 32], sizes = [8, 16, 32], strides = [1, 1, 1]} : vector<8x32x64xf32> to vector<8x16x32xf32>
    %c0_76 = arith.constant 0 : index
    %c1 = arith.constant 1 : index
    %c0_77 = arith.constant 0 : index
    %c0_78 = arith.constant 0 : index
    %c0_79 = arith.constant 0 : index
    %221 = vector.load %arg3[%c0_76, %c1, %c0_77, %c0_78, %c0_79] : memref<1x2x8x32x32xbf16, #tpu.memory_space<vmem>>, vector<1x1x8x32x32xbf16>
    %222 = vector.shape_cast %221 : vector<1x1x8x32x32xbf16> to vector<8x32x32xbf16>
    %c0_80 = arith.constant 0 : index
    %c1_81 = arith.constant 1 : index
    %c0_82 = arith.constant 0 : index
    %c0_83 = arith.constant 0 : index
    %c0_84 = arith.constant 0 : index
    %223 = vector.load %arg4[%c0_80, %c1_81, %c0_82, %c0_83, %c0_84] : memref<1x2x8x32x16xbf16, #tpu.memory_space<vmem>>, vector<1x1x8x32x16xbf16>
    %224 = vector.shape_cast %223 : vector<1x1x8x32x16xbf16> to vector<8x32x16xbf16>
    %225 = arith.truncf %220 : vector<8x16x32xf32> to vector<8x16x32xbf16>
    "tpu.trace_start"() <{level = 10 : i32, message = "npc,ncd->npd"}> : () -> ()
    %cst_85 = arith.constant dense<0.000000e+00> : vector<8x16x32xf32>
    %226 = tpu.matmul %225, %222, %cst_85 {dimension_numbers = #tpu.dot_dimension_numbers<[2], [1], [1], [2], [0, 0, 0, 1, 1, 2], [0], [0]>} : vector<8x16x32xbf16>, vector<8x32x32xbf16>, vector<8x16x32xf32> -> vector<8x16x32xf32>
    "tpu.trace_stop"() : () -> ()
    %cst_86 = arith.constant dense<0.000000e+00> : vector<8x16xf32>
    %227 = vector.multi_reduction <add>, %226, %cst_86 [2] : vector<8x16x32xf32> to vector<8x16xf32>
    %228 = vector.shape_cast %227 : vector<8x16xf32> to vector<8x16x1xf32>
    %cst_87 = arith.constant 3.200000e+01 : f32
    %229 = vector.broadcast %cst_87 : f32 to vector<8x16x1xf32>
    %230 = arith.divf %228, %229 : vector<8x16x1xf32>
    %cst_88 = arith.constant dense<0.000000e+00> : vector<8x1xf32>
    %231 = vector.multi_reduction <add>, %230, %cst_88 [1] : vector<8x16x1xf32> to vector<8x1xf32>
    %232 = vector.shape_cast %231 : vector<8x1xf32> to vector<8x1x1xf32>
    %cst_89 = arith.constant 1.600000e+01 : f32
    %233 = vector.broadcast %cst_89 : f32 to vector<8x1x1xf32>
    %234 = arith.divf %232, %233 : vector<8x1x1xf32>
    %235 = vector.broadcast %234 : vector<8x1x1xf32> to vector<8x16x32xf32>
    %236 = arith.subf %226, %235 : vector<8x16x32xf32>
    %237 = arith.mulf %236, %236 : vector<8x16x32xf32>
    %cst_90 = arith.constant dense<0.000000e+00> : vector<8x16xf32>
    %238 = vector.multi_reduction <add>, %237, %cst_90 [2] : vector<8x16x32xf32> to vector<8x16xf32>
    %239 = vector.shape_cast %238 : vector<8x16xf32> to vector<8x16x1xf32>
    %cst_91 = arith.constant 3.200000e+01 : f32
    %240 = vector.broadcast %cst_91 : f32 to vector<8x16x1xf32>
    %241 = arith.divf %239, %240 : vector<8x16x1xf32>
    %cst_92 = arith.constant dense<0.000000e+00> : vector<8x1xf32>
    %242 = vector.multi_reduction <add>, %241, %cst_92 [1] : vector<8x16x1xf32> to vector<8x1xf32>
    %243 = vector.shape_cast %242 : vector<8x1xf32> to vector<8x1x1xf32>
    %cst_93 = arith.constant 1.600000e+01 : f32
    %244 = vector.broadcast %cst_93 : f32 to vector<8x1x1xf32>
    %245 = arith.divf %243, %244 : vector<8x1x1xf32>
    %246 = vector.broadcast %234 : vector<8x1x1xf32> to vector<8x16x32xf32>
    %247 = arith.subf %226, %246 : vector<8x16x32xf32>
    %cst_94 = arith.constant 9.99999974E-6 : f32
    %248 = vector.broadcast %cst_94 : f32 to vector<8x1x1xf32>
    %249 = arith.addf %245, %248 : vector<8x1x1xf32>
    %250 = math.rsqrt %249 : vector<8x1x1xf32>
    %251 = vector.broadcast %250 : vector<8x1x1xf32> to vector<8x16x32xf32>
    %252 = arith.mulf %247, %251 : vector<8x16x32xf32>
    %cst_95 = arith.constant 0.000000e+00 : f32
    %253 = vector.broadcast %cst_95 : f32 to vector<8x16x32xf32>
    %254 = arith.maximumf %252, %253 : vector<8x16x32xf32>
    %255 = arith.truncf %254 : vector<8x16x32xf32> to vector<8x16x32xbf16>
    "tpu.trace_start"() <{level = 10 : i32, message = "nop,npc->noc"}> : () -> ()
    %cst_96 = arith.constant dense<0.000000e+00> : vector<8x32x32xf32>
    %256 = tpu.matmul %224, %255, %cst_96 {dimension_numbers = #tpu.dot_dimension_numbers<[2], [1], [1], [2], [0, 0, 0, 1, 1, 2], [0], [0]>} : vector<8x32x16xbf16>, vector<8x16x32xbf16>, vector<8x32x32xf32> -> vector<8x32x32xf32>
    "tpu.trace_stop"() : () -> ()
    %cst_97 = arith.constant dense<0.000000e+00> : vector<8x32xf32>
    %257 = vector.multi_reduction <add>, %256, %cst_97 [2] : vector<8x32x32xf32> to vector<8x32xf32>
    %258 = vector.shape_cast %257 : vector<8x32xf32> to vector<8x32x1xf32>
    %cst_98 = arith.constant 3.200000e+01 : f32
    %259 = vector.broadcast %cst_98 : f32 to vector<8x32x1xf32>
    %260 = arith.divf %258, %259 : vector<8x32x1xf32>
    %cst_99 = arith.constant dense<0.000000e+00> : vector<8x1xf32>
    %261 = vector.multi_reduction <add>, %260, %cst_99 [1] : vector<8x32x1xf32> to vector<8x1xf32>
    %262 = vector.shape_cast %261 : vector<8x1xf32> to vector<8x1x1xf32>
    %cst_100 = arith.constant 3.200000e+01 : f32
    %263 = vector.broadcast %cst_100 : f32 to vector<8x1x1xf32>
    %264 = arith.divf %262, %263 : vector<8x1x1xf32>
    %265 = vector.broadcast %264 : vector<8x1x1xf32> to vector<8x32x32xf32>
    %266 = arith.subf %256, %265 : vector<8x32x32xf32>
    %267 = arith.mulf %266, %266 : vector<8x32x32xf32>
    %cst_101 = arith.constant dense<0.000000e+00> : vector<8x32xf32>
    %268 = vector.multi_reduction <add>, %267, %cst_101 [2] : vector<8x32x32xf32> to vector<8x32xf32>
    %269 = vector.shape_cast %268 : vector<8x32xf32> to vector<8x32x1xf32>
    %cst_102 = arith.constant 3.200000e+01 : f32
    %270 = vector.broadcast %cst_102 : f32 to vector<8x32x1xf32>
    %271 = arith.divf %269, %270 : vector<8x32x1xf32>
    %cst_103 = arith.constant dense<0.000000e+00> : vector<8x1xf32>
    %272 = vector.multi_reduction <add>, %271, %cst_103 [1] : vector<8x32x1xf32> to vector<8x1xf32>
    %273 = vector.shape_cast %272 : vector<8x1xf32> to vector<8x1x1xf32>
    %cst_104 = arith.constant 3.200000e+01 : f32
    %274 = vector.broadcast %cst_104 : f32 to vector<8x1x1xf32>
    %275 = arith.divf %273, %274 : vector<8x1x1xf32>
    %276 = vector.broadcast %264 : vector<8x1x1xf32> to vector<8x32x32xf32>
    %277 = arith.subf %256, %276 : vector<8x32x32xf32>
    %cst_105 = arith.constant 9.99999974E-6 : f32
    %278 = vector.broadcast %cst_105 : f32 to vector<8x1x1xf32>
    %279 = arith.addf %275, %278 : vector<8x1x1xf32>
    %280 = math.rsqrt %279 : vector<8x1x1xf32>
    %281 = vector.broadcast %280 : vector<8x1x1xf32> to vector<8x32x32xf32>
    %282 = arith.mulf %277, %281 : vector<8x32x32xf32>
    %cst_106 = arith.constant 0.000000e+00 : f32
    %283 = vector.broadcast %cst_106 : f32 to vector<8x32x32xf32>
    %284 = arith.maximumf %282, %283 : vector<8x32x32xf32>
    %285 = vector.extract_strided_slice %284 {offsets = [0, 0, 0], sizes = [8, 1, 32], strides = [1, 1, 1]} : vector<8x32x32xf32> to vector<8x1x32xf32>
    %286 = vector.shape_cast %285 : vector<8x1x32xf32> to vector<8x32xf32>
    %c0_107 = arith.constant 0 : index
    %c1024 = arith.constant 1024 : index
    %287 = vector.load %arg11[%c0_107, %c1024] : memref<8x2048xf32, #tpu.memory_space<vmem>>, vector<8x32xf32>
    tpu.vector_store %arg11[%c0_107, %c1024], %286 {strides = array<i32>} : memref<8x2048xf32, #tpu.memory_space<vmem>>, vector<8x32xf32>,
    %288 = vector.extract_strided_slice %284 {offsets = [0, 1, 0], sizes = [8, 1, 32], strides = [1, 1, 1]} : vector<8x32x32xf32> to vector<8x1x32xf32>
    %289 = vector.shape_cast %288 : vector<8x1x32xf32> to vector<8x32xf32>
    %c0_108 = arith.constant 0 : index
    %c1056 = arith.constant 1056 : index
    %290 = vector.load %arg11[%c0_108, %c1056] : memref<8x2048xf32, #tpu.memory_space<vmem>>, vector<8x32xf32>
    tpu.vector_store %arg11[%c0_108, %c1056], %289 {strides = array<i32>} : memref<8x2048xf32, #tpu.memory_space<vmem>>, vector<8x32xf32>,
    %291 = vector.extract_strided_slice %284 {offsets = [0, 2, 0], sizes = [8, 1, 32], strides = [1, 1, 1]} : vector<8x32x32xf32> to vector<8x1x32xf32>
    %292 = vector.shape_cast %291 : vector<8x1x32xf32> to vector<8x32xf32>
    %c0_109 = arith.constant 0 : index
    %c1088 = arith.constant 1088 : index
    %293 = vector.load %arg11[%c0_109, %c1088] : memref<8x2048xf32, #tpu.memory_space<vmem>>, vector<8x32xf32>
    tpu.vector_store %arg11[%c0_109, %c1088], %292 {strides = array<i32>} : memref<8x2048xf32, #tpu.memory_space<vmem>>, vector<8x32xf32>,
    %294 = vector.extract_strided_slice %284 {offsets = [0, 3, 0], sizes = [8, 1, 32], strides = [1, 1, 1]} : vector<8x32x32xf32> to vector<8x1x32xf32>
    %295 = vector.shape_cast %294 : vector<8x1x32xf32> to vector<8x32xf32>
    %c0_110 = arith.constant 0 : index
    %c1120 = arith.constant 1120 : index
    %296 = vector.load %arg11[%c0_110, %c1120] : memref<8x2048xf32, #tpu.memory_space<vmem>>, vector<8x32xf32>
    tpu.vector_store %arg11[%c0_110, %c1120], %295 {strides = array<i32>} : memref<8x2048xf32, #tpu.memory_space<vmem>>, vector<8x32xf32>,
    %297 = vector.extract_strided_slice %284 {offsets = [0, 4, 0], sizes = [8, 1, 32], strides = [1, 1, 1]} : vector<8x32x32xf32> to vector<8x1x32xf32>
    %298 = vector.shape_cast %297 : vector<8x1x32xf32> to vector<8x32xf32>
    %c0_111 = arith.constant 0 : index
    %c1152 = arith.constant 1152 : index
    %299 = vector.load %arg11[%c0_111, %c1152] : memref<8x2048xf32, #tpu.memory_space<vmem>>, vector<8x32xf32>
    tpu.vector_store %arg11[%c0_111, %c1152], %298 {strides = array<i32>} : memref<8x2048xf32, #tpu.memory_space<vmem>>, vector<8x32xf32>,
    %300 = vector.extract_strided_slice %284 {offsets = [0, 5, 0], sizes = [8, 1, 32], strides = [1, 1, 1]} : vector<8x32x32xf32> to vector<8x1x32xf32>
    %301 = vector.shape_cast %300 : vector<8x1x32xf32> to vector<8x32xf32>
    %c0_112 = arith.constant 0 : index
    %c1184 = arith.constant 1184 : index
    %302 = vector.load %arg11[%c0_112, %c1184] : memref<8x2048xf32, #tpu.memory_space<vmem>>, vector<8x32xf32>
    tpu.vector_store %arg11[%c0_112, %c1184], %301 {strides = array<i32>} : memref<8x2048xf32, #tpu.memory_space<vmem>>, vector<8x32xf32>,
    %303 = vector.extract_strided_slice %284 {offsets = [0, 6, 0], sizes = [8, 1, 32], strides = [1, 1, 1]} : vector<8x32x32xf32> to vector<8x1x32xf32>
    %304 = vector.shape_cast %303 : vector<8x1x32xf32> to vector<8x32xf32>
    %c0_113 = arith.constant 0 : index
    %c1216 = arith.constant 1216 : index
    %305 = vector.load %arg11[%c0_113, %c1216] : memref<8x2048xf32, #tpu.memory_space<vmem>>, vector<8x32xf32>
    tpu.vector_store %arg11[%c0_113, %c1216], %304 {strides = array<i32>} : memref<8x2048xf32, #tpu.memory_space<vmem>>, vector<8x32xf32>,
    %306 = vector.extract_strided_slice %284 {offsets = [0, 7, 0], sizes = [8, 1, 32], strides = [1, 1, 1]} : vector<8x32x32xf32> to vector<8x1x32xf32>
    %307 = vector.shape_cast %306 : vector<8x1x32xf32> to vector<8x32xf32>
    %c0_114 = arith.constant 0 : index
    %c1248 = arith.constant 1248 : index
    %308 = vector.load %arg11[%c0_114, %c1248] : memref<8x2048xf32, #tpu.memory_space<vmem>>, vector<8x32xf32>
    tpu.vector_store %arg11[%c0_114, %c1248], %307 {strides = array<i32>} : memref<8x2048xf32, #tpu.memory_space<vmem>>, vector<8x32xf32>,
    %309 = vector.extract_strided_slice %284 {offsets = [0, 8, 0], sizes = [8, 1, 32], strides = [1, 1, 1]} : vector<8x32x32xf32> to vector<8x1x32xf32>
    %310 = vector.shape_cast %309 : vector<8x1x32xf32> to vector<8x32xf32>
    %c0_115 = arith.constant 0 : index
    %c1280 = arith.constant 1280 : index
    %311 = vector.load %arg11[%c0_115, %c1280] : memref<8x2048xf32, #tpu.memory_space<vmem>>, vector<8x32xf32>
    tpu.vector_store %arg11[%c0_115, %c1280], %310 {strides = array<i32>} : memref<8x2048xf32, #tpu.memory_space<vmem>>, vector<8x32xf32>,
    %312 = vector.extract_strided_slice %284 {offsets = [0, 9, 0], sizes = [8, 1, 32], strides = [1, 1, 1]} : vector<8x32x32xf32> to vector<8x1x32xf32>
    %313 = vector.shape_cast %312 : vector<8x1x32xf32> to vector<8x32xf32>
    %c0_116 = arith.constant 0 : index
    %c1312 = arith.constant 1312 : index
    %314 = vector.load %arg11[%c0_116, %c1312] : memref<8x2048xf32, #tpu.memory_space<vmem>>, vector<8x32xf32>
    tpu.vector_store %arg11[%c0_116, %c1312], %313 {strides = array<i32>} : memref<8x2048xf32, #tpu.memory_space<vmem>>, vector<8x32xf32>,
    %315 = vector.extract_strided_slice %284 {offsets = [0, 10, 0], sizes = [8, 1, 32], strides = [1, 1, 1]} : vector<8x32x32xf32> to vector<8x1x32xf32>
    %316 = vector.shape_cast %315 : vector<8x1x32xf32> to vector<8x32xf32>
    %c0_117 = arith.constant 0 : index
    %c1344 = arith.constant 1344 : index
    %317 = vector.load %arg11[%c0_117, %c1344] : memref<8x2048xf32, #tpu.memory_space<vmem>>, vector<8x32xf32>
    tpu.vector_store %arg11[%c0_117, %c1344], %316 {strides = array<i32>} : memref<8x2048xf32, #tpu.memory_space<vmem>>, vector<8x32xf32>,
    %318 = vector.extract_strided_slice %284 {offsets = [0, 11, 0], sizes = [8, 1, 32], strides = [1, 1, 1]} : vector<8x32x32xf32> to vector<8x1x32xf32>
    %319 = vector.shape_cast %318 : vector<8x1x32xf32> to vector<8x32xf32>
    %c0_118 = arith.constant 0 : index
    %c1376 = arith.constant 1376 : index
    %320 = vector.load %arg11[%c0_118, %c1376] : memref<8x2048xf32, #tpu.memory_space<vmem>>, vector<8x32xf32>
    tpu.vector_store %arg11[%c0_118, %c1376], %319 {strides = array<i32>} : memref<8x2048xf32, #tpu.memory_space<vmem>>, vector<8x32xf32>,
    %321 = vector.extract_strided_slice %284 {offsets = [0, 12, 0], sizes = [8, 1, 32], strides = [1, 1, 1]} : vector<8x32x32xf32> to vector<8x1x32xf32>
    %322 = vector.shape_cast %321 : vector<8x1x32xf32> to vector<8x32xf32>
    %c0_119 = arith.constant 0 : index
    %c1408 = arith.constant 1408 : index
    %323 = vector.load %arg11[%c0_119, %c1408] : memref<8x2048xf32, #tpu.memory_space<vmem>>, vector<8x32xf32>
    tpu.vector_store %arg11[%c0_119, %c1408], %322 {strides = array<i32>} : memref<8x2048xf32, #tpu.memory_space<vmem>>, vector<8x32xf32>,
    %324 = vector.extract_strided_slice %284 {offsets = [0, 13, 0], sizes = [8, 1, 32], strides = [1, 1, 1]} : vector<8x32x32xf32> to vector<8x1x32xf32>
    %325 = vector.shape_cast %324 : vector<8x1x32xf32> to vector<8x32xf32>
    %c0_120 = arith.constant 0 : index
    %c1440 = arith.constant 1440 : index
    %326 = vector.load %arg11[%c0_120, %c1440] : memref<8x2048xf32, #tpu.memory_space<vmem>>, vector<8x32xf32>
    tpu.vector_store %arg11[%c0_120, %c1440], %325 {strides = array<i32>} : memref<8x2048xf32, #tpu.memory_space<vmem>>, vector<8x32xf32>,
    %327 = vector.extract_strided_slice %284 {offsets = [0, 14, 0], sizes = [8, 1, 32], strides = [1, 1, 1]} : vector<8x32x32xf32> to vector<8x1x32xf32>
    %328 = vector.shape_cast %327 : vector<8x1x32xf32> to vector<8x32xf32>
    %c0_121 = arith.constant 0 : index
    %c1472 = arith.constant 1472 : index
    %329 = vector.load %arg11[%c0_121, %c1472] : memref<8x2048xf32, #tpu.memory_space<vmem>>, vector<8x32xf32>
    tpu.vector_store %arg11[%c0_121, %c1472], %328 {strides = array<i32>} : memref<8x2048xf32, #tpu.memory_space<vmem>>, vector<8x32xf32>,
    %330 = vector.extract_strided_slice %284 {offsets = [0, 15, 0], sizes = [8, 1, 32], strides = [1, 1, 1]} : vector<8x32x32xf32> to vector<8x1x32xf32>
    %331 = vector.shape_cast %330 : vector<8x1x32xf32> to vector<8x32xf32>
    %c0_122 = arith.constant 0 : index
    %c1504 = arith.constant 1504 : index
    %332 = vector.load %arg11[%c0_122, %c1504] : memref<8x2048xf32, #tpu.memory_space<vmem>>, vector<8x32xf32>
    tpu.vector_store %arg11[%c0_122, %c1504], %331 {strides = array<i32>} : memref<8x2048xf32, #tpu.memory_space<vmem>>, vector<8x32xf32>,
    %333 = vector.extract_strided_slice %284 {offsets = [0, 16, 0], sizes = [8, 1, 32], strides = [1, 1, 1]} : vector<8x32x32xf32> to vector<8x1x32xf32>
    %334 = vector.shape_cast %333 : vector<8x1x32xf32> to vector<8x32xf32>
    %c0_123 = arith.constant 0 : index
    %c1536 = arith.constant 1536 : index
    %335 = vector.load %arg11[%c0_123, %c1536] : memref<8x2048xf32, #tpu.memory_space<vmem>>, vector<8x32xf32>
    tpu.vector_store %arg11[%c0_123, %c1536], %334 {strides = array<i32>} : memref<8x2048xf32, #tpu.memory_space<vmem>>, vector<8x32xf32>,
    %336 = vector.extract_strided_slice %284 {offsets = [0, 17, 0], sizes = [8, 1, 32], strides = [1, 1, 1]} : vector<8x32x32xf32> to vector<8x1x32xf32>
    %337 = vector.shape_cast %336 : vector<8x1x32xf32> to vector<8x32xf32>
    %c0_124 = arith.constant 0 : index
    %c1568 = arith.constant 1568 : index
    %338 = vector.load %arg11[%c0_124, %c1568] : memref<8x2048xf32, #tpu.memory_space<vmem>>, vector<8x32xf32>
    tpu.vector_store %arg11[%c0_124, %c1568], %337 {strides = array<i32>} : memref<8x2048xf32, #tpu.memory_space<vmem>>, vector<8x32xf32>,
    %339 = vector.extract_strided_slice %284 {offsets = [0, 18, 0], sizes = [8, 1, 32], strides = [1, 1, 1]} : vector<8x32x32xf32> to vector<8x1x32xf32>
    %340 = vector.shape_cast %339 : vector<8x1x32xf32> to vector<8x32xf32>
    %c0_125 = arith.constant 0 : index
    %c1600 = arith.constant 1600 : index
    %341 = vector.load %arg11[%c0_125, %c1600] : memref<8x2048xf32, #tpu.memory_space<vmem>>, vector<8x32xf32>
    tpu.vector_store %arg11[%c0_125, %c1600], %340 {strides = array<i32>} : memref<8x2048xf32, #tpu.memory_space<vmem>>, vector<8x32xf32>,
    %342 = vector.extract_strided_slice %284 {offsets = [0, 19, 0], sizes = [8, 1, 32], strides = [1, 1, 1]} : vector<8x32x32xf32> to vector<8x1x32xf32>
    %343 = vector.shape_cast %342 : vector<8x1x32xf32> to vector<8x32xf32>
    %c0_126 = arith.constant 0 : index
    %c1632 = arith.constant 1632 : index
    %344 = vector.load %arg11[%c0_126, %c1632] : memref<8x2048xf32, #tpu.memory_space<vmem>>, vector<8x32xf32>
    tpu.vector_store %arg11[%c0_126, %c1632], %343 {strides = array<i32>} : memref<8x2048xf32, #tpu.memory_space<vmem>>, vector<8x32xf32>,
    %345 = vector.extract_strided_slice %284 {offsets = [0, 20, 0], sizes = [8, 1, 32], strides = [1, 1, 1]} : vector<8x32x32xf32> to vector<8x1x32xf32>
    %346 = vector.shape_cast %345 : vector<8x1x32xf32> to vector<8x32xf32>
    %c0_127 = arith.constant 0 : index
    %c1664 = arith.constant 1664 : index
    %347 = vector.load %arg11[%c0_127, %c1664] : memref<8x2048xf32, #tpu.memory_space<vmem>>, vector<8x32xf32>
    tpu.vector_store %arg11[%c0_127, %c1664], %346 {strides = array<i32>} : memref<8x2048xf32, #tpu.memory_space<vmem>>, vector<8x32xf32>,
    %348 = vector.extract_strided_slice %284 {offsets = [0, 21, 0], sizes = [8, 1, 32], strides = [1, 1, 1]} : vector<8x32x32xf32> to vector<8x1x32xf32>
    %349 = vector.shape_cast %348 : vector<8x1x32xf32> to vector<8x32xf32>
    %c0_128 = arith.constant 0 : index
    %c1696 = arith.constant 1696 : index
    %350 = vector.load %arg11[%c0_128, %c1696] : memref<8x2048xf32, #tpu.memory_space<vmem>>, vector<8x32xf32>
    tpu.vector_store %arg11[%c0_128, %c1696], %349 {strides = array<i32>} : memref<8x2048xf32, #tpu.memory_space<vmem>>, vector<8x32xf32>,
    %351 = vector.extract_strided_slice %284 {offsets = [0, 22, 0], sizes = [8, 1, 32], strides = [1, 1, 1]} : vector<8x32x32xf32> to vector<8x1x32xf32>
    %352 = vector.shape_cast %351 : vector<8x1x32xf32> to vector<8x32xf32>
    %c0_129 = arith.constant 0 : index
    %c1728 = arith.constant 1728 : index
    %353 = vector.load %arg11[%c0_129, %c1728] : memref<8x2048xf32, #tpu.memory_space<vmem>>, vector<8x32xf32>
    tpu.vector_store %arg11[%c0_129, %c1728], %352 {strides = array<i32>} : memref<8x2048xf32, #tpu.memory_space<vmem>>, vector<8x32xf32>,
    %354 = vector.extract_strided_slice %284 {offsets = [0, 23, 0], sizes = [8, 1, 32], strides = [1, 1, 1]} : vector<8x32x32xf32> to vector<8x1x32xf32>
    %355 = vector.shape_cast %354 : vector<8x1x32xf32> to vector<8x32xf32>
    %c0_130 = arith.constant 0 : index
    %c1760 = arith.constant 1760 : index
    %356 = vector.load %arg11[%c0_130, %c1760] : memref<8x2048xf32, #tpu.memory_space<vmem>>, vector<8x32xf32>
    tpu.vector_store %arg11[%c0_130, %c1760], %355 {strides = array<i32>} : memref<8x2048xf32, #tpu.memory_space<vmem>>, vector<8x32xf32>,
    %357 = vector.extract_strided_slice %284 {offsets = [0, 24, 0], sizes = [8, 1, 32], strides = [1, 1, 1]} : vector<8x32x32xf32> to vector<8x1x32xf32>
    %358 = vector.shape_cast %357 : vector<8x1x32xf32> to vector<8x32xf32>
    %c0_131 = arith.constant 0 : index
    %c1792 = arith.constant 1792 : index
    %359 = vector.load %arg11[%c0_131, %c1792] : memref<8x2048xf32, #tpu.memory_space<vmem>>, vector<8x32xf32>
    tpu.vector_store %arg11[%c0_131, %c1792], %358 {strides = array<i32>} : memref<8x2048xf32, #tpu.memory_space<vmem>>, vector<8x32xf32>,
    %360 = vector.extract_strided_slice %284 {offsets = [0, 25, 0], sizes = [8, 1, 32], strides = [1, 1, 1]} : vector<8x32x32xf32> to vector<8x1x32xf32>
    %361 = vector.shape_cast %360 : vector<8x1x32xf32> to vector<8x32xf32>
    %c0_132 = arith.constant 0 : index
    %c1824 = arith.constant 1824 : index
    %362 = vector.load %arg11[%c0_132, %c1824] : memref<8x2048xf32, #tpu.memory_space<vmem>>, vector<8x32xf32>
    tpu.vector_store %arg11[%c0_132, %c1824], %361 {strides = array<i32>} : memref<8x2048xf32, #tpu.memory_space<vmem>>, vector<8x32xf32>,
    %363 = vector.extract_strided_slice %284 {offsets = [0, 26, 0], sizes = [8, 1, 32], strides = [1, 1, 1]} : vector<8x32x32xf32> to vector<8x1x32xf32>
    %364 = vector.shape_cast %363 : vector<8x1x32xf32> to vector<8x32xf32>
    %c0_133 = arith.constant 0 : index
    %c1856 = arith.constant 1856 : index
    %365 = vector.load %arg11[%c0_133, %c1856] : memref<8x2048xf32, #tpu.memory_space<vmem>>, vector<8x32xf32>
    tpu.vector_store %arg11[%c0_133, %c1856], %364 {strides = array<i32>} : memref<8x2048xf32, #tpu.memory_space<vmem>>, vector<8x32xf32>,
    %366 = vector.extract_strided_slice %284 {offsets = [0, 27, 0], sizes = [8, 1, 32], strides = [1, 1, 1]} : vector<8x32x32xf32> to vector<8x1x32xf32>
    %367 = vector.shape_cast %366 : vector<8x1x32xf32> to vector<8x32xf32>
    %c0_134 = arith.constant 0 : index
    %c1888 = arith.constant 1888 : index
    %368 = vector.load %arg11[%c0_134, %c1888] : memref<8x2048xf32, #tpu.memory_space<vmem>>, vector<8x32xf32>
    tpu.vector_store %arg11[%c0_134, %c1888], %367 {strides = array<i32>} : memref<8x2048xf32, #tpu.memory_space<vmem>>, vector<8x32xf32>,
    %369 = vector.extract_strided_slice %284 {offsets = [0, 28, 0], sizes = [8, 1, 32], strides = [1, 1, 1]} : vector<8x32x32xf32> to vector<8x1x32xf32>
    %370 = vector.shape_cast %369 : vector<8x1x32xf32> to vector<8x32xf32>
    %c0_135 = arith.constant 0 : index
    %c1920 = arith.constant 1920 : index
    %371 = vector.load %arg11[%c0_135, %c1920] : memref<8x2048xf32, #tpu.memory_space<vmem>>, vector<8x32xf32>
    tpu.vector_store %arg11[%c0_135, %c1920], %370 {strides = array<i32>} : memref<8x2048xf32, #tpu.memory_space<vmem>>, vector<8x32xf32>,
    %372 = vector.extract_strided_slice %284 {offsets = [0, 29, 0], sizes = [8, 1, 32], strides = [1, 1, 1]} : vector<8x32x32xf32> to vector<8x1x32xf32>
    %373 = vector.shape_cast %372 : vector<8x1x32xf32> to vector<8x32xf32>
    %c0_136 = arith.constant 0 : index
    %c1952 = arith.constant 1952 : index
    %374 = vector.load %arg11[%c0_136, %c1952] : memref<8x2048xf32, #tpu.memory_space<vmem>>, vector<8x32xf32>
    tpu.vector_store %arg11[%c0_136, %c1952], %373 {strides = array<i32>} : memref<8x2048xf32, #tpu.memory_space<vmem>>, vector<8x32xf32>,
    %375 = vector.extract_strided_slice %284 {offsets = [0, 30, 0], sizes = [8, 1, 32], strides = [1, 1, 1]} : vector<8x32x32xf32> to vector<8x1x32xf32>
    %376 = vector.shape_cast %375 : vector<8x1x32xf32> to vector<8x32xf32>
    %c0_137 = arith.constant 0 : index
    %c1984 = arith.constant 1984 : index
    %377 = vector.load %arg11[%c0_137, %c1984] : memref<8x2048xf32, #tpu.memory_space<vmem>>, vector<8x32xf32>
    tpu.vector_store %arg11[%c0_137, %c1984], %376 {strides = array<i32>} : memref<8x2048xf32, #tpu.memory_space<vmem>>, vector<8x32xf32>,
    %378 = vector.extract_strided_slice %284 {offsets = [0, 31, 0], sizes = [8, 1, 32], strides = [1, 1, 1]} : vector<8x32x32xf32> to vector<8x1x32xf32>
    %379 = vector.shape_cast %378 : vector<8x1x32xf32> to vector<8x32xf32>
    %c0_138 = arith.constant 0 : index
    %c2016 = arith.constant 2016 : index
    %380 = vector.load %arg11[%c0_138, %c2016] : memref<8x2048xf32, #tpu.memory_space<vmem>>, vector<8x32xf32>
    tpu.vector_store %arg11[%c0_138, %c2016], %379 {strides = array<i32>} : memref<8x2048xf32, #tpu.memory_space<vmem>>, vector<8x32xf32>,
    %c0_139 = arith.constant 0 : index
    %c0_140 = arith.constant 0 : index
    %381 = vector.load %arg11[%c0_139, %c0_140] : memref<8x2048xf32, #tpu.memory_space<vmem>>, vector<8x2048xf32>
    %382 = arith.truncf %381 : vector<8x2048xf32> to vector<8x2048xbf16>
    %c0_141 = arith.constant 0 : index
    %c0_142 = arith.constant 0 : index
    %383 = vector.load %arg6[%c0_141, %c0_142] : memref<2048x64xbf16, #tpu.memory_space<vmem>>, vector<2048x64xbf16>
    %cst_143 = arith.constant dense<0.000000e+00> : vector<8x64xf32>
    %384 = tpu.matmul %382, %383, %cst_143 {dimension_numbers = #tpu.dot_dimension_numbers<[1], [0], [0], [1], [0, 0, 1, 1], [], []>} : vector<8x2048xbf16>, vector<2048x64xbf16>, vector<8x64xf32> -> vector<8x64xf32>
    %c0_144 = arith.constant 0 : index
    %c0_145 = arith.constant 0 : index
    %385 = vector.load %arg7[%c0_144, %c0_145] : memref<1x64xf32, #tpu.memory_space<vmem>>, vector<1x64xf32>
    %386 = vector.broadcast %385 : vector<1x64xf32> to vector<8x64xf32>
    %387 = arith.addf %384, %386 : vector<8x64xf32>
    %c0_146 = arith.constant 0 : index
    %c0_147 = arith.constant 0 : index
    %c0_148 = arith.constant 0 : index
    %388 = vector.load %arg5[%c0_146, %c0_147, %c0_148] : memref<1x8x64xf32, #tpu.memory_space<vmem>>, vector<1x8x64xf32>
    %389 = vector.shape_cast %388 : vector<1x8x64xf32> to vector<8x64xf32>
    %390 = arith.addf %387, %389 : vector<8x64xf32>
    %cst_149 = arith.constant dense<0.000000e+00> : vector<8xf32>
    %391 = vector.multi_reduction <add>, %390, %cst_149 [1] : vector<8x64xf32> to vector<8xf32>
    %392 = vector.shape_cast %391 : vector<8xf32> to vector<8x1xf32>
    %cst_150 = arith.constant 6.400000e+01 : f32
    %393 = vector.broadcast %cst_150 : f32 to vector<8x1xf32>
    %394 = arith.divf %392, %393 : vector<8x1xf32>
    %395 = vector.broadcast %394 : vector<8x1xf32> to vector<8x64xf32>
    %396 = arith.subf %390, %395 : vector<8x64xf32>
    %397 = arith.mulf %396, %396 : vector<8x64xf32>
    %cst_151 = arith.constant dense<0.000000e+00> : vector<8xf32>
    %398 = vector.multi_reduction <add>, %397, %cst_151 [1] : vector<8x64xf32> to vector<8xf32>
    %399 = vector.shape_cast %398 : vector<8xf32> to vector<8x1xf32>
    %cst_152 = arith.constant 6.400000e+01 : f32
    %400 = vector.broadcast %cst_152 : f32 to vector<8x1xf32>
    %401 = arith.divf %399, %400 : vector<8x1xf32>
    %402 = vector.broadcast %394 : vector<8x1xf32> to vector<8x64xf32>
    %403 = arith.subf %390, %402 : vector<8x64xf32>
    %cst_153 = arith.constant 9.99999974E-6 : f32
    %404 = vector.broadcast %cst_153 : f32 to vector<8x1xf32>
    %405 = arith.addf %401, %404 : vector<8x1xf32>
    %406 = math.rsqrt %405 : vector<8x1xf32>
    %407 = vector.broadcast %406 : vector<8x1xf32> to vector<8x64xf32>
    %408 = arith.mulf %403, %407 : vector<8x64xf32>
    %c0_154 = arith.constant 0 : index
    %c0_155 = arith.constant 0 : index
    %409 = vector.load %arg8[%c0_154, %c0_155] : memref<1x64xf32, #tpu.memory_space<vmem>>, vector<1x64xf32>
    %410 = vector.broadcast %409 : vector<1x64xf32> to vector<8x64xf32>
    %411 = arith.mulf %408, %410 : vector<8x64xf32>
    %c0_156 = arith.constant 0 : index
    %c0_157 = arith.constant 0 : index
    %412 = vector.load %arg9[%c0_156, %c0_157] : memref<1x64xf32, #tpu.memory_space<vmem>>, vector<1x64xf32>
    %413 = vector.broadcast %412 : vector<1x64xf32> to vector<8x64xf32>
    %414 = arith.addf %411, %413 : vector<8x64xf32>
    %c0_158 = arith.constant 0 : index
    %c0_159 = arith.constant 0 : index
    %c0_160 = arith.constant 0 : index
    %415 = vector.load %arg10[%c0_158, %c0_159, %c0_160] : memref<1x8x64xf32, #tpu.memory_space<vmem>>, vector<1x8x64xf32>
    %416 = vector.shape_cast %415 : vector<1x8x64xf32> to vector<8x64xf32>
    %417 = vector.shape_cast %414 : vector<8x64xf32> to vector<1x8x64xf32>
    tpu.vector_store %arg10[%c0_158, %c0_159, %c0_160], %417 {strides = array<i32>} : memref<1x8x64xf32, #tpu.memory_space<vmem>>, vector<1x8x64xf32>,
    return
  }
  func.func @transform_0(%arg0: i32) -> (i32, i32, i32, i32) {
    %c0_i32 = arith.constant 0 : i32
    %c0_i32_0 = arith.constant 0 : i32
    %c0_i32_1 = arith.constant 0 : i32
    %c0_i32_2 = arith.constant 0 : i32
    return %arg0, %c0_i32, %c0_i32_0, %c0_i32_1 : i32, i32, i32, i32
  }
  func.func @transform_1(%arg0: i32) -> (i32, i32, i32) {
    %c0_i32 = arith.constant 0 : i32
    %c0_i32_0 = arith.constant 0 : i32
    %c0_i32_1 = arith.constant 0 : i32
    return %arg0, %c0_i32, %c0_i32_0 : i32, i32, i32
  }
  func.func @transform_2(%arg0: i32) -> (i32, i32, i32, i32, i32) {
    %c0_i32 = arith.constant 0 : i32
    %c0_i32_0 = arith.constant 0 : i32
    %c0_i32_1 = arith.constant 0 : i32
    %c0_i32_2 = arith.constant 0 : i32
    %c0_i32_3 = arith.constant 0 : i32
    return %arg0, %c0_i32, %c0_i32_0, %c0_i32_1, %c0_i32_2 : i32, i32, i32, i32, i32
  }
  func.func @transform_3(%arg0: i32) -> (i32, i32, i32, i32, i32) {
    %c0_i32 = arith.constant 0 : i32
    %c0_i32_0 = arith.constant 0 : i32
    %c0_i32_1 = arith.constant 0 : i32
    %c0_i32_2 = arith.constant 0 : i32
    %c0_i32_3 = arith.constant 0 : i32
    return %arg0, %c0_i32, %c0_i32_0, %c0_i32_1, %c0_i32_2 : i32, i32, i32, i32, i32
  }
  func.func @transform_4(%arg0: i32) -> (i32, i32, i32) {
    %c0_i32 = arith.constant 0 : i32
    %c0_i32_0 = arith.constant 0 : i32
    %c0_i32_1 = arith.constant 0 : i32
    return %arg0, %c0_i32, %c0_i32_0 : i32, i32, i32
  }
  func.func @transform_5(%arg0: i32) -> (i32, i32) {
    %c0_i32 = arith.constant 0 : i32
    %c0_i32_0 = arith.constant 0 : i32
    %c0_i32_1 = arith.constant 0 : i32
    return %c0_i32, %c0_i32_0 : i32, i32
  }
  func.func @transform_6(%arg0: i32) -> (i32, i32) {
    %c0_i32 = arith.constant 0 : i32
    %c0_i32_0 = arith.constant 0 : i32
    %c0_i32_1 = arith.constant 0 : i32
    return %c0_i32, %c0_i32_0 : i32, i32
  }
  func.func @transform_7(%arg0: i32) -> (i32, i32) {
    %c0_i32 = arith.constant 0 : i32
    %c0_i32_0 = arith.constant 0 : i32
    %c0_i32_1 = arith.constant 0 : i32
    return %c0_i32, %c0_i32_0 : i32, i32
  }
  func.func @transform_8(%arg0: i32) -> (i32, i32) {
    %c0_i32 = arith.constant 0 : i32
    %c0_i32_0 = arith.constant 0 : i32
    %c0_i32_1 = arith.constant 0 : i32
    return %c0_i32, %c0_i32_0 : i32, i32
  }
  func.func @transform_9(%arg0: i32) -> (i32, i32, i32) {
    %c0_i32 = arith.constant 0 : i32
    %c0_i32_0 = arith.constant 0 : i32
    %c0_i32_1 = arith.constant 0 : i32
    return %arg0, %c0_i32, %c0_i32_0 : i32, i32, i32
  }
}

</mosaic_0001>

<bundles_post_ra>
// kernel: adaptive_sampling_mixing_forward.1
= control target key start
LH: loop header
LB: loop body
LE: loop exit
PB: predicated region body
PF: predicated region fallthrough
CT: control target
= control target key end

     0   :  { %s15528_s0 = inlined_call_operand.vmem [shape: f32[2,8,32,8], index: 0, kind: input, shape index: {}]   ;;  %s15529_s1 = inlined_call_operand.vmem [shape: f32[2,256,64], index: 1, kind: input, shape index: {}]   ;;  %s15530_s2 = inlined_call_operand.vmem [shape: bf16[2,2,8,32,32], index: 2, kind: input, shape index: {}]   ;;  %s15531_s3 = inlined_call_operand.vmem [shape: bf16[2,2,8,32,16], index: 3, kind: input, shape index: {}]   ;;  %s15532_s4 = inlined_call_operand.vmem [shape: f32[2,8,64], index: 4, kind: input, shape index: {}]   ;;  %s15533_s5 = inlined_call_operand.vmem [shape: bf16[2048,64], index: 5, kind: input, shape index: {}]   ;;  %s15534_s6 = inlined_call_operand.vmem [shape: f32[1,64], index: 6, kind: input, shape index: {}]   ;;  %s15535_s7 = inlined_call_operand.vmem [shape: f32[1,64], index: 7, kind: input, shape index: {}]   ;;  %s15536_s8 = inlined_call_operand.vmem [shape: f32[1,64], index: 8, kind: input, shape index: {}]   ;;  %s15537_s9 = inlined_call_operand.hbm [shape: f32[2,8,64], index: 9, kind: output, shape index: {}]  }
   0x1   :  { %15718 = sst [smem:[#allocation69_spill]] %s15528_s0 }
   0x2   :  { %14 = vsyncpa [#allocation4], 0 }
   0x3   :  { %16 = vsyncpa [#allocation4 + $0x1], 0  ;;  %s10671_s30 = smov 0   ;;  %s10673_s10 = smov 0  }
   0x4   :  { %s10675_s11 = smov 0   ;;  %s10677_s12 = smov 0  }
   0x5 LB: > { %s10692_s13 = sadd.s32 4294967295, %s10605_s12   ;;  %s9063_s14 = sadd.s32 4294967294, %s10605_s12   ;;  %s10605_s12 = sphi %s10677_s12, %s16256_s12   ;;  %s10601_s11 = sphi %s10675_s11, %s16255_s11   ;;  %s10597_s10 = sphi %s10673_s10, %s16254_s10   ;;  %s10593_s30 = sphi %s10671_s30, %s16253_s30  }
   0x6   : > { %s10696_s15 = sadd.s32 1, %s10605_s12   ;;  %s243_s16 = sadd.s32 1, %s10601_s11 }
   0x7   : > { %s240_s17 = ssub.s32 %s10605_s12, %s10696_s15  ;;  %p253_p0 = scmp.ne.s32.totalorder %s10601_s11, %s10597_s10 }
   0x8   : > { %p241_p1 = scmp.eq.s32.totalorder %s240_s17, 0  ;;  %p254_p2 = scmp.eq.s32.totalorder %s10692_s13, 1 }
   0x9   : > { %p259_p3 = scmp.ne.s32.totalorder %s10597_s10, %s10593_s30  ;;  %p260_p4 = scmp.eq.s32.totalorder %s9063_s14, 1 }
   0xa   : > { %s10707_s18 = scalar_select %p241_p1, %s10601_s11, %s243_s16  }
   0xb   : > { %p10709_p5 = por %p254_p2, %p253_p0  ;;  %p10713_p6 = por %p260_p4, %p259_p3 }
   0xc   : > { %p9066_p7 = scmp.ge.s32.totalorder %s10605_s12, 1  ;;  %p329_p8 = scmp.lt.s32.totalorder %s10605_s12, 3 }
   0xe   : > { %p330_p9 = pnand %p9066_p7, %p329_p8 }
  0x10   : > { %333 = sbr.rel (%p330_p9) target bundleno = 3563 (0xdeb), region = 56 }
  0x15   : > { %p384_p10 = scmp.lt.s32.totalorder %s10692_s13, 1  ;;  %v15542_v0 = vmov 4   ;;  %v15544_v1 = vmov 1   ;;  %s15721_s0 = sld [smem:[#allocation69_spill]]  ;;  %v15540_v20 = vmov 5   ;;  %v15538_v21 = vmov 2  }
  0x16   : > { %10116 = vset.pattern.permute.xlu1 %v15542_v0  ;;  %10127 = vset.pattern.permute.xlu0 %v15544_v1  ;;  %v15548_v24 = vmov 6   ;;  %v15552_v26 = vmov 3   ;;  %v15550_v29 = vmov 7   ;;  %v15546_v33 = vmov 0   ;;  %s9385_s14 = sshll.u32 %s10692_s13, 7 }
  0x17   : > { %s10723_s21 = scalar_select %p384_p10, %s10692_s13, 1 }
  0x19   : > { %s10726_s22 = sshll.u32 %s10723_s21, 8 }
  0x1a   : > { %s10760_s28 = scalar_lea.vmem %s15530_s2, %s10726_s22  ;;  %s10779_s16 = scalar_lea.vmem %s15531_s3, %s10726_s22 }
  0x1b   : > { %s10732_s25 = scalar_lea.vmem %s15721_s0, %s10726_s22  ;;  %s11010_s24 = scalar_lea.vmem %s15529_s1, %s10726_s22 }
  0x1c   : > { %v410_v2 = vld [vmem:[%s10732_s25 + $0x8] sm:$0xff]  ;;  %v10736_v3 = vld [vmem:[%s10732_s25 + $0x18] sm:$0xff]  ;;  %v10739_v4 = vld [vmem:[%s10732_s25] sm:$0xff]  ;;  %s10617_s22 = smov 96  }
  0x1d   : > { %643 = vperm.xlu1 %10116, %v410_v2   ;;  %v10006_v5 = vtrunc.f32 %v10736_v3  ;;  %v10000_v6 = vtrunc.f32 %v10739_v4  ;;  %v10744_v7 = vld [vmem:[%s10732_s25 + $0x20] sm:$0xff]  ;;  %v10002_v9 = vtrunc.f32 %v410_v2  ;;  %v418_v10 = vld [vmem:[%s10732_s25 + $0x48] sm:$0xff]  ;;  %v419_v16 = vld [vmem:[%s10732_s25 + $0x50] sm:$0xff] }
  0x1e   : > { %v10008_v8 = vtrunc.f32 %v10744_v7  ;;  %v10018_v14 = vtrunc.f32 %v418_v10  ;;  %v10020_v18 = vtrunc.f32 %v419_v16  ;;  %v10786_v22 = vld [vmem:[%s10732_s25 + $0x28] sm:$0xff]  ;;  %v10791_v23 = vld [vmem:[%s10732_s25 + $0x30] sm:$0xff]  ;;  %v10796_v25 = vld [vmem:[%s10732_s25 + $0x58] sm:$0xff] }
  0x1f   : > { %v10748_v11 = vcvt.f32.s32 %v10006_v5  ;;  %v10750_v12 = vcvt.f32.s32 %v10000_v6  ;;  %v10763_v15 = vcvt.f32.s32 %v10002_v9  ;;  %v10801_v27 = vld [vmem:[%s10732_s25 + $0x60] sm:$0xff]  ;;  %v426_v28 = vld [vmem:[%s10732_s25 + $0x88] sm:$0xff]  ;;  %v10810_v30 = vld [vmem:[%s10732_s25 + $0x10] sm:$0xff]  ;;  %v10010_v47 = vtrunc.f32 %v10786_v22 }
  0x20   : > { %v10754_v13 = vcvt.f32.s32 %v10008_v8  ;;  %v10767_v17 = vcvt.f32.s32 %v10018_v14  ;;  %v10771_v19 = vcvt.f32.s32 %v10020_v18  ;;  %v427_v31 = vld [vmem:[%s10732_s25 + $0x90] sm:$0xff]  ;;  %v10004_v32 = vtrunc.f32 %v10810_v30  ;;  %v424_v35 = vld [vmem:[%s10732_s25 + $0x78] sm:$0xff]  ;;  %v425_v36 = vld [vmem:[%s10732_s25 + $0x80] sm:$0xff] }
  0x21   : > { %934 = vperm.xlu0 %10127, %v10748_v11   ;;  %10117 = vset.pattern.permute.xlu1 %v15544_v1  ;;  %v10030_v37 = vtrunc.f32 %v424_v35  ;;  %v430_v38 = vld [vmem:[%s10732_s25 + $0xa8] sm:$0xff]  ;;  %v10032_v40 = vtrunc.f32 %v425_v36  ;;  %v10835_v41 = vld [vmem:[%s10732_s25 + $0xb0] sm:$0xff]  ;;  %v10011_v48 = vcvt.f32.s32 %v10010_v47  ;;  %v432_v49 = vld [vmem:[%s10732_s25 + $0xb8] sm:$0xff]  ;;  %v10012_v9 = vtrunc.f32 %v10791_v23 }
  0x22   : > { %925 = vperm.xlu1 %10117, %v10750_v12   ;;  %v10816_v34 = vcvt.f32.s32 %v10004_v32  ;;  %v10042_v43 = vtrunc.f32 %v430_v38  ;;  %v10044_v45 = vtrunc.f32 %v10835_v41  ;;  %v433_v50 = vld [vmem:[%s10732_s25 + $0xc0] sm:$0xff]  ;;  %v10877_v51 = vld [vmem:[%s10732_s25 + $0x38] sm:$0xff]  ;;  %v10892_v56 = vld [vmem:[%s10732_s25 + $0x68] sm:$0xff] }
  0x23   : > { %v10831_v39 = vcvt.f32.s32 %v10030_v37  ;;  %v10839_v42 = vcvt.f32.s32 %v10032_v40  ;;  %v10884_v53 = vld [vmem:[%s10732_s25 + $0x40] sm:$0xff]  ;;  %v10014_v54 = vtrunc.f32 %v10877_v51  ;;  %v10026_v63 = vtrunc.f32 %v10892_v56  ;;  %v10961_v35 = vld [vmem:[%s10732_s25 + $0xd0] sm:$0xff] }
  0x24   : > { %v10843_v44 = vcvt.f32.s32 %v10042_v43  ;;  %v10848_v46 = vcvt.f32.s32 %v10044_v45  ;;  %v10016_v59 = vtrunc.f32 %v10884_v53  ;;  %v10939_v14 = vcvt.f32.s32 %v10012_v9 }
  0x25   : > { %937 = vperm.xlu0 %10127, %v10754_v13   ;;  %15722 = vst [vmem:[#allocation6_spill] sm:$0xff] %v10839_v42  ;;  %v10898_v58 = vcvt.f32.s32 %v10014_v54  ;;  %v10052_v40 = vtrunc.f32 %v10961_v35  ;;  %v10520_v54 = vld [vmem:[%s10732_s25 + $0x8] sm:$0xff] }
  0x26   : > { %928 = vperm.xlu1 %10117, %v10763_v15   ;;  %15723 = vst [vmem:[#allocation7_spill] sm:$0xff] %v10843_v44  ;;  %15724 = vst [vmem:[#allocation8_spill] sm:$0xff] %v10848_v46  ;;  %v10907_v62 = vcvt.f32.s32 %v10016_v59 }
  0x27   : > { %v10979_v47 = vcvt.f32.s32 %v10052_v40  ;;  %v2187_v40 = vld [vmem:[%s11010_s24 + $0x78] sm:$0xff] }
  0x29   : > { %952 = vperm.xlu0 %10127, %v10767_v17   ;;  %15732 = vst [vmem:[#allocation16_spill] sm:$0xff] %v10979_v47 }
  0x2a   : > { %10118 = vset.pattern.permute.xlu1 %v15540_v20 }
  0x2b   : > { %1085 = vperm.xlu1 %10118, %v10739_v4  }
  0x2d   : > { %955 = vperm.xlu0 %10127, %v10771_v19  }
  0x2f   : > { %10119 = vset.pattern.permute.xlu1 %v15538_v21 }
  0x30   : > { %1341 = vperm.xlu1 %10119, %v10750_v12  }
  0x31   : > { %10157 = vset.pattern.permute.xlu0 %v15542_v0 }
  0x32   : > { %638 = vperm.xlu0 %10157, %v10739_v4  }
  0x34   : > { %1344 = vperm.xlu1 %10119, %v10763_v15  }
  0x36   : > { %663 = vperm.xlu0 %10157, %v10786_v22  }
  0x38   : > { %10120 = vset.pattern.permute.xlu1 %v15548_v24 }
  0x39   : > { %1505 = vperm.xlu1 %10120, %v410_v2  }
  0x3a   : > { %668 = vperm.xlu0 %10157, %v10791_v23  }
  0x3d   : > { %10121 = vset.pattern.permute.xlu1 %v15552_v26 }
  0x3e   : > { %693 = vperm.xlu0 %10157, %v10796_v25   ;;  %1757 = vperm.xlu1 %10121, %v10750_v12  }
  0x42   : > { %698 = vperm.xlu0 %10157, %v10801_v27   ;;  %10122 = vset.pattern.permute.xlu1 %v15550_v29 }
  0x43   : > { %1917 = vperm.xlu1 %10122, %v10739_v4  }
  0x46   : > { %723 = vperm.xlu0 %10157, %v426_v28  }
  0x47   : > { %1921 = vperm.xlu1 %10122, %v410_v2   ;;  %v10912_v2 = vld [vmem:[%s10732_s25 + $0x70] sm:$0xff] }
  0x48   : > { %v10028_v5 = vtrunc.f32 %v10912_v2 }
  0x4a   : > { %728 = vperm.xlu0 %10157, %v427_v31   ;;  %v10929_v10 = vcvt.f32.s32 %v10028_v5 }
  0x4b   : > { %10123 = vset.pattern.permute.xlu1 %v15546_v33 }
  0x4c   : > { %486 = vperm.xlu1 %10123, %v10748_v11  }
  0x4e   : > { %10191 = vset.pattern.permute.xlu0 %v15538_v21 }
  0x4f   : > { %1350 = vperm.xlu0 %10191, %v10748_v11  }
  0x50   : > { %10124 = vset.pattern.permute.xlu1 %v15544_v1 }
  0x51   : > { %931 = vperm.xlu1 %10124, %v10816_v34  }
  0x53   : > { %1353 = vperm.xlu0 %10191, %v10754_v13  }
  0x55   : > { %10125 = vset.pattern.permute.xlu1 %v15542_v0 }
  0x56   : > { %648 = vperm.xlu1 %10125, %v10810_v30  }
  0x57   : > { %1368 = vperm.xlu0 %10191, %v10767_v17  }
  0x5a   : > { %653 = vperm.xlu1 %10125, %v10736_v3  }
  0x5b   : > { %1371 = vperm.xlu0 %10191, %v10771_v19  }
  0x5e   : > { %10126 = vset.pattern.permute.xlu1 %v15540_v20 }
  0x5f   : > { %1386 = vperm.xlu0 %10191, %v10831_v39   ;;  %1097 = vperm.xlu1 %10126, %v10736_v3  }
  0x63   : > { %1389 = vperm.xlu0 %10191, %v10839_v42   ;;  %10128 = vset.pattern.permute.xlu1 %v15538_v21 }
  0x64   : > { %1347 = vperm.xlu1 %10128, %v10816_v34  }
  0x67   : > { %1404 = vperm.xlu0 %10191, %v10843_v44  }
  0x68   : > { %10129 = vset.pattern.permute.xlu1 %v15548_v24 }
  0x69   : > { %1509 = vperm.xlu1 %10129, %v10810_v30  }
  0x6b   : > { %1407 = vperm.xlu0 %10191, %v10848_v46  }
  0x6d   : > { %1513 = vperm.xlu1 %10129, %v10736_v3  }
  0x6f   : > { %10210 = vset.pattern.permute.xlu0 %v15548_v24 }
  0x70   : > { %1501 = vperm.xlu0 %10210, %v10739_v4   ;;  %v10917_v4 = vcvt.f32.s32 %v10026_v63 }
  0x71   : > { %10130 = vset.pattern.permute.xlu1 %v15552_v26 }
  0x72   : > { %1766 = vperm.xlu1 %10130, %v10748_v11  }
  0x74   : > { %1521 = vperm.xlu0 %10210, %v10786_v22  }
  0x76   : > { %10131 = vset.pattern.permute.xlu1 %v15550_v29 }
  0x77   : > { %1925 = vperm.xlu1 %10131, %v10810_v30  }
  0x78   : > { %1525 = vperm.xlu0 %10210, %v10791_v23  }
  0x7b   : > { %10132 = vset.pattern.permute.xlu1 %v15546_v33 }
  0x7c   : > { %1545 = vperm.xlu0 %10210, %v10796_v25   ;;  %489 = vperm.xlu1 %10132, %v10754_v13  }
  0x80   : > { %1549 = vperm.xlu0 %10210, %v10801_v27   ;;  %492 = vperm.xlu1 %10132, %v10011_v48   ;;  %v10948_v27 = vld [vmem:[%s10732_s25 + $0xc8] sm:$0xff] }
  0x81   : > { %v10050_v32 = vtrunc.f32 %v10948_v27 }
  0x83   : > { %v10970_v38 = vcvt.f32.s32 %v10050_v32  ;;  %v2186_v32 = vld [vmem:[%s11010_s24 + $0x70] sm:$0xff] }
  0x84   : > { %1569 = vperm.xlu0 %10210, %v426_v28   ;;  %10133 = vset.pattern.permute.xlu1 %v15544_v1 }
  0x85   : > { %940 = vperm.xlu1 %10133, %v10011_v48   ;;  %15730 = vst [vmem:[#allocation14_spill] sm:$0xff] %v10970_v38 }
  0x88   : > { %1573 = vperm.xlu0 %10210, %v427_v31  }
  0x89   : > { %10134 = vset.pattern.permute.xlu1 %v15542_v0 }
  0x8a   : > { %658 = vperm.xlu1 %10134, %v10744_v7  }
  0x8c   : > { %1593 = vperm.xlu0 %10210, %v432_v49  }
  0x8e   : > { %10135 = vset.pattern.permute.xlu1 %v15540_v20 }
  0x8f   : > { %1101 = vperm.xlu1 %10135, %v10744_v7  }
  0x90   : > { %1597 = vperm.xlu0 %10210, %v433_v50  }
  0x93   : > { %1105 = vperm.xlu1 %10135, %v10786_v22  }
  0x94   : > { %10220 = vset.pattern.permute.xlu0 %v15546_v33 }
  0x95   : > { %477 = vperm.xlu0 %10220, %v10750_v12   ;;  %v10934_v12 = vld [vmem:[%s10732_s25 + $0xa0] sm:$0xff] }
  0x96   : > { %v10040_v25 = vtrunc.f32 %v10934_v12 }
  0x97   : > { %10136 = vset.pattern.permute.xlu1 %v15538_v21 }
  0x98   : > { %v10881_v52 = vpop.permute.xlu1 %643  ;;  %1356 = vperm.xlu1 %10136, %v10011_v48   ;;  %v10957_v31 = vcvt.f32.s32 %v10040_v25 }
  0x99   : > { %480 = vperm.xlu0 %10220, %v10763_v15  }
  0x9a   : > { %15728 = vst [vmem:[#allocation12_spill] sm:$0xff] %v10957_v31 }
  0x9c   : > { %10137 = vset.pattern.permute.xlu1 %v15548_v24  ;;  %v10889_v55 = vpop.permute.xlu0 %934 }
  0x9d   : > { %483 = vperm.xlu0 %10220, %v10816_v34   ;;  %1517 = vperm.xlu1 %10137, %v10744_v7   ;;  %v10896_v57 = vpop.permute.xlu1 %925  ;;  %v10923_v7 = vld [vmem:[%s10732_s25 + $0x98] sm:$0xff] }
  0x9e   : > { %v10038_v11 = vtrunc.f32 %v10923_v7 }
  0xa0   : > { %v10901_v60 = vpop.permute.xlu0 %937  ;;  %v10944_v18 = vcvt.f32.s32 %v10038_v11  ;;  %v2203_v11 = vld [vmem:[%s11010_s24 + $0xf8] sm:$0xff] }
  0xa1   : > { %498 = vperm.xlu0 %10220, %v10898_v58   ;;  %10138 = vset.pattern.permute.xlu1 %v15552_v26  ;;  %v10905_v61 = vpop.permute.xlu1 %928 }
  0xa2   : > { %1769 = vperm.xlu1 %10138, %v10754_v13   ;;  %15727 = vst [vmem:[#allocation11_spill] sm:$0xff] %v10944_v18 }
  0xa4   : > { %v10914_v3 = vpop.permute.xlu0 %952 }
  0xa5   : > { %15725 = vst [vmem:[#allocation9_spill] sm:$0xff] %v10914_v3  ;;  %501 = vperm.xlu0 %10220, %v10907_v62  }
  0xa6   : > { %1772 = vperm.xlu1 %10138, %v10011_v48   ;;  %v10920_v6 = vpop.permute.xlu1 %1085 }
  0xa8   : > { %v10925_v8 = vpop.permute.xlu0 %955 }
  0xa9   : > { %15726 = vst [vmem:[#allocation10_spill] sm:$0xff] %v10925_v8  ;;  %516 = vperm.xlu0 %10220, %v10917_v4  }
  0xaa   : > { %10139 = vset.pattern.permute.xlu1 %v15550_v29  ;;  %v2183_v29 = vld [vmem:[%s11010_s24 + $0x58] sm:$0xff] }
  0xab   : > { %1937 = vperm.xlu1 %10139, %v10786_v22   ;;  %v10937_v13 = vpop.permute.xlu1 %1341 }
  0xad   : > { %519 = vperm.xlu0 %10220, %v10929_v10   ;;  %v10942_v16 = vpop.permute.xlu0 %638 }
  0xaf   : > { %10140 = vset.pattern.permute.xlu1 %v15546_v33  ;;  %v10951_v28 = vpop.permute.xlu1 %1344  ;;  %v2185_v33 = vld [vmem:[%s11010_s24 + $0x68] sm:$0xff] }
  0xb0   : > { %495 = vperm.xlu1 %10140, %v10939_v14  }
  0xb1   : > { %534 = vperm.xlu0 %10220, %v10944_v18   ;;  %v10955_v22 = vpop.permute.xlu0 %663 }
  0xb4   : > { %10141 = vset.pattern.permute.xlu1 %v15544_v1  ;;  %v10964_v36 = vpop.permute.xlu1 %1505  ;;  %v2184_v1 = vld [vmem:[%s11010_s24 + $0x60] sm:$0xff] }
  0xb5   : > { %537 = vperm.xlu0 %10220, %v10957_v31   ;;  %943 = vperm.xlu1 %10141, %v10939_v14   ;;  %v10968_v37 = vpop.permute.xlu0 %668 }
  0xb6   : > { %15729 = vst [vmem:[#allocation13_spill] sm:$0xff] %v10968_v37 }
  0xb9   : > { %552 = vperm.xlu0 %10220, %v10970_v38   ;;  %946 = vperm.xlu1 %10141, %v10898_v58   ;;  %v10975_v43 = vpop.permute.xlu1 %1757  ;;  %v10977_v45 = vpop.permute.xlu0 %693 }
  0xba   : > { %15731 = vst [vmem:[#allocation15_spill] sm:$0xff] %v10977_v45  ;;  %v15746_v45 = vmov 3  }
  0xbd   : > { %555 = vperm.xlu0 %10220, %v10979_v47   ;;  %10142 = vset.pattern.permute.xlu1 %v15542_v0  ;;  %v10983_v48 = vpop.permute.xlu0 %698  ;;  %v2201_v0 = vld [vmem:[%s11010_s24 + $0xe8] sm:$0xff] }
  0xbe   : > { %15733 = vst [vmem:[#allocation17_spill] sm:$0xff] %v10983_v48  ;;  %673 = vperm.xlu1 %10142, %v10877_v51   ;;  %v10986_v49 = vpop.permute.xlu1 %1917 }
  0xc1   : > { %10224 = vset.pattern.permute.xlu0 %v15540_v20  ;;  %v10989_v50 = vpop.permute.xlu0 %723 }
  0xc2   : > { %15734 = vst [vmem:[#allocation18_spill] sm:$0xff] %v10989_v50  ;;  %1089 = vperm.xlu0 %10224, %v10520_v54   ;;  %10143 = vset.pattern.permute.xlu1 %v15540_v20  ;;  %v10993_v59 = vpop.permute.xlu1 %1921  ;;  %v2200_v20 = vld [vmem:[%s11010_s24 + $0xe0] sm:$0xff] }
  0xc3   : > { %1109 = vperm.xlu1 %10143, %v10791_v23  }
  0xc5   : > { %v10996_v63 = vpop.permute.xlu0 %728 }
  0xc6   : > { %15735 = vst [vmem:[#allocation19_spill] sm:$0xff] %v10996_v63  ;;  %1093 = vperm.xlu0 %10224, %v10810_v30   ;;  %v2202_v30 = vld [vmem:[%s11010_s24 + $0xf0] sm:$0xff]  ;;  %v15739_v63 = vmov 7  }
  0xc7   : > { %10144 = vset.pattern.permute.xlu1 %v15538_v21  ;;  %v11000_v5 = vpop.permute.xlu1 %486  ;;  %v2219_v25 = vpack.c.bf16 %v2203_v11, %v2202_v30  ;;  %v2211_v21 = vpack.c.bf16 %v2187_v40, %v2186_v32  ;;  %v2218_v11 = vpack.c.bf16 %v2201_v0, %v2200_v20  ;;  %v2199_v40 = vld [vmem:[%s11010_s24 + $0xd8] sm:$0xff]  ;;  %v2182_v20 = vld [vmem:[%s11010_s24 + $0x50] sm:$0xff] }
  0xc8   : > { %1359 = vperm.xlu1 %10144, %v10939_v14  }
  0xc9   : > { %9392 = vmatprep.subr.bf16.mxu0 %v2219_v25  ;;  %v2210_v25 = vpack.c.bf16 %v2185_v33, %v2184_v1  ;;  %v2209_v33 = vpack.c.bf16 %v2183_v29, %v2182_v20  ;;  %v10521_v20 = vld [vmem:[%s10732_s25 + $0x30] sm:$0xff] }
  0xca   : > { %1113 = vperm.xlu0 %10224, %v10877_v51   ;;  %v11004_v9 = vpop.permute.xlu0 %1350  ;;  %9393 = vmatpush3.bf16.msra.mxu0 %v2211_v21  ;;  %v2198_v21 = vld [vmem:[%s11010_s24 + $0xd0] sm:$0xff] }
  0xcb   : > { %9394 = vmatprep.subr.bf16.mxu0 %v2218_v11  ;;  %v2217_v0 = vpack.c.bf16 %v2199_v40, %v2198_v21  ;;  %v2196_v11 = vld [vmem:[%s11010_s24 + $0xc0] sm:$0xff]  ;;  %v2181_v40 = vld [vmem:[%s11010_s24 + $0x48] sm:$0xff] }
  0xcc   : > { %1362 = vperm.xlu1 %10144, %v10898_v58   ;;  %v11013_v23 = vpop.permute.xlu1 %931  ;;  %v2180_v21 = vld [vmem:[%s11010_s24 + $0x40] sm:$0xff] }
  0xcd   : > { %v2208_v29 = vpack.c.bf16 %v2181_v40, %v2180_v21  ;;  %v2193_v40 = vld [vmem:[%s11010_s24 + $0xa8] sm:$0xff] }
  0xce   : > { %1117 = vperm.xlu0 %10224, %v10884_v53   ;;  %v11020_v54 = vpop.permute.xlu0 %1353  ;;  %9395 = vmatpush3.bf16.msra.mxu0 %v2210_v25  ;;  %v2197_v25 = vld [vmem:[%s11010_s24 + $0xc8] sm:$0xff] }
  0xcf   : > { %9396 = vmatprep.subr.bf16.mxu0 %v2217_v0  ;;  %v2194_v0 = vld [vmem:[%s11010_s24 + $0xb0] sm:$0xff] }
  0xd0   : > { %10145 = vset.pattern.permute.xlu1 %v15548_v24 }
  0xd1   : > { %1529 = vperm.xlu1 %10145, %v10877_v51   ;;  %v11026_v30 = vpop.permute.xlu1 %648 }
  0xd2   : > { %15736 = vst [vmem:[#allocation20_spill] sm:$0xff] %v11026_v30  ;;  %1137 = vperm.xlu0 %10224, %v10892_v56   ;;  %v11031_v32 = vpop.permute.xlu0 %1368  ;;  %9397 = vmatpush3.bf16.msra.mxu0 %v2209_v33  ;;  %v2195_v33 = vld [vmem:[%s11010_s24 + $0xb8] sm:$0xff] }
  0xd3   : > { %15737 = vst [vmem:[#allocation21_spill] sm:$0xff] %v11031_v32 }
  0xd5   : > { %10146 = vset.pattern.permute.xlu1 %v15552_v26  ;;  %v11036_v24 = vpop.permute.xlu1 %653  ;;  %v2216_v26 = vpack.c.bf16 %v2197_v25, %v2196_v11  ;;  %v2215_v11 = vpack.c.bf16 %v2195_v33, %v2194_v0  ;;  %v2178_v25 = vld [vmem:[%s11010_s24 + $0x30] sm:$0xff]  ;;  %v2177_v0 = vld [vmem:[%s11010_s24 + $0x28] sm:$0xff] }
  0xd6   : > { %1141 = vperm.xlu0 %10224, %v10912_v2   ;;  %1775 = vperm.xlu1 %10146, %v10939_v14   ;;  %v11042_v1 = vpop.permute.xlu0 %1371 }
  0xd7   : > { %15738 = vst [vmem:[#allocation22_spill] sm:$0xff] %v11042_v1  ;;  %9398 = vmatprep.subr.bf16.mxu0 %v2216_v26  ;;  %v2192_v26 = vld [vmem:[%s11010_s24 + $0xa0] sm:$0xff] }
  0xd8   : > { %9399 = vmatpush3.bf16.msra.mxu0 %v2208_v29  ;;  %v2214_v29 = vpack.c.bf16 %v2193_v40, %v2192_v26  ;;  %v2174_v26 = vld [vmem:[%s11010_s24 + $0x10] sm:$0xff] }
  0xd9   : > { %9400 = vmatprep.subr.bf16.mxu0 %v2215_v11  ;;  %v15743_v11 = vmov 0  }
  0xda   : > { %1161 = vperm.xlu0 %10224, %v10923_v7   ;;  %10147 = vset.pattern.permute.xlu1 %v15739_v63  ;;  %v11050_v50 = vpop.permute.xlu1 %1097  ;;  %v11052_v14 = vpop.permute.xlu0 %1386  ;;  %v2179_v7 = vld [vmem:[%s11010_s24 + $0x38] sm:$0xff] }
  0xdb   : > { %15740 = vst [vmem:[#allocation23_spill] sm:$0xff] %v11052_v14  ;;  %1941 = vperm.xlu1 %10147, %v10521_v20   ;;  %v2207_v14 = vpack.c.bf16 %v2179_v7, %v2178_v25  ;;  %v2176_v20 = vld [vmem:[%s11010_s24 + $0x20] sm:$0xff]  ;;  %v2191_v25 = vld [vmem:[%s11010_s24 + $0x98] sm:$0xff] }
  0xdc   : > { %v2206_v33 = vpack.c.bf16 %v2177_v0, %v2176_v20 }
  0xdd   : > { %9401 = vmatpush3.bf16.msra.mxu0 %v2207_v14  ;;  %v2190_v14 = vld [vmem:[%s11010_s24 + $0x90] sm:$0xff] }
  0xde   : > { %1165 = vperm.xlu0 %10224, %v10934_v12   ;;  %v11060_v48 = vpop.permute.xlu0 %1389  ;;  %9402 = vmatprep.subr.bf16.mxu0 %v2214_v29  ;;  %v2213_v7 = vpack.c.bf16 %v2191_v25, %v2190_v14  ;;  %v15745_v29 = vmov 1   ;;  %v2172_v14 = vld [vmem:[%s11010_s24] sm:$0xff]  ;;  %v2173_v25 = vld [vmem:[%s11010_s24 + $0x8] sm:$0xff] }
  0xdf   : > { %15741 = vst [vmem:[#allocation24_spill] sm:$0xff] %v11060_v48  ;;  %1945 = vperm.xlu1 %10147, %v10877_v51   ;;  %v11063_v21 = vpop.permute.xlu1 %1347 }
  0xe1   : > { %9403 = vmatpush3.bf16.msra.mxu0 %v2206_v33  ;;  %v2189_v33 = vld [vmem:[%s11010_s24 + $0x88] sm:$0xff] }
  0xe2   : > { %1185 = vperm.xlu0 %10224, %v10948_v27   ;;  %v11070_v12 = vpop.permute.xlu0 %1404  ;;  %v2175_v27 = vld [vmem:[%s11010_s24 + $0x18] sm:$0xff]  ;;  %9404 = vmatprep.subr.bf16.mxu0 %v2213_v7  ;;  %v15747_v7 = vmov 4  }
  0xe3   : > { %15742 = vst [vmem:[#allocation25_spill] sm:$0xff] %v11070_v12  ;;  %10148 = vset.pattern.permute.xlu1 %v15743_v11  ;;  %v2205_v20 = vpack.c.bf16 %v2175_v27, %v2174_v26  ;;  %v2188_v12 = vld [vmem:[%s11010_s24 + $0x80] sm:$0xff]  ;;  %v10522_v27 = vld [vmem:[%s10732_s25 + $0x48] sm:$0xff]  ;;  %s10619_s24 = smov 64  }
  0xe4   : > { %504 = vperm.xlu1 %10148, %v10767_v17   ;;  %v11074_v51 = vpop.permute.xlu1 %1509  ;;  %v2212_v48 = vpack.c.bf16 %v2189_v33, %v2188_v12 }
  0xe5   : > { %9405 = vmatpush3.bf16.msra.mxu0 %v2205_v20 }
  0xe6   : > { %1189 = vperm.xlu0 %10224, %v10961_v35   ;;  %v11081_v40 = vpop.permute.xlu0 %1407  ;;  %v2204_v35 = vpack.c.bf16 %v2173_v25, %v2172_v14  ;;  %9406 = vmatprep.subr.bf16.mxu0 %v2212_v48 }
  0xe7   : > { %15744 = vst [vmem:[#allocation26_spill] sm:$0xff] %v11081_v40  ;;  %v15755_v40 = vmov 6  }
  0xe8   : > { %10149 = vset.pattern.permute.xlu1 %v15745_v29  ;;  %v11084_v0 = vpop.permute.xlu1 %1513 }
  0xe9   : > { %949 = vperm.xlu1 %10149, %v10907_v62   ;;  %9407 = vmatpush3.bf16.msra.mxu0 %v2204_v35 }
  0xea   : > { %10228 = vset.pattern.permute.xlu0 %v15746_v45 }
  0xeb   : > { %v11092_v1 = vpop.permute.xlu0 %1501  ;;  %1760 = vperm.xlu0 %10228, %v10763_v15   ;;  %v15750_v15 = vmov 5  }
  0xed   : > { %10150 = vset.pattern.permute.xlu1 %v15747_v7  ;;  %v11096_v26 = vpop.permute.xlu1 %1766 }
  0xee   : > { %678 = vperm.xlu1 %10150, %v10884_v53  }
  0xef   : > { %1763 = vperm.xlu0 %10228, %v10816_v34   ;;  %v11100_v12 = vpop.permute.xlu0 %1521  ;;  %v15752_v34 = vmov 2  }
  0xf2   : > { %683 = vperm.xlu1 %10150, %v10522_v27   ;;  %v11103_v20 = vpop.permute.xlu1 %1925 }
  0xf3   : > { %15748 = vst [vmem:[#allocation27_spill] sm:$0xff] %v11103_v20  ;;  %1778 = vperm.xlu0 %10228, %v10898_v58   ;;  %v11106_v33 = vpop.permute.xlu0 %1525 }
  0xf4   : > { %15749 = vst [vmem:[#allocation28_spill] sm:$0xff] %v11106_v33 }
  0xf6   : > { %10151 = vset.pattern.permute.xlu1 %v15750_v15 }
  0xf7   : > { %1781 = vperm.xlu0 %10228, %v10907_v62   ;;  %1121 = vperm.xlu1 %10151, %v10522_v27   ;;  %v11110_v48 = vpop.permute.xlu1 %489  ;;  %v11112_v14 = vpop.permute.xlu0 %1545 }
  0xf8   : > { %15751 = vst [vmem:[#allocation29_spill] sm:$0xff] %v11112_v14 }
  0xfb   : > { %1796 = vperm.xlu0 %10228, %v10917_v4   ;;  %10152 = vset.pattern.permute.xlu1 %v15752_v34  ;;  %v11116_v25 = vpop.permute.xlu1 %492  ;;  %v11118_v35 = vpop.permute.xlu0 %1549 }
  0xfc   : > { %15753 = vst [vmem:[#allocation30_spill] sm:$0xff] %v11118_v35  ;;  %1365 = vperm.xlu1 %10152, %v10907_v62  }
  0xff   : > { %1799 = vperm.xlu0 %10228, %v10929_v10   ;;  %v11122_v58 = vpop.permute.xlu0 %1569 }
 0x100   : > { %15754 = vst [vmem:[#allocation31_spill] sm:$0xff] %v11122_v58  ;;  %10153 = vset.pattern.permute.xlu1 %v15755_v40  ;;  %v11125_v8 = vpop.permute.xlu1 %940 }
 0x101   : > { %1533 = vperm.xlu1 %10153, %v10884_v53  }
 0x103   : > { %1814 = vperm.xlu0 %10228, %v10944_v18   ;;  %v11129_v14 = vpop.permute.xlu0 %1573 }
 0x104   : > { %15756 = vst [vmem:[#allocation32_spill] sm:$0xff] %v11129_v14 }
 0x105   : > { %1537 = vperm.xlu1 %10153, %v10522_v27   ;;  %v11131_v33 = vpop.permute.xlu1 %658 }
 0x107   : > { %1817 = vperm.xlu0 %10228, %v10957_v31   ;;  %v11134_v62 = vpop.permute.xlu0 %1593  ;;  %v11151_v31 = vld [vmem:[%s10732_s25 + $0x58] sm:$0xff] }
 0x108   : > { %15757 = vst [vmem:[#allocation33_spill] sm:$0xff] %v11134_v62 }
 0x109   : > { %10154 = vset.pattern.permute.xlu1 %v15746_v45 }
 0x10a   : > { %1784 = vperm.xlu1 %10154, %v10767_v17   ;;  %v11138_v58 = vpop.permute.xlu1 %1101  ;;  %v10022_v17 = vtrunc.f32 %v11151_v31 }
 0x10b   : > { %1832 = vperm.xlu0 %10228, %v10970_v38   ;;  %v11141_v35 = vpop.permute.xlu0 %1597  ;;  %v10524_v38 = vld [vmem:[%s10732_s25 + $0x18] sm:$0xff] }
 0x10c   : > { %15758 = vst [vmem:[#allocation34_spill] sm:$0xff] %v11141_v35 }
 0x10e   : > { %10155 = vset.pattern.permute.xlu1 %v15739_v63  ;;  %v11144_v14 = vpop.permute.xlu1 %1105 }
 0x10f   : > { %1835 = vperm.xlu0 %10228, %v10979_v47   ;;  %1949 = vperm.xlu1 %10155, %v10884_v53   ;;  %v10023_v53 = vcvt.f32.s32 %v10022_v17  ;;  %v10525_v47 = vld [vmem:[%s10732_s25 + $0x20] sm:$0xff]  ;;  %v10526_v17 = vld [vmem:[%s10732_s25 + $0x50] sm:$0xff] }
 0x110   : > { %v11148_v62 = vpop.permute.xlu0 %477 }
 0x113   : > { %10232 = vset.pattern.permute.xlu0 %v15739_v63  ;;  %10156 = vset.pattern.permute.xlu1 %v15743_v11  ;;  %v11156_v35 = vpop.permute.xlu1 %1356 }
 0x114   : > { %1929 = vperm.xlu0 %10232, %v10524_v38   ;;  %v11159_v18 = vpop.permute.xlu0 %480  ;;  %507 = vperm.xlu1 %10156, %v10771_v19  }
 0x118   : > { %1933 = vperm.xlu0 %10232, %v10525_v47   ;;  %v11163_v32 = vpop.permute.xlu0 %483  ;;  %510 = vperm.xlu1 %10156, %v10023_v53   ;;  %v11165_v3 = vpop.permute.xlu1 %1517 }
 0x119   : > { %15759 = vst [vmem:[#allocation35_spill] sm:$0xff] %v11165_v3  ;;  %v10529_v3 = vld [vmem:[%s10732_s25 + $0xa8] sm:$0xff] }
 0x11c   : > { %1953 = vperm.xlu0 %10232, %v10522_v27   ;;  %10158 = vset.pattern.permute.xlu1 %v15745_v29  ;;  %v11168_v20 = vpop.permute.xlu0 %498  ;;  %v11181_v27 = vld [vmem:[%s10732_s25 + $0x78] sm:$0xff] }
 0x11d   : > { %15760 = vst [vmem:[#allocation36_spill] sm:$0xff] %v11168_v20  ;;  %958 = vperm.xlu1 %10158, %v10023_v53   ;;  %v11170_v38 = vpop.permute.xlu1 %1769  ;;  %15765 = vst [vmem:[#allocation41_spill] sm:$0xff] %v11181_v27  ;;  %v11190_v20 = vld [vmem:[%s10732_s25 + $0x80] sm:$0xff] }
 0x11e   : > { %15761 = vst [vmem:[#allocation37_spill] sm:$0xff] %v11170_v38  ;;  %15768 = vst [vmem:[#allocation44_spill] sm:$0xff] %v11190_v20 }
 0x120   : > { %v11172_v37 = vpop.permute.xlu0 %501  ;;  %1957 = vperm.xlu0 %10232, %v10526_v17  }
 0x121   : > { %15762 = vst [vmem:[#allocation38_spill] sm:$0xff] %v11172_v37  ;;  %10159 = vset.pattern.permute.xlu1 %v15747_v7  ;;  %v11176_v47 = vpop.permute.xlu1 %1772 }
 0x122   : > { %15763 = vst [vmem:[#allocation39_spill] sm:$0xff] %v11176_v47  ;;  %688 = vperm.xlu1 %10159, %v10526_v17  }
 0x124   : > { %v11178_v30 = vpop.permute.xlu0 %516  ;;  %1977 = vperm.xlu0 %10232, %v11181_v27  }
 0x125   : > { %15764 = vst [vmem:[#allocation40_spill] sm:$0xff] %v11178_v30 }
 0x126   : > { %10160 = vset.pattern.permute.xlu1 %v15750_v15  ;;  %v11185_v38 = vpop.permute.xlu1 %1937 }
 0x127   : > { %15766 = vst [vmem:[#allocation42_spill] sm:$0xff] %v11185_v38  ;;  %1125 = vperm.xlu1 %10160, %v10526_v17  }
 0x128   : > { %v11187_v37 = vpop.permute.xlu0 %519  ;;  %1981 = vperm.xlu0 %10232, %v11190_v20  }
 0x129   : > { %15767 = vst [vmem:[#allocation43_spill] sm:$0xff] %v11187_v37  ;;  %v11206_v37 = vld [vmem:[%s10732_s25 + $0xd8] sm:$0xff] }
 0x12a   : > { %15772 = vst [vmem:[#allocation48_spill] sm:$0xff] %v11206_v37 }
 0x12b   : > { %1129 = vperm.xlu1 %10160, %v11151_v31   ;;  %v11194_v47 = vpop.permute.xlu1 %495 }
 0x12c   : > { %15769 = vst [vmem:[#allocation45_spill] sm:$0xff] %v11194_v47  ;;  %v11196_v30 = vpop.permute.xlu0 %534  ;;  %2001 = vperm.xlu0 %10232, %v10529_v3  }
 0x12d   : > { %15770 = vst [vmem:[#allocation46_spill] sm:$0xff] %v11196_v30  ;;  %v11226_v30 = vld [vmem:[%s10732_s25 + $0x60] sm:$0xff] }
 0x12f   : > { %10161 = vset.pattern.permute.xlu1 %v15752_v34 }
 0x130   : > { %1374 = vperm.xlu1 %10161, %v10023_v53   ;;  %v11200_v27 = vpop.permute.xlu1 %943  ;;  %v11202_v38 = vpop.permute.xlu0 %537  ;;  %2005 = vperm.xlu0 %10232, %v10835_v41  }
 0x131   : > { %15771 = vst [vmem:[#allocation47_spill] sm:$0xff] %v11202_v38 }
 0x134   : > { %10162 = vset.pattern.permute.xlu1 %v15755_v40  ;;  %v11209_v20 = vpop.permute.xlu1 %946  ;;  %v11211_v47 = vpop.permute.xlu0 %552  ;;  %2025 = vperm.xlu0 %10232, %v11206_v37  }
 0x135   : > { %15773 = vst [vmem:[#allocation49_spill] sm:$0xff] %v11209_v20  ;;  %15774 = vst [vmem:[#allocation50_spill] sm:$0xff] %v11211_v47  ;;  %1541 = vperm.xlu1 %10162, %v10526_v17   ;;  %v10024_v17 = vtrunc.f32 %v11226_v30 }
 0x138   : > { %v11214_v3 = vpop.permute.xlu0 %555  ;;  %10235 = vset.pattern.permute.xlu0 %v15745_v29 }
 0x139   : > { %15775 = vst [vmem:[#allocation51_spill] sm:$0xff] %v11214_v3  ;;  %10163 = vset.pattern.permute.xlu1 %v15746_v45  ;;  %v11218_v38 = vpop.permute.xlu1 %673  ;;  %970 = vperm.xlu0 %10235, %v10831_v39  }
 0x13a   : > { %15776 = vst [vmem:[#allocation52_spill] sm:$0xff] %v11218_v38  ;;  %1787 = vperm.xlu1 %10163, %v10771_v19   ;;  %v11236_v19 = vcvt.f32.s32 %v10024_v17 }
 0x13d   : > { %v1090_v41 = vpop.permute.xlu0 %1089  ;;  %973 = vperm.xlu0 %10235, %v10839_v42  }
 0x13e   : > { %1790 = vperm.xlu1 %10163, %v10023_v53   ;;  %v11223_v47 = vpop.permute.xlu1 %1109 }
 0x13f   : > { %15777 = vst [vmem:[#allocation53_spill] sm:$0xff] %v11223_v47 }
 0x141   : > { %v11229_v3 = vpop.permute.xlu0 %1093  ;;  %988 = vperm.xlu0 %10235, %v10843_v44  }
 0x142   : > { %10164 = vset.pattern.permute.xlu1 %v15739_v63 }
 0x143   : > { %1961 = vperm.xlu1 %10164, %v11151_v31   ;;  %v11234_v37 = vpop.permute.xlu1 %1359 }
 0x144   : > { %15778 = vst [vmem:[#allocation54_spill] sm:$0xff] %v11234_v37 }
 0x145   : > { %v11238_v42 = vpop.permute.xlu0 %1113  ;;  %991 = vperm.xlu0 %10235, %v10848_v46  }
 0x146   : > { %15779 = vst [vmem:[#allocation55_spill] sm:$0xff] %v11238_v42  ;;  %v441_v42 = vlaneseq }
 0x147   : > { %10165 = vset.pattern.permute.xlu1 %v15743_v11  ;;  %v11242_v53 = vpop.permute.xlu1 %1362 }
 0x148   : > { %15780 = vst [vmem:[#allocation56_spill] sm:$0xff] %v11242_v53  ;;  %513 = vperm.xlu1 %10165, %v11236_v19  }
 0x149   : > { %v11245_v38 = vpop.permute.xlu0 %1117 }
 0x14a   : > { %15781 = vst [vmem:[#allocation57_spill] sm:$0xff] %v11245_v38  ;;  %v11261_v38 = vand.u32 127, %v441_v42 }
 0x14c   : > { %10166 = vset.pattern.permute.xlu1 %v15745_v29  ;;  %v11248_v44 = vpop.permute.xlu1 %1529  ;;  %vm572_vm0 = vcmp.eq.s32.totalorder %v11261_v38, %v11148_v62  ;;  %vm1022_vm2 = vcmp.eq.s32.totalorder %v11261_v38, %v10905_v61  ;;  %vm574_vm4 = vcmp.eq.s32.totalorder %v11261_v38, %v11159_v18  ;;  %vm1020_vm6 = vcmp.eq.s32.totalorder %v11261_v38, %v10896_v57 }
 0x14d   : > { %15782 = vst [vmem:[#allocation58_spill] sm:$0xff] %v11248_v44  ;;  %961 = vperm.xlu1 %10166, %v11236_v19   ;;  %v11251_v31 = vpop.permute.xlu0 %1137  ;;  %vm1436_vm8 = vcmp.eq.s32.totalorder %v11261_v38, %v10937_v13  ;;  %vm1438_vm10 = vcmp.eq.s32.totalorder %v11261_v38, %v10951_v28  ;;  %vm1852_vm14 = vcmp.eq.s32.totalorder %v11261_v38, %v10975_v43 }
 0x14e   : > { %15783 = vst [vmem:[#allocation59_spill] sm:$0xff] %v11251_v31  ;;  %v11269_v31 = vadd.s32 128, %v11261_v38 }
 0x150   : > { %vm573_vm1 = vcmp.eq.s32.totalorder %v11269_v31, %v11148_v62  ;;  %vm1023_vm3 = vcmp.eq.s32.totalorder %v11269_v31, %v10905_v61  ;;  %vm575_vm5 = vcmp.eq.s32.totalorder %v11269_v31, %v11159_v18  ;;  %vm1021_vm7 = vcmp.eq.s32.totalorder %v11269_v31, %v10896_v57 }
 0x151   : > { %964 = vperm.xlu1 %10166, %v10917_v4   ;;  %v11254_v17 = vpop.permute.xlu1 %1775  ;;  %v11256_v46 = vpop.permute.xlu0 %1141  ;;  %v1214_v61 = vsel %vm1022_vm2, %v1090_v41, 0.0  ;;  %vm1437_vm9 = vcmp.eq.s32.totalorder %v11269_v31, %v10937_v13  ;;  %vm1439_vm11 = vcmp.eq.s32.totalorder %v11269_v31, %v10951_v28  ;;  %vm1853_vm15 = vcmp.eq.s32.totalorder %v11269_v31, %v10975_v43 }
 0x152   : > { %15784 = vst [vmem:[#allocation60_spill] sm:$0xff] %v11254_v17  ;;  %15785 = vst [vmem:[#allocation61_spill] sm:$0xff] %v11256_v46  ;;  %v1213_v46 = vsel %vm1021_vm7, %v10920_v6, 0.0  ;;  %vm1442_vm2 = vcmp.eq.s32.totalorder %v11261_v38, %v11004_v9  ;;  %vm1443_vm7 = vcmp.eq.s32.totalorder %v11269_v31, %v11004_v9 }
 0x155   : > { %10167 = vset.pattern.permute.xlu1 %v15747_v7  ;;  %v11259_v53 = vpop.permute.xlu0 %1161 }
 0x156   : > { %15786 = vst [vmem:[#allocation62_spill] sm:$0xff] %v11259_v53  ;;  %703 = vperm.xlu1 %10167, %v10892_v56   ;;  %v11264_v44 = vpop.permute.xlu1 %1941  ;;  %v797_v53 = vsel %vm573_vm1, %v10942_v16, 0.0  ;;  %vm1027_vm1 = vcmp.eq.s32.totalorder %v11269_v31, %v10889_v55 }
 0x157   : > { %15787 = vst [vmem:[#allocation63_spill] sm:$0xff] %v11264_v44 }
 0x159   : > { %v11266_v37 = vpop.permute.xlu0 %1165 }
 0x15a   : > { %15788 = vst [vmem:[#allocation64_spill] sm:$0xff] %v11266_v37  ;;  %10168 = vset.pattern.permute.xlu1 %v15750_v15  ;;  %v11272_v17 = vpop.permute.xlu1 %1945  ;;  %v796_v37 = vsel %vm572_vm0, %v10942_v16, 0.0  ;;  %v1212_v16 = vsel %vm1020_vm6, %v10920_v6, 0.0  ;;  %v1630_v6 = vsel %vm1438_vm10, %v10964_v36, 0.0  ;;  %vm1026_vm0 = vcmp.eq.s32.totalorder %v11261_v38, %v10889_v55 }
 0x15b   : > { %15789 = vst [vmem:[#allocation65_spill] sm:$0xff] %v11272_v17  ;;  %1133 = vperm.xlu1 %10168, %v11226_v30   ;;  %v1276_v18 = vadd.f32 %v1212_v16, %v796_v37  ;;  %v1277_v17 = vadd.f32 %v1213_v46, %v797_v53  ;;  %v1628_v46 = vsel %vm1436_vm8, %v11092_v1, 0.0  ;;  %v1631_v37 = vsel %vm1439_vm11, %v10964_v36, 0.0 }
 0x15c   : > { %vm579_vm6 = vcmp.eq.s32.totalorder %v11269_v31, %v11000_v5  ;;  %v1219_v55 = vsel %vm1027_vm1, %v11050_v50, 0.0  ;;  %vm1444_vm8 = vcmp.eq.s32.totalorder %v11261_v38, %v11020_v54  ;;  %vm1024_vm10 = vcmp.eq.s32.totalorder %v11261_v38, %v11013_v23 }
 0x15d   : > { %v11279_v42 = vpop.permute.xlu0 %1185  ;;  %vm1025_vm11 = vcmp.eq.s32.totalorder %v11269_v31, %v11013_v23  ;;  %vm583_vm1 = vcmp.eq.s32.totalorder %v11269_v31, %v11116_v25  ;;  %v15798_v23 = vld [vmem:[#allocation41_spill] sm:$0xff] }
 0x15e   : > { %15790 = vst [vmem:[#allocation66_spill] sm:$0xff] %v11279_v42  ;;  %v1215_v42 = vsel %vm1023_vm3, %v1090_v41, 0.0  ;;  %vm1028_vm3 = vcmp.eq.s32.totalorder %v11261_v38, %v10901_v60 }
 0x15f   : > { %10169 = vset.pattern.permute.xlu1 %v15752_v34  ;;  %v11292_v62 = vpop.permute.xlu1 %504  ;;  %v799_v34 = vsel %vm575_vm5, %v10881_v52, 0.0  ;;  %vm578_vm5 = vcmp.eq.s32.totalorder %v11261_v38, %v11000_v5 }
 0x160   : > { %15791 = vst [vmem:[#allocation67_spill] sm:$0xff] %v11292_v62  ;;  %1377 = vperm.xlu1 %10169, %v11236_v19   ;;  %v798_v62 = vsel %vm574_vm4, %v10881_v52, 0.0  ;;  %v1279_v20 = vadd.f32 %v1215_v42, %v799_v34  ;;  %v1629_v52 = vsel %vm1437_vm9, %v11092_v1, 0.0  ;;  %v1692_v34 = vadd.f32 %v1628_v46, %v1276_v18 }
 0x161   : > { %v11301_v44 = vpop.permute.xlu0 %1189  ;;  %v1278_v47 = vadd.f32 %v1214_v61, %v798_v62  ;;  %v1693_v41 = vadd.f32 %v1629_v52, %v1277_v17  ;;  %v2044_v1 = vsel %vm1852_vm14, %v10986_v49, 0.0  ;;  %vm1029_vm4 = vcmp.eq.s32.totalorder %v11269_v31, %v10901_v60 }
 0x162   : > { %15792 = vst [vmem:[#allocation68_spill] sm:$0xff] %v11301_v44  ;;  %v1695_v53 = vadd.f32 %v1631_v37, %v1279_v20  ;;  %v2045_v20 = vsel %vm1853_vm15, %v10986_v49, 0.0  ;;  %v2108_v43 = vadd.f32 %v2044_v1, %v1692_v34  ;;  %vm1445_vm9 = vcmp.eq.s32.totalorder %v11269_v31, %v11020_v54 }
 0x163   : > { %v2109_v61 = vadd.f32 %v2045_v20, %v1693_v41  ;;  %v802_v34 = vsel %vm578_vm5, %v11036_v24, 0.0  ;;  %vm582_vm14 = vcmp.eq.s32.totalorder %v11261_v38, %v11116_v25  ;;  %vm1030_vm15 = vcmp.eq.s32.totalorder %v11261_v38, %v11125_v8 }
 0x164   : > { %1380 = vperm.xlu1 %10169, %v10917_v4   ;;  %v11310_v57 = vpop.permute.xlu1 %949  ;;  %v1694_v4 = vadd.f32 %v1630_v6, %v1278_v47  ;;  %v1222_v9 = vsel %vm1030_vm15, %v11144_v14, 0.0  ;;  %vm1447_vm5 = vcmp.eq.s32.totalorder %v11269_v31, %v11156_v35  ;;  %v806_v25 = vsel %vm582_vm14, %v10955_v22, 0.0 }
 0x165   : > { %v807_v20 = vsel %vm583_vm1, %v10955_v22, 0.0 }
 0x166   : > { %v1761_v13 = vpop.permute.xlu0 %1760 }
 0x167   : > { %vm1854_vm12 = vcmp.eq.s32.totalorder %v11261_v38, %v1761_v13  ;;  %vm1855_vm13 = vcmp.eq.s32.totalorder %v11269_v31, %v1761_v13  ;;  %v1634_v13 = vsel %vm1442_vm2, %v11084_v0, 0.0  ;;  %vm1031_vm2 = vcmp.eq.s32.totalorder %v11269_v31, %v11125_v8 }
 0x168   : > { %v2046_v28 = vsel %vm1854_vm12, %v10993_v59, 0.0  ;;  %10170 = vset.pattern.permute.xlu1 %v15755_v40  ;;  %v2047_v36 = vsel %vm1855_vm13, %v10993_v59, 0.0  ;;  %vm1440_vm12 = vcmp.eq.s32.totalorder %v11261_v38, %v11063_v21  ;;  %vm1441_vm13 = vcmp.eq.s32.totalorder %v11269_v31, %v11063_v21 }
 0x169   : > { %v2110_v47 = vadd.f32 %v2046_v28, %v1694_v4  ;;  %1553 = vperm.xlu1 %10170, %v10892_v56   ;;  %v11331_v17 = vpop.permute.xlu1 %678  ;;  %v2111_v42 = vadd.f32 %v2047_v36, %v1695_v53  ;;  %v11395_v53 = vsel %vm1440_vm12, %v11074_v51, 0.0  ;;  %v11398_v28 = vsel %vm1441_vm13, %v11074_v51, 0.0 }
 0x16a   : > { %v11334_v62 = vpop.permute.xlu0 %1763  ;;  %v1635_v36 = vsel %vm1443_vm7, %v11084_v0, 0.0  ;;  %vm581_vm7 = vcmp.eq.s32.totalorder %v11269_v31, %v11110_v48  ;;  %v1223_v0 = vsel %vm1031_vm2, %v11144_v14, 0.0  ;;  %v1220_v8 = vsel %vm1028_vm3, %v11138_v58, 0.0 }
 0x16b   : > { %v2221_v16 = vpack.c.bf16 %v2111_v42, %v2109_v61  ;;  %v2220_v18 = vpack.c.bf16 %v2110_v47, %v2108_v43  ;;  %v1286_v42 = vadd.f32 %v1222_v9, %v806_v25  ;;  %v1639_v14 = vsel %vm1447_vm5, %v11100_v12, 0.0 }
 0x16c   : > { %v805_v43 = vsel %vm581_vm7, %v11131_v33, 0.0  ;;  %vm576_vm3 = vcmp.eq.s32.totalorder %v11261_v38, %v11163_v32  ;;  %vm1858_vm12 = vcmp.eq.s32.totalorder %v11261_v38, %v11096_v26  ;;  %vm1859_vm13 = vcmp.eq.s32.totalorder %v11269_v31, %v11096_v26 }
 0x16d   : > { %10171 = vset.pattern.permute.xlu1 %v15746_v45  ;;  %v11337_v46 = vpop.permute.xlu1 %683  ;;  %2284 = vmatprep.mubr.bf16.mxu0 %v2221_v16  ;;  %v1287_v16 = vadd.f32 %v1223_v0, %v807_v20  ;;  %v15797_v0 = vld [vmem:[#allocation45_spill] sm:$0xff]  ;;  %vm1857_vm14 = vcmp.eq.s32.totalorder %v11269_v31, %v11334_v62  ;;  %v15800_v20 = vld [vmem:[#allocation36_spill] sm:$0xff] }
 0x16e   : > { %v11339_v59 = vpop.permute.xlu0 %1778  ;;  %1793 = vperm.xlu1 %10171, %v11236_v19   ;;  %2285 = vmatmul.mubr.bf16.vlgmr.msra.gmra.mxu0 %v2220_v18  ;;  %vm586_vm15 = vcmp.eq.s32.totalorder %v11261_v38, %v15800_v20  ;;  %vm584_vm5 = vcmp.eq.s32.totalorder %v11261_v38, %v15797_v0 }
 0x172   : > { %10172 = vset.pattern.permute.xlu1 %v15739_v63  ;;  %v11343_v49 = vpop.permute.xlu1 %1121  ;;  %v11345_v52 = vpop.permute.xlu0 %1781 }
 0x173   : > { %1965 = vperm.xlu1 %10172, %v11226_v30  }
 0x176   : > { %v11348_v6 = vpop.permute.xlu0 %1796 }
 0x177   : > { %1969 = vperm.xlu1 %10172, %v10892_v56   ;;  %v11351_v37 = vpop.permute.xlu1 %1365  ;;  %v1218_v56 = vsel %vm1026_vm0, %v11050_v50, 0.0  ;;  %v803_v50 = vsel %vm579_vm6, %v11036_v24, 0.0  ;;  %vm1446_vm0 = vcmp.eq.s32.totalorder %v11261_v38, %v11156_v35  ;;  %vm580_vm6 = vcmp.eq.s32.totalorder %v11261_v38, %v11110_v48 }
 0x178   : > { %v1282_v5 = vadd.f32 %v1218_v56, %v802_v34  ;;  %v1283_v4 = vadd.f32 %v1219_v55, %v803_v50  ;;  %v1221_v35 = vsel %vm1029_vm4, %v11138_v58, 0.0  ;;  %v1638_v47 = vsel %vm1446_vm0, %v11100_v12, 0.0  ;;  %v15793_v58 = vld [vmem:[#allocation35_spill] sm:$0xff]  ;;  %v15794_v34 = vld [vmem:[#allocation20_spill] sm:$0xff] }
 0x179   : > { %v804_v48 = vsel %vm580_vm6, %v11131_v33, 0.0  ;;  %vm577_vm4 = vcmp.eq.s32.totalorder %v11269_v31, %v11163_v32  ;;  %v1285_v12 = vadd.f32 %v1221_v35, %v805_v43  ;;  %v1702_v33 = vadd.f32 %v1638_v47, %v1286_v42 }
 0x17a   : > { %v11357_v19 = vpop.permute.xlu0 %1799  ;;  %v11407_v1 = vadd.f32 %v1634_v13, %v1282_v5  ;;  %v11425_v51 = vadd.f32 %v1635_v36, %v1283_v4  ;;  %v1284_v22 = vadd.f32 %v1220_v8, %v804_v48  ;;  %v1636_v18 = vsel %vm1444_vm8, %v15793_v58, 0.0  ;;  %v15795_v5 = vld [vmem:[#allocation39_spill] sm:$0xff]  ;;  %v15796_v4 = vld [vmem:[#allocation42_spill] sm:$0xff]  ;;  %v15801_v48 = vld [vmem:[#allocation37_spill] sm:$0xff] }
 0x17b   : > { %10173 = vset.pattern.permute.xlu1 %v15743_v11  ;;  %v1703_v56 = vadd.f32 %v1639_v14, %v1287_v16  ;;  %v1216_v32 = vsel %vm1024_vm10, %v11229_v3, 0.0  ;;  %v1217_v55 = vsel %vm1025_vm11, %v11229_v3, 0.0  ;;  %v800_v13 = vsel %vm576_vm3, %v15794_v34, 0.0  ;;  %v15803_v16 = vld [vmem:[#allocation27_spill] sm:$0xff] }
 0x17c   : > { %522 = vperm.xlu1 %10173, %v10831_v39   ;;  %v11368_v30 = vpop.permute.xlu1 %1533  ;;  %v801_v50 = vsel %vm577_vm4, %v15794_v34, 0.0  ;;  %vm1862_vm8 = vcmp.eq.s32.totalorder %v11261_v38, %v15795_v5  ;;  %v11482_v54 = vadd.f32 %v1636_v18, %v1284_v22  ;;  %vm585_vm10 = vcmp.eq.s32.totalorder %v11269_v31, %v15797_v0  ;;  %v15807_v34 = vld [vmem:[#allocation53_spill] sm:$0xff] }
 0x17d   : > { %v2054_v36 = vsel %vm1862_vm8, %v15796_v4, 0.0  ;;  %v1280_v8 = vadd.f32 %v1216_v32, %v800_v13  ;;  %v1281_v35 = vadd.f32 %v1217_v55, %v801_v50  ;;  %vm1856_vm11 = vcmp.eq.s32.totalorder %v11261_v38, %v11334_v62  ;;  %v15802_v62 = vld [vmem:[#allocation13_spill] sm:$0xff]  ;;  %v15806_v55 = vld [vmem:[#allocation38_spill] sm:$0xff] }
 0x17e   : > { %v11383_v41 = vpop.permute.xlu0 %1814  ;;  %vm587_vm0 = vcmp.eq.s32.totalorder %v11269_v31, %v15800_v20  ;;  %vm1860_vm1 = vcmp.eq.s32.totalorder %v11261_v38, %v15801_v48  ;;  %vm1861_vm2 = vcmp.eq.s32.totalorder %v11269_v31, %v15801_v48  ;;  %v11505_v42 = vadd.f32 %v2054_v36, %v1702_v33  ;;  %v15804_v33 = vld [vmem:[#allocation9_spill] sm:$0xff] }
 0x17f   : > { %v809_v43 = vsel %vm585_vm10, %v15802_v62, 0.0  ;;  %vm1032_vm6 = vcmp.eq.s32.totalorder %v11261_v38, %v11200_v27  ;;  %v2048_v22 = vsel %vm1856_vm11, %v15803_v16, 0.0  ;;  %vm1039_vm7 = vcmp.eq.s32.totalorder %v11269_v31, %v15804_v33 }
 0x180   : > { %10174 = vset.pattern.permute.xlu1 %v15745_v29  ;;  %v11405_v24 = vpop.permute.xlu1 %1537  ;;  %vm1033_vm3 = vcmp.eq.s32.totalorder %v11269_v31, %v11200_v27  ;;  %v1696_v18 = vadd.f32 %v11395_v53, %v1280_v8  ;;  %vm589_vm8 = vcmp.eq.s32.totalorder %v11269_v31, %v15806_v55  ;;  %v15809_v8 = vld [vmem:[#allocation52_spill] sm:$0xff]  ;;  %vm1867_vm11 = vcmp.eq.s32.totalorder %v11269_v31, %v11339_v59 }
 0x181   : > { %967 = vperm.xlu1 %10174, %v10929_v10   ;;  %v1225_v13 = vsel %vm1033_vm3, %v15807_v34, 0.0  ;;  %v811_v26 = vsel %vm587_vm0, %v15809_v8, 0.0  ;;  %v1224_v20 = vsel %vm1032_vm6, %v15807_v34, 0.0  ;;  %vm1037_vm6 = vcmp.eq.s32.totalorder %v11269_v31, %v11310_v57 }
 0x182   : > { %v11423_v21 = vpop.permute.xlu0 %1817  ;;  %vm1869_vm3 = vcmp.eq.s32.totalorder %v11269_v31, %v11345_v52 }
 0x185   : > { %10175 = vset.pattern.permute.xlu1 %v15747_v7  ;;  %v11446_v61 = vpop.permute.xlu1 %1784 }
 0x186   : > { %708 = vperm.xlu1 %10175, %v10912_v2   ;;  %v11454_v60 = vpop.permute.xlu0 %1832  ;;  %v1637_v2 = vsel %vm1445_vm9, %v15793_v58, 0.0  ;;  %vm1863_vm9 = vcmp.eq.s32.totalorder %v11269_v31, %v15795_v5  ;;  %v15805_v58 = vld [vmem:[#allocation49_spill] sm:$0xff]  ;;  %v2112_v5 = vadd.f32 %v2048_v22, %v1696_v18 }
 0x187   : > { %v2055_v9 = vsel %vm1863_vm9, %v15796_v4, 0.0  ;;  %v1701_v47 = vadd.f32 %v1637_v2, %v1285_v12  ;;  %v2049_v12 = vsel %vm1857_vm14, %v15803_v16, 0.0  ;;  %vm1034_vm4 = vcmp.eq.s32.totalorder %v11261_v38, %v15805_v58  ;;  %v15810_v16 = vld [vmem:[#allocation54_spill] sm:$0xff] }
 0x188   : > { %v11507_v14 = vadd.f32 %v2055_v9, %v1703_v56  ;;  %v1697_v56 = vadd.f32 %v11398_v28, %v1281_v35  ;;  %vm1035_vm9 = vcmp.eq.s32.totalorder %v11269_v31, %v15805_v58  ;;  %v15808_v28 = vld [vmem:[#allocation21_spill] sm:$0xff]  ;;  %v810_v35 = vsel %vm586_vm15, %v15809_v8, 0.0  ;;  %v15814_v8 = vld [vmem:[#allocation58_spill] sm:$0xff] }
 0x189   : > { %vm1455_vm10 = vcmp.eq.s32.totalorder %v11269_v31, %v15808_v28  ;;  %vm1038_vm14 = vcmp.eq.s32.totalorder %v11261_v38, %v15804_v33  ;;  %vm1448_vm15 = vcmp.eq.s32.totalorder %v11261_v38, %v15810_v16  ;;  %v15816_v58 = vld [vmem:[#allocation65_spill] sm:$0xff] }
 0x18a   : > { %713 = vperm.xlu1 %10175, %v15798_v23   ;;  %v11489_v3 = vpop.permute.xlu1 %1949  ;;  %v11491_v25 = vpop.permute.xlu0 %1835  ;;  %v2113_v4 = vadd.f32 %v2049_v12, %v1697_v56  ;;  %v15812_v12 = vld [vmem:[#allocation56_spill] sm:$0xff] }
 0x18b   : > { %15799 = vst [vmem:[#allocation35_spill] sm:$0xff] %v11491_v25  ;;  %vm1450_vm0 = vcmp.eq.s32.totalorder %v11261_v38, %v15812_v12 }
 0x18e   : > { %10176 = vset.pattern.permute.xlu1 %v15750_v15 }
 0x18f   : > { %v1930_v2 = vpop.permute.xlu0 %1929  ;;  %1145 = vperm.xlu1 %10176, %v15798_v23   ;;  %v11529_v32 = vpop.permute.xlu1 %507 }
 0x190   : > { %v2050_v50 = vsel %vm1858_vm12, %v1930_v2, 0.0  ;;  %v2051_v53 = vsel %vm1859_vm13, %v1930_v2, 0.0  ;;  %vm1449_vm12 = vcmp.eq.s32.totalorder %v11269_v31, %v15810_v16  ;;  %v15811_v2 = vld [vmem:[#allocation55_spill] sm:$0xff]  ;;  %vm1451_vm13 = vcmp.eq.s32.totalorder %v11269_v31, %v15812_v12 }
 0x191   : > { %v2114_v36 = vadd.f32 %v2050_v50, %v11407_v1  ;;  %v2115_v9 = vadd.f32 %v2051_v53, %v11425_v51  ;;  %v1227_v22 = vsel %vm1035_vm9, %v15811_v2, 0.0  ;;  %v15813_v51 = vmov 2  }
 0x192   : > { %v1289_v53 = vadd.f32 %v1225_v13, %v809_v43  ;;  %v1643_v25 = vsel %vm1451_vm13, %v15814_v8, 0.0  ;;  %v15815_v43 = vld [vmem:[#allocation28_spill] sm:$0xff]  ;;  %vm588_vm9 = vcmp.eq.s32.totalorder %v11261_v38, %v15806_v55  ;;  %vm1036_vm13 = vcmp.eq.s32.totalorder %v11261_v38, %v11310_v57 }
 0x193   : > { %v1934_v1 = vpop.permute.xlu0 %1933  ;;  %10177 = vset.pattern.permute.xlu1 %v15813_v51  ;;  %v11562_v18 = vpop.permute.xlu1 %510  ;;  %v2223_v56 = vpack.c.bf16 %v2115_v9, %v2113_v4  ;;  %v2222_v50 = vpack.c.bf16 %v2114_v36, %v2112_v5  ;;  %v1226_v4 = vsel %vm1034_vm4, %v15811_v2, 0.0  ;;  %v1291_v5 = vadd.f32 %v1227_v22, %v811_v26  ;;  %v15817_v13 = vld [vmem:[#allocation60_spill] sm:$0xff]  ;;  %v15818_v2 = vld [vmem:[#allocation63_spill] sm:$0xff] }
 0x194   : > { %v2053_v44 = vsel %vm1861_vm2, %v1934_v1, 0.0  ;;  %1383 = vperm.xlu1 %10177, %v10929_v10   ;;  %v2052_v27 = vsel %vm1860_vm1, %v1934_v1, 0.0  ;;  %v1641_v10 = vsel %vm1449_vm12, %v15815_v43, 0.0  ;;  %vm1865_vm1 = vcmp.eq.s32.totalorder %v11269_v31, %v15817_v13 }
 0x195   : > { %v2117_v34 = vadd.f32 %v2053_v44, %v1701_v47  ;;  %2292 = vmatprep.mubr.bf16.mxu0 %v2223_v56  ;;  %v2059_v44 = vsel %vm1867_vm11, %v15816_v58, 0.0  ;;  %v1642_v47 = vsel %vm1450_vm0, %v15814_v8, 0.0  ;;  %v1707_v48 = vadd.f32 %v1643_v25, %v1291_v5 }
 0x196   : > { %2293 = vmatmul.mubr.bf16.gmra.mxu0 %v2222_v50  ;;  %v808_v9 = vsel %vm584_vm5, %v15802_v62, 0.0  ;;  %v1290_v26 = vadd.f32 %v1226_v4, %v810_v35  ;;  %v2057_v22 = vsel %vm1865_vm1, %v15818_v2, 0.0  ;;  %v2116_v12 = vadd.f32 %v2052_v27, %v11482_v54  ;;  %v15819_v35 = vld [vmem:[#allocation67_spill] sm:$0xff]  ;;  %v10531_v50 = vld [vmem:[%s10732_s25 + $0x70] sm:$0xff] }
 0x197   : > { %v2225_v36 = vpack.c.bf16 %v11507_v14, %v2117_v34  ;;  %v1288_v25 = vadd.f32 %v1224_v20, %v808_v9  ;;  %v1705_v56 = vadd.f32 %v1641_v10, %v1289_v53  ;;  %vm1866_vm2 = vcmp.eq.s32.totalorder %v11261_v38, %v11339_v59  ;;  %v1954_v53 = vpop.permute.xlu0 %1953  ;;  %v15820_v10 = vld [vmem:[#allocation57_spill] sm:$0xff] }
 0x198   : > { %10178 = vset.pattern.permute.xlu1 %v15755_v40  ;;  %v11605_v1 = vpop.permute.xlu1 %958  ;;  %v2123_v14 = vadd.f32 %v2059_v44, %v1707_v48  ;;  %v1640_v0 = vsel %vm1448_vm15, %v15815_v43, 0.0  ;;  %v1706_v62 = vadd.f32 %v1642_v47, %v1290_v26  ;;  %vm591_vm5 = vcmp.eq.s32.totalorder %v11269_v31, %v15819_v35 }
 0x199   : > { %2300 = vmatprep.mubr.bf16.mxu0 %v2225_v36  ;;  %v1231_v54 = vsel %vm1039_vm7, %v11343_v49, 0.0  ;;  %1557 = vperm.xlu1 %10178, %v10531_v50   ;;  %v2121_v20 = vadd.f32 %v2057_v22, %v1705_v56  ;;  %v813_v59 = vsel %vm589_vm8, %v11331_v17, 0.0  ;;  %v815_v16 = vsel %vm591_vm5, %v11337_v46, 0.0 }
 0x19a   : > { %v2058_v8 = vsel %vm1866_vm2, %v15816_v58, 0.0  ;;  %v1647_v4 = vsel %vm1455_vm10, %v11405_v24, 0.0  ;;  %v2224_v5 = vpack.c.bf16 %v11505_v42, %v2116_v12  ;;  %v1295_v27 = vadd.f32 %v1231_v54, %v815_v16  ;;  %v11682_v54 = vld [vmem:[%s10732_s25 + $0x88] sm:$0xff] }
 0x19b   : > { %vm1453_vm7 = vcmp.eq.s32.totalorder %v11269_v31, %v11351_v37  ;;  %vm1871_vm4 = vcmp.eq.s32.totalorder %v11269_v31, %v11446_v61  ;;  %v2227_v43 = vpack.c.bf16 %v2123_v14, %v2121_v20  ;;  %vm1864_vm8 = vcmp.eq.s32.totalorder %v11261_v38, %v15817_v13 }
 0x19c   : > { %v1229_v58 = vsel %vm1037_vm6, %v15820_v10, 0.0  ;;  %v1645_v44 = vsel %vm1453_vm7, %v11368_v30, 0.0  ;;  %v2063_v47 = vsel %vm1871_vm4, %v1954_v53, 0.0  ;;  %v2056_v42 = vsel %vm1864_vm8, %v15818_v2, 0.0 }
 0x19d   : > { %v11639_v34 = vpop.permute.xlu1 %688  ;;  %1561 = vperm.xlu1 %10178, %v15798_v23   ;;  %v1293_v48 = vadd.f32 %v1229_v58, %v813_v59  ;;  %v1711_v36 = vadd.f32 %v1647_v4, %v1295_v27  ;;  %vm1454_vm10 = vcmp.eq.s32.totalorder %v11261_v38, %v15808_v28  ;;  %v1704_v13 = vadd.f32 %v1640_v0, %v1288_v25  ;;  %v15822_v4 = vld [vmem:[#allocation10_spill] sm:$0xff] }
 0x19e   : > { %2301 = vmatmul.mubr.bf16.gmra.mxu0 %v2224_v5  ;;  %v2122_v9 = vadd.f32 %v2058_v8, %v1706_v62  ;;  %v2061_v26 = vsel %vm1869_vm3, %v11489_v3, 0.0  ;;  %v1230_v23 = vsel %vm1038_vm14, %v11343_v49, 0.0  ;;  %vm590_vm12 = vcmp.eq.s32.totalorder %v11261_v38, %v15819_v35  ;;  %v10262_v8 = vld [vmem:[%s10760_s28 + $0x8] sm:$0xff]   ;;  %v15823_v5 = vld [vmem:[#allocation22_spill] sm:$0xff] }
 0x19f   : > { %2308 = vmatprep.mubr.bf16.mxu0 %v2227_v43  ;;  %v1709_v55 = vadd.f32 %v1645_v44, %v1293_v48  ;;  %v2127_v2 = vadd.f32 %v2063_v47, %v1711_v36  ;;  %v2120_v22 = vadd.f32 %v2056_v42, %v1704_v13  ;;  %v812_v28 = vsel %vm588_vm9, %v11331_v17, 0.0  ;;  %v10263_v47 = vld [vmem:[%s10760_s28] sm:$0xff]  }
 0x1a0   : > { %v814_v25 = vsel %vm590_vm12, %v11337_v46, 0.0  ;;  %vm1868_vm11 = vcmp.eq.s32.totalorder %v11261_v38, %v11345_v52  ;;  %v1646_v49 = vsel %vm1454_vm10, %v11405_v24, 0.0  ;;  %vm1452_vm14 = vcmp.eq.s32.totalorder %v11261_v38, %v11351_v37 }
 0x1a1   : > { %10179 = vset.pattern.permute.xlu1 %v15746_v45  ;;  %v2125_v33 = vadd.f32 %v2061_v26, %v1709_v55  ;;  %v1294_v56 = vadd.f32 %v1230_v23, %v814_v25  ;;  %vm1870_vm15 = vcmp.eq.s32.totalorder %v11261_v38, %v11446_v61  ;;  %v2226_v57 = vpack.c.bf16 %v2122_v9, %v2120_v22  ;;  %v15825_v26 = vld [vmem:[#allocation29_spill] sm:$0xff] }
 0x1a2   : > { %v1126_v12 = vpop.permute.xlu1 %1125  ;;  %1802 = vperm.xlu1 %10179, %v10831_v39   ;;  %v1228_v17 = vsel %vm1036_vm13, %v15820_v10, 0.0  ;;  %v1644_v46 = vsel %vm1452_vm14, %v11368_v30, 0.0  ;;  %v2062_v14 = vsel %vm1870_vm15, %v1954_v53, 0.0  ;;  %v2060_v39 = vsel %vm1868_vm11, %v11489_v3, 0.0  ;;  %v15821_v53 = vld [vmem:[#allocation6_spill] sm:$0xff] }
 0x1a3   : > { %v2229_v0 = vpack.c.bf16 %v2127_v2, %v2125_v33  ;;  %v1292_v62 = vadd.f32 %v1228_v17, %v812_v28  ;;  %v1710_v24 = vadd.f32 %v1646_v49, %v1294_v56  ;;  %v10034_v30 = vtrunc.f32 %v11682_v54 }
 0x1a4   : > { %vm594_vm0 = vcmp.eq.s32.totalorder %v11261_v38, %v11562_v18  ;;  %vm595_vm1 = vcmp.eq.s32.totalorder %v11269_v31, %v11562_v18  ;;  %vm1040_vm2 = vcmp.eq.s32.totalorder %v11261_v38, %v15822_v4  ;;  %vm1041_vm5 = vcmp.eq.s32.totalorder %v11269_v31, %v15822_v4  ;;  %v15824_v18 = vld [vmem:[#allocation15_spill] sm:$0xff] }
 0x1a5   : > { %v1708_v37 = vadd.f32 %v1644_v46, %v1292_v62  ;;  %v2126_v61 = vadd.f32 %v2062_v14, %v1710_v24  ;;  %v11687_v52 = vcvt.f32.s32 %v10034_v30  ;;  %vm1456_vm6 = vcmp.eq.s32.totalorder %v11261_v38, %v15823_v5 }
 0x1a6   : > { %2309 = vmatmul.mubr.bf16.gmra.mxu0 %v2226_v57  ;;  %v1130_v35 = vpop.permute.xlu1 %1129  ;;  %10180 = vset.pattern.permute.xlu1 %v15739_v63  ;;  %vm1457_vm3 = vcmp.eq.s32.totalorder %v11269_v31, %v15823_v5  ;;  %vm592_vm7 = vcmp.eq.s32.totalorder %v11261_v38, %v11529_v32  ;;  %vm593_vm4 = vcmp.eq.s32.totalorder %v11269_v31, %v11529_v32  ;;  %v818_v43 = vsel %vm594_vm0, %v15824_v18, 0.0 }
 0x1a7   : > { %2316 = vmatprep.mubr.bf16.mxu0 %v2229_v0  ;;  %1973 = vperm.xlu1 %10180, %v10531_v50   ;;  %v2124_v20 = vadd.f32 %v2060_v39, %v1708_v37  ;;  %v10615_v50 = vmov 0.0   ;;  %v819_v10 = vsel %vm595_vm1, %v15824_v18, 0.0  ;;  %vm1042_vm8 = vcmp.eq.s32.totalorder %v11261_v38, %v11605_v1 }
 0x1a8   : > { %9776 = vmatprep.subr.bf16.mxu1 %v10615_v50  ;;  %9912 = vmatprep.subr.bf16.mxu0 %v10615_v50  ;;  %vm1043_vm9 = vcmp.eq.s32.totalorder %v11269_v31, %v11605_v1  ;;  %v1232_v58 = vsel %vm1040_vm2, %v1126_v12, 0.0  ;;  %v1234_v44 = vsel %vm1042_vm8, %v1130_v35, 0.0  ;;  %v816_v42 = vsel %vm592_vm7, %v11639_v34, 0.0  ;;  %v1958_v1 = vpop.permute.xlu0 %1957 }
 0x1a9   : > { %v2228_v16 = vpack.c.bf16 %v2126_v61, %v2124_v20  ;;  %9777 = vmatpush3.bf16.msra.mxu1 %v10262_v8  ;;  %v1233_v48 = vsel %vm1041_vm5, %v1126_v12, 0.0  ;;  %v1235_v36 = vsel %vm1043_vm9, %v1130_v35, 0.0  ;;  %vm15628_vm11 = vmmov 0   ;;  %v15827_v61 = vld [vmem:[#allocation48_spill] sm:$0xff] }
 0x1aa   : > { %9778 = vmatprep.subr.bf16.mxu1 %v10615_v50  ;;  %9780 = vmatprep.mubr.msk.bf16.mxu1 %vm15628_vm11, %v10615_v50  ;;  %v817_v9 = vsel %vm593_vm4, %v11639_v34, 0.0  ;;  %v1296_v2 = vadd.f32 %v1232_v58, %v816_v42  ;;  %v1298_v22 = vadd.f32 %v1234_v44, %v818_v43  ;;  %v15826_v34 = vld [vmem:[#allocation44_spill] sm:$0xff]  ;;  %v1299_v25 = vadd.f32 %v1235_v36, %v819_v10  ;;  %v11773_v43 = vld [vmem:[%s10732_s25 + $0xb8] sm:$0xff] }
 0x1ab   : > { %v1375_v59 = vpop.permute.xlu1 %1374  ;;  %10181 = vset.pattern.permute.xlu1 %v15743_v11  ;;  %v1297_v12 = vadd.f32 %v1233_v48, %v817_v9  ;;  %v10054_v30 = vtrunc.f32 %v15827_v61  ;;  %v11759_v8 = vld [vmem:[%s10732_s25 + $0xe0] sm:$0xff]  ;;  %vm1879_vm7 = vcmp.eq.s32.totalorder %v11269_v31, %v11348_v6  ;;  %v15830_v9 = vld [vmem:[#allocation17_spill] sm:$0xff] }
 0x1ac   : > { %525 = vperm.xlu1 %10181, %v15821_v53   ;;  %vm1458_vm10 = vcmp.eq.s32.totalorder %v11261_v38, %v1375_v59  ;;  %vm1459_vm12 = vcmp.eq.s32.totalorder %v11269_v31, %v1375_v59  ;;  %v10056_v4 = vtrunc.f32 %v11759_v8  ;;  %v11778_v58 = vld [vmem:[%s10732_s25 + $0xc0] sm:$0xff] }
 0x1ad   : > { %v1650_v23 = vsel %vm1458_vm10, %v15825_v26, 0.0  ;;  %9779 = vmatpush3.bf16.msra.mxu1 %v10263_v47  ;;  %v1651_v28 = vsel %vm1459_vm12, %v15825_v26, 0.0  ;;  %v11784_v47 = vld [vmem:[%s10732_s25 + $0x90] sm:$0xff] }
 0x1ae   : > { %2317 = vmatmul.mubr.bf16.gmra.mxu0 %v2228_v16  ;;  %9784 = vmatprep.subr.bf16.mxu1 %v10615_v50  ;;  %v1714_v33 = vadd.f32 %v1650_v23, %v1298_v22  ;;  %v1715_v17 = vadd.f32 %v1651_v28, %v1299_v25  ;;  %v11756_v16 = vcvt.f32.s32 %v10054_v30  ;;  %v11764_v5 = vcvt.f32.s32 %v10056_v4  ;;  %v15831_v22 = vld [vmem:[#allocation59_spill] sm:$0xff] }
 0x1af   : > { %v10036_v42 = vtrunc.f32 %v11784_v47 }
 0x1b0   : > { %v1542_v3 = vpop.permute.xlu1 %1541  ;;  %528 = vperm.xlu1 %10181, %v11687_v52   ;;  %1006 = vperm.xlu0 %10235, %v11756_v16  }
 0x1b1   : > { %v1648_v55 = vsel %vm1456_vm6, %v1542_v3, 0.0  ;;  %v1649_v32 = vsel %vm1457_vm3, %v1542_v3, 0.0  ;;  %v11789_v36 = vcvt.f32.s32 %v10036_v42  ;;  %vm1878_vm3 = vcmp.eq.s32.totalorder %v11261_v38, %v11348_v6 }
 0x1b2   : > { %v1712_v56 = vadd.f32 %v1648_v55, %v1296_v2  ;;  %v1713_v46 = vadd.f32 %v1649_v32, %v1297_v12 }
 0x1b4   : > { %10182 = vset.pattern.permute.xlu1 %v15745_v29  ;;  %1009 = vperm.xlu0 %10235, %v11764_v5  }
 0x1b5   : > { %v1788_v27 = vpop.permute.xlu1 %1787  ;;  %976 = vperm.xlu1 %10182, %v11687_v52  }
 0x1b6   : > { %vm1872_vm13 = vcmp.eq.s32.totalorder %v11261_v38, %v1788_v27  ;;  %vm1873_vm14 = vcmp.eq.s32.totalorder %v11269_v31, %v1788_v27 }
 0x1b7   : > { %v2064_v49 = vsel %vm1872_vm13, %v1958_v1, 0.0  ;;  %v2065_v57 = vsel %vm1873_vm14, %v1958_v1, 0.0 }
 0x1b8   : > { %v2128_v0 = vadd.f32 %v2064_v49, %v1712_v56  ;;  %v2129_v35 = vadd.f32 %v2065_v57, %v1713_v46  ;;  %10237 = vset.pattern.permute.xlu0 %v15747_v7  ;;  %v15832_v56 = vld [vmem:[#allocation30_spill] sm:$0xff] }
 0x1b9   : > { %v1791_v13 = vpop.permute.xlu1 %1790  ;;  %10183 = vset.pattern.permute.xlu1 %v15747_v7  ;;  %753 = vperm.xlu0 %10237, %v11773_v43  }
 0x1ba   : > { %718 = vperm.xlu1 %10183, %v15826_v34   ;;  %vm1874_vm15 = vcmp.eq.s32.totalorder %v11261_v38, %v1791_v13  ;;  %vm1875_vm0 = vcmp.eq.s32.totalorder %v11269_v31, %v1791_v13  ;;  %v15829_v13 = vld [vmem:[#allocation11_spill] sm:$0xff] }
 0x1bd   : > { %758 = vperm.xlu0 %10237, %v11778_v58  }
 0x1be   : > { %v1962_v14 = vpop.permute.xlu1 %1961  ;;  %10184 = vset.pattern.permute.xlu1 %v15750_v15 }
 0x1bf   : > { %v2066_v62 = vsel %vm1874_vm15, %v1962_v14, 0.0  ;;  %v2067_v24 = vsel %vm1875_vm0, %v1962_v14, 0.0  ;;  %1149 = vperm.xlu1 %10184, %v15826_v34  }
 0x1c0   : > { %v2130_v39 = vadd.f32 %v2066_v62, %v1714_v33  ;;  %v2131_v37 = vadd.f32 %v2067_v24, %v1715_v17 }
 0x1c2   : > { %v2231_v20 = vpack.c.bf16 %v2131_v37, %v2129_v35  ;;  %v2230_v59 = vpack.c.bf16 %v2130_v39, %v2128_v0  ;;  %v10536_v0 = vld [vmem:[%s10732_s25 + $0x98] sm:$0xff] }
 0x1c3   : > { %v514_v3 = vpop.permute.xlu1 %513  ;;  %1153 = vperm.xlu1 %10184, %v11682_v54  }
 0x1c4   : > { %2324 = vmatprep.mubr.bf16.mxu0 %v2231_v20  ;;  %vm596_vm5 = vcmp.eq.s32.totalorder %v11261_v38, %v514_v3  ;;  %vm597_vm6 = vcmp.eq.s32.totalorder %v11269_v31, %v514_v3 }
 0x1c5   : > { %2325 = vmatmul.mubr.bf16.gmra.mxu0 %v2230_v59  ;;  %v820_v26 = vsel %vm596_vm5, %v15830_v9, 0.0  ;;  %v821_v23 = vsel %vm597_vm6, %v15830_v9, 0.0 }
 0x1c7   : > { %10185 = vset.pattern.permute.xlu1 %v15813_v51 }
 0x1c8   : > { %v962_v27 = vpop.permute.xlu1 %961  ;;  %1392 = vperm.xlu1 %10185, %v11687_v52  }
 0x1c9   : > { %vm1044_vm9 = vcmp.eq.s32.totalorder %v11261_v38, %v962_v27  ;;  %vm1045_vm10 = vcmp.eq.s32.totalorder %v11269_v31, %v962_v27 }
 0x1cc   : > { %v965_v18 = vpop.permute.xlu1 %964  ;;  %10186 = vset.pattern.permute.xlu1 %v15755_v40 }
 0x1cd   : > { %1565 = vperm.xlu1 %10186, %v15826_v34   ;;  %vm1046_vm4 = vcmp.eq.s32.totalorder %v11261_v38, %v965_v18  ;;  %vm1047_vm8 = vcmp.eq.s32.totalorder %v11269_v31, %v965_v18 }
 0x1ce   : > { %v1238_v28 = vsel %vm1046_vm4, %v15831_v22, 0.0  ;;  %v1239_v32 = vsel %vm1047_vm8, %v15831_v22, 0.0  ;;  %v15833_v22 = vld [vmem:[#allocation7_spill] sm:$0xff] }
 0x1d1   : > { %v704_v10 = vpop.permute.xlu1 %703  ;;  %10187 = vset.pattern.permute.xlu1 %v15746_v45 }
 0x1d2   : > { %1805 = vperm.xlu1 %10187, %v15821_v53  }
 0x1d6   : > { %v1134_v44 = vpop.permute.xlu1 %1133  ;;  %1808 = vperm.xlu1 %10187, %v11687_v52   ;;  %v15828_v52 = vld [vmem:[#allocation40_spill] sm:$0xff] }
 0x1d7   : > { %vm598_vm1 = vcmp.eq.s32.totalorder %v11261_v38, %v15828_v52  ;;  %vm599_vm2 = vcmp.eq.s32.totalorder %v11269_v31, %v15828_v52  ;;  %v1236_v34 = vsel %vm1044_vm9, %v1134_v44, 0.0  ;;  %v1237_v12 = vsel %vm1045_vm10, %v1134_v44, 0.0 }
 0x1d8   : > { %v822_v55 = vsel %vm598_vm1, %v704_v10, 0.0  ;;  %v823_v2 = vsel %vm599_vm2, %v704_v10, 0.0  ;;  %v1300_v62 = vadd.f32 %v1236_v34, %v820_v26  ;;  %v1301_v24 = vadd.f32 %v1237_v12, %v821_v23  ;;  %v15834_v34 = vld [vmem:[#allocation43_spill] sm:$0xff] }
 0x1d9   : > { %v1302_v25 = vadd.f32 %v1238_v28, %v822_v55  ;;  %v1303_v49 = vadd.f32 %v1239_v32, %v823_v2  ;;  %vm600_vm2 = vcmp.eq.s32.totalorder %v11261_v38, %v15834_v34  ;;  %vm601_vm5 = vcmp.eq.s32.totalorder %v11269_v31, %v15834_v34  ;;  %v15836_v12 = vld [vmem:[#allocation23_spill] sm:$0xff] }
 0x1da   : > { %10188 = vset.pattern.permute.xlu1 %v15739_v63  ;;  %vm1467_vm4 = vcmp.eq.s32.totalorder %v11269_v31, %v15836_v12  ;;  %vm1880_vm10 = vcmp.eq.s32.totalorder %v11261_v38, %v11357_v19 }
 0x1db   : > { %v1378_v48 = vpop.permute.xlu1 %1377  ;;  %1985 = vperm.xlu1 %10188, %v11682_v54  }
 0x1dc   : > { %vm1460_vm12 = vcmp.eq.s32.totalorder %v11261_v38, %v1378_v48  ;;  %vm1461_vm13 = vcmp.eq.s32.totalorder %v11269_v31, %v1378_v48 }
 0x1dd   : > { %v1652_v57 = vsel %vm1460_vm12, %v15832_v56, 0.0  ;;  %v1653_v17 = vsel %vm1461_vm13, %v15832_v56, 0.0  ;;  %vm1881_vm12 = vcmp.eq.s32.totalorder %v11269_v31, %v11357_v19 }
 0x1de   : > { %v1716_v37 = vadd.f32 %v1652_v57, %v1300_v62  ;;  %v1717_v61 = vadd.f32 %v1653_v17, %v1301_v24  ;;  %v11878_v24 = vld [vmem:[%s10732_s25 + $0xa0] sm:$0xff] }
 0x1df   : > { %v1381_v1 = vpop.permute.xlu1 %1380  ;;  %10189 = vset.pattern.permute.xlu1 %v15743_v11 }
 0x1e0   : > { %531 = vperm.xlu1 %10189, %v11789_v36   ;;  %vm1462_vm14 = vcmp.eq.s32.totalorder %v11261_v38, %v1381_v1  ;;  %vm1463_vm15 = vcmp.eq.s32.totalorder %v11269_v31, %v1381_v1 }
 0x1e4   : > { %v1554_v53 = vpop.permute.xlu1 %1553  ;;  %10190 = vset.pattern.permute.xlu1 %v15745_v29 }
 0x1e5   : > { %979 = vperm.xlu1 %10190, %v11789_v36   ;;  %v1654_v46 = vsel %vm1462_vm14, %v1554_v53, 0.0  ;;  %v1655_v14 = vsel %vm1463_vm15, %v1554_v53, 0.0  ;;  %v1978_v53 = vpop.permute.xlu0 %1977 }
 0x1e6   : > { %v1718_v30 = vadd.f32 %v1654_v46, %v1302_v25  ;;  %v1719_v20 = vadd.f32 %v1655_v14, %v1303_v49  ;;  %v15837_v25 = vld [vmem:[#allocation61_spill] sm:$0xff] }
 0x1e9   : > { %v1794_v54 = vpop.permute.xlu1 %1793  ;;  %982 = vperm.xlu1 %10190, %v15829_v13   ;;  %v11835_v6 = vpop.permute.xlu0 %1981 }
 0x1ea   : > { %vm1876_vm0 = vcmp.eq.s32.totalorder %v11261_v38, %v1794_v54  ;;  %vm1877_vm1 = vcmp.eq.s32.totalorder %v11269_v31, %v1794_v54 }
 0x1ed   : > { %10192 = vset.pattern.permute.xlu1 %v15747_v7  ;;  %v11838_v26 = vpop.permute.xlu0 %2001 }
 0x1ee   : > { %v1966_v33 = vpop.permute.xlu1 %1965  ;;  %733 = vperm.xlu1 %10192, %v10536_v0  }
 0x1ef   : > { %v2068_v35 = vsel %vm1876_vm0, %v1966_v33, 0.0  ;;  %v2069_v39 = vsel %vm1877_vm1, %v1966_v33, 0.0 }
 0x1f0   : > { %v2132_v27 = vadd.f32 %v2068_v35, %v1716_v37  ;;  %v2133_v18 = vadd.f32 %v2069_v39, %v1717_v61 }
 0x1f1   : > { %v11843_v55 = vpop.permute.xlu0 %2005 }
 0x1f2   : > { %v1970_v59 = vpop.permute.xlu1 %1969  ;;  %10193 = vset.pattern.permute.xlu1 %v15750_v15 }
 0x1f3   : > { %v2070_v3 = vsel %vm1878_vm3, %v1970_v59, 0.0  ;;  %v2071_v4 = vsel %vm1879_vm7, %v1970_v59, 0.0  ;;  %1157 = vperm.xlu1 %10193, %v11784_v47   ;;  %vm1466_vm7 = vcmp.eq.s32.totalorder %v11261_v38, %v15836_v12  ;;  %v11902_v12 = vld [vmem:[%s10732_s25 + $0xe8] sm:$0xff] }
 0x1f4   : > { %v2134_v10 = vadd.f32 %v2070_v3, %v1718_v30  ;;  %v2135_v44 = vadd.f32 %v2071_v4, %v1719_v20  ;;  %783 = vperm.xlu0 %10237, %v11902_v12  }
 0x1f5   : > { %v11846_v2 = vpop.permute.xlu0 %2025 }
 0x1f6   : > { %v2233_v42 = vpack.c.bf16 %v2135_v44, %v2133_v18  ;;  %v2232_v48 = vpack.c.bf16 %v2134_v10, %v2132_v27 }
 0x1f7   : > { %v523_v1 = vpop.permute.xlu1 %522  ;;  %10194 = vset.pattern.permute.xlu1 %v15813_v51 }
 0x1f8   : > { %2332 = vmatprep.mubr.bf16.mxu0 %v2233_v42  ;;  %1395 = vperm.xlu1 %10194, %v11789_v36   ;;  %vm602_vm13 = vcmp.eq.s32.totalorder %v11261_v38, %v523_v1  ;;  %vm603_vm14 = vcmp.eq.s32.totalorder %v11269_v31, %v523_v1 }
 0x1f9   : > { %2333 = vmatmul.mubr.bf16.gmra.mxu0 %v2232_v48  ;;  %v971_v32 = vpop.permute.xlu0 %970  ;;  %v10538_v48 = vld [vmem:[%s10732_s25 + $0xa8] sm:$0xff]  ;;  %10240 = vset.pattern.permute.xlu0 %v15813_v51 }
 0x1fa   : > { %vm1050_vm8 = vcmp.eq.s32.totalorder %v11261_v38, %v971_v32  ;;  %vm1051_vm9 = vcmp.eq.s32.totalorder %v11269_v31, %v971_v32  ;;  %1422 = vperm.xlu0 %10240, %v11756_v16  }
 0x1fc   : > { %v968_v52 = vpop.permute.xlu1 %967  ;;  %1398 = vperm.xlu1 %10194, %v15829_v13  }
 0x1fd   : > { %vm1048_vm6 = vcmp.eq.s32.totalorder %v11261_v38, %v968_v52  ;;  %vm1049_vm3 = vcmp.eq.s32.totalorder %v11269_v31, %v968_v52 }
 0x1fe   : > { %v1240_v49 = vsel %vm1048_vm6, %v15837_v25, 0.0  ;;  %v1241_v33 = vsel %vm1049_vm3, %v15837_v25, 0.0  ;;  %1425 = vperm.xlu0 %10240, %v11764_v5  }
 0x200   : > { %10195 = vset.pattern.permute.xlu1 %v15755_v40 }
 0x201   : > { %v709_v54 = vpop.permute.xlu1 %708  ;;  %1577 = vperm.xlu1 %10195, %v10536_v0  }
 0x202   : > { %v824_v56 = vsel %vm600_vm2, %v709_v54, 0.0  ;;  %v825_v57 = vsel %vm601_vm5, %v709_v54, 0.0  ;;  %vm15838_vm2 = vmmov 0   ;;  %10244 = vset.pattern.permute.xlu0 %v15755_v40 }
 0x203   : > { %v1304_v30 = vadd.f32 %v1240_v49, %v824_v56  ;;  %v1305_v20 = vadd.f32 %v1241_v33, %v825_v57  ;;  %1617 = vperm.xlu0 %10244, %v11902_v12  }
 0x205   : > { %v714_v9 = vpop.permute.xlu1 %713  ;;  %10196 = vset.pattern.permute.xlu1 %v15746_v45 }
 0x206   : > { %1811 = vperm.xlu1 %10196, %v11789_v36   ;;  %v826_v17 = vsel %vm602_vm13, %v714_v9, 0.0  ;;  %v827_v46 = vsel %vm603_vm14, %v714_v9, 0.0 }
 0x207   : > { %10246 = vset.pattern.permute.xlu0 %v15739_v63 }
 0x208   : > { %2029 = vperm.xlu0 %10246, %v11759_v8   ;;  %v974_v8 = vpop.permute.xlu0 %973 }
 0x20a   : > { %v1146_v23 = vpop.permute.xlu1 %1145  ;;  %10197 = vset.pattern.permute.xlu1 %v15739_v63 }
 0x20b   : > { %1989 = vperm.xlu1 %10197, %v11784_v47   ;;  %v15835_v47 = vld [vmem:[#allocation12_spill] sm:$0xff]  ;;  %v1242_v14 = vsel %vm1050_vm8, %v1146_v23, 0.0 }
 0x20c   : > { %v1306_v59 = vadd.f32 %v1242_v14, %v826_v17  ;;  %10249 = vset.pattern.permute.xlu0 %v15743_v11 }
 0x20f   : > { %v1384_v13 = vpop.permute.xlu1 %1383  ;;  %1993 = vperm.xlu1 %10197, %v10536_v0   ;;  %v1243_v0 = vsel %vm1051_vm9, %v1146_v23, 0.0 }
 0x210   : > { %vm1464_vm15 = vcmp.eq.s32.totalorder %v11261_v38, %v1384_v13  ;;  %vm1465_vm0 = vcmp.eq.s32.totalorder %v11269_v31, %v1384_v13  ;;  %v1307_v3 = vadd.f32 %v1243_v0, %v827_v46  ;;  %v10264_v46 = vld [vmem:[%s10760_s28 + $0x18] sm:$0xff]  }
 0x213   : > { %10198 = vset.pattern.permute.xlu1 %v15743_v11 }
 0x214   : > { %540 = vperm.xlu1 %10198, %v15833_v22   ;;  %v1558_v28 = vpop.permute.xlu1 %1557 }
 0x215   : > { %v1656_v35 = vsel %vm1464_vm15, %v1558_v28, 0.0  ;;  %v1657_v39 = vsel %vm1465_vm0, %v1558_v28, 0.0 }
 0x216   : > { %v1720_v18 = vadd.f32 %v1656_v35, %v1304_v30  ;;  %v1721_v10 = vadd.f32 %v1657_v39, %v1305_v20  ;;  %v11935_v30 = vld [vmem:[%s10732_s25 + $0xf8] sm:$0xff] }
 0x218   : > { %10199 = vset.pattern.permute.xlu1 %v15745_v29  ;;  %v1562_v36 = vpop.permute.xlu1 %1561 }
 0x219   : > { %985 = vperm.xlu1 %10199, %v15835_v47   ;;  %v1658_v37 = vsel %vm1466_vm7, %v1562_v36, 0.0  ;;  %v1659_v61 = vsel %vm1467_vm4, %v1562_v36, 0.0  ;;  %vm1052_vm7 = vcmp.eq.s32.totalorder %v11261_v38, %v974_v8 }
 0x21a   : > { %v1722_v44 = vadd.f32 %v1658_v37, %v1306_v59  ;;  %v1723_v42 = vadd.f32 %v1659_v61, %v1307_v3  ;;  %v15839_v37 = vld [vmem:[#allocation8_spill] sm:$0xff]  ;;  %v11949_v3 = vld [vmem:[%s10732_s25 + $0xf0] sm:$0xff] }
 0x21d   : > { %10200 = vset.pattern.permute.xlu1 %v15747_v7  ;;  %v1803_v62 = vpop.permute.xlu1 %1802 }
 0x21e   : > { %vm1882_vm1 = vcmp.eq.s32.totalorder %v11261_v38, %v1803_v62  ;;  %vm1883_vm11 = vcmp.eq.s32.totalorder %v11269_v31, %v1803_v62  ;;  %738 = vperm.xlu1 %10200, %v11878_v24   ;;  %v10265_v62 = vld [vmem:[%s10760_s28 + $0x10] sm:$0xff]  }
 0x21f   : > { %v2074_v4 = vsel %vm1882_vm1, %v1978_v53, 0.0  ;;  %v2075_v27 = vsel %vm1883_vm11, %v1978_v53, 0.0  ;;  %vm15630_vm11 = vcmask 261120  }
 0x220   : > { %v2138_v9 = vadd.f32 %v2074_v4, %v1722_v44  ;;  %v2139_v23 = vadd.f32 %v2075_v27, %v1723_v42  ;;  %v15840_v4 = vld [vmem:[#allocation24_spill] sm:$0xff] }
 0x221   : > { %vm1468_vm3 = vcmp.eq.s32.totalorder %v11261_v38, %v15840_v4  ;;  %vm1469_vm4 = vcmp.eq.s32.totalorder %v11269_v31, %v15840_v4 }
 0x222   : > { %743 = vperm.xlu1 %10200, %v10538_v48   ;;  %v1974_v1 = vpop.permute.xlu1 %1973 }
 0x223   : > { %v2072_v52 = vsel %vm1880_vm10, %v1974_v1, 0.0  ;;  %v2073_v54 = vsel %vm1881_vm12, %v1974_v1, 0.0  ;;  %vm1053_vm10 = vcmp.eq.s32.totalorder %v11269_v31, %v974_v8 }
 0x224   : > { %v2136_v13 = vadd.f32 %v2072_v52, %v1720_v18  ;;  %v2137_v53 = vadd.f32 %v2073_v54, %v1721_v10  ;;  %v15841_v18 = vld [vmem:[#allocation18_spill] sm:$0xff] }
 0x226   : > { %10201 = vset.pattern.permute.xlu1 %v15750_v15  ;;  %v2235_v28 = vpack.c.bf16 %v2139_v23, %v2137_v53  ;;  %v2234_v32 = vpack.c.bf16 %v2138_v9, %v2136_v13  ;;  %v15842_v13 = vld [vmem:[#allocation31_spill] sm:$0xff] }
 0x227   : > { %1169 = vperm.xlu1 %10201, %v10538_v48   ;;  %v11895_v36 = vpop.permute.xlu1 %525 }
 0x228   : > { %2340 = vmatprep.mubr.bf16.mxu0 %v2235_v28  ;;  %vm604_vm8 = vcmp.eq.s32.totalorder %v11261_v38, %v11895_v36  ;;  %vm605_vm9 = vcmp.eq.s32.totalorder %v11269_v31, %v11895_v36 }
 0x229   : > { %2341 = vmatmul.mubr.bf16.gmra.mxu0 %v2234_v32  ;;  %v10539_v32 = vld [vmem:[%s10732_s25 + $0xb0] sm:$0xff] }
 0x22b   : > { %10202 = vset.pattern.permute.xlu1 %v15813_v51  ;;  %v11898_v34 = vpop.permute.xlu1 %528 }
 0x22c   : > { %1401 = vperm.xlu1 %10202, %v15835_v47   ;;  %vm606_vm5 = vcmp.eq.s32.totalorder %v11261_v38, %v11898_v34  ;;  %vm607_vm6 = vcmp.eq.s32.totalorder %v11269_v31, %v11898_v34 }
 0x22d   : > { %v830_v10 = vsel %vm606_vm5, %v15841_v18, 0.0  ;;  %v831_v44 = vsel %vm607_vm6, %v15841_v18, 0.0 }
 0x22e   : > { %v9408_v19 = vpop.f32.mrf.mxu0 }
 0x230   : > { %v9409_v25 = vpop.f32.mrf.mxu0  ;;  %10203 = vset.pattern.permute.xlu1 %v15755_v40  ;;  %v11906_v49 = vpop.permute.xlu1 %976 }
 0x231   : > { %1581 = vperm.xlu1 %10203, %v11878_v24   ;;  %v9410_v47 = vadd.f32 %v9409_v25, %v9408_v19  ;;  %vm1054_vm12 = vcmp.eq.s32.totalorder %v11261_v38, %v11906_v49  ;;  %vm1055_vm14 = vcmp.eq.s32.totalorder %v11269_v31, %v11906_v49 }
 0x232   : > { %v9411_v33 = vpop.f32.mrf.mxu0 }
 0x234   : > { %v9412_v56 = vpop.f32.mrf.mxu0 }
 0x235   : > { %v9413_v57 = vadd.f32 %v9412_v56, %v9411_v33  ;;  %1585 = vperm.xlu1 %10203, %v10538_v48   ;;  %v11911_v17 = vpop.permute.xlu1 %718 }
 0x236   : > { %v828_v1 = vsel %vm604_vm8, %v11911_v17, 0.0  ;;  %v829_v23 = vsel %vm605_vm9, %v11911_v17, 0.0 }
 0x237   : > { %v2477_v14 = vpack.c.bf16 %v9413_v57, %v9410_v47 }
 0x239   : > { %9781 = vmatmul.mubr.msk.bf16.vlgmr.msra.gmra.mxu1 %vm15630_vm11, %v2477_v14  ;;  %10204 = vset.pattern.permute.xlu1 %v15746_v45 }
 0x23a   : > { %1820 = vperm.xlu1 %10204, %v15833_v22   ;;  %v1150_v0 = vpop.permute.xlu1 %1149  ;;  %9785 = vmatpush3.bf16.msra.mxu1 %v10264_v46  ;;  %v10046_v22 = vtrunc.f32 %v11773_v43 }
 0x23b   : > { %9786 = vmatprep.subr.bf16.mxu1 %v10615_v50  ;;  %9788 = vmatprep.mubr.msk.bf16.mxu1 %vm15838_vm2, %v10615_v50  ;;  %v1244_v42 = vsel %vm1052_vm7, %v1150_v0, 0.0  ;;  %v1245_v52 = vsel %vm1053_vm10, %v1150_v0, 0.0  ;;  %vm1890_vm10 = vcmp.eq.s32.totalorder %v11261_v38, %v11383_v41 }
 0x23c   : > { %v11932_v61 = vcvt.f32.s32 %v10046_v22  ;;  %v1308_v34 = vadd.f32 %v1244_v42, %v828_v1  ;;  %v1309_v36 = vadd.f32 %v1245_v52, %v829_v23 }
 0x23e   : > { %10205 = vset.pattern.permute.xlu1 %v15739_v63  ;;  %v1154_v35 = vpop.permute.xlu1 %1153  ;;  %9787 = vmatpush3.bf16.msra.mxu1 %v10265_v62 }
 0x23f   : > { %1997 = vperm.xlu1 %10205, %v11878_v24   ;;  %9792 = vmatprep.subr.bf16.mxu1 %v10615_v50  ;;  %v10062_v24 = vtrunc.f32 %v11935_v30  ;;  %v1246_v48 = vsel %vm1054_vm12, %v1154_v35, 0.0  ;;  %v1247_v54 = vsel %vm1055_vm14, %v1154_v35, 0.0  ;;  %vm1891_vm12 = vcmp.eq.s32.totalorder %v11269_v31, %v11383_v41 }
 0x240   : > { %v1310_v19 = vadd.f32 %v1246_v48, %v830_v10  ;;  %v1311_v33 = vadd.f32 %v1247_v54, %v831_v44 }
 0x241   : > { %v11940_v59 = vcvt.f32.s32 %v10062_v24 }
 0x243   : > { %10206 = vset.pattern.permute.xlu1 %v15743_v11  ;;  %v1393_v39 = vpop.permute.xlu1 %1392  ;;  %570 = vperm.xlu0 %10249, %v11940_v59  }
 0x244   : > { %543 = vperm.xlu1 %10206, %v15839_v37   ;;  %vm1470_vm13 = vcmp.eq.s32.totalorder %v11261_v38, %v1393_v39  ;;  %vm1471_vm15 = vcmp.eq.s32.totalorder %v11269_v31, %v1393_v39 }
 0x245   : > { %v1662_v53 = vsel %vm1470_vm13, %v15842_v13, 0.0  ;;  %v1663_v25 = vsel %vm1471_vm15, %v15842_v13, 0.0 }
 0x246   : > { %v1726_v47 = vadd.f32 %v1662_v53, %v1310_v19  ;;  %v1727_v14 = vadd.f32 %v1663_v25, %v1311_v33  ;;  %v10266_v25 = vld [vmem:[%s10760_s28 + $0x28] sm:$0xff]  }
 0x247   : > { %10251 = vset.pattern.permute.xlu0 %v15747_v7 }
 0x248   : > { %546 = vperm.xlu1 %10206, %v11932_v61   ;;  %v1566_v20 = vpop.permute.xlu1 %1565  ;;  %788 = vperm.xlu0 %10251, %v11949_v3  }
 0x249   : > { %v1660_v28 = vsel %vm1468_vm3, %v1566_v20, 0.0  ;;  %v1661_v49 = vsel %vm1469_vm4, %v1566_v20, 0.0 }
 0x24a   : > { %v1724_v57 = vadd.f32 %v1660_v28, %v1308_v34  ;;  %v1725_v0 = vadd.f32 %v1661_v49, %v1309_v36 }
 0x24c   : > { %10207 = vset.pattern.permute.xlu1 %v15745_v29  ;;  %10254 = vset.pattern.permute.xlu0 %v15750_v15 }
 0x24d   : > { %994 = vperm.xlu1 %10207, %v11932_v61   ;;  %v1806_v27 = vpop.permute.xlu1 %1805  ;;  %1209 = vperm.xlu0 %10254, %v11935_v30  }
 0x24e   : > { %vm1884_vm0 = vcmp.eq.s32.totalorder %v11261_v38, %v1806_v27  ;;  %vm1885_vm1 = vcmp.eq.s32.totalorder %v11269_v31, %v1806_v27 }
 0x24f   : > { %v2076_v56 = vsel %vm1884_vm0, %v11835_v6, 0.0  ;;  %v2077_v17 = vsel %vm1885_vm1, %v11835_v6, 0.0 }
 0x250   : > { %v2140_v35 = vadd.f32 %v2076_v56, %v1724_v57  ;;  %v2141_v20 = vadd.f32 %v2077_v17, %v1725_v0  ;;  %v10267_v57 = vld [vmem:[%s10760_s28 + $0x20] sm:$0xff]  }
 0x251   : > { %10208 = vset.pattern.permute.xlu1 %v15747_v7  ;;  %v1809_v9 = vpop.permute.xlu1 %1808  ;;  %10256 = vset.pattern.permute.xlu0 %v15755_v40 }
 0x252   : > { %748 = vperm.xlu1 %10208, %v10539_v32   ;;  %vm1886_vm5 = vcmp.eq.s32.totalorder %v11261_v38, %v1809_v9  ;;  %vm1887_vm6 = vcmp.eq.s32.totalorder %v11269_v31, %v1809_v9  ;;  %1621 = vperm.xlu0 %10256, %v11949_v3  }
 0x256   : > { %v9414_v46 = vpop.f32.mrf.mxu0  ;;  %10209 = vset.pattern.permute.xlu1 %v15750_v15  ;;  %v1986_v62 = vpop.permute.xlu1 %1985  ;;  %10259 = vset.pattern.permute.xlu0 %v15746_v45 }
 0x257   : > { %v2078_v22 = vsel %vm1886_vm5, %v1986_v62, 0.0  ;;  %v2079_v39 = vsel %vm1887_vm6, %v1986_v62, 0.0  ;;  %1173 = vperm.xlu1 %10209, %v10539_v32   ;;  %1850 = vperm.xlu0 %10259, %v11940_v59   ;;  %v10048_v62 = vtrunc.f32 %v11778_v58 }
 0x258   : > { %v9415_v24 = vpop.f32.mrf.mxu0  ;;  %v2142_v8 = vadd.f32 %v2078_v22, %v1726_v47  ;;  %v2143_v4 = vadd.f32 %v2079_v39, %v1727_v14 }
 0x259   : > { %v11998_v27 = vadd.f32 %v9415_v24, %v9414_v46 }
 0x25a   : > { %v9417_v6 = vpop.f32.mrf.mxu0  ;;  %v2237_v18 = vpack.c.bf16 %v2143_v4, %v2141_v20  ;;  %v2236_v10 = vpack.c.bf16 %v2142_v8, %v2140_v35  ;;  %v12038_v8 = vcvt.f32.s32 %v10048_v62  ;;  %v10268_v4 = vld [vmem:[%s10760_s28 + $0x38] sm:$0xff]  }
 0x25b   : > { %1177 = vperm.xlu1 %10209, %v11773_v43   ;;  %v12003_v44 = vpop.permute.xlu1 %531  ;;  %10261 = vset.pattern.permute.xlu0 %v15739_v63 }
 0x25c   : > { %v9418_v42 = vpop.f32.mrf.mxu0  ;;  %2348 = vmatprep.mubr.bf16.mxu0 %v2237_v18  ;;  %v10269_v18 = vld [vmem:[%s10760_s28 + $0x30] sm:$0xff]   ;;  %vm608_vm4 = vcmp.eq.s32.totalorder %v11261_v38, %v12003_v44  ;;  %vm609_vm8 = vcmp.eq.s32.totalorder %v11269_v31, %v12003_v44 }
 0x25d   : > { %v12005_v48 = vadd.f32 %v9418_v42, %v9417_v6  ;;  %2349 = vmatmul.mubr.bf16.gmra.mxu0 %v2236_v10  ;;  %v15843_v10 = vld [vmem:[#allocation46_spill] sm:$0xff] }
 0x25e   : > { %v9420_v1 = vpop.f32.mrf.mxu0  ;;  %vm610_vm3 = vcmp.eq.s32.totalorder %v11261_v38, %v15843_v10  ;;  %vm611_vm7 = vcmp.eq.s32.totalorder %v11269_v31, %v15843_v10  ;;  %v15844_v42 = vld [vmem:[#allocation14_spill] sm:$0xff] }
 0x25f   : > { %v5029_v52 = vpack.c.bf16 %v12005_v48, %v11998_v27  ;;  %10211 = vset.pattern.permute.xlu1 %v15813_v51 }
 0x260   : > { %v9421_v54 = vpop.f32.mrf.mxu0  ;;  %1410 = vperm.xlu1 %10211, %v11932_v61   ;;  %v12013_v9 = vpop.permute.xlu1 %979 }
 0x261   : > { %v9422_v53 = vadd.f32 %v9421_v54, %v9420_v1  ;;  %vm1056_vm15 = vcmp.eq.s32.totalorder %v11261_v38, %v12013_v9  ;;  %vm1057_vm0 = vcmp.eq.s32.totalorder %v11269_v31, %v12013_v9  ;;  %v10540_v9 = vld [vmem:[%s10732_s25 + $0xc8] sm:$0xff] }
 0x262   : > { %v9423_v23 = vpop.f32.mrf.mxu0 }
 0x264   : > { %v9424_v13 = vpop.f32.mrf.mxu0  ;;  %10212 = vset.pattern.permute.xlu1 %v15755_v40  ;;  %v12017_v34 = vpop.permute.xlu1 %982 }
 0x265   : > { %v9425_v28 = vadd.f32 %v9424_v13, %v9423_v23  ;;  %1589 = vperm.xlu1 %10212, %v10539_v32   ;;  %vm1058_vm9 = vcmp.eq.s32.totalorder %v11261_v38, %v12017_v34  ;;  %vm1059_vm13 = vcmp.eq.s32.totalorder %v11269_v31, %v12017_v34  ;;  %v15845_v23 = vld [vmem:[#allocation19_spill] sm:$0xff] }
 0x266   : > { %v9426_v19 = vpop.f32.mrf.mxu0  ;;  %v832_v13 = vsel %vm608_vm4, %v15845_v23, 0.0  ;;  %v833_v44 = vsel %vm609_vm8, %v15845_v23, 0.0 }
 0x267   : > { %v2478_v49 = vpack.c.bf16 %v9425_v28, %v9422_v53  ;;  %v15846_v28 = vld [vmem:[#allocation62_spill] sm:$0xff] }
 0x268   : > { %v9427_v36 = vpop.f32.mrf.mxu0 }
 0x269   : > { %v12020_v33 = vadd.f32 %v9427_v36, %v9426_v19  ;;  %9789 = vmatmul.mubr.msk.bf16.vlgmr.msra.gmra.mxu1 %vm15630_vm11, %v2478_v49  ;;  %10213 = vset.pattern.permute.xlu1 %v15746_v45  ;;  %v734_v56 = vpop.permute.xlu1 %733  ;;  %v1250_v19 = vsel %vm1058_vm9, %v15846_v28, 0.0 }
 0x26a   : > { %v9429_v47 = vpop.f32.mrf.mxu0  ;;  %9793 = vmatpush3.bf16.msra.mxu1 %v10266_v25  ;;  %1823 = vperm.xlu1 %10213, %v15839_v37   ;;  %v834_v54 = vsel %vm610_vm3, %v734_v56, 0.0  ;;  %v835_v53 = vsel %vm611_vm7, %v734_v56, 0.0  ;;  %v1251_v25 = vsel %vm1059_vm13, %v15846_v28, 0.0 }
 0x26b   : > { %9794 = vmatprep.subr.bf16.mxu1 %v10615_v50  ;;  %9796 = vmatprep.mubr.msk.bf16.mxu1 %vm15838_vm2, %v10615_v50  ;;  %v1314_v49 = vadd.f32 %v1250_v19, %v834_v54  ;;  %v1315_v56 = vadd.f32 %v1251_v25, %v835_v53 }
 0x26c   : > { %v9430_v17 = vpop.f32.mrf.mxu0 }
 0x26d   : > { %v12029_v32 = vadd.f32 %v9430_v17, %v9429_v47 }
 0x26e   : > { %v9432_v46 = vpop.f32.mrf.mxu0  ;;  %9795 = vmatpush3.bf16.msra.mxu1 %v10267_v57  ;;  %1826 = vperm.xlu1 %10213, %v11932_v61   ;;  %v1158_v0 = vpop.permute.xlu1 %1157  ;;  %v15847_v57 = vld [vmem:[#allocation32_spill] sm:$0xff] }
 0x26f   : > { %v5030_v14 = vpack.c.bf16 %v12029_v32, %v12020_v33  ;;  %9800 = vmatprep.subr.bf16.mxu1 %v10615_v50  ;;  %v1248_v36 = vsel %vm1056_vm15, %v1158_v0, 0.0  ;;  %v1249_v47 = vsel %vm1057_vm0, %v1158_v0, 0.0  ;;  %vm1892_vm0 = vcmp.eq.s32.totalorder %v11261_v38, %v11423_v21 }
 0x270   : > { %v9433_v37 = vpop.f32.mrf.mxu0  ;;  %v1312_v0 = vadd.f32 %v1248_v36, %v832_v13 }
 0x271   : > { %v9434_v24 = vadd.f32 %v9433_v37, %v9432_v46 }
 0x272   : > { %v9435_v35 = vpop.f32.mrf.mxu0  ;;  %10214 = vset.pattern.permute.xlu1 %v15739_v63 }
 0x273   : > { %2009 = vperm.xlu1 %10214, %v11773_v43   ;;  %v1396_v22 = vpop.permute.xlu1 %1395 }
 0x274   : > { %v9436_v39 = vpop.f32.mrf.mxu0  ;;  %vm1472_vm14 = vcmp.eq.s32.totalorder %v11261_v38, %v1396_v22  ;;  %vm1473_vm1 = vcmp.eq.s32.totalorder %v11269_v31, %v1396_v22 }
 0x275   : > { %v9437_v20 = vadd.f32 %v9436_v39, %v9435_v35  ;;  %v1664_v17 = vsel %vm1472_vm14, %v15847_v57, 0.0  ;;  %v1665_v62 = vsel %vm1473_vm1, %v15847_v57, 0.0 }
 0x277   : > { %v2479_v61 = vpack.c.bf16 %v9437_v20, %v9434_v24  ;;  %10215 = vset.pattern.permute.xlu1 %v15743_v11  ;;  %v1399_v6 = vpop.permute.xlu1 %1398  ;;  %v1313_v24 = vadd.f32 %v1249_v47, %v833_v44 }
 0x278   : > { %549 = vperm.xlu1 %10215, %v12038_v8   ;;  %vm1474_vm5 = vcmp.eq.s32.totalorder %v11261_v38, %v1399_v6  ;;  %vm1475_vm6 = vcmp.eq.s32.totalorder %v11269_v31, %v1399_v6  ;;  %v1728_v6 = vadd.f32 %v1664_v17, %v1312_v0 }
 0x279   : > { %9797 = vmatmul.mubr.msk.bf16.vlgmr.msra.gmra.mxu1 %vm15630_vm11, %v2479_v61 }
 0x27a   : > { %9801 = vmatpush3.bf16.msra.mxu1 %v10268_v4  ;;  %9804 = vmatprep.mubr.msk.bf16.mxu1 %vm15838_vm2, %v10615_v50 }
 0x27b   : > { %9802 = vmatprep.subr.bf16.mxu1 %v10615_v50 }
 0x27c   : > { %10216 = vset.pattern.permute.xlu1 %v15745_v29  ;;  %v1578_v43 = vpop.permute.xlu1 %1577 }
 0x27d   : > { %997 = vperm.xlu1 %10216, %v12038_v8   ;;  %v1666_v35 = vsel %vm1474_vm5, %v1578_v43, 0.0  ;;  %v1667_v22 = vsel %vm1475_vm6, %v1578_v43, 0.0 }
 0x27e   : > { %9803 = vmatpush3.bf16.msra.mxu1 %v10269_v18  ;;  %v1729_v18 = vadd.f32 %v1665_v62, %v1313_v24  ;;  %v1730_v10 = vadd.f32 %v1666_v35, %v1314_v49  ;;  %v1731_v54 = vadd.f32 %v1667_v22, %v1315_v56  ;;  %v15848_v35 = vld [vmem:[#allocation47_spill] sm:$0xff] }
 0x27f   : > { %9808 = vmatprep.subr.bf16.mxu1 %v10615_v50  ;;  %vm612_vm4 = vcmp.eq.s32.totalorder %v11261_v38, %v15848_v35  ;;  %vm613_vm8 = vcmp.eq.s32.totalorder %v11269_v31, %v15848_v35 }
 0x281   : > { %1000 = vperm.xlu1 %10216, %v15844_v42   ;;  %v1812_v1 = vpop.permute.xlu1 %1811 }
 0x282   : > { %vm1888_vm3 = vcmp.eq.s32.totalorder %v11261_v38, %v1812_v1  ;;  %vm1889_vm7 = vcmp.eq.s32.totalorder %v11269_v31, %v1812_v1 }
 0x285   : > { %v9438_v34 = vpop.f32.mrf.mxu0  ;;  %10217 = vset.pattern.permute.xlu1 %v15747_v7 }
 0x286   : > { %763 = vperm.xlu1 %10217, %v10540_v9   ;;  %v1990_v46 = vpop.permute.xlu1 %1989 }
 0x287   : > { %v9439_v37 = vpop.f32.mrf.mxu0  ;;  %v2080_v4 = vsel %vm1888_vm3, %v1990_v46, 0.0  ;;  %v2081_v61 = vsel %vm1889_vm7, %v1990_v46, 0.0 }
 0x288   : > { %v12084_v39 = vadd.f32 %v9439_v37, %v9438_v34  ;;  %v2144_v44 = vadd.f32 %v2080_v4, %v1728_v6  ;;  %v2145_v28 = vadd.f32 %v2081_v61, %v1729_v18  ;;  %v989_v37 = vpop.permute.xlu0 %988 }
 0x289   : > { %v9441_v20 = vpop.f32.mrf.mxu0  ;;  %vm1062_vm14 = vcmp.eq.s32.totalorder %v11261_v38, %v989_v37  ;;  %vm1063_vm15 = vcmp.eq.s32.totalorder %v11269_v31, %v989_v37 }
 0x28a   : > { %10218 = vset.pattern.permute.xlu1 %v15750_v15  ;;  %v1994_v23 = vpop.permute.xlu1 %1993 }
 0x28b   : > { %v9442_v53 = vpop.f32.mrf.mxu0  ;;  %v2082_v43 = vsel %vm1890_vm10, %v1994_v23, 0.0  ;;  %v2083_v13 = vsel %vm1891_vm12, %v1994_v23, 0.0  ;;  %1181 = vperm.xlu1 %10218, %v11778_v58  }
 0x28c   : > { %v12095_v1 = vadd.f32 %v9442_v53, %v9441_v20  ;;  %v2146_v19 = vadd.f32 %v2082_v43, %v1730_v10  ;;  %v2147_v34 = vadd.f32 %v2083_v13, %v1731_v54  ;;  %v10541_v54 = vld [vmem:[%s10732_s25 + $0xd0] sm:$0xff] }
 0x28e   : > { %v5031_v25 = vpack.c.bf16 %v12095_v1, %v12084_v39  ;;  %v2239_v49 = vpack.c.bf16 %v2147_v34, %v2145_v28  ;;  %v2238_v36 = vpack.c.bf16 %v2146_v19, %v2144_v44 }
 0x28f   : > { %10219 = vset.pattern.permute.xlu1 %v15813_v51  ;;  %v541_v47 = vpop.permute.xlu1 %540 }
 0x290   : > { %1413 = vperm.xlu1 %10219, %v12038_v8   ;;  %2356 = vmatprep.mubr.bf16.mxu0 %v2239_v49  ;;  %vm614_vm5 = vcmp.eq.s32.totalorder %v11261_v38, %v541_v47  ;;  %vm615_vm6 = vcmp.eq.s32.totalorder %v11269_v31, %v541_v47 }
 0x291   : > { %2357 = vmatmul.mubr.bf16.gmra.mxu0 %v2238_v36 }
 0x294   : > { %1416 = vperm.xlu1 %10219, %v15844_v42   ;;  %v986_v41 = vpop.permute.xlu1 %985 }
 0x295   : > { %vm1060_vm9 = vcmp.eq.s32.totalorder %v11261_v38, %v986_v41  ;;  %vm1061_vm10 = vcmp.eq.s32.totalorder %v11269_v31, %v986_v41 }
 0x298   : > { %10221 = vset.pattern.permute.xlu1 %v15755_v40 }
 0x299   : > { %1601 = vperm.xlu1 %10221, %v10540_v9   ;;  %v739_v56 = vpop.permute.xlu1 %738 }
 0x29a   : > { %v836_v24 = vsel %vm612_vm4, %v739_v56, 0.0  ;;  %v837_v20 = vsel %vm613_vm8, %v739_v56, 0.0  ;;  %vm15852_vm4 = vcmp.eq.s32.totalorder %v11269_v31, %v11423_v21  ;;  %v10270_v21 = vld [vmem:[%s10760_s28 + $0x48] sm:$0xff]  }
 0x29d   : > { %10222 = vset.pattern.permute.xlu1 %v15746_v45  ;;  %v744_v57 = vpop.permute.xlu1 %743 }
 0x29e   : > { %1829 = vperm.xlu1 %10222, %v12038_v8   ;;  %v15850_v8 = vld [vmem:[#allocation25_spill] sm:$0xff]  ;;  %v838_v4 = vsel %vm614_vm5, %v744_v57, 0.0  ;;  %v839_v61 = vsel %vm615_vm6, %v744_v57, 0.0 }
 0x29f   : > { %vm1478_vm12 = vcmp.eq.s32.totalorder %v11261_v38, %v15850_v8  ;;  %vm1479_vm13 = vcmp.eq.s32.totalorder %v11269_v31, %v15850_v8 }
 0x2a2   : > { %10223 = vset.pattern.permute.xlu1 %v15739_v63  ;;  %v1170_v17 = vpop.permute.xlu1 %1169 }
 0x2a3   : > { %2013 = vperm.xlu1 %10223, %v11778_v58   ;;  %v15849_v58 = vld [vmem:[#allocation16_spill] sm:$0xff]  ;;  %v1254_v6 = vsel %vm1062_vm14, %v1170_v17, 0.0  ;;  %v1255_v18 = vsel %vm1063_vm15, %v1170_v17, 0.0 }
 0x2a4   : > { %v1318_v19 = vadd.f32 %v1254_v6, %v838_v4  ;;  %v1319_v34 = vadd.f32 %v1255_v18, %v839_v61 }
 0x2a7   : > { %2017 = vperm.xlu1 %10223, %v10540_v9   ;;  %v1402_v46 = vpop.permute.xlu1 %1401  ;;  %v15851_v9 = vld [vmem:[#allocation64_spill] sm:$0xff] }
 0x2a8   : > { %v1252_v22 = vsel %vm1060_vm9, %v15851_v9, 0.0  ;;  %v1253_v0 = vsel %vm1061_vm10, %v15851_v9, 0.0  ;;  %vm1476_vm3 = vcmp.eq.s32.totalorder %v11261_v38, %v1402_v46  ;;  %vm1477_vm7 = vcmp.eq.s32.totalorder %v11269_v31, %v1402_v46  ;;  %v10542_v46 = vld [vmem:[%s10732_s25 + $0xd8] sm:$0xff] }
 0x2a9   : > { %v1316_v44 = vadd.f32 %v1252_v22, %v836_v24  ;;  %v1317_v28 = vadd.f32 %v1253_v0, %v837_v20 }
 0x2ab   : > { %10225 = vset.pattern.permute.xlu1 %v15743_v11 }
 0x2ac   : > { %558 = vperm.xlu1 %10225, %v11756_v16   ;;  %v1582_v42 = vpop.permute.xlu1 %1581 }
 0x2ad   : > { %v1668_v23 = vsel %vm1476_vm3, %v1582_v42, 0.0  ;;  %v1669_v53 = vsel %vm1477_vm7, %v1582_v42, 0.0 }
 0x2ae   : > { %v1732_v41 = vadd.f32 %v1668_v23, %v1316_v44  ;;  %v1733_v56 = vadd.f32 %v1669_v53, %v1317_v28  ;;  %v10271_v53 = vld [vmem:[%s10760_s28 + $0x40] sm:$0xff]   ;;  %v992_v44 = vpop.permute.xlu0 %991 }
 0x2af   : > { %vm1065_vm14 = vcmp.eq.s32.totalorder %v11269_v31, %v992_v44 }
 0x2b0   : > { %10226 = vset.pattern.permute.xlu1 %v15745_v29  ;;  %v1586_v62 = vpop.permute.xlu1 %1585 }
 0x2b1   : > { %1003 = vperm.xlu1 %10226, %v15849_v58   ;;  %v1670_v43 = vsel %vm1478_vm12, %v1586_v62, 0.0  ;;  %v1671_v13 = vsel %vm1479_vm13, %v1586_v62, 0.0  ;;  %vm1064_vm12 = vcmp.eq.s32.totalorder %v11261_v38, %v992_v44 }
 0x2b2   : > { %v1734_v57 = vadd.f32 %v1670_v43, %v1318_v19  ;;  %v1735_v17 = vadd.f32 %v1671_v13, %v1319_v34  ;;  %v12169_v19 = vpop.permute.xlu0 %1006  ;;  %v10058_v34 = vtrunc.f32 %v11902_v12 }
 0x2b5   : > { %10227 = vset.pattern.permute.xlu1 %v15747_v7  ;;  %v1821_v10 = vpop.permute.xlu1 %1820 }
 0x2b6   : > { %vm1894_vm11 = vcmp.eq.s32.totalorder %v11261_v38, %v1821_v10  ;;  %vm1895_vm1 = vcmp.eq.s32.totalorder %v11269_v31, %v1821_v10  ;;  %768 = vperm.xlu1 %10227, %v10541_v54  }
 0x2b7   : > { %v2086_v36 = vsel %vm1894_vm11, %v11838_v26, 0.0  ;;  %v2087_v47 = vsel %vm1895_vm1, %v11838_v26, 0.0  ;;  %vm15853_vm11 = vcmask 261120  }
 0x2b8   : > { %v2150_v8 = vadd.f32 %v2086_v36, %v1734_v57  ;;  %v2151_v9 = vadd.f32 %v2087_v47, %v1735_v17  ;;  %v12174_v36 = vcvt.f32.s32 %v10058_v34  ;;  %v12176_v47 = vpop.permute.xlu0 %1009 }
 0x2b9   : > { %v9444_v49 = vpop.f32.mrf.mxu0 }
 0x2ba   : > { %773 = vperm.xlu1 %10227, %v10542_v46   ;;  %v1998_v42 = vpop.permute.xlu1 %1997 }
 0x2bb   : > { %v9445_v37 = vpop.f32.mrf.mxu0  ;;  %v2084_v62 = vsel %vm1892_vm0, %v1998_v42, 0.0  ;;  %v2085_v35 = vsel %vm15852_vm4, %v1998_v42, 0.0 }
 0x2bc   : > { %v2148_v26 = vadd.f32 %v2084_v62, %v1732_v41  ;;  %v2149_v22 = vadd.f32 %v2085_v35, %v1733_v56  ;;  %v9446_v61 = vadd.f32 %v9445_v37, %v9444_v49  ;;  %v15854_v41 = vld [vmem:[#allocation26_spill] sm:$0xff] }
 0x2bd   : > { %v9447_v0 = vpop.f32.mrf.mxu0  ;;  %vm1480_vm10 = vcmp.eq.s32.totalorder %v11261_v38, %v15854_v41  ;;  %vm1481_vm13 = vcmp.eq.s32.totalorder %v11269_v31, %v15854_v41 }
 0x2be   : > { %10229 = vset.pattern.permute.xlu1 %v15750_v15  ;;  %v2241_v20 = vpack.c.bf16 %v2151_v9, %v2149_v22  ;;  %v2240_v4 = vpack.c.bf16 %v2150_v8, %v2148_v26  ;;  %v15855_v22 = vld [vmem:[#allocation33_spill] sm:$0xff] }
 0x2bf   : > { %v9448_v24 = vpop.f32.mrf.mxu0  ;;  %1193 = vperm.xlu1 %10229, %v10542_v46   ;;  %v12154_v18 = vpop.permute.xlu1 %543 }
 0x2c0   : > { %v9449_v6 = vadd.f32 %v9448_v24, %v9447_v0  ;;  %2364 = vmatprep.mubr.bf16.mxu0 %v2241_v20  ;;  %vm616_vm15 = vcmp.eq.s32.totalorder %v11261_v38, %v12154_v18  ;;  %vm617_vm0 = vcmp.eq.s32.totalorder %v11269_v31, %v12154_v18  ;;  %v10543_v20 = vld [vmem:[%s10732_s25 + $0xe0] sm:$0xff] }
 0x2c1   : > { %2365 = vmatmul.mubr.bf16.gmra.mxu0 %v2240_v4 }
 0x2c2   : > { %v2480_v10 = vpack.c.bf16 %v9449_v6, %v9446_v61 }
 0x2c3   : > { %10230 = vset.pattern.permute.xlu1 %v15813_v51  ;;  %v547_v23 = vpop.permute.xlu1 %546 }
 0x2c4   : > { %9805 = vmatmul.mubr.msk.bf16.vlgmr.msra.gmra.mxu1 %vm15853_vm11, %v2480_v10  ;;  %1419 = vperm.xlu1 %10230, %v15849_v58   ;;  %vm618_vm8 = vcmp.eq.s32.totalorder %v11261_v38, %v547_v23  ;;  %vm619_vm9 = vcmp.eq.s32.totalorder %v11269_v31, %v547_v23 }
 0x2c5   : > { %9809 = vmatpush3.bf16.msra.mxu1 %v10270_v21  ;;  %9812 = vmatprep.mubr.msk.bf16.mxu1 %vm15838_vm2, %v10615_v50 }
 0x2c6   : > { %9810 = vmatprep.subr.bf16.mxu1 %v10615_v50 }
 0x2c8   : > { %10231 = vset.pattern.permute.xlu1 %v15755_v40  ;;  %v995_v43 = vpop.permute.xlu1 %994 }
 0x2c9   : > { %9811 = vmatpush3.bf16.msra.mxu1 %v10271_v53  ;;  %1605 = vperm.xlu1 %10231, %v10541_v54   ;;  %vm1066_vm1 = vcmp.eq.s32.totalorder %v11261_v38, %v995_v43  ;;  %vm1067_vm6 = vcmp.eq.s32.totalorder %v11269_v31, %v995_v43 }
 0x2ca   : > { %9816 = vmatprep.subr.bf16.mxu1 %v10615_v50 }
 0x2cd   : > { %1609 = vperm.xlu1 %10231, %v10542_v46   ;;  %v749_v13 = vpop.permute.xlu1 %748 }
 0x2ce   : > { %v840_v37 = vsel %vm616_vm15, %v749_v13, 0.0  ;;  %v841_v26 = vsel %vm617_vm0, %v749_v13, 0.0 }
 0x2d1   : > { %10233 = vset.pattern.permute.xlu1 %v15746_v45 }
 0x2d2   : > { %1838 = vperm.xlu1 %10233, %v11756_v16   ;;  %v1174_v58 = vpop.permute.xlu1 %1173 }
 0x2d3   : > { %v1256_v46 = vsel %vm1064_vm12, %v1174_v58, 0.0  ;;  %v1257_v62 = vsel %vm1065_vm14, %v1174_v58, 0.0 }
 0x2d4   : > { %v1320_v4 = vadd.f32 %v1256_v46, %v840_v37  ;;  %v1321_v10 = vadd.f32 %v1257_v62, %v841_v26 }
 0x2d6   : > { %10234 = vset.pattern.permute.xlu1 %v15739_v63  ;;  %v1178_v28 = vpop.permute.xlu1 %1177 }
 0x2d7   : > { %2021 = vperm.xlu1 %10234, %v10541_v54   ;;  %v754_v54 = vpop.permute.xlu0 %753  ;;  %v1258_v42 = vsel %vm1066_vm1, %v1178_v28, 0.0  ;;  %v1259_v35 = vsel %vm1067_vm6, %v1178_v28, 0.0 }
 0x2d8   : > { %v842_v57 = vsel %vm618_vm8, %v754_v54, 0.0  ;;  %v843_v17 = vsel %vm619_vm9, %v754_v54, 0.0  ;;  %vm15856_vm9 = vcmask 261120  }
 0x2d9   : > { %v1322_v61 = vadd.f32 %v1258_v42, %v842_v57  ;;  %v1323_v23 = vadd.f32 %v1259_v35, %v843_v17 }
 0x2db   : > { %10236 = vset.pattern.permute.xlu1 %v15743_v11  ;;  %v1411_v49 = vpop.permute.xlu1 %1410 }
 0x2dc   : > { %561 = vperm.xlu1 %10236, %v11764_v5   ;;  %vm1482_vm5 = vcmp.eq.s32.totalorder %v11261_v38, %v1411_v49  ;;  %vm1483_vm3 = vcmp.eq.s32.totalorder %v11269_v31, %v1411_v49 }
 0x2dd   : > { %v1674_v0 = vsel %vm1482_vm5, %v15855_v22, 0.0  ;;  %v1675_v6 = vsel %vm1483_vm3, %v15855_v22, 0.0 }
 0x2de   : > { %v1738_v13 = vadd.f32 %v1674_v0, %v1322_v61  ;;  %v1739_v34 = vadd.f32 %v1675_v6, %v1323_v23 }
 0x2e0   : > { %564 = vperm.xlu1 %10236, %v12174_v36   ;;  %v1590_v16 = vpop.permute.xlu1 %1589 }
 0x2e1   : > { %v1672_v24 = vsel %vm1480_vm10, %v1590_v16, 0.0  ;;  %v1673_v18 = vsel %vm1481_vm13, %v1590_v16, 0.0 }
 0x2e2   : > { %v1736_v44 = vadd.f32 %v1672_v24, %v1320_v4  ;;  %v1737_v49 = vadd.f32 %v1673_v18, %v1321_v10 }
 0x2e4   : > { %10238 = vset.pattern.permute.xlu1 %v15745_v29 }
 0x2e5   : > { %1012 = vperm.xlu1 %10238, %v12174_v36   ;;  %v1824_v56 = vpop.permute.xlu1 %1823 }
 0x2e6   : > { %vm1896_vm7 = vcmp.eq.s32.totalorder %v11261_v38, %v1824_v56  ;;  %vm1897_vm4 = vcmp.eq.s32.totalorder %v11269_v31, %v1824_v56 }
 0x2e7   : > { %v2088_v53 = vsel %vm1896_vm7, %v11843_v55, 0.0  ;;  %v2089_v58 = vsel %vm1897_vm4, %v11843_v55, 0.0 }
 0x2e8   : > { %v2152_v54 = vadd.f32 %v2088_v53, %v1736_v44  ;;  %v2153_v17 = vadd.f32 %v2089_v58, %v1737_v49  ;;  %v15857_v53 = vld [vmem:[#allocation50_spill] sm:$0xff] }
 0x2e9   : > { %v9450_v8 = vpop.f32.mrf.mxu0  ;;  %10239 = vset.pattern.permute.xlu1 %v15747_v7  ;;  %v1827_v9 = vpop.permute.xlu1 %1826  ;;  %vm622_vm1 = vcmp.eq.s32.totalorder %v11261_v38, %v15857_v53  ;;  %vm623_vm5 = vcmp.eq.s32.totalorder %v11269_v31, %v15857_v53  ;;  %v15858_v58 = vld [vmem:[#allocation66_spill] sm:$0xff] }
 0x2ea   : > { %778 = vperm.xlu1 %10239, %v10543_v20   ;;  %vm1898_vm11 = vcmp.eq.s32.totalorder %v11261_v38, %v1827_v9  ;;  %vm1899_vm8 = vcmp.eq.s32.totalorder %v11269_v31, %v1827_v9 }
 0x2eb   : > { %v9451_v21 = vpop.f32.mrf.mxu0 }
 0x2ec   : > { %v12217_v43 = vadd.f32 %v9451_v21, %v9450_v8  ;;  %v10060_v21 = vtrunc.f32 %v11949_v3 }
 0x2ed   : > { %v9453_v28 = vpop.f32.mrf.mxu0 }
 0x2ee   : > { %10241 = vset.pattern.permute.xlu1 %v15750_v15  ;;  %v2010_v16 = vpop.permute.xlu1 %2009  ;;  %v12243_v23 = vcvt.f32.s32 %v10060_v21 }
 0x2ef   : > { %v2090_v41 = vsel %vm1898_vm11, %v2010_v16, 0.0  ;;  %v2091_v56 = vsel %vm1899_vm8, %v2010_v16, 0.0  ;;  %v9454_v57 = vpop.f32.mrf.mxu0  ;;  %1197 = vperm.xlu1 %10241, %v10543_v20  }
 0x2f0   : > { %v2154_v46 = vadd.f32 %v2090_v41, %v1738_v13  ;;  %v2155_v42 = vadd.f32 %v2091_v56, %v1739_v34  ;;  %v12223_v37 = vadd.f32 %v9454_v57, %v9453_v28  ;;  %v15859_v57 = vld [vmem:[#allocation34_spill] sm:$0xff] }
 0x2f2   : > { %v5032_v55 = vpack.c.bf16 %v12223_v37, %v12217_v43  ;;  %v2243_v62 = vpack.c.bf16 %v2155_v42, %v2153_v17  ;;  %v2242_v35 = vpack.c.bf16 %v2154_v46, %v2152_v54 }
 0x2f3   : > { %1201 = vperm.xlu1 %10241, %v11902_v12   ;;  %v550_v8 = vpop.permute.xlu1 %549 }
 0x2f4   : > { %2372 = vmatprep.mubr.bf16.mxu0 %v2243_v62  ;;  %vm620_vm10 = vcmp.eq.s32.totalorder %v11261_v38, %v550_v8  ;;  %vm621_vm12 = vcmp.eq.s32.totalorder %v11269_v31, %v550_v8 }
 0x2f5   : > { %2373 = vmatmul.mubr.bf16.gmra.mxu0 %v2242_v35 }
 0x2f7   : > { %10242 = vset.pattern.permute.xlu1 %v15813_v51 }
 0x2f8   : > { %1428 = vperm.xlu1 %10242, %v12174_v36   ;;  %v998_v9 = vpop.permute.xlu1 %997 }
 0x2f9   : > { %v12230_v26 = vpop.f32.mrf.mxu1  ;;  %vm1068_vm13 = vcmp.eq.s32.totalorder %v11261_v38, %v998_v9  ;;  %vm1069_vm14 = vcmp.eq.s32.totalorder %v11269_v31, %v998_v9 }
 0x2fa   : > { %v2934_v22 = vsel %vm15856_vm9, %v12230_v26, 0.0  ;;  %vm1902_vm9 = vcmp.eq.s32.totalorder %v11261_v38, %v11454_v60 }
 0x2fb   : > { %2935 = vadd.xlane.f32.xlu0 %v2934_v22  ;;  %v9782_v0 = vpop.f32.mrf.mxu1 }
 0x2fc   : > { %10243 = vset.pattern.permute.xlu1 %v15755_v40  ;;  %v1001_v24 = vpop.permute.xlu1 %1000 }
 0x2fd   : > { %v12235_v4 = vpop.f32.mrf.mxu1  ;;  %1613 = vperm.xlu1 %10243, %v10543_v20   ;;  %vm1070_vm15 = vcmp.eq.s32.totalorder %v11261_v38, %v1001_v24  ;;  %vm1071_vm0 = vcmp.eq.s32.totalorder %v11269_v31, %v1001_v24 }
 0x2fe   : > { %v1262_v28 = vsel %vm1070_vm15, %v15858_v58, 0.0  ;;  %v1263_v34 = vsel %vm1071_vm0, %v15858_v58, 0.0  ;;  %v10272_v58 = vld [vmem:[%s10760_s28 + $0x58] sm:$0xff]  }
 0x2ff   : > { %v9783_v61 = vpop.f32.mrf.mxu1 }
 0x301   : > { %10245 = vset.pattern.permute.xlu1 %v15746_v45  ;;  %v764_v6 = vpop.permute.xlu1 %763 }
 0x302   : > { %1841 = vperm.xlu1 %10245, %v11764_v5   ;;  %v846_v49 = vsel %vm622_vm1, %v764_v6, 0.0  ;;  %v847_v16 = vsel %vm623_vm5, %v764_v6, 0.0  ;;  %vm1074_vm1 = vcmp.eq.s32.totalorder %v11261_v38, %v12169_v19 }
 0x303   : > { %v1326_v9 = vadd.f32 %v1262_v28, %v846_v49 }
 0x306   : > { %1844 = vperm.xlu1 %10245, %v12174_v36   ;;  %v1182_v18 = vpop.permute.xlu1 %1181  ;;  %v759_v36 = vpop.permute.xlu0 %758 }
 0x307   : > { %v844_v13 = vsel %vm620_vm10, %v759_v36, 0.0  ;;  %v845_v44 = vsel %vm621_vm12, %v759_v36, 0.0  ;;  %vm1903_vm10 = vcmp.eq.s32.totalorder %v11269_v31, %v11454_v60  ;;  %vm15860_vm12 = vcmask 261120  }
 0x308   : > { %vm15863_vm15 = vmmov %vm15860_vm12 }
 0x30a   : > { %10247 = vset.pattern.permute.xlu1 %v15739_v63 }
 0x30b   : > { %2033 = vperm.xlu1 %10247, %v11902_v12   ;;  %v1414_v10 = vpop.permute.xlu1 %1413  ;;  %v1261_v12 = vsel %vm1069_vm14, %v1182_v18, 0.0  ;;  %vm15862_vm14 = vmmov %vm15860_vm12 }
 0x30c   : > { %vm1484_vm6 = vcmp.eq.s32.totalorder %v11261_v38, %v1414_v10  ;;  %vm1485_vm3 = vcmp.eq.s32.totalorder %v11269_v31, %v1414_v10  ;;  %v1325_v41 = vadd.f32 %v1261_v12, %v845_v44 }
 0x30d   : > { %v1676_v17 = vsel %vm1484_vm6, %v15859_v57, 0.0  ;;  %v1677_v46 = vsel %vm1485_vm3, %v15859_v57, 0.0 }
 0x30e   : > { %v1741_v61 = vadd.f32 %v1677_v46, %v1325_v41 }
 0x30f   : > { %10248 = vset.pattern.permute.xlu1 %v15743_v11  ;;  %v1417_v20 = vpop.permute.xlu1 %1416 }
 0x310   : > { %567 = vperm.xlu1 %10248, %v12243_v23   ;;  %vm1486_vm7 = vcmp.eq.s32.totalorder %v11261_v38, %v1417_v20  ;;  %vm1487_vm4 = vcmp.eq.s32.totalorder %v11269_v31, %v1417_v20 }
 0x314   : > { %10250 = vset.pattern.permute.xlu1 %v15745_v29  ;;  %v1602_v5 = vpop.permute.xlu1 %1601  ;;  %v1260_v29 = vsel %vm1068_vm13, %v1182_v18, 0.0  ;;  %vm15861_vm13 = vmmov %vm15860_vm12 }
 0x315   : > { %1015 = vperm.xlu1 %10250, %v12243_v23   ;;  %v1324_v54 = vadd.f32 %v1260_v29, %v844_v13  ;;  %v1678_v62 = vsel %vm1486_vm7, %v1602_v5, 0.0  ;;  %v1679_v35 = vsel %vm1487_vm4, %v1602_v5, 0.0  ;;  %vm1075_vm7 = vcmp.eq.s32.totalorder %v11269_v31, %v12169_v19 }
 0x316   : > { %v1742_v18 = vadd.f32 %v1678_v62, %v1326_v9  ;;  %v10544_v9 = vld [vmem:[%s10732_s25 + $0xf8] sm:$0xff]  ;;  %s10618_s25 = smov 32  }
 0x317   : > { %v1740_v24 = vadd.f32 %v1676_v17, %v1324_v54  ;;  %v10273_v54 = vld [vmem:[%s10760_s28 + $0x50] sm:$0xff]  }
 0x319   : > { %1018 = vperm.xlu1 %10250, %v11940_v59   ;;  %v1830_v11 = vpop.permute.xlu1 %1829 }
 0x31a   : > { %vm1900_vm11 = vcmp.eq.s32.totalorder %v11261_v38, %v1830_v11  ;;  %vm1901_vm8 = vcmp.eq.s32.totalorder %v11269_v31, %v1830_v11 }
 0x31d   : > { %v9456_v56 = vpop.f32.mrf.mxu0  ;;  %10252 = vset.pattern.permute.xlu1 %v15747_v7  ;;  %v1327_v7 = vadd.f32 %v1263_v34, %v847_v16 }
 0x31e   : > { %793 = vperm.xlu1 %10252, %v11935_v30   ;;  %v2014_v42 = vpop.permute.xlu1 %2013 }
 0x31f   : > { %v9457_v8 = vpop.f32.mrf.mxu0  ;;  %v2092_v22 = vsel %vm1900_vm11, %v2014_v42, 0.0  ;;  %v2093_v0 = vsel %vm1901_vm8, %v2014_v42, 0.0  ;;  %v1743_v21 = vadd.f32 %v1679_v35, %v1327_v7  ;;  %v12309_v7 = vpop.permute.xlu0 %783 }
 0x320   : > { %v2156_v20 = vadd.f32 %v2092_v22, %v1740_v24  ;;  %v2157_v5 = vadd.f32 %v2093_v0, %v1741_v61  ;;  %v9458_v12 = vadd.f32 %v9457_v8, %v9456_v56  ;;  %v15865_v0 = vld [vmem:[#allocation68_spill] sm:$0xff] }
 0x321   : > { %v9459_v6 = vpop.f32.mrf.mxu0 }
 0x322   : > { %10253 = vset.pattern.permute.xlu1 %v15750_v15  ;;  %v2018_v10 = vpop.permute.xlu1 %2017 }
 0x323   : > { %v2094_v36 = vsel %vm1902_vm9, %v2018_v10, 0.0  ;;  %v2095_v11 = vsel %vm1903_vm10, %v2018_v10, 0.0  ;;  %v9460_v29 = vpop.f32.mrf.mxu0  ;;  %1205 = vperm.xlu1 %10253, %v11949_v3   ;;  %v1423_v22 = vpop.permute.xlu0 %1422 }
 0x324   : > { %v2158_v53 = vadd.f32 %v2094_v36, %v1742_v18  ;;  %v2159_v13 = vadd.f32 %v2095_v11, %v1743_v21  ;;  %v9461_v44 = vadd.f32 %v9460_v29, %v9459_v6  ;;  %vm1490_vm4 = vcmp.eq.s32.totalorder %v11261_v38, %v1423_v22 }
 0x325   : > { %vm1491_vm9 = vcmp.eq.s32.totalorder %v11269_v31, %v1423_v22 }
 0x326   : > { %v2481_v28 = vpack.c.bf16 %v9461_v44, %v9458_v12  ;;  %v2245_v60 = vpack.c.bf16 %v2159_v13, %v2157_v5  ;;  %v2244_v34 = vpack.c.bf16 %v2158_v53, %v2156_v20 }
 0x327   : > { %10255 = vset.pattern.permute.xlu1 %v15813_v51  ;;  %v559_v15 = vpop.permute.xlu1 %558 }
 0x328   : > { %9813 = vmatmul.mubr.msk.bf16.vlgmr.msra.gmra.mxu1 %vm15860_vm12, %v2481_v28  ;;  %1431 = vperm.xlu1 %10255, %v12243_v23   ;;  %vm626_vm11 = vcmp.eq.s32.totalorder %v11261_v38, %v559_v15  ;;  %vm627_vm8 = vcmp.eq.s32.totalorder %v11269_v31, %v559_v15 }
 0x329   : > { %v12282_v49 = vpop.f32.mrf.mxu1  ;;  %2380 = vmatprep.mubr.bf16.mxu0 %v2245_v60  ;;  %9817 = vmatpush3.bf16.msra.mxu1 %v10272_v58  ;;  %v15866_v60 = vld [vmem:[#allocation35_spill] sm:$0xff] }
 0x32a   : > { %v2940_v16 = vsel %vm15861_vm13, %v12282_v49, 0.0  ;;  %2381 = vmatmul.mubr.bf16.gmra.mxu0 %v2244_v34  ;;  %9818 = vmatprep.subr.bf16.mxu1 %v10615_v50 }
 0x32b   : > { %2941 = vadd.xlane.f32.xlu0 %v2940_v16  ;;  %v9790_v41 = vpop.f32.mrf.mxu1  ;;  %9820 = vmatprep.mubr.msk.bf16.mxu1 %vm15838_vm2, %v10615_v50 }
 0x32c   : > { %1434 = vperm.xlu1 %10255, %v11940_v59   ;;  %v1004_v51 = vpop.permute.xlu1 %1003 }
 0x32d   : > { %v12291_v56 = vpop.f32.mrf.mxu1  ;;  %9819 = vmatpush3.bf16.msra.mxu1 %v10273_v54  ;;  %vm1072_vm0 = vcmp.eq.s32.totalorder %v11261_v38, %v1004_v51  ;;  %vm1073_vm5 = vcmp.eq.s32.totalorder %v11269_v31, %v1004_v51 }
 0x32e   : > { %v2943_v57 = vsel %vm15862_vm14, %v12291_v56, 0.0  ;;  %9824 = vmatprep.subr.bf16.mxu1 %v10615_v50  ;;  %v1264_v24 = vsel %vm1072_vm0, %v15865_v0, 0.0  ;;  %v1265_v61 = vsel %vm1073_vm5, %v15865_v0, 0.0  ;;  %vm1905_vm0 = vcmp.eq.s32.totalorder %v11269_v31, %v15866_v60 }
 0x32f   : > { %2944 = vadd.xlane.f32.xlu0 %v2943_v57  ;;  %v9791_v17 = vpop.f32.mrf.mxu1 }
 0x330   : > { %10257 = vset.pattern.permute.xlu1 %v15755_v40 }
 0x331   : > { %1625 = vperm.xlu1 %10257, %v11935_v30   ;;  %v769_v46 = vpop.permute.xlu1 %768 }
 0x335   : > { %10258 = vset.pattern.permute.xlu1 %v15746_v45  ;;  %v774_v59 = vpop.permute.xlu1 %773 }
 0x336   : > { %1847 = vperm.xlu1 %10258, %v12243_v23   ;;  %v850_v10 = vsel %vm626_vm11, %v774_v59, 0.0  ;;  %v851_v20 = vsel %vm627_vm8, %v774_v59, 0.0 }
 0x339   : > { %v12300_v42 = vpop.f32.mrf.mxu1 }
 0x33a   : > { %10260 = vset.pattern.permute.xlu1 %v15739_v63  ;;  %v1194_v62 = vpop.permute.xlu1 %1193 }
 0x33b   : > { %v9798_v35 = vpop.f32.mrf.mxu1  ;;  %2037 = vperm.xlu1 %10260, %v11949_v3   ;;  %v15864_v3 = vld [vmem:[#allocation51_spill] sm:$0xff]  ;;  %v1266_v21 = vsel %vm1074_vm1, %v1194_v62, 0.0  ;;  %v1267_v5 = vsel %vm1075_vm7, %v1194_v62, 0.0  ;;  %vm15867_vm1 = vcmask 261120   ;;  %vm1076_vm7 = vcmp.eq.s32.totalorder %v11261_v38, %v12176_v47 }
 0x33c   : > { %vm624_vm6 = vcmp.eq.s32.totalorder %v11261_v38, %v15864_v3  ;;  %vm625_vm3 = vcmp.eq.s32.totalorder %v11269_v31, %v15864_v3  ;;  %v1330_v11 = vadd.f32 %v1266_v21, %v850_v10  ;;  %v1331_v58 = vadd.f32 %v1267_v5, %v851_v20  ;;  %vm15868_vm5 = vmmov %vm15867_vm1 }
 0x33d   : > { %v12304_v8 = vpop.f32.mrf.mxu1  ;;  %v848_v6 = vsel %vm624_vm6, %v769_v46, 0.0  ;;  %v849_v18 = vsel %vm625_vm3, %v769_v46, 0.0  ;;  %v2946_v21 = vsel %vm15868_vm5, %v12300_v42, 0.0 }
 0x33e   : > { %v2949_v40 = vsel %vm15863_vm15, %v12304_v8, 0.0  ;;  %v1328_v13 = vadd.f32 %v1264_v24, %v848_v6  ;;  %v1329_v44 = vadd.f32 %v1265_v61, %v849_v18  ;;  %vm1904_vm15 = vcmp.eq.s32.totalorder %v11261_v38, %v15866_v60 }
 0x33f   : > { %2950 = vadd.xlane.f32.xlu0 %v2949_v40  ;;  %v9799_v30 = vpop.f32.mrf.mxu1  ;;  %2041 = vperm.xlu1 %10260, %v10544_v9   ;;  %v1420_v45 = vpop.permute.xlu1 %1419  ;;  %v2937_v6 = vsel %vm15867_vm1, %v12235_v4, 0.0 }
 0x340   : > { %vm1488_vm10 = vcmp.eq.s32.totalorder %v11261_v38, %v1420_v45  ;;  %vm1489_vm12 = vcmp.eq.s32.totalorder %v11269_v31, %v1420_v45 }
 0x344   : > { %v1606_v23 = vpop.permute.xlu1 %1605 }
 0x345   : > { %v1680_v29 = vsel %vm1488_vm10, %v1606_v23, 0.0  ;;  %v1681_v12 = vsel %vm1489_vm12, %v1606_v23, 0.0 }
 0x346   : > { %v1744_v54 = vadd.f32 %v1680_v29, %v1328_v13  ;;  %v1745_v41 = vadd.f32 %v1681_v12, %v1329_v44 }
 0x348   : > { %v1610_v63 = vpop.permute.xlu1 %1609 }
 0x349   : > { %v1682_v36 = vsel %vm1490_vm4, %v1610_v63, 0.0  ;;  %v1683_v53 = vsel %vm1491_vm9, %v1610_v63, 0.0  ;;  %vm1077_vm4 = vcmp.eq.s32.totalorder %v11269_v31, %v12176_v47 }
 0x34a   : > { %v1746_v34 = vadd.f32 %v1682_v36, %v1330_v11  ;;  %v1747_v51 = vadd.f32 %v1683_v53, %v1331_v58 }
 0x34d   : > { %v1839_v19 = vpop.permute.xlu1 %1838 }
 0x34e   : > { %vm1906_vm13 = vcmp.eq.s32.totalorder %v11261_v38, %v1839_v19  ;;  %vm1907_vm14 = vcmp.eq.s32.totalorder %v11269_v31, %v1839_v19  ;;  %v1426_v19 = vpop.permute.xlu0 %1425 }
 0x34f   : > { %v2098_v28 = vsel %vm1906_vm13, %v11846_v2, 0.0  ;;  %v2099_v15 = vsel %vm1907_vm14, %v11846_v2, 0.0  ;;  %vm1492_vm11 = vcmp.eq.s32.totalorder %v11261_v38, %v1426_v19  ;;  %vm1493_vm8 = vcmp.eq.s32.totalorder %v11269_v31, %v1426_v19 }
 0x350   : > { %v2162_v17 = vadd.f32 %v2098_v28, %v1746_v34  ;;  %v2163_v35 = vadd.f32 %v2099_v15, %v1747_v51 }
 0x351   : > { %v9462_v16 = vpop.f32.mrf.mxu0 }
 0x352   : > { %v2022_v57 = vpop.permute.xlu1 %2021  ;;  %v1618_v11 = vpop.permute.xlu0 %1617 }
 0x353   : > { %v2096_v46 = vsel %vm1904_vm15, %v2022_v57, 0.0  ;;  %v2097_v59 = vsel %vm1905_vm0, %v2022_v57, 0.0  ;;  %v9463_v62 = vpop.f32.mrf.mxu0 }
 0x354   : > { %v2160_v40 = vadd.f32 %v2096_v46, %v1744_v54  ;;  %v2161_v30 = vadd.f32 %v2097_v59, %v1745_v41  ;;  %v12339_v9 = vadd.f32 %v9463_v62, %v9462_v16 }
 0x355   : > { %v9465_v45 = vpop.f32.mrf.mxu0 }
 0x356   : > { %v2247_v23 = vpack.c.bf16 %v2163_v35, %v2161_v30  ;;  %v2246_v2 = vpack.c.bf16 %v2162_v17, %v2160_v40  ;;  %v2030_v54 = vpop.permute.xlu0 %2029 }
 0x357   : > { %v9466_v22 = vpop.f32.mrf.mxu0  ;;  %v562_v63 = vpop.permute.xlu1 %561 }
 0x358   : > { %v12341_v3 = vadd.f32 %v9466_v22, %v9465_v45  ;;  %2388 = vmatprep.mubr.bf16.mxu0 %v2247_v23  ;;  %vm628_vm9 = vcmp.eq.s32.totalorder %v11261_v38, %v562_v63  ;;  %vm629_vm10 = vcmp.eq.s32.totalorder %v11269_v31, %v562_v63 }
 0x359   : > { %2389 = vmatmul.mubr.bf16.gmra.mxu0 %v2246_v2 }
 0x35a   : > { %v5033_v0 = vpack.c.bf16 %v12341_v3, %v12339_v9 }
 0x35b   : > { %v565_v24 = vpop.permute.xlu1 %564 }
 0x35c   : > { %vm630_vm6 = vcmp.eq.s32.totalorder %v11261_v38, %v565_v24  ;;  %vm631_vm3 = vcmp.eq.s32.totalorder %v11269_v31, %v565_v24 }
 0x35d   : > { %v854_v12 = vsel %vm630_vm6, %v12309_v7, 0.0  ;;  %v855_v53 = vsel %vm631_vm3, %v12309_v7, 0.0 }
 0x360   : > { %v1013_v61 = vpop.permute.xlu1 %1012 }
 0x361   : > { %vm1078_vm12 = vcmp.eq.s32.totalorder %v11261_v38, %v1013_v61  ;;  %vm1079_vm13 = vcmp.eq.s32.totalorder %v11269_v31, %v1013_v61 }
 0x363   : > { %2938 = vadd.xlane.f32.xlu1 %v2937_v6 }
 0x365   : > { %v779_v18 = vpop.permute.xlu1 %778 }
 0x366   : > { %v852_v58 = vsel %vm628_vm9, %v779_v18, 0.0  ;;  %v853_v15 = vsel %vm629_vm10, %v779_v18, 0.0 }
 0x367   : > { %2947 = vadd.xlane.f32.xlu1 %v2946_v21 }
 0x36a   : > { %v1198_v10 = vpop.permute.xlu1 %1197 }
 0x36b   : > { %v1268_v13 = vsel %vm1076_vm7, %v1198_v10, 0.0  ;;  %v1269_v47 = vsel %vm1077_vm4, %v1198_v10, 0.0  ;;  %vm15869_vm7 = vmmov %vm15868_vm5 }
 0x36c   : > { %v1332_v16 = vadd.f32 %v1268_v13, %v852_v58  ;;  %v1333_v57 = vadd.f32 %v1269_v47, %v853_v15  ;;  %v10274_v47 = vld [vmem:[%s10760_s28 + $0x68] sm:$0xff]   ;;  %vm15870_vm4 = vmmov %vm15868_vm5 }
 0x36d   : > { %vm15873_vm9 = vmmov %vm15870_vm4 }
 0x36e   : > { %v1202_v20 = vpop.permute.xlu1 %1201  ;;  %vm15874_vm10 = vmmov %vm15870_vm4 }
 0x36f   : > { %v1270_v44 = vsel %vm1078_vm12, %v1202_v20, 0.0  ;;  %v1271_v28 = vsel %vm1079_vm13, %v1202_v20, 0.0  ;;  %vm15875_vm12 = vmmov %vm15870_vm4 }
 0x370   : > { %v1334_v17 = vadd.f32 %v1270_v44, %v854_v12  ;;  %v1335_v40 = vadd.f32 %v1271_v28, %v855_v53 }
 0x373   : > { %v1429_v5 = vpop.permute.xlu1 %1428 }
 0x374   : > { %vm1494_vm14 = vcmp.eq.s32.totalorder %v11261_v38, %v1429_v5  ;;  %vm1495_vm15 = vcmp.eq.s32.totalorder %v11269_v31, %v1429_v5 }
 0x375   : > { %v1686_v41 = vsel %vm1494_vm14, %v1618_v11, 0.0  ;;  %v1687_v46 = vsel %vm1495_vm15, %v1618_v11, 0.0 }
 0x376   : > { %v1750_v2 = vadd.f32 %v1686_v41, %v1334_v17  ;;  %v1751_v61 = vadd.f32 %v1687_v46, %v1335_v40 }
 0x378   : > { %v1614_v36 = vpop.permute.xlu1 %1613 }
 0x379   : > { %v1684_v60 = vsel %vm1492_vm11, %v1614_v36, 0.0  ;;  %v1685_v51 = vsel %vm1493_vm8, %v1614_v36, 0.0  ;;  %vm15871_vm11 = vmmov %vm15870_vm4 }
 0x37a   : > { %v1748_v30 = vadd.f32 %v1684_v60, %v1332_v16  ;;  %v1749_v22 = vadd.f32 %v1685_v51, %v1333_v57  ;;  %v10275_v60 = vld [vmem:[%s10760_s28 + $0x60] sm:$0xff]   ;;  %vm15872_vm8 = vmmov %vm15870_vm4 }
 0x37d   : > { %v1842_v29 = vpop.permute.xlu1 %1841 }
 0x37e   : > { %vm1908_vm0 = vcmp.eq.s32.totalorder %v11261_v38, %v1842_v29  ;;  %vm1909_vm1 = vcmp.eq.s32.totalorder %v11269_v31, %v1842_v29 }
 0x37f   : > { %v2100_v59 = vsel %vm1908_vm0, %v2030_v54, 0.0  ;;  %v2101_v45 = vsel %vm1909_vm1, %v2030_v54, 0.0 }
 0x380   : > { %v2164_v6 = vadd.f32 %v2100_v59, %v1748_v30  ;;  %v2165_v21 = vadd.f32 %v2101_v45, %v1749_v22 }
 0x381   : > { %v9468_v7 = vpop.f32.mrf.mxu0  ;;  %v1845_v34 = vpop.permute.xlu1 %1844 }
 0x382   : > { %vm1910_vm6 = vcmp.eq.s32.totalorder %v11261_v38, %v1845_v34  ;;  %vm1911_vm3 = vcmp.eq.s32.totalorder %v11269_v31, %v1845_v34 }
 0x383   : > { %v9469_v62 = vpop.f32.mrf.mxu0 }
 0x384   : > { %v12373_v35 = vpop.f32.mrf.mxu1  ;;  %v9470_v10 = vadd.f32 %v9469_v62, %v9468_v7 }
 0x385   : > { %v2952_v23 = vsel %vm15868_vm5, %v12373_v35, 0.0  ;;  %v9471_v63 = vpop.f32.mrf.mxu0 }
 0x386   : > { %v9806_v24 = vpop.f32.mrf.mxu1  ;;  %2953 = vadd.xlane.f32.xlu1 %v2952_v23  ;;  %v2034_v18 = vpop.permute.xlu1 %2033 }
 0x387   : > { %v2102_v20 = vsel %vm1910_vm6, %v2034_v18, 0.0  ;;  %v2103_v5 = vsel %vm1911_vm3, %v2034_v18, 0.0  ;;  %v9472_v19 = vpop.f32.mrf.mxu0  ;;  %v10276_v24 = vld [vmem:[%s10760_s28 + $0x78] sm:$0xff]  }
 0x388   : > { %v12381_v36 = vpop.f32.mrf.mxu1  ;;  %v2166_v11 = vadd.f32 %v2102_v20, %v1750_v2  ;;  %v2167_v29 = vadd.f32 %v2103_v5, %v1751_v61  ;;  %v9473_v12 = vadd.f32 %v9472_v19, %v9471_v63 }
 0x389   : > { %v2955_v53 = vsel %vm15869_vm7, %v12381_v36, 0.0  ;;  %vm15876_vm7 = vmmov %vm15870_vm4 }
 0x38a   : > { %2956 = vadd.xlane.f32.xlu0 %v2955_v53  ;;  %v9807_v13 = vpop.f32.mrf.mxu1  ;;  %v2482_v44 = vpack.c.bf16 %v9473_v12, %v9470_v10  ;;  %v2249_v58 = vpack.c.bf16 %v2167_v29, %v2165_v21  ;;  %v2248_v28 = vpack.c.bf16 %v2166_v11, %v2164_v6  ;;  %v10277_v6 = vld [vmem:[%s10760_s28 + $0x70] sm:$0xff]  }
 0x38b   : > { %v568_v29 = vpop.permute.xlu1 %567 }
 0x38c   : > { %2396 = vmatprep.mubr.bf16.mxu0 %v2249_v58  ;;  %9821 = vmatmul.mubr.msk.bf16.vlgmr.msra.gmra.mxu1 %vm15870_vm4, %v2482_v44  ;;  %v571_v58 = vpop.permute.xlu0 %570  ;;  %vm632_vm14 = vcmp.eq.s32.totalorder %v11261_v38, %v568_v29  ;;  %vm633_vm15 = vcmp.eq.s32.totalorder %v11269_v31, %v568_v29 }
 0x38d   : > { %2397 = vmatmul.mubr.bf16.gmra.mxu0 %v2248_v28  ;;  %9825 = vmatpush3.bf16.msra.mxu1 %v10274_v47  ;;  %vm634_vm13 = vcmp.eq.s32.totalorder %v11261_v38, %v571_v58  ;;  %vm635_vm5 = vcmp.eq.s32.totalorder %v11269_v31, %v571_v58 }
 0x38e   : > { %9826 = vmatprep.subr.bf16.mxu1 %v10615_v50  ;;  %9828 = vmatprep.mubr.msk.bf16.mxu1 %vm15838_vm2, %v10615_v50 }
 0x390   : > { %v1016_v12 = vpop.permute.xlu1 %1015 }
 0x391   : > { %9827 = vmatpush3.bf16.msra.mxu1 %v10275_v60  ;;  %v789_v60 = vpop.permute.xlu0 %788  ;;  %vm1080_vm6 = vcmp.eq.s32.totalorder %v11261_v38, %v1016_v12  ;;  %vm1081_vm3 = vcmp.eq.s32.totalorder %v11269_v31, %v1016_v12 }
 0x392   : > { %9832 = vmatprep.subr.bf16.mxu1 %v10615_v50 }
 0x394   : > { %v1019_v53 = vpop.permute.xlu1 %1018 }
 0x395   : > { %vm1082_vm0 = vcmp.eq.s32.totalorder %v11261_v38, %v1019_v53  ;;  %vm1083_vm1 = vcmp.eq.s32.totalorder %v11269_v31, %v1019_v53 }
 0x399   : > { %v794_v13 = vpop.permute.xlu1 %793 }
 0x39a   : > { %v858_v29 = vsel %vm634_vm13, %v794_v13, 0.0 }
 0x39e   : > { %v1206_v47 = vpop.permute.xlu1 %1205 }
 0x39f   : > { %v1273_v53 = vsel %vm1081_vm3, %v1206_v47, 0.0 }
 0x3a3   : > { %v1432_v44 = vpop.permute.xlu1 %1431 }
 0x3a4   : > { %vm1496_vm4 = vcmp.eq.s32.totalorder %v11261_v38, %v1432_v44 }
 0x3a7   : > { %v1435_v28 = vpop.permute.xlu1 %1434 }
 0x3b5   : > { %v9474_v7 = vpop.f32.mrf.mxu0 }
 0x3b7   : > { %v9475_v34 = vpop.f32.mrf.mxu0 }
 0x3b8   : > { %v12392_v15 = vadd.f32 %v9475_v34, %v9474_v7 }
 0x3b9   : > { %v9477_v16 = vpop.f32.mrf.mxu0 }
 0x3bb   : > { %v9478_v54 = vpop.f32.mrf.mxu0 }
 0x3bc   : > { %v12394_v41 = vadd.f32 %v9478_v54, %v9477_v16  ;;  %v1626_v54 = vpop.permute.xlu1 %1625 }
 0x3e8   : > { %v12398_v57 = vpop.f32.mrf.mxu1 }
 0x3e9   : > { %v2958_v17 = vsel %vm15871_vm11, %v12398_v57, 0.0  ;;  %vm1497_vm11 = vcmp.eq.s32.totalorder %v11269_v31, %v1432_v44 }
 0x3ea   : > { %v9480_v46 = vpop.f32.mrf.mxu0  ;;  %v9814_v59 = vpop.f32.mrf.mxu1  ;;  %2959 = vadd.xlane.f32.xlu1 %v2958_v17 }
 0x3ec   : > { %v9481_v62 = vpop.f32.mrf.mxu0  ;;  %v12402_v40 = vpop.f32.mrf.mxu1 }
 0x3ed   : > { %v2961_v30 = vsel %vm15872_vm8, %v12402_v40, 0.0  ;;  %v9482_v22 = vadd.f32 %v9481_v62, %v9480_v46  ;;  %v1210_v62 = vpop.permute.xlu0 %1209  ;;  %vm1498_vm8 = vcmp.eq.s32.totalorder %v11261_v38, %v1435_v28 }
 0x3ee   : > { %v9483_v45 = vpop.f32.mrf.mxu0  ;;  %2962 = vadd.xlane.f32.xlu0 %v2961_v30  ;;  %v9815_v23 = vpop.f32.mrf.mxu1 }
 0x3f0   : > { %v9484_v2 = vpop.f32.mrf.mxu0 }
 0x3f1   : > { %v9485_v63 = vadd.f32 %v9484_v2, %v9483_v45 }
 0x3f3   : > { %v2483_v61 = vpack.c.bf16 %v9485_v63, %v9482_v22  ;;  %v1848_v22 = vpop.permute.xlu1 %1847 }
 0x3f4   : > { %vm1912_vm13 = vcmp.eq.s32.totalorder %v11261_v38, %v1848_v22 }
 0x3f5   : > { %9829 = vmatmul.mubr.msk.bf16.vlgmr.msra.gmra.mxu1 %vm15873_vm9, %v2483_v61  ;;  %vm1499_vm9 = vcmp.eq.s32.totalorder %v11269_v31, %v1435_v28 }
 0x3f6   : > { %9833 = vmatpush3.bf16.msra.mxu1 %v10276_v24  ;;  %9836 = vmatprep.mubr.msk.bf16.mxu1 %vm15838_vm2, %v10615_v50 }
 0x3f7   : > { %9834 = vmatprep.subr.bf16.mxu1 %v10615_v50  ;;  %v2038_v12 = vpop.permute.xlu1 %2037 }
 0x3fa   : > { %9835 = vmatpush3.bf16.msra.mxu1 %v10277_v6  ;;  %v1622_v6 = vpop.permute.xlu0 %1621 }
 0x3fb   : > { %v1689_v58 = vsel %vm1497_vm11, %v1622_v6, 0.0 }
 0x419   : > { %v9486_v18 = vpop.f32.mrf.mxu0 }
 0x41b   : > { %v9487_v21 = vpop.f32.mrf.mxu0 }
 0x41c   : > { %v12412_v10 = vadd.f32 %v9487_v21, %v9486_v18  ;;  %v856_v18 = vsel %vm632_vm14, %v789_v60, 0.0  ;;  %v857_v21 = vsel %vm633_vm15, %v789_v60, 0.0  ;;  %vm1913_vm14 = vcmp.eq.s32.totalorder %v11269_v31, %v1848_v22  ;;  %vm15877_vm15 = vmmov %vm15876_vm7 }
 0x41d   : > { %v9489_v20 = vpop.f32.mrf.mxu0 }
 0x41f   : > { %v9490_v5 = vpop.f32.mrf.mxu0 }
 0x420   : > { %v12414_v19 = vadd.f32 %v9490_v5, %v9489_v20  ;;  %v1274_v20 = vsel %vm1082_vm0, %v1210_v62, 0.0  ;;  %v1275_v5 = vsel %vm1083_vm1, %v1210_v62, 0.0  ;;  %v1337_v62 = vadd.f32 %v1273_v53, %v857_v21  ;;  %vm15878_vm0 = vmmov %vm15876_vm7 }
 0x421   : > { %v1338_v60 = vadd.f32 %v1274_v20, %v858_v29  ;;  %vm15879_vm1 = vmmov %vm15878_vm0 }
 0x422   : > { %v1753_v44 = vadd.f32 %v1689_v58, %v1337_v62  ;;  %vm15882_vm3 = vmmov %vm15878_vm0  ;;  %v15897_v3 = vpack.c.bf16 %v12414_v19, %v12412_v10 }
 0x423   : > { %vm15885_vm11 = vmmov %vm15878_vm0 }
 0x44c   : > { %v12418_v7 = vpop.f32.mrf.mxu1 }
 0x44d   : > { %v9492_v34 = vpop.f32.mrf.mxu0  ;;  %v2964_v16 = vsel %vm15874_vm10, %v12418_v7, 0.0 }
 0x44e   : > { %v9822_v17 = vpop.f32.mrf.mxu1  ;;  %2965 = vadd.xlane.f32.xlu1 %v2964_v16  ;;  %v1272_v16 = vsel %vm1080_vm6, %v1206_v47, 0.0  ;;  %vm15881_vm6 = vmmov %vm15878_vm0 }
 0x44f   : > { %v9493_v46 = vpop.f32.mrf.mxu0 }
 0x450   : > { %v12422_v59 = vpop.f32.mrf.mxu1  ;;  %v9494_v63 = vadd.f32 %v9493_v46, %v9492_v34  ;;  %v859_v34 = vsel %vm635_vm5, %v794_v13, 0.0  ;;  %v1336_v46 = vadd.f32 %v1272_v16, %v856_v18  ;;  %v1691_v13 = vsel %vm1499_vm9, %v1626_v54, 0.0  ;;  %vm15880_vm5 = vmmov %vm15878_vm0 }
 0x451   : > { %v9495_v30 = vpop.f32.mrf.mxu0  ;;  %v2967_v45 = vsel %vm15875_vm12, %v12422_v59, 0.0  ;;  %v1339_v17 = vadd.f32 %v1275_v5, %v859_v34  ;;  %vm15887_vm9 = vmmov %vm15878_vm0 }
 0x452   : > { %2968 = vadd.xlane.f32.xlu0 %v2967_v45  ;;  %v9823_v23 = vpop.f32.mrf.mxu1  ;;  %v1688_v45 = vsel %vm1496_vm4, %v1622_v6, 0.0  ;;  %vm15884_vm4 = vmmov %vm15878_vm0 }
 0x453   : > { %v9496_v2 = vpop.f32.mrf.mxu0  ;;  %v1690_v23 = vsel %vm1498_vm8, %v1626_v54, 0.0  ;;  %v1752_v47 = vadd.f32 %v1688_v45, %v1336_v46  ;;  %vm15886_vm8 = vmmov %vm15878_vm0 }
 0x454   : > { %v9497_v24 = vadd.f32 %v9496_v2, %v9495_v30  ;;  %v1851_v30 = vpop.permute.xlu0 %1850  ;;  %v1754_v28 = vadd.f32 %v1690_v23, %v1338_v60  ;;  %v1755_v2 = vadd.f32 %v1691_v13, %v1339_v17 }
 0x455   : > { %vm1914_vm10 = vcmp.eq.s32.totalorder %v11261_v38, %v1851_v30  ;;  %vm1915_vm12 = vcmp.eq.s32.totalorder %v11269_v31, %v1851_v30 }
 0x456   : > { %v2484_v61 = vpack.c.bf16 %v9497_v24, %v9494_v63  ;;  %v2042_v63 = vpop.permute.xlu1 %2041  ;;  %v2104_v24 = vsel %vm1912_vm13, %v2038_v12, 0.0  ;;  %vm15890_vm13 = vmmov %vm15878_vm0 }
 0x457   : > { %v2106_v18 = vsel %vm1914_vm10, %v2042_v63, 0.0  ;;  %v2107_v21 = vsel %vm1915_vm12, %v2042_v63, 0.0  ;;  %v2168_v6 = vadd.f32 %v2104_v24, %v1752_v47  ;;  %vm15888_vm10 = vmmov %vm15878_vm0 }
 0x458   : > { %9837 = vmatmul.mubr.msk.bf16.vlgmr.msra.gmra.mxu1 %vm15876_vm7, %v2484_v61  ;;  %v2105_v61 = vsel %vm1913_vm14, %v2038_v12, 0.0  ;;  %v2170_v54 = vadd.f32 %v2106_v18, %v1754_v28  ;;  %v2171_v5 = vadd.f32 %v2107_v21, %v1755_v2  ;;  %v2936_v60 = vpop.xlane.xlu0 %2935  ;;  %vm15883_vm7 = vmmov %vm15878_vm0 }
 0x459   : > { %v2169_v20 = vadd.f32 %v2105_v61, %v1753_v44  ;;  %v2983_v45 = vmul.f32 0.03125, %v2936_v60  ;;  %vm15889_vm12 = vmmov %vm15878_vm0 }
 0x45a   : > { %v2250_v34 = vpack.c.bf16 %v2170_v54, %v2168_v6  ;;  %v2939_v46 = vpop.xlane.xlu1 %2938  ;;  %vm15891_vm14 = vmmov %vm15878_vm0 }
 0x45b   : > { %v2251_v29 = vpack.c.bf16 %v2171_v5, %v2169_v20  ;;  %v2984_v62 = vmul.f32 0.03125, %v2939_v46 }
 0x45c   : > { %v2942_v17 = vpop.xlane.xlu0 %2941 }
 0x45d   : > { %2404 = vmatprep.mubr.bf16.mxu0 %v2251_v29  ;;  %v2999_v23 = vadd.f32 %v2984_v62, %v2983_v45  ;;  %v2985_v47 = vmul.f32 0.03125, %v2942_v17 }
 0x45e   : > { %2405 = vmatmul.mubr.bf16.gmra.mxu0 %v2250_v34  ;;  %v2948_v13 = vpop.xlane.xlu1 %2947 }
 0x45f   : > { %9916 = vmatprep.mubr.msk.bf16.mxu0 %vm15838_vm2, %v10615_v50  ;;  %v3000_v2 = vrot.slane %v2999_v23, 4  ;;  %v2987_v63 = vmul.f32 0.03125, %v2948_v13 }
 0x460   : > { %v2945_v30 = vpop.xlane.xlu0 %2944 }
 0x461   : > { %v2986_v58 = vmul.f32 0.03125, %v2945_v30  ;;  %v3001_v21 = vadd.f32 %v3000_v2, %v2999_v23 }
 0x462   : > { %v2954_v20 = vpop.xlane.xlu1 %2953 }
 0x463   : > { %v3006_v28 = vadd.f32 %v2986_v58, %v2985_v47  ;;  %v2989_v29 = vmul.f32 0.03125, %v2954_v20 }
 0x464   : > { %v2951_v44 = vpop.xlane.xlu0 %2950 }
 0x465   : > { %v2988_v24 = vmul.f32 0.03125, %v2951_v44  ;;  %v3007_v18 = vrot.slane %v3006_v28, 4 }
 0x467   : > { %v3013_v6 = vadd.f32 %v2988_v24, %v2987_v63  ;;  %v3008_v34 = vadd.f32 %v3007_v18, %v3006_v28 }
 0x468   : > { %v2957_v61 = vpop.xlane.xlu0 %2956 }
 0x469   : > { %v2990_v54 = vmul.f32 0.03125, %v2957_v61  ;;  %v3009_v62 = vrot.slane %v3008_v34, 2 }
 0x46b   : > { %v3010_v2 = vadd.f32 %v3009_v62, %v3008_v34 }
 0x46d   : > { %v3011_v20 = vrot.slane %v3010_v2, 1 }
 0x477   : > { %v2963_v5 = vpop.xlane.xlu0 %2962 }
 0x478   : > { %v2992_v60 = vmul.f32 0.03125, %v2963_v5 }
 0x4b5   : > { %v12447_v38 = vpop.f32.mrf.mxu1 }
 0x4b6   : > { %v2970_v31 = vsel %vm15877_vm15, %v12447_v38, 0.0  ;;  %vm15892_vm15 = vmmov %vm15878_vm0 }
 0x4b7   : > { %2971 = vadd.xlane.f32.xlu1 %v2970_v31  ;;  %v9830_v22 = vpop.f32.mrf.mxu1  ;;  %v3002_v31 = vrot.slane %v3001_v21, 2 }
 0x4b8   : > { %v3014_v22 = vrot.slane %v3013_v6, 4 }
 0x4b9   : > { %v12451_v16 = vpop.f32.mrf.mxu1  ;;  %v3003_v30 = vadd.f32 %v3002_v31, %v3001_v21 }
 0x4ba   : > { %v2973_v53 = vsel %vm15878_vm0, %v12451_v16, 0.0  ;;  %v3015_v45 = vadd.f32 %v3014_v22, %v3013_v6  ;;  %v3012_v6 = vadd.f32 %v3011_v20, %v3010_v2  ;;  %vm3290_vm0 = vcmask 130048  }
 0x4bb   : > { %2974 = vadd.xlane.f32.xlu0 %v2973_v53  ;;  %v9831_v12 = vpop.f32.mrf.mxu1  ;;  %v2960_v53 = vpop.xlane.xlu1 %2959  ;;  %v3004_v63 = vrot.slane %v3003_v30, 1 }
 0x4bc   : > { %v3020_v12 = vadd.f32 %v2990_v54, %v2989_v29  ;;  %v2991_v46 = vmul.f32 0.03125, %v2960_v53  ;;  %v3016_v24 = vrot.slane %v3015_v45, 2  ;;  %v3057_v34 = vmul.f32 0.0625, %v3012_v6 }
 0x4bd   : > { %v3005_v54 = vadd.f32 %v3004_v63, %v3003_v30 }
 0x4be   : > { %v3021_v13 = vrot.slane %v3020_v12, 4  ;;  %v3027_v47 = vadd.f32 %v2992_v60, %v2991_v46  ;;  %v3017_v11 = vadd.f32 %v3016_v24, %v3015_v45  ;;  %v12471_v63 = vsub.f32 %v12291_v56, %v3057_v34 }
 0x4bf   : > { %v3056_v21 = vmul.f32 0.0625, %v3005_v54 }
 0x4c0   : > { %v3022_v61 = vadd.f32 %v3021_v13, %v3020_v12  ;;  %v3028_v28 = vrot.slane %v3027_v47, 4  ;;  %v3018_v51 = vrot.slane %v3017_v11, 1 }
 0x4c1   : > { %v12463_v45 = vsub.f32 %v12235_v4, %v3056_v21 }
 0x4c2   : > { %v3023_v5 = vrot.slane %v3022_v61, 2  ;;  %v3029_v29 = vadd.f32 %v3028_v28, %v3027_v47  ;;  %v3019_v46 = vadd.f32 %v3018_v51, %v3017_v11  ;;  %v12466_v47 = vsub.f32 %v12282_v49, %v3057_v34 }
 0x4c3   : > { %v3081_v49 = vmul.f32 %v12463_v45, %v12463_v45 }
 0x4c4   : > { %v3024_v31 = vadd.f32 %v3023_v5, %v3022_v61  ;;  %v3030_v22 = vrot.slane %v3029_v29, 2  ;;  %v3082_v61 = vmul.f32 %v12466_v47, %v12466_v47 }
 0x4c6   : > { %v3025_v12 = vrot.slane %v3024_v31, 1  ;;  %v3031_v62 = vadd.f32 %v3030_v22, %v3029_v29  ;;  %v3099_v29 = vsel %vm15882_vm3, %v3081_v49, 0.0  ;;  %vm15895_vm3 = vmmov %vm15879_vm1 }
 0x4c8   : > { %v3026_v11 = vadd.f32 %v3025_v12, %v3024_v31 }
 0x4ca   : > { %v3059_v54 = vmul.f32 0.0625, %v3026_v11 }
 0x4cc   : > { %v12495_v31 = vsub.f32 %v12373_v35, %v3059_v54  ;;  %v12501_v12 = vsub.f32 %v12381_v36, %v3059_v54 }
 0x4d7   : > { %v2966_v58 = vpop.xlane.xlu1 %2965 }
 0x4d8   : > { %v2993_v44 = vmul.f32 0.03125, %v2966_v58 }
 0x4db   : > { %v2969_v17 = vpop.xlane.xlu0 %2968 }
 0x4dc   : > { %v2994_v23 = vmul.f32 0.03125, %v2969_v17  ;;  %v12456_v17 = vsub.f32 %v12230_v26, %v3056_v21  ;;  %v3083_v21 = vmul.f32 %v12471_v63, %v12471_v63 }
 0x4de   : > { %v3034_v18 = vadd.f32 %v2994_v23, %v2993_v44  ;;  %v3080_v30 = vmul.f32 %v12456_v17, %v12456_v17  ;;  %v3058_v23 = vmul.f32 0.0625, %v3019_v46  ;;  %v3032_v44 = vrot.slane %v3031_v62, 1 }
 0x4df   : > { %v3105_v34 = vsel %vm15884_vm4, %v3083_v21, 0.0  ;;  %vm15899_vm4 = vmmov %vm15879_vm1 }
 0x4e0   : > { %v3035_v53 = vrot.slane %v3034_v18, 4  ;;  %v3096_v4 = vsel %vm15880_vm5, %v3080_v30, 0.0  ;;  %v12481_v28 = vsub.f32 %v12300_v42, %v3058_v23  ;;  %v3033_v56 = vadd.f32 %v3032_v44, %v3031_v62  ;;  %vm15893_vm5 = vmmov %vm15879_vm1 }
 0x4e1   : > { %v12490_v6 = vsub.f32 %v12304_v8, %v3058_v23  ;;  %v3086_v62 = vmul.f32 %v12495_v31, %v12495_v31  ;;  %v3087_v23 = vmul.f32 %v12501_v12, %v12501_v12 }
 0x4e2   : > { %v3036_v60 = vadd.f32 %v3035_v53, %v3034_v18  ;;  %v3102_v53 = vsel %vm15883_vm7, %v3082_v61, 0.0  ;;  %v3084_v42 = vmul.f32 %v12481_v28, %v12481_v28  ;;  %v3060_v22 = vmul.f32 0.0625, %v3033_v56  ;;  %vm15898_vm7 = vmmov %vm15879_vm1 }
 0x4e3   : > { %v3085_v46 = vmul.f32 %v12490_v6, %v12490_v6  ;;  %v3114_v44 = vsel %vm15887_vm9, %v3086_v62, 0.0  ;;  %vm15902_vm9 = vmmov %vm15879_vm1 }
 0x4e4   : > { %v3037_v58 = vrot.slane %v3036_v60, 2  ;;  %v3108_v8 = vsel %vm15885_vm11, %v3084_v42, 0.0  ;;  %v12507_v35 = vsub.f32 %v12398_v57, %v3060_v22  ;;  %v3117_v57 = vsel %vm15888_vm10, %v3087_v23, 0.0  ;;  %vm15900_vm11 = vmmov %vm15879_vm1 }
 0x4e5   : > { %v3111_v30 = vsel %vm15886_vm8, %v3085_v46, 0.0  ;;  %v10278_v46 = vld [vmem:[%s10779_s16] sm:$0xff]   ;;  %vm15901_vm8 = vmmov %vm15879_vm1 }
 0x4e6   : > { %v3038_v26 = vadd.f32 %v3037_v58, %v3036_v60  ;;  %v3088_v36 = vmul.f32 %v12507_v35, %v12507_v35  ;;  %9842 = vmatprep.mubr.msk.bf16.mxu1 %vm3290_vm0, %v10278_v46  ;;  %vm15903_vm10 = vmmov %vm15879_vm1 }
 0x4e8   : > { %v3039_v18 = vrot.slane %v3038_v26, 1  ;;  %v3120_v11 = vsel %vm15889_vm12, %v3088_v36, 0.0  ;;  %v10290_v36 = vld [vmem:[%s10760_s28 + $0xb8] sm:$0xff]   ;;  %vm15904_vm12 = vmmov %vm15879_vm1 }
 0x4e9   : > { %9913 = vmatpush3.bf16.msra.mxu0 %v10290_v36 }
 0x4ea   : > { %v3040_v60 = vadd.f32 %v3039_v18, %v3038_v26  ;;  %v12516_v26 = vsub.f32 %v12402_v40, %v3060_v22  ;;  %9914 = vmatprep.subr.bf16.mxu0 %v10615_v50 }
 0x4ec   : > { %v3061_v58 = vmul.f32 0.0625, %v3040_v60 }
 0x4ee   : > { %v12528_v49 = vsub.f32 %v12422_v59, %v3061_v58 }
 0x4f0   : > { %v3091_v61 = vmul.f32 %v12528_v49, %v12528_v49 }
 0x4f2   : > { %v3129_v18 = vsel %vm15892_vm15, %v3091_v61, 0.0  ;;  %vm15917_vm15 = vmmov %vm15879_vm1 }
 0x518   : > { %v12458_v13 = vpop.f32.mrf.mxu1 }
 0x519   : > { %v2976_v51 = vsel %vm15879_vm1, %v12458_v13, 0.0 }
 0x51a   : > { %2977 = vadd.xlane.f32.xlu1 %v2976_v51  ;;  %v9838_v2 = vpop.f32.mrf.mxu1  ;;  %v12519_v51 = vsub.f32 %v12418_v7, %v3061_v58 }
 0x51b   : > { %v3089_v2 = vmul.f32 %v12516_v26, %v12516_v26 }
 0x51c   : > { %v12473_v24 = vpop.f32.mrf.mxu1 }
 0x51d   : > { %v2979_v20 = vsel %vm15881_vm6, %v12473_v24, 0.0  ;;  %v3123_v40 = vsel %vm15890_vm13, %v3089_v2, 0.0  ;;  %vm15894_vm6 = vmmov %vm15879_vm1 }
 0x51e   : > { %2980 = vadd.xlane.f32.xlu0 %v2979_v20  ;;  %v9839_v5 = vpop.f32.mrf.mxu1  ;;  %3097 = vadd.xlane.f32.xlu1 %v3096_v4  ;;  %v3090_v4 = vmul.f32 %v12519_v51, %v12519_v51  ;;  %vm15905_vm13 = vmmov %vm15879_vm1 }
 0x520   : > { %v3126_v7 = vsel %vm15891_vm14, %v3090_v4, 0.0  ;;  %vm15916_vm14 = vmmov %vm15879_vm1 }
 0x522   : > { %3100 = vadd.xlane.f32.xlu0 %v3099_v29  ;;  %3103 = vadd.xlane.f32.xlu1 %v3102_v53 }
 0x526   : > { %3106 = vadd.xlane.f32.xlu0 %v3105_v34  ;;  %3109 = vadd.xlane.f32.xlu1 %v3108_v8 }
 0x52a   : > { %3112 = vadd.xlane.f32.xlu0 %v3111_v30  ;;  %3115 = vadd.xlane.f32.xlu1 %v3114_v44 }
 0x52e   : > { %3118 = vadd.xlane.f32.xlu0 %v3117_v57  ;;  %3121 = vadd.xlane.f32.xlu1 %v3120_v11 }
 0x532   : > { %3124 = vadd.xlane.f32.xlu0 %v3123_v40  ;;  %3127 = vadd.xlane.f32.xlu1 %v3126_v7 }
 0x536   : > { %3130 = vadd.xlane.f32.xlu0 %v3129_v18 }
 0x540   : > { %v2972_v20 = vpop.xlane.xlu1 %2971 }
 0x541   : > { %v2995_v56 = vmul.f32 0.03125, %v2972_v20 }
 0x544   : > { %v2975_v54 = vpop.xlane.xlu0 %2974 }
 0x545   : > { %v2996_v59 = vmul.f32 0.03125, %v2975_v54 }
 0x547   : > { %v3041_v5 = vadd.f32 %v2996_v59, %v2995_v56 }
 0x549   : > { %v3042_v29 = vrot.slane %v3041_v5, 4 }
 0x54b   : > { %v3043_v53 = vadd.f32 %v3042_v29, %v3041_v5 }
 0x54d   : > { %v3044_v21 = vrot.slane %v3043_v53, 2 }
 0x54f   : > { %v3045_v42 = vadd.f32 %v3044_v21, %v3043_v53 }
 0x551   : > { %v3046_v22 = vrot.slane %v3045_v42, 1 }
 0x553   : > { %v3047_v60 = vadd.f32 %v3046_v22, %v3045_v42 }
 0x555   : > { %v3062_v34 = vmul.f32 0.0625, %v3047_v60 }
 0x557   : > { %v12537_v8 = vsub.f32 %v12451_v16, %v3062_v34  ;;  %v12540_v62 = vsub.f32 %v12447_v38, %v3062_v34 }
 0x559   : > { %v3093_v58 = vmul.f32 %v12537_v8, %v12537_v8  ;;  %v3092_v30 = vmul.f32 %v12540_v62, %v12540_v62 }
 0x55b   : > { %v3135_v23 = vsel %vm15879_vm1, %v3093_v58, 0.0  ;;  %v3132_v44 = vsel %vm15893_vm5, %v3092_v30, 0.0  ;;  %vm15918_vm5 = vmmov %vm15879_vm1 }
 0x55c   : > { %3136 = vadd.xlane.f32.xlu0 %v3135_v23  ;;  %3133 = vadd.xlane.f32.xlu1 %v3132_v44 }
 0x5a3   : > { %v2978_v38 = vpop.xlane.xlu1 %2977 }
 0x5a4   : > { %v2997_v11 = vmul.f32 0.03125, %v2978_v38 }
 0x5a7   : > { %v2981_v16 = vpop.xlane.xlu0 %2980  ;;  %v3098_v57 = vpop.xlane.xlu1 %3097 }
 0x5a8   : > { %v2998_v2 = vmul.f32 0.03125, %v2981_v16  ;;  %v3144_v18 = vmul.f32 0.03125, %v3098_v57 }
 0x5aa   : > { %v3048_v4 = vadd.f32 %v2998_v2, %v2997_v11 }
 0x5ab   : > { %v3101_v40 = vpop.xlane.xlu0 %3100  ;;  %v3104_v7 = vpop.xlane.xlu1 %3103 }
 0x5ac   : > { %v3049_v61 = vrot.slane %v3048_v4, 4  ;;  %v3145_v20 = vmul.f32 0.03125, %v3101_v40  ;;  %v3146_v21 = vmul.f32 0.03125, %v3104_v7 }
 0x5ae   : > { %v3050_v54 = vadd.f32 %v3049_v61, %v3048_v4  ;;  %v3160_v56 = vadd.f32 %v3145_v20, %v3144_v18 }
 0x5af   : > { %v3107_v59 = vpop.xlane.xlu0 %3106  ;;  %v3110_v5 = vpop.xlane.xlu1 %3109 }
 0x5b0   : > { %v3051_v29 = vrot.slane %v3050_v54, 2  ;;  %v3161_v53 = vrot.slane %v3160_v56, 4  ;;  %v3147_v42 = vmul.f32 0.03125, %v3107_v59  ;;  %v3148_v46 = vmul.f32 0.03125, %v3110_v5 }
 0x5b2   : > { %v3052_v22 = vadd.f32 %v3051_v29, %v3050_v54  ;;  %v3162_v60 = vadd.f32 %v3161_v53, %v3160_v56  ;;  %v3167_v34 = vadd.f32 %v3147_v42, %v3146_v21 }
 0x5b3   : > { %v3113_v58 = vpop.xlane.xlu0 %3112  ;;  %v3116_v30 = vpop.xlane.xlu1 %3115 }
 0x5b4   : > { %v3053_v23 = vrot.slane %v3052_v22, 1  ;;  %v3163_v44 = vrot.slane %v3162_v60, 2  ;;  %v3168_v36 = vrot.slane %v3167_v34, 4  ;;  %v3149_v38 = vmul.f32 0.03125, %v3113_v58 }
 0x5b5   : > { %v3150_v4 = vmul.f32 0.03125, %v3116_v30 }
 0x5b6   : > { %v3164_v16 = vadd.f32 %v3163_v44, %v3162_v60  ;;  %v3169_v57 = vadd.f32 %v3168_v36, %v3167_v34  ;;  %v3174_v11 = vadd.f32 %v3149_v38, %v3148_v46  ;;  %v3054_v2 = vadd.f32 %v3053_v23, %v3052_v22 }
 0x5b7   : > { %v3119_v40 = vpop.xlane.xlu0 %3118  ;;  %v3122_v54 = vpop.xlane.xlu1 %3121 }
 0x5b8   : > { %v3165_v61 = vrot.slane %v3164_v16, 1  ;;  %v3170_v18 = vrot.slane %v3169_v57, 2  ;;  %v3175_v7 = vrot.slane %v3174_v11, 4  ;;  %v3151_v20 = vmul.f32 0.03125, %v3119_v40 }
 0x5b9   : > { %v3063_v56 = vmul.f32 0.0625, %v3054_v2  ;;  %v3152_v30 = vmul.f32 0.03125, %v3122_v54 }
 0x5ba   : > { %v3166_v59 = vadd.f32 %v3165_v61, %v3164_v16  ;;  %v3171_v5 = vadd.f32 %v3170_v18, %v3169_v57  ;;  %v3176_v29 = vadd.f32 %v3175_v7, %v3174_v11  ;;  %v3181_v53 = vadd.f32 %v3151_v20, %v3150_v4 }
 0x5bb   : > { %v3125_v21 = vpop.xlane.xlu0 %3124  ;;  %v12552_v42 = vsub.f32 %v12473_v24, %v3063_v56  ;;  %v12555_v60 = vsub.f32 %v12458_v13, %v3063_v56  ;;  %v3128_v11 = vpop.xlane.xlu1 %3127 }
 0x5bc   : > { %v3216_v22 = vmul.f32 0.0625, %v3166_v59  ;;  %v3172_v34 = vrot.slane %v3171_v5, 1  ;;  %v3177_v46 = vrot.slane %v3176_v29, 2  ;;  %v3182_v58 = vrot.slane %v3181_v53, 4 }
 0x5bd   : > { %v3153_v23 = vmul.f32 0.03125, %v3125_v21  ;;  %v3095_v44 = vmul.f32 %v12552_v42, %v12552_v42  ;;  %v3094_v36 = vmul.f32 %v12555_v60, %v12555_v60  ;;  %v3154_v54 = vmul.f32 0.03125, %v3128_v11 }
 0x5be   : > { %v3224_v38 = vadd.f32 1e-05, %v3216_v22  ;;  %v3173_v16 = vadd.f32 %v3172_v34, %v3171_v5  ;;  %v3178_v57 = vadd.f32 %v3177_v46, %v3176_v29  ;;  %v3183_v24 = vadd.f32 %v3182_v58, %v3181_v53 }
 0x5bf   : > { %v3188_v2 = vadd.f32 %v3153_v23, %v3152_v30  ;;  %v3131_v13 = vpop.xlane.xlu0 %3130  ;;  %v3141_v4 = vsel %vm15894_vm6, %v3095_v44, 0.0  ;;  %v3138_v40 = vsel %vm15895_vm3, %v3094_v36, 0.0  ;;  %vm15919_vm6 = vmmov %vm15879_vm1 }
 0x5c0   : > { %10454 = vrsqrt.f32 %v3224_v38  ;;  %v3217_v61 = vmul.f32 0.0625, %v3173_v16  ;;  %v3179_v18 = vrot.slane %v3178_v57, 1  ;;  %v3184_v7 = vrot.slane %v3183_v24, 2  ;;  %3142 = vadd.xlane.f32.xlu0 %v3141_v4  ;;  %3139 = vadd.xlane.f32.xlu1 %v3138_v40  ;;  %vm15920_vm3 = vmmov %vm15879_vm1 }
 0x5c1   : > { %v3189_v20 = vrot.slane %v3188_v2, 4  ;;  %v3155_v56 = vmul.f32 0.03125, %v3131_v13 }
 0x5c2   : > { %v3225_v59 = vadd.f32 1e-05, %v3217_v61  ;;  %v3180_v5 = vadd.f32 %v3179_v18, %v3178_v57  ;;  %v3185_v29 = vadd.f32 %v3184_v7, %v3183_v24  ;;  %v9498_v57 = vpop.f32.mrf.mxu0 }
 0x5c3   : > { %v3190_v53 = vadd.f32 %v3189_v20, %v3188_v2  ;;  %v3195_v21 = vadd.f32 %v3155_v56, %v3154_v54 }
 0x5c4   : > { %10456 = vrsqrt.f32 %v3225_v59  ;;  %v3218_v22 = vmul.f32 0.0625, %v3180_v5  ;;  %v3186_v34 = vrot.slane %v3185_v29, 1  ;;  %v9499_v5 = vpop.f32.mrf.mxu0 }
 0x5c5   : > { %v3191_v46 = vrot.slane %v3190_v53, 2  ;;  %v3196_v58 = vrot.slane %v3195_v21, 4 }
 0x5c6   : > { %v3226_v30 = vadd.f32 1e-05, %v3218_v22  ;;  %v3187_v23 = vadd.f32 %v3186_v34, %v3185_v29  ;;  %v10291_v22 = vld [vmem:[%s10760_s28 + $0xb0] sm:$0xff]  }
 0x5c7   : > { %v3192_v44 = vadd.f32 %v3191_v46, %v3190_v53  ;;  %v3197_v36 = vadd.f32 %v3196_v58, %v3195_v21  ;;  %v9501_v46 = vpop.f32.mrf.mxu0  ;;  %v10279_v58 = vld [vmem:[%s10779_s16 + $0x8] sm:$0xff]   ;;  %9915 = vmatpush3.bf16.msra.mxu0 %v10291_v22  ;;  %v10289_v22 = vld [vmem:[%s10779_s16 + $0x58] sm:$0xff]  }
 0x5c8   : > { %10458 = vrsqrt.f32 %v3226_v30  ;;  %v3219_v38 = vmul.f32 0.0625, %v3187_v23  ;;  %9928 = vmatprep.subr.bf16.mxu0 %v10615_v50 }
 0x5c9   : > { %v3193_v16 = vrot.slane %v3192_v44, 1  ;;  %v3198_v4 = vrot.slane %v3197_v36, 2  ;;  %v9502_v39 = vpop.f32.mrf.mxu0 }
 0x5ca   : > { %v3227_v11 = vadd.f32 1e-05, %v3219_v38 }
 0x5cb   : > { %v3194_v13 = vadd.f32 %v3193_v16, %v3192_v44  ;;  %v3199_v40 = vadd.f32 %v3198_v4, %v3197_v36  ;;  %v10281_v36 = vld [vmem:[%s10779_s16 + $0x18] sm:$0xff]  }
 0x5cc   : > { %10460 = vrsqrt.f32 %v3227_v11 }
 0x5cd   : > { %v10455_v24 = vpop.eup %10454  ;;  %v3220_v2 = vmul.f32 0.0625, %v3194_v13  ;;  %v3200_v61 = vrot.slane %v3199_v40, 1  ;;  %v10284_v13 = vld [vmem:[%s10779_s16 + $0x30] sm:$0xff]  }
 0x5ce   : > { %v3240_v18 = vmul.f32 %v10455_v24, %v12456_v17  ;;  %v3241_v7 = vmul.f32 %v10455_v24, %v12463_v45 }
 0x5cf   : > { %v3228_v20 = vadd.f32 1e-05, %v3220_v2  ;;  %v3201_v54 = vadd.f32 %v3200_v61, %v3199_v40 }
 0x5d0   : > { %v3256_v56 = vmax.f32 %v3240_v18, 0.0  ;;  %v3257_v59 = vmax.f32 %v3241_v7, 0.0  ;;  %v10285_v7 = vld [vmem:[%s10779_s16 + $0x38] sm:$0xff]  }
 0x5d1   : > { %v10457_v29 = vpop.eup %10456  ;;  %10462 = vrsqrt.f32 %v3228_v20  ;;  %v3221_v53 = vmul.f32 0.0625, %v3201_v54  ;;  %5038 = vrot.lane.b32.xlu1 %v5029_v52, %s10617_s22 }
 0x5d2   : > { %v3272_v21 = vpack.c.bf16 %v3257_v59, %v3256_v56  ;;  %v3242_v17 = vmul.f32 %v10457_v29, %v12466_v47  ;;  %v3243_v45 = vmul.f32 %v10457_v29, %v12471_v63  ;;  %v10280_v47 = vld [vmem:[%s10779_s16 + $0x10] sm:$0xff]   ;;  %v10286_v56 = vld [vmem:[%s10779_s16 + $0x40] sm:$0xff]  }
 0x5d3   : > { %v3229_v34 = vadd.f32 1e-05, %v3221_v53  ;;  %v10287_v53 = vld [vmem:[%s10779_s16 + $0x48] sm:$0xff]  }
 0x5d4   : > { %9840 = vmatprep.subr.bf16.mxu1 %v3272_v21  ;;  %v3258_v30 = vmax.f32 %v3242_v17, 0.0  ;;  %v3259_v23 = vmax.f32 %v3243_v45, 0.0 }
 0x5d5   : > { %v10459_v44 = vpop.eup %10458  ;;  %5156 = vrot.lane.b32.xlu1 %v5031_v25, %s10617_s22  ;;  %9841 = vmatpush3.bf16.msra.mxu1 %v3272_v21  ;;  %10464 = vrsqrt.f32 %v3229_v34  ;;  %v10288_v21 = vld [vmem:[%s10779_s16 + $0x50] sm:$0xff]   ;;  %v10296_v34 = vld [vmem:[%s10779_s16 + $0x60] sm:$0xff]  }
 0x5d6   : > { %5097 = vrot.lane.b32.xlu0 %v5030_v14, %s10617_s22  ;;  %v3273_v27 = vpack.c.bf16 %v3259_v23, %v3258_v30  ;;  %v3244_v48 = vmul.f32 %v10459_v44, %v12481_v28  ;;  %v3245_v52 = vmul.f32 %v10459_v44, %v12490_v6  ;;  %v9500_v28 = vadd.f32 %v9499_v5, %v9498_v57 }
 0x5d7   : > { %v9503_v6 = vadd.f32 %v9502_v39, %v9501_v46 }
 0x5d8   : > { %9843 = vmatmul.mubr.msk.bf16.vlgmr.msra.gmra.mxu1 %vm3290_vm0, %v10279_v58  ;;  %9846 = vmatprep.subr.bf16.mxu1 %v3273_v27  ;;  %v3260_v1 = vmax.f32 %v3244_v48, 0.0  ;;  %v3261_v25 = vmax.f32 %v3245_v52, 0.0  ;;  %v10297_v48 = vld [vmem:[%s10779_s16 + $0x68] sm:$0xff]   ;;  %v10298_v52 = vld [vmem:[%s10779_s16 + $0x70] sm:$0xff]  }
 0x5d9   : > { %v10461_v63 = vpop.eup %10460  ;;  %5215 = vrot.lane.b32.xlu1 %v5032_v55, %s10617_s22  ;;  %9847 = vmatpush3.bf16.msra.mxu1 %v3273_v27  ;;  %v15896_v55 = vpack.c.bf16 %v12394_v41, %v12392_v15  ;;  %v10283_v15 = vld [vmem:[%s10779_s16 + $0x28] sm:$0xff]  }
 0x5da   : > { %5274 = vrot.lane.b32.xlu0 %v5033_v0, %s10617_s22  ;;  %v3274_v33 = vpack.c.bf16 %v3261_v25, %v3260_v1  ;;  %9848 = vmatprep.mubr.msk.bf16.mxu1 %vm3290_vm0, %v10280_v47  ;;  %v3246_v32 = vmul.f32 %v10461_v63, %v12495_v31  ;;  %v3247_v14 = vmul.f32 %v10461_v63, %v12501_v12  ;;  %v10282_v31 = vld [vmem:[%s10779_s16 + $0x20] sm:$0xff]  }
 0x5db   : > { %v5036_v12 = vpack.c.bf16 %v9503_v6, %v9500_v28  ;;  %v10292_v28 = vld [vmem:[%s10760_s28 + $0xd8] sm:$0xff]  }
 0x5dc   : > { %9852 = vmatprep.subr.bf16.mxu1 %v3274_v33  ;;  %v3262_v43 = vmax.f32 %v3246_v32, 0.0  ;;  %v3263_v37 = vmax.f32 %v3247_v14, 0.0 }
 0x5dd   : > { %5333 = vrot.lane.b32.xlu1 %v15896_v55, %s10617_s22 }
 0x5de   : > { %v10463_v9 = vpop.eup %10462  ;;  %5392 = vrot.lane.b32.xlu0 %v15897_v3, %s10617_s22  ;;  %v3275_v0 = vpack.c.bf16 %v3263_v37, %v3262_v43  ;;  %v10293_v37 = vld [vmem:[%s10760_s28 + $0xd0] sm:$0xff]   ;;  %v10294_v3 = vld [vmem:[%s10760_s28 + $0xf8] sm:$0xff]  }
 0x5df   : > { %v3248_v38 = vmul.f32 %v10463_v9, %v12507_v35  ;;  %v3249_v16 = vmul.f32 %v10463_v9, %v12516_v26 }
 0x5e0   : > { %9849 = vmatmul.mubr.msk.bf16.vlgmr.msra.gmra.mxu1 %vm3290_vm0, %v10281_v36 }
 0x5e1   : > { %5451 = vrot.lane.b32.xlu1 %v5036_v12, %s10617_s22  ;;  %9853 = vmatpush3.bf16.msra.mxu1 %v3274_v33  ;;  %v3264_v41 = vmax.f32 %v3248_v38, 0.0  ;;  %v3265_v10 = vmax.f32 %v3249_v16, 0.0  ;;  %v10295_v12 = vld [vmem:[%s10760_s28 + $0xf0] sm:$0xff]  }
 0x5e2   : > { %9858 = vmatprep.subr.bf16.mxu1 %v3275_v0  ;;  %9854 = vmatprep.mubr.msk.bf16.mxu1 %vm3290_vm0, %v10282_v31  ;;  %v10465_v19 = vpop.eup %10464 }
 0x5e3   : > { %v3276_v26 = vpack.c.bf16 %v3265_v10, %v3264_v41  ;;  %v3250_v24 = vmul.f32 %v10465_v19, %v12519_v51  ;;  %v3251_v2 = vmul.f32 %v10465_v19, %v12528_v49 }
 0x5e5   : > { %v3137_v4 = vpop.xlane.xlu0 %3136  ;;  %v3134_v11 = vpop.xlane.xlu1 %3133  ;;  %v3266_v20 = vmax.f32 %v3250_v24, 0.0  ;;  %v3267_v54 = vmax.f32 %v3251_v2, 0.0  ;;  %v10306_v24 = vld [vmem:[%s10760_s28 + $0xc8] sm:$0xff]   ;;  %v10307_v2 = vld [vmem:[%s10760_s28 + $0xc0] sm:$0xff]  }
 0x5e6   : > { %v3157_v40 = vmul.f32 0.03125, %v3137_v4  ;;  %v3156_v57 = vmul.f32 0.03125, %v3134_v11  ;;  %v10299_v11 = vld [vmem:[%s10779_s16 + $0x78] sm:$0xff]  }
 0x5e7   : > { %v3277_v51 = vpack.c.bf16 %v3267_v54, %v3266_v20 }
 0x5e8   : > { %v3202_v35 = vadd.f32 %v3157_v40, %v3156_v57  ;;  %9855 = vmatmul.mubr.msk.bf16.vlgmr.msra.gmra.mxu1 %vm3290_vm0, %v10283_v15  ;;  %v10301_v40 = vld [vmem:[%s10760_s28 + $0x80] sm:$0xff]   ;;  %v10304_v57 = vld [vmem:[%s10760_s28 + $0xa8] sm:$0xff]  }
 0x5e9   : > { %9859 = vmatpush3.bf16.msra.mxu1 %v3275_v0  ;;  %9860 = vmatprep.mubr.msk.bf16.mxu1 %vm3290_vm0, %v10284_v13  ;;  %v10300_v13 = vld [vmem:[%s10760_s28 + $0x88] sm:$0xff]  }
 0x5ea   : > { %v3203_v61 = vrot.slane %v3202_v35, 4  ;;  %9864 = vmatprep.subr.bf16.mxu1 %v3276_v26 }
 0x5ec   : > { %v3204_v18 = vadd.f32 %v3203_v61, %v3202_v35  ;;  %v10308_v61 = vld [vmem:[%s10760_s28 + $0xe8] sm:$0xff]  }
 0x5ee   : > { %v3205_v59 = vrot.slane %v3204_v18, 2 }
 0x5f0   : > { %v3206_v5 = vadd.f32 %v3205_v59, %v3204_v18  ;;  %9861 = vmatmul.mubr.msk.bf16.vlgmr.msra.gmra.mxu1 %vm3290_vm0, %v10285_v7  ;;  %v10309_v7 = vld [vmem:[%s10760_s28 + $0xe0] sm:$0xff]  }
 0x5f1   : > { %9865 = vmatpush3.bf16.msra.mxu1 %v3276_v26  ;;  %9866 = vmatprep.mubr.msk.bf16.mxu1 %vm3290_vm0, %v10286_v56  ;;  %v10305_v26 = vld [vmem:[%s10760_s28 + $0xa0] sm:$0xff]  }
 0x5f2   : > { %v3207_v49 = vrot.slane %v3206_v5, 1  ;;  %9870 = vmatprep.subr.bf16.mxu1 %v3277_v51 }
 0x5f4   : > { %v3208_v29 = vadd.f32 %v3207_v49, %v3206_v5 }
 0x5f6   : > { %v3222_v17 = vmul.f32 0.0625, %v3208_v29 }
 0x5f8   : > { %v3230_v45 = vadd.f32 1e-05, %v3222_v17  ;;  %9867 = vmatmul.mubr.msk.bf16.vlgmr.msra.gmra.mxu1 %vm3290_vm0, %v10287_v53 }
 0x5f9   : > { %9871 = vmatpush3.bf16.msra.mxu1 %v3277_v51  ;;  %9872 = vmatprep.mubr.msk.bf16.mxu1 %vm3290_vm0, %v10288_v21 }
 0x5fa   : > { %10466 = vrsqrt.f32 %v3230_v45 }
 0x600   : > { %9873 = vmatmul.mubr.msk.bf16.vlgmr.msra.gmra.mxu1 %vm3290_vm0, %v10289_v22 }
 0x601   : > { %9878 = vmatprep.mubr.msk.bf16.mxu1 %vm3290_vm0, %v10296_v34 }
 0x607   : > { %v10467_v46 = vpop.eup %10466 }
 0x608   : > { %v3252_v58 = vmul.f32 %v10467_v46, %v12540_v62  ;;  %v3253_v30 = vmul.f32 %v10467_v46, %v12537_v8 }
 0x60a   : > { %v3268_v23 = vmax.f32 %v3252_v58, 0.0  ;;  %v3269_v44 = vmax.f32 %v3253_v30, 0.0 }
 0x60c   : > { %v3278_v27 = vpack.c.bf16 %v3269_v44, %v3268_v23 }
 0x60e   : > { %9876 = vmatprep.subr.bf16.mxu1 %v3278_v27 }
 0x60f   : > { %9877 = vmatpush3.bf16.msra.mxu1 %v3278_v27 }
 0x612   : > { %9879 = vmatmul.mubr.msk.bf16.vlgmr.msra.gmra.mxu1 %vm3290_vm0, %v10297_v48 }
 0x613   : > { %9884 = vmatprep.mubr.msk.bf16.mxu1 %vm3290_vm0, %v10298_v52 }
 0x649   : > { %v3143_v47 = vpop.xlane.xlu0 %3142  ;;  %v3140_v39 = vpop.xlane.xlu1 %3139 }
 0x64a   : > { %v3159_v1 = vmul.f32 0.03125, %v3143_v47  ;;  %v3158_v25 = vmul.f32 0.03125, %v3140_v39 }
 0x64c   : > { %v3209_v62 = vadd.f32 %v3159_v1, %v3158_v25 }
 0x64d   : > { %v5039_v63 = vpop.permute.xlu1 %5038  ;;  %v5098_v35 = vpop.permute.xlu0 %5097 }
 0x64e   : > { %v3210_v8 = vrot.slane %v3209_v62, 4 }
 0x650   : > { %v3211_v33 = vadd.f32 %v3210_v8, %v3209_v62 }
 0x651   : > { %v12636_v32 = vpop.permute.xlu1 %5156  ;;  %v5275_v18 = vpop.permute.xlu0 %5274 }
 0x652   : > { %v3212_v14 = vrot.slane %v3211_v33, 2 }
 0x654   : > { %v3213_v6 = vadd.f32 %v3212_v14, %v3211_v33 }
 0x655   : > { %v5216_v36 = vpop.permute.xlu1 %5215  ;;  %v5393_v20 = vpop.permute.xlu0 %5392 }
 0x656   : > { %v3214_v43 = vrot.slane %v3213_v6, 1  ;;  %9917 = vmatmul.mubr.msk.bf16.vlgmr.msra.gmra.mxu0 %vm15898_vm7, %v5216_v36  ;;  %vm15921_vm7 = vmmov %vm15879_vm1 }
 0x657   : > { %9929 = vmatpush3.bf16.msra.mxu0 %v10292_v28  ;;  %9932 = vmatprep.mubr.msk.bf16.mxu0 %vm15838_vm2, %v10615_v50 }
 0x658   : > { %v3215_v55 = vadd.f32 %v3214_v43, %v3213_v6  ;;  %9930 = vmatprep.subr.bf16.mxu0 %v10615_v50 }
 0x659   : > { %v5334_v31 = vpop.permute.xlu1 %5333 }
 0x65a   : > { %v3223_v9 = vmul.f32 0.0625, %v3215_v55 }
 0x65b   : > { %9931 = vmatpush3.bf16.msra.mxu0 %v10293_v37 }
 0x65c   : > { %v3231_v0 = vadd.f32 1e-05, %v3223_v9  ;;  %9944 = vmatprep.subr.bf16.mxu0 %v10615_v50 }
 0x65d   : > { %v5452_v38 = vpop.permute.xlu1 %5451 }
 0x65e   : > { %10468 = vrsqrt.f32 %v3231_v0  ;;  %9933 = vmatmul.mubr.msk.bf16.vlgmr.msra.gmra.mxu0 %vm15899_vm4, %v5334_v31  ;;  %vm15922_vm4 = vmmov %vm15879_vm1 }
 0x65f   : > { %9945 = vmatpush3.bf16.msra.mxu0 %v10294_v3  ;;  %9948 = vmatprep.mubr.msk.bf16.mxu0 %vm15838_vm2, %v10615_v50 }
 0x660   : > { %9946 = vmatprep.subr.bf16.mxu0 %v10615_v50 }
 0x663   : > { %9947 = vmatpush3.bf16.msra.mxu0 %v10295_v12 }
 0x666   : > { %9949 = vmatmul.mubr.msk.bf16.vlgmr.msra.gmra.mxu0 %vm15900_vm11, %v5452_v38  ;;  %vm15923_vm11 = vmmov %vm15879_vm1 }
 0x66b   : > { %v10469_v16 = vpop.eup %10468 }
 0x66c   : > { %v3254_v15 = vmul.f32 %v10469_v16, %v12555_v60  ;;  %v3255_v41 = vmul.f32 %v10469_v16, %v12552_v42  ;;  %v10302_v42 = vld [vmem:[%s10760_s28 + $0x98] sm:$0xff]   ;;  %v10303_v60 = vld [vmem:[%s10760_s28 + $0x90] sm:$0xff]  }
 0x66e   : > { %v3270_v10 = vmax.f32 %v3254_v15, 0.0  ;;  %v3271_v19 = vmax.f32 %v3255_v41, 0.0 }
 0x670   : > { %v3279_v4 = vpack.c.bf16 %v3271_v19, %v3270_v10 }
 0x672   : > { %9882 = vmatprep.subr.bf16.mxu1 %v3279_v4 }
 0x673   : > { %9883 = vmatpush3.bf16.msra.mxu1 %v3279_v4 }
 0x674   : > { %9888 = vmatprep.subr.bf16.mxu1 %v10615_v50 }
 0x676   : > { %9885 = vmatmul.mubr.msk.bf16.vlgmr.msra.gmra.mxu1 %vm3290_vm0, %v10299_v11 }
 0x677   : > { %9889 = vmatpush3.bf16.msra.mxu1 %v10300_v13  ;;  %9892 = vmatprep.mubr.msk.bf16.mxu1 %vm15838_vm2, %v10615_v50 }
 0x678   : > { %9890 = vmatprep.subr.bf16.mxu1 %v10615_v50 }
 0x67b   : > { %9891 = vmatpush3.bf16.msra.mxu1 %v10301_v40 }
 0x67c   : > { %9896 = vmatprep.subr.bf16.mxu1 %v10615_v50 }
 0x67e   : > { %9893 = vmatmul.mubr.msk.bf16.vlgmr.msra.gmra.mxu1 %vm15901_vm8, %v5039_v63  ;;  %vm15924_vm8 = vmmov %vm15879_vm1 }
 0x67f   : > { %9897 = vmatpush3.bf16.msra.mxu1 %v10302_v42  ;;  %9900 = vmatprep.mubr.msk.bf16.mxu1 %vm15838_vm2, %v10615_v50 }
 0x680   : > { %9898 = vmatprep.subr.bf16.mxu1 %v10615_v50 }
 0x683   : > { %9899 = vmatpush3.bf16.msra.mxu1 %v10303_v60 }
 0x684   : > { %9904 = vmatprep.subr.bf16.mxu1 %v10615_v50 }
 0x686   : > { %9901 = vmatmul.mubr.msk.bf16.vlgmr.msra.gmra.mxu1 %vm15902_vm9, %v5098_v35  ;;  %vm15925_vm9 = vmmov %vm15879_vm1 }
 0x687   : > { %9905 = vmatpush3.bf16.msra.mxu1 %v10304_v57  ;;  %9908 = vmatprep.mubr.msk.bf16.mxu1 %vm15838_vm2, %v10615_v50 }
 0x688   : > { %9906 = vmatprep.subr.bf16.mxu1 %v10615_v50 }
 0x68b   : > { %9907 = vmatpush3.bf16.msra.mxu1 %v10305_v26 }
 0x68c   : > { %9920 = vmatprep.subr.bf16.mxu1 %v10615_v50 }
 0x68e   : > { %9909 = vmatmul.mubr.msk.bf16.vlgmr.msra.gmra.mxu1 %vm15903_vm10, %v12636_v32  ;;  %vm15926_vm10 = vmmov %vm15879_vm1 }
 0x68f   : > { %9921 = vmatpush3.bf16.msra.mxu1 %v10306_v24  ;;  %9924 = vmatprep.mubr.msk.bf16.mxu1 %vm15838_vm2, %v10615_v50 }
 0x690   : > { %9922 = vmatprep.subr.bf16.mxu1 %v10615_v50 }
 0x693   : > { %9923 = vmatpush3.bf16.msra.mxu1 %v10307_v2 }
 0x694   : > { %9936 = vmatprep.subr.bf16.mxu1 %v10615_v50 }
 0x696   : > { %9925 = vmatmul.mubr.msk.bf16.vlgmr.msra.gmra.mxu1 %vm15904_vm12, %v5275_v18  ;;  %vm15927_vm12 = vmmov %vm15879_vm1 }
 0x697   : > { %9937 = vmatpush3.bf16.msra.mxu1 %v10308_v61  ;;  %9940 = vmatprep.mubr.msk.bf16.mxu1 %vm15838_vm2, %v10615_v50  ;;  %vm15915_vm2 = vmmov %vm15879_vm1 }
 0x698   : > { %9938 = vmatprep.subr.bf16.mxu1 %v10615_v50  ;;  %v12692_v54 = vpop.f32.mrf.mxu1 }
 0x69a   : > { %v12694_v56 = vpop.f32.mrf.mxu1 }
 0x69b   : > { %9939 = vmatpush3.bf16.msra.mxu1 %v10309_v7 }
 0x69c   : > { %v12696_v59 = vpop.f32.mrf.mxu1 }
 0x69e   : > { %9941 = vmatmul.mubr.msk.bf16.vlgmr.msra.gmra.mxu1 %vm15905_vm13, %v5393_v20  ;;  %v12698_v5 = vpop.f32.mrf.mxu1  ;;  %vm15928_vm13 = vmmov %vm15879_vm1 }
 0x6a0   : > { %v12700_v51 = vpop.f32.mrf.mxu1 }
 0x6a2   : > { %v12702_v49 = vpop.f32.mrf.mxu1 }
 0x6a4   : > { %v12704_v29 = vpop.f32.mrf.mxu1 }
 0x6a6   : > { %v12706_v53 = vpop.f32.mrf.mxu1 }
 0x6a8   : > { %v12708_v50 = vpop.f32.mrf.mxu1 }
 0x6aa   : > { %v12710_v21 = vpop.f32.mrf.mxu1 }
 0x6ac   : > { %v12712_v17 = vpop.f32.mrf.mxu1 }
 0x6ae   : > { %v12714_v45 = vpop.f32.mrf.mxu1 }
 0x6b0   : > { %v12716_v22 = vpop.f32.mrf.mxu1 }
 0x6b2   : > { %v12718_v34 = vpop.f32.mrf.mxu1 }
 0x6b4   : > { %v12720_v46 = vpop.f32.mrf.mxu1 }
 0x6b6   : > { %v12722_v58 = vpop.f32.mrf.mxu1 }
 0x6b8   : > { %v12724_v30 = vpop.f32.mrf.mxu1 }
 0x6ba   : > { %v12726_v23 = vpop.f32.mrf.mxu1 }
 0x6bc   : > { %v12728_v44 = vpop.f32.mrf.mxu1 }
 0x6bd   : > { %15906 = vst [vmem:[#allocation20_spill] sm:$0xff] %v12728_v44 }
 0x6be   : > { %v12730_v27 = vpop.f32.mrf.mxu1 }
 0x6c0   : > { %v12734_v47 = vpop.f32.mrf.mxu1 }
 0x6c1   : > { %15907 = vst [vmem:[#allocation39_spill] sm:$0xff] %v12734_v47 }
 0x6c2   : > { %v12738_v25 = vpop.f32.mrf.mxu1 }
 0x6c4   : > { %v12742_v8 = vpop.f32.mrf.mxu1 }
 0x6c5   : > { %15908 = vst [vmem:[#allocation42_spill] sm:$0xff] %v12742_v8 }
 0x6c6   : > { %v12746_v14 = vpop.f32.mrf.mxu1 }
 0x6d2   : > { %v12750_v6 = vpop.f32.mrf.mxu1 }
 0x6d3   : > { %15909 = vst [vmem:[#allocation45_spill] sm:$0xff] %v12750_v6 }
 0x6d4   : > { %v12754_v37 = vpop.f32.mrf.mxu1 }
 0x6d6   : > { %v12756_v9 = vpop.f32.mrf.mxu1 }
 0x6d7   : > { %15910 = vst [vmem:[#allocation41_spill] sm:$0xff] %v12756_v9 }
 0x6d8   : > { %v12758_v3 = vpop.f32.mrf.mxu1 }
 0x716   : > { %v12732_v48 = vpop.f32.mrf.mxu0 }
 0x717   : > { %v5527_v18 = vsel %vm15920_vm3, %v12732_v48, 0.0  ;;  %vm15938_vm3 = vmmov %vm15879_vm1 }
 0x718   : > { %v9918_v52 = vpop.f32.mrf.mxu0 }
 0x71a   : > { %v12736_v39 = vpop.f32.mrf.mxu0 }
 0x71c   : > { %v9919_v1 = vpop.f32.mrf.mxu0 }
 0x71d   : > { %v5530_v1 = vsel %vm15922_vm4, %v12736_v39, 0.0  ;;  %vm15940_vm4 = vmmov %vm15879_vm1 }
 0x71e   : > { %v12740_v62 = vpop.f32.mrf.mxu0 }
 0x720   : > { %v9934_v63 = vpop.f32.mrf.mxu0 }
 0x722   : > { %v12744_v33 = vpop.f32.mrf.mxu0 }
 0x724   : > { %v9935_v32 = vpop.f32.mrf.mxu0 }
 0x726   : > { %v12748_v28 = vpop.f32.mrf.mxu0 }
 0x728   : > { %v9950_v36 = vpop.f32.mrf.mxu0 }
 0x72a   : > { %v12752_v43 = vpop.f32.mrf.mxu0 }
 0x72c   : > { %v9951_v55 = vpop.f32.mrf.mxu0 }
 0x72d   : > { %v5539_v55 = vsel %vm15924_vm8, %v12740_v62, 0.0  ;;  %vm15942_vm8 = vmmov %vm15879_vm1 }
 0x736   : > { %v12760_v0 = vpop.f32.mrf.mxu1 }
 0x737   : > { %15911 = vst [vmem:[#allocation36_spill] sm:$0xff] %v12760_v0 }
 0x738   : > { %v12762_v31 = vpop.f32.mrf.mxu1 }
 0x739   : > { %15912 = vst [vmem:[#allocation37_spill] sm:$0xff] %v12762_v31 }
 0x73a   : > { %v12764_v12 = vpop.f32.mrf.mxu1 }
 0x73b   : > { %15913 = vst [vmem:[#allocation13_spill] sm:$0xff] %v12764_v12 }
 0x73c   : > { %v12766_v38 = vpop.f32.mrf.mxu1 }
 0x73d   : > { %15914 = vst [vmem:[#allocation27_spill] sm:$0xff] %v12766_v38 }
 0x73e   : > { %v12768_v16 = vpop.f32.mrf.mxu1 }
 0x73f   : > { %v5509_v15 = vsel %vm15915_vm2, %v12768_v16, 0.0  ;;  %vm15929_vm2 = vmmov %vm15879_vm1 }
 0x740   : > { %5510 = vadd.xlane.f32.xlu0 %v5509_v15  ;;  %v9894_v41 = vpop.f32.mrf.mxu1 }
 0x742   : > { %v12772_v10 = vpop.f32.mrf.mxu1 }
 0x743   : > { %v5512_v19 = vsel %vm15916_vm14, %v12772_v10, 0.0  ;;  %vm15932_vm14 = vmmov %vm15879_vm1 }
 0x744   : > { %5513 = vadd.xlane.f32.xlu1 %v5512_v19  ;;  %v9895_v4 = vpop.f32.mrf.mxu1 }
 0x745   : > { %v5542_v4 = vsel %vm15926_vm10, %v12744_v33, 0.0  ;;  %vm15944_vm10 = vmmov %vm15879_vm1 }
 0x746   : > { %v12776_v11 = vpop.f32.mrf.mxu1 }
 0x747   : > { %v5515_v13 = vsel %vm15917_vm15, %v12776_v11, 0.0  ;;  %vm15933_vm15 = vmmov %vm15879_vm1 }
 0x748   : > { %5516 = vadd.xlane.f32.xlu0 %v5515_v13  ;;  %v9902_v40 = vpop.f32.mrf.mxu1 }
 0x74a   : > { %v12780_v42 = vpop.f32.mrf.mxu1 }
 0x74b   : > { %v5518_v60 = vsel %vm15879_vm1, %v12780_v42, 0.0 }
 0x74c   : > { %5519 = vadd.xlane.f32.xlu0 %v5518_v60  ;;  %v9903_v57 = vpop.f32.mrf.mxu1 }
 0x74d   : > { %v5551_v57 = vsel %vm15928_vm13, %v12748_v28, 0.0  ;;  %vm15946_vm13 = vmmov %vm15879_vm1 }
 0x74e   : > { %v12784_v35 = vpop.f32.mrf.mxu1 }
 0x74f   : > { %v5521_v26 = vsel %vm15918_vm5, %v12784_v35, 0.0  ;;  %vm15936_vm5 = vmmov %vm15879_vm1 }
 0x750   : > { %5522 = vadd.xlane.f32.xlu1 %v5521_v26  ;;  %v9910_v24 = vpop.f32.mrf.mxu1 }
 0x751   : > { %v5554_v24 = vsel %vm15929_vm2, %v12752_v43, 0.0  ;;  %vm15947_vm2 = vmmov %vm15879_vm1 }
 0x752   : > { %v12788_v2 = vpop.f32.mrf.mxu1 }
 0x753   : > { %v5524_v61 = vsel %vm15919_vm6, %v12788_v2, 0.0  ;;  %vm15937_vm6 = vmmov %vm15879_vm1 }
 0x754   : > { %5525 = vadd.xlane.f32.xlu0 %v5524_v61  ;;  %v9911_v7 = vpop.f32.mrf.mxu1  ;;  %5528 = vadd.xlane.f32.xlu1 %v5527_v18 }
 0x756   : > { %v12794_v20 = vpop.f32.mrf.mxu1 }
 0x757   : > { %v5533_v52 = vsel %vm15921_vm7, %v12794_v20, 0.0  ;;  %vm15939_vm7 = vmmov %vm15879_vm1 }
 0x758   : > { %v9926_v63 = vpop.f32.mrf.mxu1  ;;  %5534 = vadd.xlane.f32.xlu1 %v5533_v52  ;;  %5531 = vadd.xlane.f32.xlu0 %v5530_v1 }
 0x75a   : > { %v12800_v32 = vpop.f32.mrf.mxu1 }
 0x75b   : > { %v5536_v36 = vsel %vm15923_vm11, %v12800_v32, 0.0  ;;  %vm15941_vm11 = vmmov %vm15879_vm1 }
 0x75c   : > { %v9927_v15 = vpop.f32.mrf.mxu1  ;;  %5537 = vadd.xlane.f32.xlu0 %v5536_v36  ;;  %5540 = vadd.xlane.f32.xlu1 %v5539_v55 }
 0x75e   : > { %v12806_v41 = vpop.f32.mrf.mxu1 }
 0x75f   : > { %v5545_v19 = vsel %vm15925_vm9, %v12806_v41, 0.0  ;;  %vm15943_vm9 = vmmov %vm15879_vm1 }
 0x760   : > { %v9942_v13 = vpop.f32.mrf.mxu1  ;;  %5546 = vadd.xlane.f32.xlu1 %v5545_v19  ;;  %5543 = vadd.xlane.f32.xlu0 %v5542_v4 }
 0x762   : > { %v12812_v40 = vpop.f32.mrf.mxu1 }
 0x763   : > { %v5548_v60 = vsel %vm15927_vm12, %v12812_v40, 0.0  ;;  %vm15945_vm12 = vmmov %vm15879_vm1 }
 0x764   : > { %v9943_v26 = vpop.f32.mrf.mxu1  ;;  %5549 = vadd.xlane.f32.xlu0 %v5548_v60  ;;  %5552 = vadd.xlane.f32.xlu1 %v5551_v57 }
 0x768   : > { %5555 = vadd.xlane.f32.xlu0 %v5554_v24 }
 0x7c9   : > { %v5511_v61 = vpop.xlane.xlu0 %5510 }
 0x7ca   : > { %v5557_v7 = vmul.f32 0.03125, %v5511_v61 }
 0x7cd   : > { %v5514_v18 = vpop.xlane.xlu1 %5513 }
 0x7ce   : > { %v5558_v52 = vmul.f32 0.03125, %v5514_v18 }
 0x7d0   : > { %v5573_v1 = vadd.f32 %v5558_v52, %v5557_v7 }
 0x7d1   : > { %v5517_v63 = vpop.xlane.xlu0 %5516 }
 0x7d2   : > { %v5574_v36 = vrot.slane %v5573_v1, 4  ;;  %v5559_v4 = vmul.f32 0.03125, %v5517_v63 }
 0x7d4   : > { %v5575_v55 = vadd.f32 %v5574_v36, %v5573_v1 }
 0x7d5   : > { %v5520_v15 = vpop.xlane.xlu0 %5519 }
 0x7d6   : > { %v5576_v19 = vrot.slane %v5575_v55, 2  ;;  %v5560_v13 = vmul.f32 0.03125, %v5520_v15 }
 0x7d8   : > { %v5577_v9 = vadd.f32 %v5576_v19, %v5575_v55  ;;  %v5580_v26 = vadd.f32 %v5560_v13, %v5559_v4 }
 0x7d9   : > { %v5523_v60 = vpop.xlane.xlu1 %5522 }
 0x7da   : > { %v5578_v57 = vrot.slane %v5577_v9, 1  ;;  %v5581_v12 = vrot.slane %v5580_v26, 4  ;;  %v5561_v61 = vmul.f32 0.03125, %v5523_v60 }
 0x7dc   : > { %v5582_v0 = vadd.f32 %v5581_v12, %v5580_v26  ;;  %v5579_v8 = vadd.f32 %v5578_v57, %v5577_v9 }
 0x7dd   : > { %v5526_v24 = vpop.xlane.xlu0 %5525  ;;  %v5529_v47 = vpop.xlane.xlu1 %5528 }
 0x7de   : > { %v5583_v6 = vrot.slane %v5582_v0, 2  ;;  %v5562_v18 = vmul.f32 0.03125, %v5526_v24  ;;  %v5629_v7 = vmul.f32 0.0625, %v5579_v8  ;;  %v5563_v12 = vmul.f32 0.03125, %v5529_v47 }
 0x7e0   : > { %v5584_v52 = vadd.f32 %v5583_v6, %v5582_v0  ;;  %v5587_v38 = vadd.f32 %v5562_v18, %v5561_v61  ;;  %v12821_v1 = vsub.f32 %v12772_v10, %v5629_v7  ;;  %v12824_v63 = vsub.f32 %v12768_v16, %v5629_v7 }
 0x7e1   : > { %v5532_v36 = vpop.xlane.xlu0 %5531  ;;  %v5535_v55 = vpop.xlane.xlu1 %5534 }
 0x7e2   : > { %15930 = vst [vmem:[#allocation9_spill] sm:$0xff] %v12821_v1  ;;  %15931 = vst [vmem:[#allocation49_spill] sm:$0xff] %v12824_v63  ;;  %v5585_v15 = vrot.slane %v5584_v52, 1  ;;  %v5588_v19 = vrot.slane %v5587_v38, 4  ;;  %v5564_v9 = vmul.f32 0.03125, %v5532_v36  ;;  %v5654_v4 = vmul.f32 %v12821_v1, %v12821_v1 }
 0x7e3   : > { %v5653_v8 = vmul.f32 %v12824_v63, %v12824_v63  ;;  %v5565_v61 = vmul.f32 0.03125, %v5535_v55 }
 0x7e4   : > { %v5589_v6 = vadd.f32 %v5588_v19, %v5587_v38  ;;  %v5594_v0 = vadd.f32 %v5564_v9, %v5563_v12  ;;  %v5586_v13 = vadd.f32 %v5585_v15, %v5584_v52  ;;  %v5672_v26 = vsel %vm15932_vm14, %v5654_v4, 0.0  ;;  %vm15948_vm14 = vmmov %vm15879_vm1 }
 0x7e5   : > { %v5538_v10 = vpop.xlane.xlu0 %5537  ;;  %v5669_v16 = vsel %vm15933_vm15, %v5653_v8, 0.0  ;;  %v5541_v60 = vpop.xlane.xlu1 %5540  ;;  %5673 = vadd.xlane.f32.xlu0 %v5672_v26  ;;  %vm15949_vm15 = vmmov %vm15879_vm1 }
 0x7e6   : > { %v5590_v57 = vrot.slane %v5589_v6, 2  ;;  %v5595_v24 = vrot.slane %v5594_v0, 4  ;;  %v5566_v47 = vmul.f32 0.03125, %v5538_v10  ;;  %5670 = vadd.xlane.f32.xlu1 %v5669_v16  ;;  %v5630_v18 = vmul.f32 0.0625, %v5586_v13 }
 0x7e7   : > { %v5567_v63 = vmul.f32 0.03125, %v5541_v60 }
 0x7e8   : > { %v5591_v7 = vadd.f32 %v5590_v57, %v5589_v6  ;;  %v5596_v36 = vadd.f32 %v5595_v24, %v5594_v0  ;;  %v5601_v1 = vadd.f32 %v5566_v47, %v5565_v61  ;;  %v12833_v52 = vsub.f32 %v12780_v42, %v5630_v18 }
 0x7e9   : > { %v5544_v38 = vpop.xlane.xlu0 %5543  ;;  %v5547_v19 = vpop.xlane.xlu1 %5546  ;;  %v12836_v15 = vsub.f32 %v12776_v11, %v5630_v18 }
 0x7ea   : > { %15934 = vst [vmem:[#allocation38_spill] sm:$0xff] %v12833_v52  ;;  %v5592_v12 = vrot.slane %v5591_v7, 1  ;;  %v5597_v9 = vrot.slane %v5596_v36, 2  ;;  %v5602_v4 = vrot.slane %v5601_v1, 4  ;;  %v5568_v55 = vmul.f32 0.03125, %v5544_v38 }
 0x7eb   : > { %15935 = vst [vmem:[#allocation53_spill] sm:$0xff] %v12836_v15  ;;  %v5656_v8 = vmul.f32 %v12833_v52, %v12833_v52  ;;  %v5655_v6 = vmul.f32 %v12836_v15, %v12836_v15  ;;  %v5569_v16 = vmul.f32 0.03125, %v5547_v19 }
 0x7ec   : > { %v5598_v0 = vadd.f32 %v5597_v9, %v5596_v36  ;;  %v5603_v13 = vadd.f32 %v5602_v4, %v5601_v1  ;;  %v5608_v10 = vadd.f32 %v5568_v55, %v5567_v63  ;;  %v5593_v26 = vadd.f32 %v5592_v12, %v5591_v7 }
 0x7ed   : > { %v5550_v42 = vpop.xlane.xlu0 %5549  ;;  %v5678_v60 = vsel %vm15879_vm1, %v5656_v8, 0.0  ;;  %v5675_v11 = vsel %vm15936_vm5, %v5655_v6, 0.0  ;;  %v5553_v18 = vpop.xlane.xlu1 %5552  ;;  %vm15950_vm5 = vmmov %vm15879_vm1 }
 0x7ee   : > { %v5599_v57 = vrot.slane %v5598_v0, 1  ;;  %v5604_v24 = vrot.slane %v5603_v13, 2  ;;  %v5609_v61 = vrot.slane %v5608_v10, 4  ;;  %v5570_v47 = vmul.f32 0.03125, %v5550_v42  ;;  %5679 = vadd.xlane.f32.xlu0 %v5678_v60  ;;  %5676 = vadd.xlane.f32.xlu1 %v5675_v11 }
 0x7ef   : > { %v5631_v38 = vmul.f32 0.0625, %v5593_v26  ;;  %v5571_v63 = vmul.f32 0.03125, %v5553_v18 }
 0x7f0   : > { %v5605_v52 = vadd.f32 %v5604_v24, %v5603_v13  ;;  %v5610_v15 = vadd.f32 %v5609_v61, %v5608_v10  ;;  %v5615_v36 = vadd.f32 %v5570_v47, %v5569_v16  ;;  %v5600_v1 = vadd.f32 %v5599_v57, %v5598_v0 }
 0x7f1   : > { %v5556_v7 = vpop.xlane.xlu0 %5555  ;;  %v12845_v19 = vsub.f32 %v12788_v2, %v5631_v38  ;;  %v12848_v12 = vsub.f32 %v12784_v35, %v5631_v38 }
 0x7f2   : > { %v5606_v9 = vrot.slane %v5605_v52, 1  ;;  %v5611_v4 = vrot.slane %v5610_v15, 2  ;;  %v5616_v55 = vrot.slane %v5615_v36, 4  ;;  %v5572_v8 = vmul.f32 0.03125, %v5556_v7 }
 0x7f3   : > { %v5658_v6 = vmul.f32 %v12845_v19, %v12845_v19  ;;  %v5657_v13 = vmul.f32 %v12848_v12, %v12848_v12  ;;  %v5632_v10 = vmul.f32 0.0625, %v5600_v1 }
 0x7f4   : > { %v5612_v0 = vadd.f32 %v5611_v4, %v5610_v15  ;;  %v5617_v26 = vadd.f32 %v5616_v55, %v5615_v36  ;;  %v5622_v16 = vadd.f32 %v5572_v8, %v5571_v63  ;;  %v5607_v42 = vadd.f32 %v5606_v9, %v5605_v52 }
 0x7f5   : > { %v5684_v2 = vsel %vm15937_vm6, %v5658_v6, 0.0  ;;  %v5681_v35 = vsel %vm15938_vm3, %v5657_v13, 0.0  ;;  %v12857_v60 = vsub.f32 %v12736_v39, %v5632_v10  ;;  %v12860_v11 = vsub.f32 %v12732_v48, %v5632_v10  ;;  %vm15951_vm6 = vmmov %vm15879_vm1 }
 0x7f6   : > { %v5613_v57 = vrot.slane %v5612_v0, 1  ;;  %v5618_v24 = vrot.slane %v5617_v26, 2  ;;  %v5623_v61 = vrot.slane %v5622_v16, 4  ;;  %5685 = vadd.xlane.f32.xlu0 %v5684_v2  ;;  %5682 = vadd.xlane.f32.xlu1 %v5681_v35  ;;  %v5633_v47 = vmul.f32 0.0625, %v5607_v42  ;;  %vm15952_vm3 = vmmov %vm15879_vm1 }
 0x7f7   : > { %v5660_v15 = vmul.f32 %v12857_v60, %v12857_v60  ;;  %v5659_v52 = vmul.f32 %v12860_v11, %v12860_v11 }
 0x7f8   : > { %v5619_v18 = vadd.f32 %v5618_v24, %v5617_v26  ;;  %v5624_v38 = vadd.f32 %v5623_v61, %v5622_v16  ;;  %v12867_v39 = vsub.f32 %v12800_v32, %v5633_v47  ;;  %v12870_v48 = vsub.f32 %v12794_v20, %v5633_v47 }
 0x7f9   : > { %v5690_v36 = vsel %vm15939_vm7, %v5660_v15, 0.0  ;;  %v5687_v1 = vsel %vm15940_vm4, %v5659_v52, 0.0  ;;  %v5614_v63 = vadd.f32 %v5613_v57, %v5612_v0  ;;  %vm15953_vm7 = vmmov %vm15879_vm1 }
 0x7fa   : > { %v5620_v7 = vrot.slane %v5619_v18, 1  ;;  %v5625_v9 = vrot.slane %v5624_v38, 2  ;;  %5691 = vadd.xlane.f32.xlu0 %v5690_v36  ;;  %5688 = vadd.xlane.f32.xlu1 %v5687_v1  ;;  %v5662_v4 = vmul.f32 %v12867_v39, %v12867_v39  ;;  %v5661_v55 = vmul.f32 %v12870_v48, %v12870_v48  ;;  %vm15954_vm4 = vmmov %vm15879_vm1 }
 0x7fb   : > { %v5634_v32 = vmul.f32 0.0625, %v5614_v63 }
 0x7fc   : > { %v5626_v8 = vadd.f32 %v5625_v9, %v5624_v38  ;;  %v5696_v20 = vsel %vm15941_vm11, %v5662_v4, 0.0  ;;  %v5693_v6 = vsel %vm15942_vm8, %v5661_v55, 0.0  ;;  %v5621_v13 = vadd.f32 %v5620_v7, %v5619_v18  ;;  %vm15955_vm11 = vmmov %vm15879_vm1 }
 0x7fd   : > { %v12881_v10 = vsub.f32 %v12744_v33, %v5634_v32  ;;  %v12884_v0 = vsub.f32 %v12740_v62, %v5634_v32  ;;  %v3816_v7 = vsel %vm15950_vm5, %v12706_v53, 0.0  ;;  %v3813_v9 = vsel %vm15951_vm6, %v12702_v49, 0.0  ;;  %vm15956_vm8 = vmmov %vm15879_vm1 }
 0x7fe   : > { %v5627_v26 = vrot.slane %v5626_v8, 1  ;;  %5697 = vadd.xlane.f32.xlu0 %v5696_v20  ;;  %5694 = vadd.xlane.f32.xlu1 %v5693_v6  ;;  %v5635_v16 = vmul.f32 0.0625, %v5621_v13  ;;  %v3828_v4 = vsel %vm15952_vm3, %v12714_v45, 0.0  ;;  %v3825_v55 = vsel %vm15953_vm7, %v12710_v21, 0.0  ;;  %v10310_v20 = vld [vmem:[%s10779_s16 + $0x80] sm:$0xff]   ;;  %vm15964_vm5 = vmmov %vm15879_vm1 }
 0x7ff   : > { %v5664_v42 = vmul.f32 %v12881_v10, %v12881_v10  ;;  %v5663_v2 = vmul.f32 %v12884_v0, %v12884_v0  ;;  %v3819_v32 = vsel %vm15954_vm4, %v12700_v51, 0.0  ;;  %v3840_v6 = vsel %vm15956_vm8, %v12722_v58, 0.0  ;;  %9954 = vmatprep.mubr.msk.bf16.mxu1 %vm3290_vm0, %v10310_v20  ;;  %vm15965_vm6 = vmmov %vm15879_vm1  ;;  %v15980_v20 = vld [vmem:[#allocation36_spill] sm:$0xff] }
 0x800   : > { %v12891_v35 = vsub.f32 %v12812_v40, %v5635_v16  ;;  %v12894_v57 = vsub.f32 %v12806_v41, %v5635_v16  ;;  %v5628_v33 = vadd.f32 %v5627_v26, %v5626_v8  ;;  %v3807_v8 = vsel %vm15955_vm11, %v12692_v54, 0.0  ;;  %vm15966_vm3 = vmmov %vm15879_vm1 }
 0x801   : > { %v5702_v62 = vsel %vm15943_vm9, %v5664_v42, 0.0  ;;  %v5699_v24 = vsel %vm15944_vm10, %v5663_v2, 0.0  ;;  %vm15957_vm9 = vmmov %vm15879_vm1  ;;  %v10312_v42 = vld [vmem:[%s10779_s16 + $0x90] sm:$0xff]  }
 0x802   : > { %5703 = vadd.xlane.f32.xlu0 %v5702_v62  ;;  %5700 = vadd.xlane.f32.xlu1 %v5699_v24  ;;  %v5666_v61 = vmul.f32 %v12891_v35, %v12891_v35  ;;  %v5665_v47 = vmul.f32 %v12894_v57, %v12894_v57  ;;  %v5636_v15 = vmul.f32 0.0625, %v5628_v33  ;;  %v3837_v13 = vsel %vm15957_vm9, %v12718_v34, 0.0  ;;  %vm15958_vm10 = vmmov %vm15879_vm1 }
 0x803   : > { %v3849_v26 = vsel %vm15958_vm10, %v12726_v23, 0.0  ;;  %9960 = vmatprep.mubr.msk.bf16.mxu0 %vm3290_vm0, %v10312_v42  ;;  %vm15967_vm7 = vmmov %vm15879_vm1 }
 0x804   : > { %v5708_v40 = vsel %vm15945_vm12, %v5666_v61, 0.0  ;;  %v5705_v52 = vsel %vm15946_vm13, %v5665_v47, 0.0  ;;  %v12905_v41 = vsub.f32 %v12752_v43, %v5636_v15  ;;  %v12908_v18 = vsub.f32 %v12748_v28, %v5636_v15  ;;  %vm15959_vm12 = vmmov %vm15879_vm1 }
 0x805   : > { %v3804_v43 = vsel %vm15949_vm15, %v12698_v5, 0.0  ;;  %v3801_v28 = vsel %vm15879_vm1, %v12694_v56, 0.0  ;;  %v3831_v16 = vsel %vm15959_vm12, %v12708_v50, 0.0  ;;  %vm15960_vm13 = vmmov %vm15879_vm1  ;;  %v3855_v61 = vsel %vm15879_vm1, %v12724_v30, 0.0 }
 0x806   : > { %5709 = vadd.xlane.f32.xlu0 %v5708_v40  ;;  %5706 = vadd.xlane.f32.xlu1 %v5705_v52  ;;  %v5668_v38 = vmul.f32 %v12905_v41, %v12905_v41  ;;  %v5667_v36 = vmul.f32 %v12908_v18, %v12908_v18  ;;  %v3810_v2 = vsel %vm15960_vm13, %v12696_v59, 0.0  ;;  %vm15963_vm15 = vmmov %vm15879_vm1  ;;  %v3834_v47 = vsel %vm15964_vm5, %v12712_v17, 0.0 }
 0x807   : > { %v3822_v24 = vsel %vm15963_vm15, %v12704_v29, 0.0  ;;  %v3864_v15 = vsel %vm15965_vm6, %v12746_v14, 0.0  ;;  %v3861_v40 = vsel %vm15966_vm3, %v12738_v25, 0.0  ;;  %v3876_v52 = vsel %vm15967_vm7, %v12758_v3, 0.0  ;;  %vm15968_vm4 = vmmov %vm15879_vm1 }
 0x808   : > { %v5714_v1 = vsel %vm15947_vm2, %v5668_v38, 0.0  ;;  %v5711_v63 = vsel %vm15948_vm14, %v5667_v36, 0.0  ;;  %vm15961_vm2 = vmmov %vm15879_vm1  ;;  %v3873_v38 = vsel %vm15968_vm4, %v12754_v37, 0.0 }
 0x809   : > { %v3852_v33 = vsel %vm15961_vm2, %v12730_v27, 0.0  ;;  %vm15962_vm14 = vmmov %vm15879_vm1 }
 0x80a   : > { %5715 = vadd.xlane.f32.xlu0 %v5714_v1  ;;  %5712 = vadd.xlane.f32.xlu1 %v5711_v63  ;;  %v3843_v62 = vsel %vm15962_vm14, %v12716_v22, 0.0  ;;  %vm15969_vm11 = vmmov %vm15879_vm1 }
 0x80b   : > { %v3885_v36 = vsel %vm15969_vm11, %v12762_v31, 0.0  ;;  %vm15970_vm8 = vmmov %vm15879_vm1  ;;  %v15985_v31 = vld [vmem:[#allocation49_spill] sm:$0xff] }
 0x80c   : > { %v3846_v1 = vsel %vm15970_vm8, %v12720_v46, 0.0  ;;  %vm15971_vm9 = vmmov %vm15879_vm1 }
 0x80d   : > { %v3858_v63 = vsel %vm15971_vm9, %v12728_v44, 0.0  ;;  %vm15973_vm10 = vmmov %vm15879_vm1 }
 0x80e   : > { %3805 = vadd.xlane.f32.xlu0 %v3804_v43  ;;  %3802 = vadd.xlane.f32.xlu1 %v3801_v28  ;;  %v15972_v43 = vld [vmem:[#allocation27_spill] sm:$0xff]  ;;  %vm15975_vm12 = vmmov %vm15879_vm1 }
 0x80f   : > { %v3888_v28 = vsel %vm15973_vm10, %v15972_v43, 0.0  ;;  %vm15977_vm13 = vmmov %vm15879_vm1 }
 0x810   : > { %vm15979_vm2 = vmmov %vm15879_vm1 }
 0x811   : > { %vm15981_vm14 = vmmov %vm15879_vm1 }
 0x812   : > { %3817 = vadd.xlane.f32.xlu0 %v3816_v7  ;;  %3814 = vadd.xlane.f32.xlu1 %v3813_v9  ;;  %v15974_v7 = vld [vmem:[#allocation45_spill] sm:$0xff]  ;;  %vm15983_vm15 = vmmov %vm15879_vm1 }
 0x813   : > { %v3879_v9 = vsel %vm15975_vm12, %v15974_v7, 0.0 }
 0x816   : > { %3829 = vadd.xlane.f32.xlu0 %v3828_v4  ;;  %3826 = vadd.xlane.f32.xlu1 %v3825_v55  ;;  %v15976_v4 = vld [vmem:[#allocation39_spill] sm:$0xff] }
 0x817   : > { %v3867_v55 = vsel %vm15977_vm13, %v15976_v4, 0.0 }
 0x81a   : > { %3820 = vadd.xlane.f32.xlu0 %v3819_v32  ;;  %3808 = vadd.xlane.f32.xlu1 %v3807_v8  ;;  %v15978_v32 = vld [vmem:[#allocation42_spill] sm:$0xff] }
 0x81b   : > { %v3870_v8 = vsel %vm15979_vm2, %v15978_v32, 0.0 }
 0x81e   : > { %3841 = vadd.xlane.f32.xlu0 %v3840_v6  ;;  %3838 = vadd.xlane.f32.xlu1 %v3837_v13  ;;  %v3891_v6 = vsel %vm15981_vm14, %v15980_v20, 0.0  ;;  %v15982_v13 = vld [vmem:[#allocation13_spill] sm:$0xff] }
 0x822   : > { %3850 = vadd.xlane.f32.xlu0 %v3849_v26  ;;  %3832 = vadd.xlane.f32.xlu1 %v3831_v16  ;;  %v3894_v26 = vsel %vm15983_vm15, %v15982_v13, 0.0  ;;  %v15984_v16 = vld [vmem:[#allocation41_spill] sm:$0xff] }
 0x823   : > { %v3882_v42 = vsel %vm15879_vm1, %v15984_v16, 0.0 }
 0x826   : > { %3811 = vadd.xlane.f32.xlu0 %v3810_v2  ;;  %3853 = vadd.xlane.f32.xlu1 %v3852_v33 }
 0x82a   : > { %3844 = vadd.xlane.f32.xlu0 %v3843_v62  ;;  %3823 = vadd.xlane.f32.xlu1 %v3822_v24 }
 0x82e   : > { %3856 = vadd.xlane.f32.xlu0 %v3855_v61  ;;  %3835 = vadd.xlane.f32.xlu1 %v3834_v47 }
 0x832   : > { %3865 = vadd.xlane.f32.xlu0 %v3864_v15  ;;  %3862 = vadd.xlane.f32.xlu1 %v3861_v40 }
 0x836   : > { %3877 = vadd.xlane.f32.xlu0 %v3876_v52  ;;  %3874 = vadd.xlane.f32.xlu1 %v3873_v38 }
 0x83a   : > { %3886 = vadd.xlane.f32.xlu0 %v3885_v36  ;;  %3847 = vadd.xlane.f32.xlu1 %v3846_v1 }
 0x83e   : > { %3859 = vadd.xlane.f32.xlu0 %v3858_v63  ;;  %3889 = vadd.xlane.f32.xlu1 %v3888_v28 }
 0x842   : > { %3880 = vadd.xlane.f32.xlu0 %v3879_v9  ;;  %3868 = vadd.xlane.f32.xlu1 %v3867_v55 }
 0x846   : > { %3871 = vadd.xlane.f32.xlu0 %v3870_v8  ;;  %3892 = vadd.xlane.f32.xlu1 %v3891_v6 }
 0x84a   : > { %3895 = vadd.xlane.f32.xlu0 %v3894_v26  ;;  %3883 = vadd.xlane.f32.xlu1 %v3882_v42 }
 0x86e   : > { %v5674_v2 = vpop.xlane.xlu0 %5673 }
 0x86f   : > { %v5671_v33 = vpop.xlane.xlu1 %5670  ;;  %v5718_v62 = vmul.f32 0.03125, %v5674_v2 }
 0x870   : > { %v5717_v24 = vmul.f32 0.03125, %v5671_v33 }
 0x872   : > { %v5733_v61 = vadd.f32 %v5718_v62, %v5717_v24 }
 0x874   : > { %v5734_v47 = vrot.slane %v5733_v61, 4 }
 0x876   : > { %v5735_v15 = vadd.f32 %v5734_v47, %v5733_v61 }
 0x877   : > { %v5680_v40 = vpop.xlane.xlu0 %5679  ;;  %v5677_v52 = vpop.xlane.xlu1 %5676 }
 0x878   : > { %v5736_v38 = vrot.slane %v5735_v15, 2  ;;  %v5720_v36 = vmul.f32 0.03125, %v5680_v40  ;;  %v5719_v1 = vmul.f32 0.03125, %v5677_v52 }
 0x87a   : > { %v5737_v63 = vadd.f32 %v5736_v38, %v5735_v15  ;;  %v5740_v28 = vadd.f32 %v5720_v36, %v5719_v1 }
 0x87c   : > { %v5738_v9 = vrot.slane %v5737_v63, 1  ;;  %v5741_v55 = vrot.slane %v5740_v28, 4 }
 0x87e   : > { %v5739_v8 = vadd.f32 %v5738_v9, %v5737_v63  ;;  %v5742_v6 = vadd.f32 %v5741_v55, %v5740_v28 }
 0x87f   : > { %v5686_v26 = vpop.xlane.xlu0 %5685  ;;  %v5683_v42 = vpop.xlane.xlu1 %5682 }
 0x880   : > { %v5789_v13 = vmul.f32 0.0625, %v5739_v8  ;;  %v5743_v32 = vrot.slane %v5742_v6, 2  ;;  %v5722_v2 = vmul.f32 0.03125, %v5686_v26  ;;  %v5721_v33 = vmul.f32 0.03125, %v5683_v42 }
 0x882   : > { %v5797_v62 = vadd.f32 1e-05, %v5789_v13  ;;  %v5744_v24 = vadd.f32 %v5743_v32, %v5742_v6  ;;  %v5747_v61 = vadd.f32 %v5722_v2, %v5721_v33 }
 0x883   : > { %v5692_v47 = vpop.xlane.xlu0 %5691  ;;  %v5689_v16 = vpop.xlane.xlu1 %5688 }
 0x884   : > { %10470 = vrsqrt.f32 %v5797_v62  ;;  %v5745_v40 = vrot.slane %v5744_v24, 1  ;;  %v5748_v52 = vrot.slane %v5747_v61, 4  ;;  %v5724_v15 = vmul.f32 0.03125, %v5692_v47 }
 0x885   : > { %v5723_v38 = vmul.f32 0.03125, %v5689_v16 }
 0x886   : > { %v5746_v36 = vadd.f32 %v5745_v40, %v5744_v24  ;;  %v5749_v1 = vadd.f32 %v5748_v52, %v5747_v61 }
 0x887   : > { %v5754_v63 = vadd.f32 %v5724_v15, %v5723_v38  ;;  %v5698_v28 = vpop.xlane.xlu0 %5697  ;;  %v5695_v9 = vpop.xlane.xlu1 %5694 }
 0x888   : > { %v5790_v55 = vmul.f32 0.0625, %v5746_v36  ;;  %v5750_v8 = vrot.slane %v5749_v1, 2  ;;  %v5726_v7 = vmul.f32 0.03125, %v5698_v28  ;;  %v5725_v26 = vmul.f32 0.03125, %v5695_v9 }
 0x889   : > { %v5755_v42 = vrot.slane %v5754_v63, 4 }
 0x88a   : > { %v5798_v13 = vadd.f32 1e-05, %v5790_v55  ;;  %v5751_v32 = vadd.f32 %v5750_v8, %v5749_v1  ;;  %v5761_v6 = vadd.f32 %v5726_v7, %v5725_v26 }
 0x88b   : > { %v5756_v2 = vadd.f32 %v5755_v42, %v5754_v63  ;;  %v5704_v33 = vpop.xlane.xlu0 %5703  ;;  %v5701_v62 = vpop.xlane.xlu1 %5700 }
 0x88c   : > { %10472 = vrsqrt.f32 %v5798_v13  ;;  %v5752_v20 = vrot.slane %v5751_v32, 1  ;;  %v5762_v47 = vrot.slane %v5761_v6, 4  ;;  %v5728_v16 = vmul.f32 0.03125, %v5704_v33 }
 0x88d   : > { %v5757_v24 = vrot.slane %v5756_v2, 2  ;;  %v5727_v61 = vmul.f32 0.03125, %v5701_v62 }
 0x88e   : > { %v5753_v40 = vadd.f32 %v5752_v20, %v5751_v32  ;;  %v5763_v52 = vadd.f32 %v5762_v47, %v5761_v6  ;;  %v15986_v6 = vld [vmem:[#allocation9_spill] sm:$0xff] }
 0x88f   : > { %v5758_v15 = vadd.f32 %v5757_v24, %v5756_v2  ;;  %v5768_v38 = vadd.f32 %v5728_v16, %v5727_v61  ;;  %v5710_v36 = vpop.xlane.xlu0 %5709  ;;  %v5707_v28 = vpop.xlane.xlu1 %5706 }
 0x890   : > { %v5791_v9 = vmul.f32 0.0625, %v5753_v40  ;;  %v5764_v44 = vrot.slane %v5763_v52, 2  ;;  %v5730_v55 = vmul.f32 0.03125, %v5710_v36  ;;  %v5729_v1 = vmul.f32 0.03125, %v5707_v28 }
 0x891   : > { %v10471_v7 = vpop.eup %10470  ;;  %v5759_v63 = vrot.slane %v5758_v15, 1  ;;  %v5769_v8 = vrot.slane %v5768_v38, 4 }
 0x892   : > { %v5799_v26 = vadd.f32 1e-05, %v5791_v9  ;;  %v5765_v42 = vadd.f32 %v5764_v44, %v5763_v52  ;;  %v5775_v13 = vadd.f32 %v5730_v55, %v5729_v1  ;;  %v5813_v33 = vmul.f32 %v10471_v7, %v15985_v31 }
 0x893   : > { %v5760_v4 = vadd.f32 %v5759_v63, %v5758_v15  ;;  %v5770_v62 = vadd.f32 %v5769_v8, %v5768_v38  ;;  %v5716_v20 = vpop.xlane.xlu0 %5715  ;;  %v5713_v32 = vpop.xlane.xlu1 %5712  ;;  %v5814_v2 = vmul.f32 %v10471_v7, %v15986_v6 }
 0x894   : > { %10474 = vrsqrt.f32 %v5799_v26  ;;  %v5766_v47 = vrot.slane %v5765_v42, 1  ;;  %v5776_v16 = vrot.slane %v5775_v13, 4  ;;  %v5732_v24 = vmul.f32 0.03125, %v5716_v20 }
 0x895   : > { %v5792_v61 = vmul.f32 0.0625, %v5760_v4  ;;  %v5771_v40 = vrot.slane %v5770_v62, 2  ;;  %v5731_v36 = vmul.f32 0.03125, %v5713_v32  ;;  %v5829_v28 = vmax.f32 %v5813_v33, 0.0 }
 0x896   : > { %v5767_v43 = vadd.f32 %v5766_v47, %v5765_v42  ;;  %v5777_v9 = vadd.f32 %v5776_v16, %v5775_v13  ;;  %v5830_v44 = vmax.f32 %v5814_v2, 0.0  ;;  %v15987_v13 = vld [vmem:[#allocation53_spill] sm:$0xff] }
 0x897   : > { %v5800_v52 = vadd.f32 1e-05, %v5792_v61  ;;  %v5772_v55 = vadd.f32 %v5771_v40, %v5770_v62  ;;  %v5782_v31 = vadd.f32 %v5732_v24, %v5731_v36  ;;  %v12986_v15 = vpop.xlane.xlu0 %3805  ;;  %v12988_v38 = vpop.xlane.xlu1 %3802  ;;  %v10311_v47 = vld [vmem:[%s10779_s16 + $0x88] sm:$0xff]   ;;  %v10314_v61 = vld [vmem:[%s10779_s16 + $0xa0] sm:$0xff]  }
 0x898   : > { %v5793_v1 = vmul.f32 0.0625, %v5767_v43  ;;  %v5778_v7 = vrot.slane %v5777_v9, 2  ;;  %v5845_v26 = vpack.c.bf16 %v5830_v44, %v5829_v28  ;;  %v15988_v43 = vld [vmem:[#allocation38_spill] sm:$0xff] }
 0x899   : > { %v10473_v63 = vpop.eup %10472  ;;  %10476 = vrsqrt.f32 %v5800_v52  ;;  %v5773_v8 = vrot.slane %v5772_v55, 1  ;;  %v5783_v4 = vrot.slane %v5782_v31, 4 }
 0x89a   : > { %v5801_v33 = vadd.f32 1e-05, %v5793_v1  ;;  %v5779_v42 = vadd.f32 %v5778_v7, %v5777_v9  ;;  %v5815_v20 = vmul.f32 %v10473_v63, %v15987_v13  ;;  %9952 = vmatprep.subr.bf16.mxu1 %v5845_v26  ;;  %v5816_v16 = vmul.f32 %v10473_v63, %v15988_v43 }
 0x89b   : > { %v5774_v32 = vadd.f32 %v5773_v8, %v5772_v55  ;;  %v5784_v62 = vadd.f32 %v5783_v4, %v5782_v31  ;;  %v12991_v6 = vpop.xlane.xlu0 %3817  ;;  %v12993_v2 = vpop.xlane.xlu1 %3814  ;;  %9953 = vmatpush3.bf16.msra.mxu1 %v5845_v26  ;;  %v10313_v26 = vld [vmem:[%s10779_s16 + $0x98] sm:$0xff]  }
 0x89c   : > { %10478 = vrsqrt.f32 %v5801_v33  ;;  %v5780_v24 = vrot.slane %v5779_v42, 1  ;;  %v5831_v28 = vmax.f32 %v5815_v20, 0.0  ;;  %v5832_v9 = vmax.f32 %v5816_v16, 0.0  ;;  %v10316_v20 = vld [vmem:[%s10779_s16 + $0xb0] sm:$0xff]  }
 0x89d   : > { %v5794_v40 = vmul.f32 0.0625, %v5774_v32  ;;  %v5785_v36 = vrot.slane %v5784_v62, 2 }
 0x89e   : > { %v5781_v44 = vadd.f32 %v5780_v24, %v5779_v42  ;;  %9955 = vmatmul.mubr.msk.bf16.vlgmr.msra.gmra.mxu1 %vm3290_vm0, %v10311_v47  ;;  %v5846_v7 = vpack.c.bf16 %v5832_v9, %v5831_v28 }
 0x89f   : > { %v5802_v52 = vadd.f32 1e-05, %v5794_v40  ;;  %v5786_v55 = vadd.f32 %v5785_v36, %v5784_v62  ;;  %v12999_v31 = vpop.xlane.xlu0 %3829  ;;  %v13001_v1 = vpop.xlane.xlu1 %3826  ;;  %9966 = vmatprep.mubr.msk.bf16.mxu1 %vm3290_vm0, %v10314_v61 }
 0x8a0   : > { %v5795_v63 = vmul.f32 0.0625, %v5781_v44  ;;  %9958 = vmatprep.subr.bf16.mxu0 %v5846_v7 }
 0x8a1   : > { %v10475_v8 = vpop.eup %10474  ;;  %10480 = vrsqrt.f32 %v5802_v52  ;;  %v5787_v4 = vrot.slane %v5786_v55, 1  ;;  %9959 = vmatpush3.bf16.msra.mxu0 %v5846_v7  ;;  %v10315_v7 = vld [vmem:[%s10779_s16 + $0xa8] sm:$0xff]  }
 0x8a2   : > { %v5803_v33 = vadd.f32 1e-05, %v5795_v63  ;;  %v5817_v42 = vmul.f32 %v10475_v8, %v12848_v12  ;;  %v5818_v13 = vmul.f32 %v10475_v8, %v12845_v19  ;;  %v3898_v63 = vmul.f32 0.03125, %v12986_v15 }
 0x8a3   : > { %v5788_v32 = vadd.f32 %v5787_v4, %v5786_v55  ;;  %v3821_v62 = vpop.xlane.xlu0 %3820  ;;  %v3809_v47 = vpop.xlane.xlu1 %3808  ;;  %v3897_v8 = vmul.f32 0.03125, %v12988_v38  ;;  %v3901_v15 = vmul.f32 0.03125, %v12993_v2  ;;  %v10317_v38 = vld [vmem:[%s10779_s16 + $0xb8] sm:$0xff]  }
 0x8a4   : > { %10482 = vrsqrt.f32 %v5803_v33  ;;  %v5833_v43 = vmax.f32 %v5817_v42, 0.0  ;;  %9961 = vmatmul.mubr.msk.bf16.vlgmr.msra.gmra.mxu0 %vm3290_vm0, %v10313_v26  ;;  %v5834_v24 = vmax.f32 %v5818_v13, 0.0  ;;  %v10318_v33 = vld [vmem:[%s10779_s16 + $0xc0] sm:$0xff]   ;;  %v3899_v13 = vmul.f32 0.03125, %v3809_v47 }
 0x8a5   : > { %v5796_v16 = vmul.f32 0.0625, %v5788_v32  ;;  %9972 = vmatprep.mubr.msk.bf16.mxu0 %vm3290_vm0, %v10316_v20 }
 0x8a6   : > { %v10477_v61 = vpop.eup %10476  ;;  %v5847_v19 = vpack.c.bf16 %v5834_v24, %v5833_v43  ;;  %v3902_v43 = vmul.f32 0.03125, %v12991_v6  ;;  %v10320_v24 = vld [vmem:[%s10779_s16 + $0xd0] sm:$0xff]  }
 0x8a7   : > { %v5804_v40 = vadd.f32 1e-05, %v5796_v16  ;;  %v13010_v36 = vpop.xlane.xlu0 %3841  ;;  %v13012_v12 = vpop.xlane.xlu1 %3838  ;;  %v5819_v28 = vmul.f32 %v10477_v61, %v12860_v11  ;;  %v5820_v9 = vmul.f32 %v10477_v61, %v12857_v60  ;;  %v3929_v16 = vadd.f32 %v3898_v63, %v3897_v8 }
 0x8a8   : > { %9964 = vmatprep.subr.bf16.mxu1 %v5847_v19  ;;  %v3903_v61 = vmul.f32 0.03125, %v3821_v62  ;;  %v3905_v63 = vmul.f32 0.03125, %v13001_v1 }
 0x8a9   : > { %v10479_v44 = vpop.eup %10478  ;;  %10484 = vrsqrt.f32 %v5804_v40  ;;  %v5835_v52 = vmax.f32 %v5819_v28, 0.0  ;;  %v5836_v55 = vmax.f32 %v5820_v9, 0.0  ;;  %9965 = vmatpush3.bf16.msra.mxu1 %v5847_v19  ;;  %v3930_v19 = vadd.f32 %v3929_v16, %v3899_v13 }
 0x8aa   : > { %v5821_v4 = vmul.f32 %v10479_v44, %v12870_v48  ;;  %v5822_v26 = vmul.f32 %v10479_v44, %v12867_v39  ;;  %v3938_v44 = vadd.f32 %v3902_v43, %v3901_v15  ;;  %v10321_v15 = vld [vmem:[%s10779_s16 + $0xd8] sm:$0xff]  }
 0x8ab   : > { %v13022_v11 = vpop.xlane.xlu0 %3850  ;;  %v3833_v60 = vpop.xlane.xlu1 %3832  ;;  %v5848_v42 = vpack.c.bf16 %v5836_v55, %v5835_v52  ;;  %v3906_v52 = vmul.f32 0.03125, %v12999_v31 }
 0x8ac   : > { %v5837_v20 = vmax.f32 %v5821_v4, 0.0  ;;  %v5838_v32 = vmax.f32 %v5822_v26, 0.0  ;;  %9967 = vmatmul.mubr.msk.bf16.vlgmr.msra.gmra.mxu1 %vm3290_vm0, %v10315_v7  ;;  %v10319_v7 = vld [vmem:[%s10779_s16 + $0xc8] sm:$0xff]   ;;  %v10324_v4 = vld [vmem:[%s10779_s16 + $0xe0] sm:$0xff]   ;;  %v3939_v26 = vadd.f32 %v3938_v44, %v3903_v61  ;;  %v3907_v13 = vmul.f32 0.03125, %v3833_v60 }
 0x8ad   : > { %9970 = vmatprep.subr.bf16.mxu0 %v5848_v42  ;;  %9978 = vmatprep.mubr.msk.bf16.mxu1 %vm3290_vm0, %v10318_v33 }
 0x8ae   : > { %v10481_v48 = vpop.eup %10480  ;;  %9971 = vmatpush3.bf16.msra.mxu0 %v5848_v42  ;;  %v5849_v39 = vpack.c.bf16 %v5838_v32, %v5837_v20 }
 0x8af   : > { %v3812_v47 = vpop.xlane.xlu0 %3811  ;;  %v13030_v40 = vpop.xlane.xlu1 %3853  ;;  %v5823_v6 = vmul.f32 %v10481_v48, %v12884_v0  ;;  %v5824_v2 = vmul.f32 %v10481_v48, %v12881_v10 }
 0x8b0   : > { %v3900_v28 = vmul.f32 0.03125, %v3812_v47  ;;  %9976 = vmatprep.subr.bf16.mxu1 %v5849_v39  ;;  %v10322_v47 = vld [vmem:[%s10779_s16 + $0xf0] sm:$0xff]  }
 0x8b1   : > { %v10483_v9 = vpop.eup %10482  ;;  %9973 = vmatmul.mubr.msk.bf16.vlgmr.msra.gmra.mxu0 %vm3290_vm0, %v10317_v38  ;;  %9977 = vmatpush3.bf16.msra.mxu1 %v5849_v39  ;;  %v5839_v55 = vmax.f32 %v5823_v6, 0.0  ;;  %v5840_v62 = vmax.f32 %v5824_v2, 0.0  ;;  %v3947_v38 = vadd.f32 %v3906_v52, %v3905_v63  ;;  %v10325_v52 = vld [vmem:[%s10779_s16 + $0xe8] sm:$0xff]  }
 0x8b2   : > { %v3931_v8 = vadd.f32 %v3930_v19, %v3900_v28  ;;  %v5825_v10 = vmul.f32 %v10483_v9, %v12894_v57  ;;  %v5826_v0 = vmul.f32 %v10483_v9, %v12891_v35  ;;  %9984 = vmatprep.mubr.msk.bf16.mxu0 %vm3290_vm0, %v10320_v24 }
 0x8b3   : > { %v3845_v33 = vpop.xlane.xlu0 %3844  ;;  %v3824_v31 = vpop.xlane.xlu1 %3823  ;;  %v5850_v42 = vpack.c.bf16 %v5840_v62, %v5839_v55  ;;  %v3948_v6 = vadd.f32 %v3947_v38, %v3907_v13 }
 0x8b4   : > { %v3932_v20 = vrot.slane %v3931_v8, 4  ;;  %v3904_v32 = vmul.f32 0.03125, %v3824_v31  ;;  %v5841_v43 = vmax.f32 %v5825_v10, 0.0  ;;  %v5842_v1 = vmax.f32 %v5826_v0, 0.0  ;;  %9979 = vmatmul.mubr.msk.bf16.vlgmr.msra.gmra.mxu1 %vm3290_vm0, %v10319_v7  ;;  %v10323_v31 = vld [vmem:[%s10779_s16 + $0xf8] sm:$0xff]   ;;  %s9076_s16 = sshll.u32 %s10723_s21, 3 }
 0x8b5   : > { %9982 = vmatprep.subr.bf16.mxu0 %v5850_v42  ;;  %9990 = vmatprep.mubr.msk.bf16.mxu1 %vm3290_vm0, %v10324_v4  ;;  %v3910_v4 = vmul.f32 0.03125, %v13010_v36  ;;  %s407_s26 = scalar_lea.vmem %s15532_s4, %s9076_s16  ;;  %s381_s21 = sand.u32 1, %s10597_s10  }
 0x8b6   : > { %v10485_v57 = vpop.eup %10484  ;;  %v3933_v35 = vadd.f32 %v3932_v20, %v3931_v8  ;;  %v3940_v48 = vadd.f32 %v3939_v26, %v3904_v32  ;;  %9983 = vmatpush3.bf16.msra.mxu0 %v5850_v42  ;;  %v5851_v60 = vpack.c.bf16 %v5842_v1, %v5841_v43  ;;  %v3909_v26 = vmul.f32 0.03125, %v13012_v12  ;;  %s8943_s0 = scalar_lea.sflag [#allocation4], %s381_s21 }
 0x8b7   : > { %v3857_v16 = vpop.xlane.xlu0 %3856  ;;  %v3836_v39 = vpop.xlane.xlu1 %3835  ;;  %v5827_v24 = vmul.f32 %v10485_v57, %v12908_v18  ;;  %v5828_v61 = vmul.f32 %v10485_v57, %v12905_v41  ;;  %v3911_v32 = vmul.f32 0.03125, %v3845_v33  ;;  %v3914_v12 = vmul.f32 0.03125, %v13030_v40 }
 0x8b8   : > { %v3934_v2 = vrot.slane %v3933_v35, 2  ;;  %v3941_v19 = vrot.slane %v3940_v48, 4  ;;  %v3908_v28 = vmul.f32 0.03125, %v3836_v39  ;;  %9988 = vmatprep.subr.bf16.mxu1 %v5851_v60  ;;  %v3956_v36 = vadd.f32 %v3910_v4, %v3909_v26 }
 0x8b9   : > { %v5843_v9 = vmax.f32 %v5827_v24, 0.0  ;;  %v5844_v44 = vmax.f32 %v5828_v61, 0.0  ;;  %9985 = vmatmul.mubr.msk.bf16.vlgmr.msra.gmra.mxu0 %vm3290_vm0, %v10321_v15  ;;  %9989 = vmatpush3.bf16.msra.mxu1 %v5851_v60  ;;  %v3913_v60 = vmul.f32 0.03125, %v13022_v11  ;;  %v3915_v40 = vmul.f32 0.03125, %v3857_v16 }
 0x8ba   : > { %v3935_v55 = vadd.f32 %v3934_v2, %v3933_v35  ;;  %v3942_v62 = vadd.f32 %v3941_v19, %v3940_v48  ;;  %v3949_v7 = vadd.f32 %v3948_v6, %v3908_v28  ;;  %9996 = vmatprep.mubr.msk.bf16.mxu0 %vm3290_vm0, %v10322_v47  ;;  %v3957_v24 = vadd.f32 %v3956_v36, %v3911_v32 }
 0x8bb   : > { %v13050_v63 = vpop.xlane.xlu0 %3865  ;;  %v13052_v18 = vpop.xlane.xlu1 %3862  ;;  %v5852_v41 = vpack.c.bf16 %v5844_v44, %v5843_v9  ;;  %v3965_v28 = vadd.f32 %v3914_v12, %v3913_v60 }
 0x8bc   : > { %v3936_v8 = vrot.slane %v3935_v55, 1  ;;  %v3943_v10 = vrot.slane %v3942_v62, 2  ;;  %v3950_v0 = vrot.slane %v3949_v7, 4  ;;  %9991 = vmatmul.mubr.msk.bf16.vlgmr.msra.gmra.mxu1 %vm3290_vm0, %v10325_v52 }
 0x8bd   : > { %9994 = vmatprep.subr.bf16.mxu0 %v5852_v41 }
 0x8be   : > { %v3937_v42 = vadd.f32 %v3936_v8, %v3935_v55  ;;  %v3944_v13 = vadd.f32 %v3943_v10, %v3942_v62  ;;  %v3951_v20 = vadd.f32 %v3950_v0, %v3949_v7  ;;  %9995 = vmatpush3.bf16.msra.mxu0 %v5852_v41  ;;  %v3966_v7 = vadd.f32 %v3965_v28, %v3915_v40 }
 0x8bf   : > { %v13059_v43 = vpop.xlane.xlu0 %3877  ;;  %v13061_v1 = vpop.xlane.xlu1 %3874 }
 0x8c0   : > { %v13063_v15 = vmul.f32 0.03125, %v3937_v42  ;;  %v3945_v57 = vrot.slane %v3944_v13, 1  ;;  %v3952_v38 = vrot.slane %v3951_v20, 2 }
 0x8c1   : > { %9997 = vmatmul.mubr.msk.bf16.vlgmr.msra.gmra.mxu0 %vm3290_vm0, %v10323_v31  ;;  %vm15993_vm0 = vmmov %vm15879_vm1 }
 0x8c2   : > { %v3946_v35 = vadd.f32 %v3945_v57, %v3944_v13  ;;  %v3953_v48 = vadd.f32 %v3952_v38, %v3951_v20  ;;  %v13069_v39 = vsub.f32 %v12698_v5, %v13063_v15  ;;  %v13073_v33 = vsub.f32 %v12694_v56, %v13063_v15  ;;  %vm15994_vm5 = vmmov %vm15993_vm0 }
 0x8c3   : > { %v13076_v61 = vpop.xlane.xlu0 %3886  ;;  %v3848_v47 = vpop.xlane.xlu1 %3847  ;;  %v13106_v31 = vsub.f32 %v12692_v54, %v13063_v15  ;;  %vm15997_vm6 = vmmov %vm15993_vm0 }
 0x8c4   : > { %15989 = vst [vmem:[#allocation21_spill] sm:$0xff] %v13069_v39  ;;  %15990 = vst [vmem:[#allocation52_spill] sm:$0xff] %v13073_v33  ;;  %v13078_v6 = vmul.f32 0.03125, %v3946_v35  ;;  %v3954_v2 = vrot.slane %v3953_v48, 1  ;;  %v3912_v19 = vmul.f32 0.03125, %v3848_v47  ;;  %v4042_v5 = vmul.f32 %v13069_v39, %v13069_v39 }
 0x8c5   : > { %v4041_v9 = vmul.f32 %v13073_v33, %v13073_v33  ;;  %15996 = vst [vmem:[#allocation58_spill] sm:$0xff] %v13106_v31  ;;  %vm15998_vm3 = vmmov %vm15993_vm0 }
 0x8c6   : > { %v3955_v56 = vadd.f32 %v3954_v2, %v3953_v48  ;;  %v3958_v44 = vadd.f32 %v3957_v24, %v3912_v19  ;;  %v13086_v11 = vsub.f32 %v12706_v53, %v13078_v6  ;;  %v13090_v52 = vsub.f32 %v12702_v49, %v13078_v6  ;;  %vm16001_vm7 = vmmov %vm15993_vm0 }
 0x8c7   : > { %v3860_v16 = vpop.xlane.xlu0 %3859  ;;  %v4076_v55 = vsel %vm15993_vm0, %v4042_v5, 0.0  ;;  %v4073_v62 = vsel %vm15994_vm5, %v4041_v9, 0.0  ;;  %v13116_v32 = vsub.f32 %v12700_v51, %v13078_v6  ;;  %vm16002_vm4 = vmmov %vm15993_vm0  ;;  %v4043_v48 = vmul.f32 %v13106_v31, %v13106_v31 }
 0x8c8   : > { %15991 = vst [vmem:[#allocation54_spill] sm:$0xff] %v13086_v11  ;;  %15992 = vst [vmem:[#allocation55_spill] sm:$0xff] %v13090_v52  ;;  %v13094_v41 = vmul.f32 0.03125, %v3955_v56  ;;  %v3959_v8 = vrot.slane %v3958_v44, 4  ;;  %v3916_v10 = vmul.f32 0.03125, %v3860_v16  ;;  %4077 = vadd.xlane.f32.xlu0 %v4076_v55  ;;  %4074 = vadd.xlane.f32.xlu1 %v4073_v62  ;;  %v4046_v53 = vmul.f32 %v13086_v11, %v13086_v11 }
 0x8c9   : > { %v4045_v0 = vmul.f32 %v13090_v52, %v13090_v52  ;;  %16000 = vst [vmem:[#allocation65_spill] sm:$0xff] %v13116_v32  ;;  %v4047_v51 = vmul.f32 %v13116_v32, %v13116_v32  ;;  %vm16003_vm11 = vmmov %vm15993_vm0 }
 0x8ca   : > { %v3960_v49 = vadd.f32 %v3959_v8, %v3958_v44  ;;  %v3967_v4 = vadd.f32 %v3966_v7, %v3916_v10  ;;  %v13102_v26 = vsub.f32 %v12714_v45, %v13094_v41  ;;  %v4088_v42 = vsel %vm15997_vm6, %v4046_v53, 0.0  ;;  %vm16004_vm8 = vmmov %vm15993_vm0 }
 0x8cb   : > { %v4085_v13 = vsel %vm15998_vm3, %v4045_v0, 0.0  ;;  %v13112_v20 = vsub.f32 %v12710_v21, %v13094_v41  ;;  %v4091_v2 = vsel %vm16003_vm11, %v4047_v51, 0.0  ;;  %v4079_v19 = vsel %vm16004_vm8, %v4043_v48, 0.0  ;;  %vm16008_vm9 = vmmov %vm15993_vm0  ;;  %v3890_v48 = vpop.xlane.xlu1 %3889 }
 0x8cc   : > { %15995 = vst [vmem:[#allocation56_spill] sm:$0xff] %v13102_v26  ;;  %v3961_v57 = vrot.slane %v3960_v49, 2  ;;  %v3968_v38 = vrot.slane %v3967_v4, 4  ;;  %4089 = vadd.xlane.f32.xlu0 %v4088_v42  ;;  %4086 = vadd.xlane.f32.xlu1 %v4085_v13  ;;  %v4050_v54 = vmul.f32 %v13102_v26, %v13102_v26  ;;  %v13142_v16 = vsub.f32 %v12708_v50, %v13094_v41  ;;  %vm16010_vm10 = vmmov %vm15993_vm0 }
 0x8cd   : > { %15999 = vst [vmem:[#allocation28_spill] sm:$0xff] %v13112_v20  ;;  %v4049_v45 = vmul.f32 %v13112_v20, %v13112_v20  ;;  %vm16012_vm12 = vmmov %vm15993_vm0 }
 0x8ce   : > { %v3962_v36 = vadd.f32 %v3961_v57, %v3960_v49  ;;  %v3969_v12 = vadd.f32 %v3968_v38, %v3967_v4  ;;  %v4100_v35 = vsel %vm16001_vm7, %v4050_v54, 0.0  ;;  %16007 = vst [vmem:[#allocation67_spill] sm:$0xff] %v13142_v16  ;;  %v4051_v50 = vmul.f32 %v13142_v16, %v13142_v16  ;;  %vm16013_vm13 = vmmov %vm15993_vm0 }
 0x8cf   : > { %v4097_v21 = vsel %vm16002_vm4, %v4049_v45, 0.0  ;;  %vm16014_vm2 = vmmov %vm15993_vm0 }
 0x8d0   : > { %v3963_v60 = vrot.slane %v3962_v36, 1  ;;  %v3970_v24 = vrot.slane %v3969_v12, 2  ;;  %4101 = vadd.xlane.f32.xlu0 %v4100_v35  ;;  %4098 = vadd.xlane.f32.xlu1 %v4097_v21  ;;  %vm16015_vm14 = vmmov %vm15993_vm0 }
 0x8d1   : > { %vm16016_vm15 = vmmov %vm15993_vm0 }
 0x8d2   : > { %v3964_v47 = vadd.f32 %v3963_v60, %v3962_v36  ;;  %v3971_v40 = vadd.f32 %v3970_v24, %v3969_v12  ;;  %vm16017_vm1 = vmmov %vm15993_vm0 }
 0x8d3   : > { %vm16018_vm5 = vmmov %vm15993_vm0 }
 0x8d4   : > { %v13130_v28 = vmul.f32 0.03125, %v3964_v47  ;;  %v3972_v5 = vrot.slane %v3971_v40, 1  ;;  %4092 = vadd.xlane.f32.xlu0 %v4091_v2  ;;  %4080 = vadd.xlane.f32.xlu1 %v4079_v19  ;;  %vm16019_vm6 = vmmov %vm15993_vm0 }
 0x8d5   : > { %vm16020_vm3 = vmmov %vm15993_vm0 }
 0x8d6   : > { %v3973_v9 = vadd.f32 %v3972_v5, %v3971_v40  ;;  %v13134_v56 = vsub.f32 %v12722_v58, %v13130_v28  ;;  %v13138_v44 = vsub.f32 %v12718_v34, %v13130_v28  ;;  %vm16021_vm7 = vmmov %vm15993_vm0  ;;  %v3869_v5 = vpop.xlane.xlu1 %3868 }
 0x8d7   : > { %vm16022_vm4 = vmmov %vm15993_vm0 }
 0x8d8   : > { %16005 = vst [vmem:[#allocation60_spill] sm:$0xff] %v13134_v56  ;;  %16006 = vst [vmem:[#allocation63_spill] sm:$0xff] %v13138_v44  ;;  %v13144_v55 = vmul.f32 0.03125, %v3973_v9  ;;  %v4054_v62 = vmul.f32 %v13134_v56, %v13134_v56  ;;  %v4053_v7 = vmul.f32 %v13138_v44, %v13138_v44 }
 0x8d9   : > { %vm16023_vm11 = vmmov %vm15993_vm0 }
 0x8da   : > { %v4112_v8 = vsel %vm16008_vm9, %v4054_v62, 0.0  ;;  %v13153_v58 = vsub.f32 %v12726_v23, %v13144_v55  ;;  %v4109_v34 = vsel %vm16010_vm10, %v4053_v7, 0.0  ;;  %v13160_v10 = vsub.f32 %v12730_v27, %v13144_v55  ;;  %vm16024_vm8 = vmmov %vm15993_vm0 }
 0x8db   : > { %4113 = vadd.xlane.f32.xlu0 %v4112_v8  ;;  %4110 = vadd.xlane.f32.xlu1 %v4109_v34  ;;  %v4103_v23 = vsel %vm16013_vm13, %v4051_v50, 0.0  ;;  %v3881_v34 = vpop.xlane.xlu0 %3880  ;;  %vm16025_vm9 = vmmov %vm15993_vm0 }
 0x8dc   : > { %16009 = vst [vmem:[#allocation57_spill] sm:$0xff] %v13153_v58  ;;  %16011 = vst [vmem:[#allocation6_spill] sm:$0xff] %v13160_v10  ;;  %v4057_v53 = vmul.f32 %v13153_v58, %v13153_v58  ;;  %v4058_v49 = vmul.f32 %v13160_v10, %v13160_v10 }
 0x8dd   : > { %vm16026_vm10 = vmmov %vm15993_vm0 }
 0x8de   : > { %v4121_v0 = vsel %vm16012_vm12, %v4057_v53, 0.0  ;;  %v4124_v4 = vsel %vm16014_vm2, %v4058_v49, 0.0  ;;  %v3918_v49 = vmul.f32 0.03125, %v13050_v63  ;;  %v3921_v63 = vmul.f32 0.03125, %v13061_v1  ;;  %vm16027_vm12 = vmmov %vm15993_vm0 }
 0x8df   : > { %4122 = vadd.xlane.f32.xlu0 %v4121_v0  ;;  %4104 = vadd.xlane.f32.xlu1 %v4103_v23  ;;  %vm16028_vm13 = vmmov %vm15993_vm0 }
 0x8e0   : > { %vm16029_vm2 = vmmov %vm15993_vm0 }
 0x8e3   : > { %4125 = vadd.xlane.f32.xlu1 %v4124_v4  ;;  %v3917_v4 = vmul.f32 0.03125, %v13052_v18 }
 0x95e   : > { %v13169_v42 = vpop.f32.mrf.mxu1 }
 0x95f   : > { %v6379_v27 = vsel %vm16015_vm14, %v13169_v42, 0.0  ;;  %vm16030_vm14 = vmmov %vm15993_vm0 }
 0x960   : > { %v13173_v13 = vpop.f32.mrf.mxu1  ;;  %6380 = vadd.xlane.f32.xlu1 %v6379_v27  ;;  %v3893_v27 = vpop.xlane.xlu1 %3892 }
 0x961   : > { %v6373_v54 = vsel %vm16017_vm1, %v13173_v13, 0.0  ;;  %vm16032_vm1 = vmmov %vm15993_vm0 }
 0x962   : > { %v13175_v57 = vpop.f32.mrf.mxu1 }
 0x963   : > { %v6382_v38 = vsel %vm16016_vm15, %v13175_v57, 0.0  ;;  %vm16031_vm15 = vmmov %vm15993_vm0 }
 0x964   : > { %6383 = vadd.xlane.f32.xlu0 %v6382_v38  ;;  %v13181_v45 = vpop.f32.mrf.mxu1  ;;  %v13183_v36 = vpop.f32.mrf.mxu0  ;;  %6374 = vadd.xlane.f32.xlu1 %v6373_v54 }
 0x965   : > { %v6376_v35 = vsel %vm15993_vm0, %v13181_v45, 0.0  ;;  %v6391_v60 = vsel %vm16019_vm6, %v13183_v36, 0.0  ;;  %vm16036_vm6 = vmmov %vm15993_vm0 }
 0x966   : > { %v13185_v12 = vpop.f32.mrf.mxu0 }
 0x967   : > { %v6385_v21 = vsel %vm16018_vm5, %v13185_v12, 0.0  ;;  %vm16034_vm5 = vmmov %vm15993_vm0 }
 0x968   : > { %6377 = vadd.xlane.f32.xlu0 %v6376_v35  ;;  %v13191_v51 = vpop.f32.mrf.mxu0  ;;  %6386 = vadd.xlane.f32.xlu1 %v6385_v21  ;;  %v3872_v35 = vpop.xlane.xlu0 %3871 }
 0x969   : > { %v6394_v24 = vsel %vm16020_vm3, %v13191_v51, 0.0  ;;  %vm16037_vm3 = vmmov %vm15993_vm0 }
 0x96a   : > { %v13197_v47 = vpop.f32.mrf.mxu0 }
 0x96b   : > { %v6388_v9 = vsel %vm16022_vm4, %v13197_v47, 0.0  ;;  %vm16041_vm4 = vmmov %vm15993_vm0 }
 0x96c   : > { %6392 = vadd.xlane.f32.xlu0 %v6391_v60  ;;  %6395 = vadd.xlane.f32.xlu1 %v6394_v24  ;;  %v13199_v40 = vpop.f32.mrf.mxu1  ;;  %v3919_v60 = vmul.f32 0.03125, %v3869_v5  ;;  %v3974_v24 = vadd.f32 %v3918_v49, %v3917_v4  ;;  %v3896_v10 = vpop.xlane.xlu0 %3895 }
 0x96d   : > { %v6403_v2 = vsel %vm16021_vm7, %v13199_v40, 0.0  ;;  %vm16040_vm7 = vmmov %vm15993_vm0 }
 0x96e   : > { %v13203_v19 = vpop.f32.mrf.mxu1 }
 0x96f   : > { %v6397_v53 = vsel %vm16024_vm8, %v13203_v19, 0.0  ;;  %vm16044_vm8 = vmmov %vm15993_vm0 }
 0x970   : > { %6389 = vadd.xlane.f32.xlu0 %v6388_v9  ;;  %6404 = vadd.xlane.f32.xlu1 %v6403_v2  ;;  %v13209_v7 = vpop.f32.mrf.mxu1  ;;  %v3922_v2 = vmul.f32 0.03125, %v13059_v43  ;;  %v3920_v9 = vmul.f32 0.03125, %v3872_v35 }
 0x971   : > { %v13207_v62 = vpop.f32.mrf.mxu0 }
 0x972   : > { %v6415_v8 = vsel %vm16023_vm11, %v13207_v62, 0.0  ;;  %v13217_v0 = vpop.f32.mrf.mxu1  ;;  %v3983_v1 = vadd.f32 %v3922_v2, %v3921_v63  ;;  %v3925_v63 = vmul.f32 0.03125, %v13076_v61  ;;  %vm16043_vm11 = vmmov %vm15993_vm0 }
 0x973   : > { %v13213_v50 = vpop.f32.mrf.mxu0  ;;  %v6400_v38 = vsel %vm16025_vm9, %v13217_v0, 0.0  ;;  %vm16048_vm9 = vmmov %vm15993_vm0 }
 0x974   : > { %6416 = vadd.xlane.f32.xlu0 %v6415_v8  ;;  %6398 = vadd.xlane.f32.xlu1 %v6397_v53  ;;  %v6409_v54 = vsel %vm16026_vm10, %v13213_v50, 0.0  ;;  %v6406_v8 = vsel %vm16028_vm13, %v13209_v7, 0.0  ;;  %v3884_v53 = vpop.xlane.xlu1 %3883  ;;  %v13235_v16 = vpop.f32.mrf.mxu1  ;;  %vm16049_vm10 = vmmov %vm15993_vm0 }
 0x975   : > { %v13219_v23 = vpop.f32.mrf.mxu0  ;;  %v6427_v5 = vsel %vm16029_vm2, %v13235_v16, 0.0  ;;  %v3924_v4 = vmul.f32 0.03125, %v3884_v53  ;;  %vm16054_vm13 = vmmov %vm15993_vm0 }
 0x976   : > { %v6418_v35 = vsel %vm16030_vm14, %v13219_v23, 0.0  ;;  %v13243_v31 = vpop.f32.mrf.mxu1  ;;  %vm16058_vm2 = vmmov %vm15993_vm0 }
 0x977   : > { %v13227_v21 = vpop.f32.mrf.mxu0  ;;  %v6421_v2 = vsel %vm16032_vm1, %v13243_v31, 0.0  ;;  %vm16059_vm14 = vmmov %vm15993_vm0 }
 0x978   : > { %6401 = vadd.xlane.f32.xlu0 %v6400_v38  ;;  %6410 = vadd.xlane.f32.xlu1 %v6409_v54  ;;  %v6412_v18 = vsel %vm16027_vm12, %v13227_v21, 0.0  ;;  %v3923_v38 = vmul.f32 0.03125, %v3881_v34  ;;  %v3975_v54 = vadd.f32 %v3974_v24, %v3919_v60  ;;  %v3926_v60 = vmul.f32 0.03125, %v3890_v48  ;;  %v13252_v53 = vpop.f32.mrf.mxu1  ;;  %vm16053_vm12 = vmmov %vm15993_vm0 }
 0x979   : > { %v13239_v43 = vpop.f32.mrf.mxu0  ;;  %vm16063_vm1 = vmmov %vm15993_vm0 }
 0x97a   : > { %v3976_v49 = vadd.f32 %v3975_v54, %v3920_v9  ;;  %v6439_v34 = vsel %vm16031_vm15, %v13239_v43, 0.0  ;;  %v3927_v9 = vmul.f32 0.03125, %v3893_v27  ;;  %v3928_v54 = vmul.f32 0.03125, %v3896_v10  ;;  %v13260_v56 = vpop.f32.mrf.mxu1  ;;  %vm16061_vm15 = vmmov %vm15993_vm0 }
 0x97b   : > { %v13247_v24 = vpop.f32.mrf.mxu0 }
 0x97c   : > { %6413 = vadd.xlane.f32.xlu0 %v6412_v18  ;;  %6407 = vadd.xlane.f32.xlu1 %v6406_v8  ;;  %v3984_v18 = vadd.f32 %v3983_v1, %v3923_v38  ;;  %v3977_v8 = vrot.slane %v3976_v49, 4  ;;  %v3992_v38 = vadd.f32 %v3926_v60, %v3925_v63  ;;  %v6424_v60 = vsel %vm16037_vm3, %v13260_v56, 0.0  ;;  %vm16069_vm3 = vmmov %vm15993_vm0 }
 0x97e   : > { %v3985_v58 = vadd.f32 %v3984_v18, %v3924_v4  ;;  %v3978_v48 = vadd.f32 %v3977_v8, %v3976_v49  ;;  %v6433_v4 = vsel %vm16034_vm5, %v13247_v24, 0.0  ;;  %v3993_v18 = vadd.f32 %v3992_v38, %v3927_v9  ;;  %vm16066_vm5 = vmmov %vm15993_vm0 }
 0x980   : > { %6428 = vadd.xlane.f32.xlu0 %v6427_v5  ;;  %6419 = vadd.xlane.f32.xlu1 %v6418_v35  ;;  %v13254_v5 = vpop.f32.mrf.mxu0  ;;  %v3986_v1 = vrot.slane %v3985_v58, 4  ;;  %v6430_v35 = vsel %vm15993_vm0, %v13252_v53, 0.0  ;;  %v3994_v61 = vadd.f32 %v3993_v18, %v3928_v54 }
 0x981   : > { %16033 = vst [vmem:[#allocation10_spill] sm:$0xff] %v13254_v5  ;;  %v6442_v49 = vsel %vm16036_vm6, %v13254_v5, 0.0  ;;  %vm16068_vm6 = vmmov %vm15993_vm0 }
 0x982   : > { %v13262_v27 = vpop.f32.mrf.mxu0  ;;  %v3987_v10 = vadd.f32 %v3986_v1, %v3985_v58  ;;  %v3995_v9 = vrot.slane %v3994_v61, 4 }
 0x983   : > { %16035 = vst [vmem:[#allocation22_spill] sm:$0xff] %v13262_v27  ;;  %v6436_v58 = vsel %vm16041_vm4, %v13262_v27, 0.0  ;;  %vm16076_vm4 = vmmov %vm15993_vm0 }
 0x984   : > { %6422 = vadd.xlane.f32.xlu0 %v6421_v2  ;;  %6440 = vadd.xlane.f32.xlu1 %v6439_v34  ;;  %v3979_v34 = vrot.slane %v3978_v48, 2  ;;  %v13268_v8 = vpop.f32.mrf.mxu0  ;;  %v13270_v2 = vpop.f32.mrf.mxu1  ;;  %v3988_v54 = vrot.slane %v3987_v10, 2  ;;  %v3996_v18 = vadd.f32 %v3995_v9, %v3994_v61  ;;  %v13300_v9 = vsub.f32 %v12696_v59, %v13063_v15 }
 0x985   : > { %16038 = vst [vmem:[#allocation15_spill] sm:$0xff] %v13268_v8  ;;  %16039 = vst [vmem:[#allocation29_spill] sm:$0xff] %v13270_v2  ;;  %v6463_v63 = vsel %vm16040_vm7, %v13268_v8, 0.0 }
 0x986   : > { %v3980_v38 = vadd.f32 %v3979_v34, %v3978_v48  ;;  %v13276_v1 = vpop.f32.mrf.mxu1  ;;  %v3989_v34 = vadd.f32 %v3988_v54, %v3987_v10  ;;  %16051 = vst [vmem:[#allocation59_spill] sm:$0xff] %v13300_v9  ;;  %v13304_v54 = vsub.f32 %v12712_v17, %v13094_v41  ;;  %v4044_v15 = vmul.f32 %v13300_v9, %v13300_v9  ;;  %vm16073_vm7 = vmmov %vm15993_vm0 }
 0x987   : > { %16042 = vst [vmem:[#allocation44_spill] sm:$0xff] %v13276_v1 }
 0x988   : > { %6431 = vadd.xlane.f32.xlu0 %v6430_v35  ;;  %6434 = vadd.xlane.f32.xlu1 %v6433_v4  ;;  %v6451_v35 = vsel %vm16043_vm11, %v13270_v2, 0.0  ;;  %v6445_v4 = vsel %vm16044_vm8, %v13276_v1, 0.0  ;;  %v3981_v48 = vrot.slane %v3980_v38, 1  ;;  %v3990_v44 = vrot.slane %v3989_v34, 1  ;;  %16052 = vst [vmem:[#allocation30_spill] sm:$0xff] %v13304_v54  ;;  %vm16081_vm11 = vmmov %vm15993_vm0 }
 0x989   : > { %v4052_v17 = vmul.f32 %v13304_v54, %v13304_v54  ;;  %vm16082_vm8 = vmmov %vm15993_vm0 }
 0x98a   : > { %v3982_v39 = vadd.f32 %v3981_v48, %v3980_v38 }
 0x98c   : > { %6443 = vadd.xlane.f32.xlu0 %v6442_v49  ;;  %6425 = vadd.xlane.f32.xlu1 %v6424_v60  ;;  %v13284_v49 = vsub.f32 %v12704_v29, %v13078_v6  ;;  %v13286_v60 = vpop.f32.mrf.mxu0  ;;  %v13306_v38 = vmul.f32 0.03125, %v3982_v39  ;;  %v13321_v39 = vsub.f32 %v12716_v22, %v13130_v28  ;;  %v13336_v22 = vsub.f32 %v12724_v30, %v13144_v55 }
 0x98d   : > { %16046 = vst [vmem:[#allocation40_spill] sm:$0xff] %v13286_v60  ;;  %v6457_v61 = vsel %vm16048_vm9, %v13286_v60, 0.0  ;;  %v13349_v30 = vsub.f32 %v12720_v46, %v13130_v28  ;;  %vm16085_vm9 = vmmov %vm15993_vm0 }
 0x98e   : > { %16045 = vst [vmem:[#allocation48_spill] sm:$0xff] %v13284_v49  ;;  %v4048_v26 = vmul.f32 %v13284_v49, %v13284_v49  ;;  %v13296_v6 = vpop.f32.mrf.mxu0  ;;  %16057 = vst [vmem:[#allocation12_spill] sm:$0xff] %v13321_v39 }
 0x98f   : > { %16050 = vst [vmem:[#allocation17_spill] sm:$0xff] %v13296_v6  ;;  %16062 = vst [vmem:[#allocation61_spill] sm:$0xff] %v13336_v22 }
 0x990   : > { %6437 = vadd.xlane.f32.xlu0 %v6436_v58  ;;  %6464 = vadd.xlane.f32.xlu1 %v6463_v63  ;;  %v3997_v63 = vrot.slane %v3996_v18, 2  ;;  %v13288_v58 = vpop.f32.mrf.mxu1  ;;  %v4094_v48 = vsel %vm16054_vm13, %v4048_v26, 0.0  ;;  %16065 = vst [vmem:[#allocation24_spill] sm:$0xff] %v13349_v30  ;;  %vm16092_vm13 = vmmov %vm15993_vm0 }
 0x991   : > { %16047 = vst [vmem:[#allocation11_spill] sm:$0xff] %v13288_v58  ;;  %v6454_v29 = vsel %vm16049_vm10, %v13288_v58, 0.0  ;;  %vm16086_vm10 = vmmov %vm15993_vm0 }
 0x992   : > { %v3998_v10 = vadd.f32 %v3997_v63, %v3996_v18  ;;  %v13311_v49 = vpop.f32.mrf.mxu1  ;;  %v13329_v18 = vsub.f32 %v12738_v25, %v13306_v38  ;;  %v4055_v63 = vmul.f32 %v13321_v39, %v13321_v39 }
 0x993   : > { %16055 = vst [vmem:[#allocation7_spill] sm:$0xff] %v13311_v49  ;;  %v6448_v26 = vsel %vm16058_vm2, %v13311_v49, 0.0  ;;  %vm16095_vm2 = vmmov %vm15993_vm0 }
 0x994   : > { %6452 = vadd.xlane.f32.xlu0 %v6451_v35  ;;  %6446 = vadd.xlane.f32.xlu1 %v6445_v4  ;;  %v3991_v35 = vadd.f32 %v3990_v44, %v3989_v34  ;;  %v6466_v4 = vsel %vm16053_vm12, %v13296_v6, 0.0  ;;  %v3999_v59 = vrot.slane %v3998_v10, 1  ;;  %16060 = vst [vmem:[#allocation23_spill] sm:$0xff] %v13329_v18  ;;  %v4082_v34 = vsel %vm16061_vm15, %v4044_v15, 0.0  ;;  %vm16091_vm12 = vmmov %vm15993_vm0 }
 0x995   : > { %v4059_v15 = vmul.f32 %v13336_v22, %v13336_v22  ;;  %vm16099_vm15 = vmmov %vm15993_vm0 }
 0x996   : > { %v4007_v41 = vmul.f32 0.03125, %v3991_v35  ;;  %v4106_v35 = vsel %vm16063_vm1, %v4052_v17, 0.0  ;;  %vm16100_vm1 = vmmov %vm15993_vm0 }
 0x998   : > { %6458 = vadd.xlane.f32.xlu0 %v6457_v61  ;;  %6455 = vadd.xlane.f32.xlu1 %v6454_v29  ;;  %v13313_v61 = vpop.f32.mrf.mxu0  ;;  %v4000_v29 = vadd.f32 %v3999_v59, %v3998_v10  ;;  %v13342_v25 = vsub.f32 %v12754_v37, %v4007_v41  ;;  %v13356_v37 = vsub.f32 %v12746_v14, %v13306_v38 }
 0x999   : > { %16056 = vst [vmem:[#allocation43_spill] sm:$0xff] %v13313_v61  ;;  %v6460_v44 = vsel %vm16059_vm14, %v13313_v61, 0.0  ;;  %vm16096_vm14 = vmmov %vm15993_vm0 }
 0x99a   : > { %16064 = vst [vmem:[#allocation8_spill] sm:$0xff] %v13342_v25  ;;  %v4008_v10 = vmul.f32 0.03125, %v4000_v29  ;;  %v4065_v17 = vmul.f32 %v13342_v25, %v13342_v25  ;;  %16067 = vst [vmem:[#allocation18_spill] sm:$0xff] %v13356_v37  ;;  %v4062_v28 = vmul.f32 %v13356_v37, %v13356_v37 }
 0x99c   : > { %6467 = vadd.xlane.f32.xlu0 %v6466_v4  ;;  %4095 = vadd.xlane.f32.xlu1 %v4094_v48  ;;  %v4061_v4 = vmul.f32 %v13329_v18, %v13329_v18  ;;  %v4115_v48 = vsel %vm15993_vm0, %v4055_v63, 0.0  ;;  %v4145_v46 = vsel %vm16069_vm3, %v4065_v17, 0.0  ;;  %v16071_v63 = vld [vmem:[#allocation27_spill] sm:$0xff]  ;;  %vm16106_vm3 = vmmov %vm15993_vm0 }
 0x99d   : > { %v13368_v29 = vsub.f32 %v16071_v63, %v4008_v10 }
 0x99e   : > { %v4133_v59 = vsel %vm16066_vm5, %v4061_v4, 0.0  ;;  %vm16104_vm5 = vmmov %vm15993_vm0 }
 0x99f   : > { %16072 = vst [vmem:[#allocation46_spill] sm:$0xff] %v13368_v29 }
 0x9a0   : > { %6449 = vadd.xlane.f32.xlu0 %v6448_v26  ;;  %6461 = vadd.xlane.f32.xlu1 %v6460_v44  ;;  %v4127_v26 = vsel %vm16068_vm6, %v4059_v15, 0.0  ;;  %v4056_v44 = vmul.f32 %v13349_v30, %v13349_v30  ;;  %v16083_v30 = vld [vmem:[#allocation36_spill] sm:$0xff]  ;;  %vm16105_vm6 = vmmov %vm15993_vm0 }
 0x9a1   : > { %v13394_v54 = vsub.f32 %v16083_v30, %v4008_v10 }
 0x9a2   : > { %v4118_v14 = vsel %vm16073_vm7, %v4056_v44, 0.0  ;;  %v16079_v44 = vld [vmem:[#allocation20_spill] sm:$0xff]  ;;  %vm16110_vm7 = vmmov %vm15993_vm0 }
 0x9a3   : > { %16084 = vst [vmem:[#allocation32_spill] sm:$0xff] %v13394_v54 }
 0x9a4   : > { %4083 = vadd.xlane.f32.xlu0 %v4082_v34  ;;  %4107 = vadd.xlane.f32.xlu1 %v4106_v35  ;;  %v13365_v34 = vsub.f32 %v12758_v3, %v4007_v41  ;;  %v16074_v35 = vld [vmem:[#allocation39_spill] sm:$0xff]  ;;  %v4070_v3 = vmul.f32 %v13368_v29, %v13368_v29 }
 0x9a5   : > { %v13373_v4 = vsub.f32 %v16074_v35, %v13306_v38 }
 0x9a6   : > { %16070 = vst [vmem:[#allocation31_spill] sm:$0xff] %v13365_v34  ;;  %v4066_v15 = vmul.f32 %v13365_v34, %v13365_v34  ;;  %v4160_v63 = vsel %vm16082_vm8, %v4070_v3, 0.0  ;;  %vm16115_vm8 = vmmov %vm15993_vm0 }
 0x9a7   : > { %16075 = vst [vmem:[#allocation14_spill] sm:$0xff] %v13373_v4 }
 0x9a8   : > { %4116 = vadd.xlane.f32.xlu0 %v4115_v48  ;;  %4134 = vadd.xlane.f32.xlu1 %v4133_v59  ;;  %v4136_v48 = vsel %vm16076_vm4, %v4062_v28, 0.0  ;;  %v16077_v59 = vld [vmem:[#allocation37_spill] sm:$0xff]  ;;  %v4148_v28 = vsel %vm16081_vm11, %v4066_v15, 0.0  ;;  %v4071_v15 = vmul.f32 %v13394_v54, %v13394_v54  ;;  %vm16111_vm4 = vmmov %vm15993_vm0 }
 0x9a9   : > { %v13381_v17 = vsub.f32 %v16077_v59, %v4008_v10  ;;  %v16087_v59 = vld [vmem:[#allocation45_spill] sm:$0xff]  ;;  %vm16114_vm11 = vmmov %vm15993_vm0 }
 0x9aa   : > { %v13403_v3 = vsub.f32 %v16087_v59, %v4007_v41  ;;  %v13425_v59 = vpop.xlane.xlu1 %4074 }
 0x9ab   : > { %16078 = vst [vmem:[#allocation19_spill] sm:$0xff] %v13381_v17  ;;  %v4069_v35 = vmul.f32 %v13381_v17, %v13381_v17 }
 0x9ac   : > { %4128 = vadd.xlane.f32.xlu0 %v4127_v26  ;;  %4146 = vadd.xlane.f32.xlu1 %v4145_v46  ;;  %v4063_v26 = vmul.f32 %v13373_v4, %v13373_v4  ;;  %v13387_v46 = vsub.f32 %v16079_v44, %v13144_v55  ;;  %16088 = vst [vmem:[#allocation47_spill] sm:$0xff] %v13403_v3  ;;  %v16089_v44 = vld [vmem:[#allocation41_spill] sm:$0xff] }
 0x9ad   : > { %v4157_v55 = vsel %vm16086_vm10, %v4069_v35, 0.0  ;;  %v13406_v9 = vsub.f32 %v16089_v44, %v4007_v41  ;;  %v16093_v35 = vld [vmem:[#allocation42_spill] sm:$0xff]  ;;  %vm16118_vm10 = vmmov %vm15993_vm0 }
 0x9ae   : > { %16080 = vst [vmem:[#allocation62_spill] sm:$0xff] %v13387_v46 }
 0x9af   : > { %16090 = vst [vmem:[#allocation16_spill] sm:$0xff] %v13406_v9 }
 0x9b0   : > { %4137 = vadd.xlane.f32.xlu0 %v4136_v48  ;;  %4119 = vadd.xlane.f32.xlu1 %v4118_v14  ;;  %v4139_v14 = vsel %vm16085_vm9, %v4063_v26, 0.0  ;;  %v4060_v48 = vmul.f32 %v13387_v46, %v13387_v46  ;;  %v4163_v26 = vsel %vm16092_vm13, %v4071_v15, 0.0  ;;  %v13416_v46 = vsub.f32 %v16093_v35, %v13306_v38  ;;  %vm16116_vm9 = vmmov %vm15993_vm0 }
 0x9b1   : > { %vm16124_vm13 = vmmov %vm15993_vm0 }
 0x9b2   : > { %v4130_v30 = vsel %vm16091_vm12, %v4060_v48, 0.0  ;;  %16094 = vst [vmem:[#allocation25_spill] sm:$0xff] %v13416_v46  ;;  %v4064_v48 = vmul.f32 %v13416_v46, %v13416_v46  ;;  %vm16123_vm12 = vmmov %vm15993_vm0 }
 0x9b4   : > { %4149 = vadd.xlane.f32.xlu0 %v4148_v28  ;;  %4161 = vadd.xlane.f32.xlu1 %v4160_v63  ;;  %v4067_v28 = vmul.f32 %v13403_v3, %v13403_v3  ;;  %v4068_v63 = vmul.f32 %v13406_v9, %v13406_v9  ;;  %v4142_v44 = vsel %vm16099_vm15, %v4064_v48, 0.0  ;;  %vm16128_vm15 = vmmov %vm15993_vm0 }
 0x9b6   : > { %v4151_v41 = vsel %vm16095_vm2, %v4067_v28, 0.0  ;;  %v13433_v28 = vpop.xlane.xlu0 %4077  ;;  %vm16126_vm2 = vmmov %vm15993_vm0 }
 0x9b8   : > { %4158 = vadd.xlane.f32.xlu0 %v4157_v55  ;;  %4140 = vadd.xlane.f32.xlu1 %v4139_v14  ;;  %v4154_v14 = vsel %vm16096_vm14, %v4068_v63, 0.0  ;;  %v16097_v55 = vld [vmem:[#allocation13_spill] sm:$0xff]  ;;  %vm16127_vm14 = vmmov %vm15993_vm0 }
 0x9b9   : > { %v13423_v15 = vsub.f32 %v16097_v55, %v4008_v10 }
 0x9ba   : > { %v13437_v10 = vpop.xlane.xlu0 %4089 }
 0x9bb   : > { %16098 = vst [vmem:[#allocation64_spill] sm:$0xff] %v13423_v15  ;;  %v4072_v38 = vmul.f32 %v13423_v15, %v13423_v15 }
 0x9bc   : > { %4131 = vadd.xlane.f32.xlu0 %v4130_v30  ;;  %4164 = vadd.xlane.f32.xlu1 %v4163_v26  ;;  %v13431_v26 = vpop.xlane.xlu1 %4086 }
 0x9bd   : > { %v4166_v30 = vsel %vm16100_vm1, %v4072_v38, 0.0  ;;  %vm16129_vm1 = vmmov %vm15993_vm0 }
 0x9c0   : > { %4152 = vadd.xlane.f32.xlu0 %v4151_v41  ;;  %4155 = vadd.xlane.f32.xlu1 %v4154_v14  ;;  %v13435_v63 = vpop.xlane.xlu1 %4098  ;;  %v13441_v41 = vpop.xlane.xlu0 %4101 }
 0x9c4   : > { %4143 = vadd.xlane.f32.xlu0 %v4142_v44  ;;  %v13439_v35 = vpop.xlane.xlu1 %4080  ;;  %v13445_v48 = vpop.xlane.xlu0 %4092 }
 0x9c8   : > { %4167 = vadd.xlane.f32.xlu0 %v4166_v30  ;;  %v13443_v14 = vpop.xlane.xlu1 %4110  ;;  %v13449_v44 = vpop.xlane.xlu0 %4113 }
 0x9cc   : > { %v13447_v55 = vpop.xlane.xlu1 %4104  ;;  %v13453_v30 = vpop.xlane.xlu0 %4122 }
 0x9d0   : > { %v13451_v38 = vpop.xlane.xlu1 %4125 }
 0x9e9   : > { %v6381_v15 = vpop.xlane.xlu1 %6380 }
 0x9ea   : > { %v6471_v39 = vmul.f32 0.03125, %v6381_v15 }
 0x9ed   : > { %v6384_v9 = vpop.xlane.xlu0 %6383  ;;  %v6375_v46 = vpop.xlane.xlu1 %6374 }
 0x9ee   : > { %v6469_v4 = vmul.f32 0.03125, %v6375_v46  ;;  %v6472_v18 = vmul.f32 0.03125, %v6384_v9 }
 0x9f1   : > { %v6378_v54 = vpop.xlane.xlu0 %6377  ;;  %v6387_v3 = vpop.xlane.xlu1 %6386 }
 0x9f2   : > { %v6470_v22 = vmul.f32 0.03125, %v6378_v54  ;;  %v6473_v11 = vmul.f32 0.03125, %v6387_v3 }
 0x9f4   : > { %v6501_v29 = vadd.f32 %v6470_v22, %v6469_v4 }
 0x9f5   : > { %v6393_v17 = vpop.xlane.xlu0 %6392  ;;  %v6396_v37 = vpop.xlane.xlu1 %6395 }
 0x9f6   : > { %v6502_v34 = vadd.f32 %v6501_v29, %v6471_v39  ;;  %v6475_v8 = vmul.f32 0.03125, %v6393_v17  ;;  %v6476_v46 = vmul.f32 0.03125, %v6396_v37 }
 0x9f8   : > { %v6503_v25 = vadd.f32 %v6502_v34, %v6472_v18 }
 0x9f9   : > { %v6390_v20 = vpop.xlane.xlu0 %6389  ;;  %v6405_v33 = vpop.xlane.xlu1 %6404 }
 0x9fa   : > { %v6504_v32 = vrot.slane %v6503_v25, 4  ;;  %v6474_v52 = vmul.f32 0.03125, %v6390_v20  ;;  %v6479_v3 = vmul.f32 0.03125, %v6405_v33 }
 0x9fc   : > { %v6505_v6 = vadd.f32 %v6504_v32, %v6503_v25  ;;  %v6510_v60 = vadd.f32 %v6474_v52, %v6473_v11 }
 0x9fd   : > { %v6417_v61 = vpop.xlane.xlu0 %6416  ;;  %v6399_v58 = vpop.xlane.xlu1 %6398 }
 0x9fe   : > { %v6506_v2 = vrot.slane %v6505_v6, 2  ;;  %v6511_v54 = vadd.f32 %v6510_v60, %v6475_v8  ;;  %v6477_v18 = vmul.f32 0.03125, %v6399_v58  ;;  %v6483_v60 = vmul.f32 0.03125, %v6417_v61 }
 0xa00   : > { %v6507_v15 = vadd.f32 %v6506_v2, %v6505_v6  ;;  %v6512_v22 = vadd.f32 %v6511_v54, %v6476_v46 }
 0xa01   : > { %v6402_v4 = vpop.xlane.xlu0 %6401  ;;  %v6411_v49 = vpop.xlane.xlu1 %6410 }
 0xa02   : > { %v6508_v9 = vrot.slane %v6507_v15, 1  ;;  %v6513_v39 = vrot.slane %v6512_v22, 4  ;;  %v6478_v34 = vmul.f32 0.03125, %v6402_v4  ;;  %v6481_v32 = vmul.f32 0.03125, %v6411_v49 }
 0xa04   : > { %v6509_v29 = vadd.f32 %v6508_v9, %v6507_v15  ;;  %v6514_v1 = vadd.f32 %v6513_v39, %v6512_v22  ;;  %v6519_v20 = vadd.f32 %v6478_v34, %v6477_v18 }
 0xa05   : > { %v6414_v25 = vpop.xlane.xlu0 %6413  ;;  %v6408_v11 = vpop.xlane.xlu1 %6407 }
 0xa06   : > { %v6515_v52 = vrot.slane %v6514_v1, 2  ;;  %v6482_v17 = vmul.f32 0.03125, %v6414_v25  ;;  %v6520_v5 = vadd.f32 %v6519_v20, %v6479_v3  ;;  %v6480_v37 = vmul.f32 0.03125, %v6408_v11 }
 0xa07   : > { %v6573_v8 = vmul.f32 0.03125, %v6509_v29 }
 0xa08   : > { %v6516_v2 = vadd.f32 %v6515_v52, %v6514_v1  ;;  %v6528_v6 = vadd.f32 %v6482_v17, %v6481_v32  ;;  %v6521_v46 = vadd.f32 %v6520_v5, %v6480_v37 }
 0xa09   : > { %v6429_v54 = vpop.xlane.xlu0 %6428  ;;  %v6420_v27 = vpop.xlane.xlu1 %6419  ;;  %v13456_v58 = vsub.f32 %v13181_v45, %v6573_v8  ;;  %v13459_v33 = vsub.f32 %v13173_v13, %v6573_v8  ;;  %v13462_v49 = vsub.f32 %v13175_v57, %v6573_v8  ;;  %v13465_v15 = vsub.f32 %v13169_v42, %v6573_v8 }
 0xa0a   : > { %v6517_v22 = vrot.slane %v6516_v2, 1  ;;  %v6522_v4 = vrot.slane %v6521_v46, 4  ;;  %v6529_v1 = vadd.f32 %v6528_v6, %v6483_v60  ;;  %v6484_v61 = vmul.f32 0.03125, %v6420_v27 }
 0xa0b   : > { %16101 = vst [vmem:[#allocation26_spill] sm:$0xff] %v13456_v58  ;;  %16102 = vst [vmem:[#allocation33_spill] sm:$0xff] %v13462_v49  ;;  %v6614_v5 = vmul.f32 %v13456_v58, %v13456_v58  ;;  %v6613_v45 = vmul.f32 %v13459_v33, %v13459_v33  ;;  %v6616_v13 = vmul.f32 %v13462_v49, %v13462_v49 }
 0xa0c   : > { %16103 = vst [vmem:[#allocation50_spill] sm:$0xff] %v13465_v15  ;;  %v6518_v9 = vadd.f32 %v6517_v22, %v6516_v2  ;;  %v6523_v39 = vadd.f32 %v6522_v4, %v6521_v46  ;;  %v6615_v57 = vmul.f32 %v13465_v15, %v13465_v15  ;;  %v6530_v42 = vadd.f32 %v6529_v1, %v6484_v61 }
 0xa0d   : > { %v6423_v18 = vpop.xlane.xlu0 %6422  ;;  %v6648_v34 = vsel %vm15993_vm0, %v6614_v5, 0.0  ;;  %v6645_v27 = vsel %vm16104_vm5, %v6613_v45, 0.0  ;;  %v6441_v29 = vpop.xlane.xlu1 %6440  ;;  %v6654_v11 = vsel %vm16105_vm6, %v6616_v13, 0.0  ;;  %v4170_v46 = vmul.f32 0.03125, %v13433_v28  ;;  %vm16133_vm5 = vmmov %vm15993_vm0 }
 0xa0e   : > { %v6524_v3 = vrot.slane %v6523_v39, 2  ;;  %6649 = vadd.xlane.f32.xlu0 %v6648_v34  ;;  %6646 = vadd.xlane.f32.xlu1 %v6645_v27  ;;  %v6531_v20 = vrot.slane %v6530_v42, 4  ;;  %v6574_v32 = vmul.f32 0.03125, %v6518_v9  ;;  %v6651_v52 = vsel %vm16106_vm3, %v6615_v57, 0.0  ;;  %vm16136_vm6 = vmmov %vm15993_vm0 }
 0xa0f   : > { %v4169_v1 = vmul.f32 0.03125, %v13425_v59  ;;  %v6485_v57 = vmul.f32 0.03125, %v6423_v18  ;;  %vm16137_vm3 = vmmov %vm15993_vm0 }
 0xa10   : > { %v6525_v25 = vadd.f32 %v6524_v3, %v6523_v39  ;;  %v6532_v17 = vadd.f32 %v6531_v20, %v6530_v42  ;;  %v13480_v2 = vsub.f32 %v13197_v47, %v6574_v32  ;;  %v13483_v60 = vsub.f32 %v13185_v12, %v6574_v32 }
 0xa11   : > { %v6432_v37 = vpop.xlane.xlu0 %6431  ;;  %v6435_v8 = vpop.xlane.xlu1 %6434  ;;  %v13486_v6 = vsub.f32 %v13183_v36, %v6574_v32  ;;  %v13490_v4 = vsub.f32 %v13191_v51, %v6574_v32  ;;  %v13503_v34 = vadd.f32 %v4170_v46, %v4169_v1  ;;  %v6487_v3 = vmul.f32 0.03125, %v6429_v54 }
 0xa12   : > { %16107 = vst [vmem:[#allocation66_spill] sm:$0xff] %v13480_v2  ;;  %v6526_v22 = vrot.slane %v6525_v25, 1  ;;  %6655 = vadd.xlane.f32.xlu0 %v6654_v11  ;;  %6652 = vadd.xlane.f32.xlu1 %v6651_v52  ;;  %v6533_v61 = vrot.slane %v6532_v17, 2  ;;  %v6618_v47 = vmul.f32 %v13480_v2, %v13480_v2  ;;  %v6617_v12 = vmul.f32 %v13483_v60, %v13483_v60 }
 0xa13   : > { %16108 = vst [vmem:[#allocation34_spill] sm:$0xff] %v13486_v6  ;;  %16109 = vst [vmem:[#allocation51_spill] sm:$0xff] %v13490_v4  ;;  %v6619_v36 = vmul.f32 %v13486_v6, %v13486_v6  ;;  %v6620_v59 = vmul.f32 %v13490_v4, %v13490_v4  ;;  %v6488_v52 = vmul.f32 0.03125, %v6432_v37  ;;  %v6489_v46 = vmul.f32 0.03125, %v6435_v8  ;;  %v16184_v6 = vld [vmem:[#allocation23_spill] sm:$0xff] }
 0xa14   : > { %v6527_v5 = vadd.f32 %v6526_v22, %v6525_v25  ;;  %v6534_v28 = vadd.f32 %v6533_v61, %v6532_v17  ;;  %v6660_v9 = vsel %vm16110_vm7, %v6618_v47, 0.0  ;;  %v6657_v51 = vsel %vm16111_vm4, %v6617_v12, 0.0  ;;  %vm16141_vm7 = vmmov %vm15993_vm0 }
 0xa15   : > { %v6444_v45 = vpop.xlane.xlu0 %6443  ;;  %v6426_v39 = vpop.xlane.xlu1 %6425  ;;  %v6663_v22 = vsel %vm16114_vm11, %v6619_v36, 0.0  ;;  %v6666_v18 = vsel %vm16115_vm8, %v6620_v59, 0.0  ;;  %v6491_v12 = vmul.f32 0.03125, %v6441_v29  ;;  %vm16142_vm4 = vmmov %vm15993_vm0 }
 0xa16   : > { %v6575_v13 = vmul.f32 0.03125, %v6527_v5  ;;  %6661 = vadd.xlane.f32.xlu0 %v6660_v9  ;;  %6658 = vadd.xlane.f32.xlu1 %v6657_v51  ;;  %v6486_v42 = vmul.f32 0.03125, %v6426_v39  ;;  %v6535_v27 = vrot.slane %v6534_v28, 1  ;;  %vm16145_vm11 = vmmov %vm15993_vm0 }
 0xa17   : > { %vm16150_vm8 = vmmov %vm15993_vm0 }
 0xa18   : > { %v6537_v20 = vadd.f32 %v6486_v42, %v6485_v57  ;;  %v13506_v32 = vsub.f32 %v13217_v0, %v6575_v13  ;;  %v13509_v25 = vsub.f32 %v13203_v19, %v6575_v13  ;;  %v6536_v11 = vadd.f32 %v6535_v27, %v6534_v28 }
 0xa19   : > { %v6438_v17 = vpop.xlane.xlu0 %6437  ;;  %v13513_v61 = vpop.xlane.xlu1 %6464  ;;  %v4174_v19 = vmul.f32 0.03125, %v13437_v10  ;;  %v13522_v8 = vsub.f32 %v13199_v40, %v6575_v13  ;;  %v4173_v57 = vmul.f32 0.03125, %v13431_v26  ;;  %v6492_v42 = vmul.f32 0.03125, %v6444_v45 }
 0xa1a   : > { %16112 = vst [vmem:[#allocation68_spill] sm:$0xff] %v13506_v32  ;;  %16113 = vst [vmem:[#allocation35_spill] sm:$0xff] %v13509_v25  ;;  %v6538_v1 = vadd.f32 %v6537_v20, %v6487_v3  ;;  %v6490_v47 = vmul.f32 0.03125, %v6438_v17  ;;  %6664 = vadd.xlane.f32.xlu0 %v6663_v22  ;;  %6667 = vadd.xlane.f32.xlu1 %v6666_v18  ;;  %v6622_v0 = vmul.f32 %v13506_v32, %v13506_v32 }
 0xa1b   : > { %v6576_v54 = vmul.f32 0.03125, %v6536_v11  ;;  %v6621_v37 = vmul.f32 %v13509_v25, %v13509_v25  ;;  %16117 = vst [vmem:[#allocation49_spill] sm:$0xff] %v13522_v8  ;;  %v4178_v3 = vmul.f32 0.03125, %v13441_v41  ;;  %v4177_v20 = vmul.f32 0.03125, %v13435_v63 }
 0xa1c   : > { %v6539_v5 = vadd.f32 %v6538_v1, %v6488_v52  ;;  %v6546_v36 = vadd.f32 %v6490_v47, %v6489_v46  ;;  %v6672_v28 = vsel %vm16116_vm9, %v6622_v0, 0.0  ;;  %v13545_v26 = vsub.f32 %v13209_v7, %v6575_v13  ;;  %vm16151_vm9 = vmmov %vm15993_vm0 }
 0xa1d   : > { %v13524_v9 = vpop.xlane.xlu0 %6452  ;;  %v6669_v51 = vsel %vm16118_vm10, %v6621_v37, 0.0  ;;  %v6447_v39 = vpop.xlane.xlu1 %6446  ;;  %v13528_v59 = vsub.f32 %v13227_v21, %v6576_v54  ;;  %v13531_v10 = vsub.f32 %v13213_v50, %v6576_v54  ;;  %v13534_v29 = vsub.f32 %v13207_v62, %v6576_v54  ;;  %vm16162_vm10 = vmmov %vm15993_vm0 }
 0xa1e   : > { %v6540_v27 = vrot.slane %v6539_v5, 4  ;;  %v6547_v40 = vadd.f32 %v6546_v36, %v6491_v12  ;;  %6673 = vadd.xlane.f32.xlu0 %v6672_v28  ;;  %6670 = vadd.xlane.f32.xlu1 %v6669_v51  ;;  %v4175_v62 = vmul.f32 0.03125, %v13445_v48  ;;  %16122 = vst [vmem:[#allocation27_spill] sm:$0xff] %v13545_v26  ;;  %v6623_v18 = vmul.f32 %v13522_v8, %v13522_v8 }
 0xa1f   : > { %16119 = vst [vmem:[#allocation9_spill] sm:$0xff] %v13528_v59  ;;  %16120 = vst [vmem:[#allocation53_spill] sm:$0xff] %v13531_v10  ;;  %v6626_v21 = vmul.f32 %v13528_v59, %v13528_v59  ;;  %v6625_v50 = vmul.f32 %v13531_v10, %v13531_v10  ;;  %v6627_v63 = vmul.f32 %v13534_v29, %v13534_v29  ;;  %v4171_v48 = vmul.f32 0.03125, %v13439_v35 }
 0xa20   : > { %16121 = vst [vmem:[#allocation38_spill] sm:$0xff] %v13534_v29  ;;  %v6541_v11 = vadd.f32 %v6540_v27, %v6539_v5  ;;  %v6548_v52 = vadd.f32 %v6547_v40, %v6492_v42  ;;  %v4210_v46 = vadd.f32 %v4174_v19, %v4173_v57  ;;  %v4182_v7 = vmul.f32 0.03125, %v13449_v44  ;;  %v16183_v29 = vld [vmem:[#allocation31_spill] sm:$0xff] }
 0xa21   : > { %v6459_v45 = vpop.xlane.xlu0 %6458  ;;  %v6684_v17 = vsel %vm16123_vm12, %v6626_v21, 0.0  ;;  %v6681_v41 = vsel %vm16124_vm13, %v6625_v50, 0.0  ;;  %v6456_v22 = vpop.xlane.xlu1 %6455  ;;  %v4181_v13 = vmul.f32 0.03125, %v13443_v14  ;;  %v4179_v0 = vmul.f32 0.03125, %v13447_v55  ;;  %vm16163_vm12 = vmmov %vm15993_vm0 }
 0xa22   : > { %v6542_v1 = vrot.slane %v6541_v11, 2  ;;  %v6549_v47 = vrot.slane %v6548_v52, 4  ;;  %6685 = vadd.xlane.f32.xlu0 %v6684_v17  ;;  %6682 = vadd.xlane.f32.xlu1 %v6681_v41  ;;  %v13558_v12 = vsub.f32 %v13219_v23, %v6576_v54  ;;  %v4219_v37 = vadd.f32 %v4178_v3, %v4177_v20  ;;  %vm16164_vm13 = vmmov %vm15993_vm0 }
 0xa23   : > { %v4186_v5 = vmul.f32 0.03125, %v13451_v38  ;;  %v4211_v28 = vadd.f32 %v4210_v46, %v4175_v62  ;;  %v6687_v51 = vsel %vm16126_vm2, %v6627_v63, 0.0  ;;  %v6675_v57 = vsel %vm16127_vm14, %v6623_v18, 0.0  ;;  %vm16165_vm2 = vmmov %vm15993_vm0 }
 0xa24   : > { %16125 = vst [vmem:[#allocation39_spill] sm:$0xff] %v13558_v12  ;;  %v6543_v36 = vadd.f32 %v6542_v1, %v6541_v11  ;;  %v6550_v19 = vadd.f32 %v6549_v47, %v6548_v52  ;;  %v6624_v14 = vmul.f32 %v13545_v26, %v13545_v26  ;;  %v4185_v55 = vmul.f32 0.03125, %v13453_v30  ;;  %vm16166_vm14 = vmmov %vm15993_vm0 }
 0xa25   : > { %v6468_v35 = vpop.xlane.xlu0 %6467  ;;  %v4096_v42 = vpop.xlane.xlu1 %4095  ;;  %v4202_v38 = vadd.f32 %v13503_v34, %v4171_v48  ;;  %v13567_v27 = vadd.f32 %v4182_v7, %v4181_v13  ;;  %v4220_v40 = vadd.f32 %v4219_v37, %v4179_v0  ;;  %v6628_v3 = vmul.f32 %v13558_v12, %v13558_v12 }
 0xa26   : > { %v6544_v44 = vrot.slane %v6543_v36, 1  ;;  %v6551_v23 = vrot.slane %v6550_v19, 2  ;;  %6688 = vadd.xlane.f32.xlu0 %v6687_v51  ;;  %6676 = vadd.xlane.f32.xlu1 %v6675_v57  ;;  %v4176_v54 = vmul.f32 0.03125, %v4096_v42  ;;  %v13571_v20 = vadd.f32 %v4186_v5, %v4185_v55 }
 0xa27   : > { %v6499_v30 = vmul.f32 0.03125, %v13513_v61  ;;  %v6493_v11 = vmul.f32 0.03125, %v6447_v39  ;;  %v6497_v52 = vmul.f32 0.03125, %v6459_v45  ;;  %v6678_v41 = vsel %vm16128_vm15, %v6624_v14, 0.0  ;;  %vm16170_vm15 = vmmov %vm15993_vm0 }
 0xa28   : > { %v6545_v21 = vadd.f32 %v6544_v44, %v6543_v36  ;;  %v6552_v50 = vadd.f32 %v6551_v23, %v6550_v19  ;;  %v4212_v62 = vadd.f32 %v4211_v28, %v4176_v54  ;;  %v6495_v1 = vmul.f32 0.03125, %v13524_v9 }
 0xa29   : > { %v6450_v17 = vpop.xlane.xlu0 %6449  ;;  %v6462_v63 = vpop.xlane.xlu1 %6461  ;;  %v6496_v47 = vmul.f32 0.03125, %v6456_v22  ;;  %v6690_v7 = vsel %vm16129_vm1, %v6628_v3, 0.0  ;;  %v6500_v45 = vmul.f32 0.03125, %v6468_v35  ;;  %vm4370_vm1 = vcmask 1041409  }
 0xa2a   : > { %v6553_v34 = vrot.slane %v6552_v50, 1  ;;  %v4213_v18 = vrot.slane %v4212_v62, 4  ;;  %v6494_v46 = vmul.f32 0.03125, %v6450_v17  ;;  %6679 = vadd.xlane.f32.xlu1 %v6678_v41  ;;  %v6498_v48 = vmul.f32 0.03125, %v6462_v63 }
 0xa2b   : > { %v6577_v13 = vmul.f32 0.03125, %v6545_v21 }
 0xa2c   : > { %v6554_v0 = vadd.f32 %v6553_v34, %v6552_v50  ;;  %v4214_v37 = vadd.f32 %v4213_v18, %v4212_v62  ;;  %v6555_v61 = vadd.f32 %v6494_v46, %v6493_v11  ;;  %v6564_v39 = vadd.f32 %v6498_v48, %v6497_v52 }
 0xa2d   : > { %v4084_v5 = vpop.xlane.xlu0 %4083  ;;  %v4108_v36 = vpop.xlane.xlu1 %4107  ;;  %v13578_v19 = vsub.f32 %v13260_v56, %v6577_v13  ;;  %v13581_v28 = vsub.f32 %v13243_v31, %v6577_v13  ;;  %v13584_v51 = vsub.f32 %v13235_v16, %v6577_v13 }
 0xa2e   : > { %v4215_v9 = vrot.slane %v4214_v37, 2  ;;  %v6556_v22 = vadd.f32 %v6555_v61, %v6495_v1  ;;  %v6565_v57 = vadd.f32 %v6564_v39, %v6499_v30  ;;  %v4172_v42 = vmul.f32 0.03125, %v4084_v5  ;;  %6691 = vadd.xlane.f32.xlu1 %v6690_v7 }
 0xa2f   : > { %16130 = vst [vmem:[#allocation37_spill] sm:$0xff] %v13578_v19  ;;  %16131 = vst [vmem:[#allocation20_spill] sm:$0xff] %v13581_v28  ;;  %v4180_v14 = vmul.f32 0.03125, %v4108_v36  ;;  %v6630_v35 = vmul.f32 %v13578_v19, %v13578_v19  ;;  %v6629_v55 = vmul.f32 %v13581_v28, %v13581_v28  ;;  %v13590_v56 = vmul.f32 0.03125, %v6554_v0 }
 0xa30   : > { %16132 = vst [vmem:[#allocation36_spill] sm:$0xff] %v13584_v51  ;;  %v4216_v44 = vadd.f32 %v4215_v9, %v4214_v37  ;;  %v6557_v31 = vadd.f32 %v6556_v22, %v6496_v47  ;;  %v6566_v23 = vadd.f32 %v6565_v57, %v6500_v45  ;;  %v4203_v54 = vadd.f32 %v4202_v38, %v4172_v42 }
 0xa31   : > { %v4221_v16 = vadd.f32 %v4220_v40, %v4180_v14  ;;  %v4117_v3 = vpop.xlane.xlu0 %4116  ;;  %v6696_v21 = vsel %vm15993_vm0, %v6630_v35, 0.0  ;;  %v6693_v50 = vsel %vm16133_vm5, %v6629_v55, 0.0  ;;  %v4135_v62 = vpop.xlane.xlu1 %4134  ;;  %v13596_v30 = vsub.f32 %v13247_v24, %v13590_v56  ;;  %vm16173_vm5 = vmmov %vm16165_vm2 }
 0xa32   : > { %v4217_v11 = vrot.slane %v4216_v44, 1  ;;  %v6558_v52 = vrot.slane %v6557_v31, 4  ;;  %v6567_v17 = vrot.slane %v6566_v23, 4  ;;  %v4204_v41 = vrot.slane %v4203_v54, 4  ;;  %6697 = vadd.xlane.f32.xlu1 %v6696_v21  ;;  %6694 = vadd.xlane.f32.xlu0 %v6693_v50 }
 0xa33   : > { %16134 = vst [vmem:[#allocation45_spill] sm:$0xff] %v13596_v30  ;;  %v4222_v63 = vrot.slane %v4221_v16, 4  ;;  %v4183_v34 = vmul.f32 0.03125, %v4117_v3  ;;  %v6633_v38 = vmul.f32 %v13596_v30, %v13596_v30  ;;  %v13601_v40 = vsub.f32 %v13252_v53, %v6577_v13 }
 0xa34   : > { %v4218_v18 = vadd.f32 %v4217_v11, %v4216_v44  ;;  %v6559_v46 = vadd.f32 %v6558_v52, %v6557_v31  ;;  %v6568_v48 = vadd.f32 %v6567_v17, %v6566_v23  ;;  %v4205_v1 = vadd.f32 %v4204_v41, %v4203_v54  ;;  %v16139_v54 = vld [vmem:[#allocation22_spill] sm:$0xff] }
 0xa35   : > { %16135 = vst [vmem:[#allocation41_spill] sm:$0xff] %v13601_v40  ;;  %v4223_v24 = vadd.f32 %v4222_v63, %v4221_v16  ;;  %v4189_v47 = vmul.f32 0.03125, %v4135_v62  ;;  %v4129_v7 = vpop.xlane.xlu0 %4128  ;;  %v6705_v0 = vsel %vm16136_vm6, %v6633_v38, 0.0  ;;  %v6631_v37 = vmul.f32 %v13584_v51, %v13584_v51  ;;  %v4147_v61 = vpop.xlane.xlu1 %4146 }
 0xa36   : > { %v4274_v39 = vmul.f32 0.03125, %v4218_v18  ;;  %v6560_v45 = vrot.slane %v6559_v46, 2  ;;  %v6569_v5 = vrot.slane %v6568_v48, 2  ;;  %v4206_v36 = vrot.slane %v4205_v1, 2  ;;  %6706 = vadd.xlane.f32.xlu1 %v6705_v0 }
 0xa37   : > { %v4224_v53 = vrot.slane %v4223_v24, 2  ;;  %v4229_v13 = vadd.f32 %v13567_v27, %v4183_v34  ;;  %v4187_v9 = vmul.f32 0.03125, %v4129_v7  ;;  %v6699_v22 = vsel %vm16137_vm3, %v6631_v37, 0.0 }
 0xa38   : > { %v4282_v57 = vadd.f32 1e-05, %v4274_v39  ;;  %v6561_v42 = vadd.f32 %v6560_v45, %v6559_v46  ;;  %v6570_v14 = vadd.f32 %v6569_v5, %v6568_v48  ;;  %v4207_v35 = vadd.f32 %v4206_v36, %v4205_v1  ;;  %6700 = vadd.xlane.f32.xlu0 %v6699_v22  ;;  %v16143_v45 = vld [vmem:[#allocation10_spill] sm:$0xff] }
 0xa39   : > { %v4225_v55 = vadd.f32 %v4224_v53, %v4223_v24  ;;  %v4193_v44 = vmul.f32 0.03125, %v4147_v61  ;;  %v4138_v31 = vpop.xlane.xlu0 %4137  ;;  %v13610_v23 = vsub.f32 %v13239_v43, %v13590_v56  ;;  %v13614_v16 = vsub.f32 %v16139_v54, %v13590_v56  ;;  %v4120_v27 = vpop.xlane.xlu1 %4119 }
 0xa3a   : > { %v6562_v3 = vrot.slane %v6561_v42, 1  ;;  %v6571_v21 = vrot.slane %v6570_v14, 1  ;;  %v4208_v50 = vrot.slane %v4207_v35, 1  ;;  %v13617_v62 = vadd.f32 %v13571_v20, %v4187_v9 }
 0xa3b   : > { %16138 = vst [vmem:[#allocation42_spill] sm:$0xff] %v13610_v23  ;;  %16140 = vst [vmem:[#allocation13_spill] sm:$0xff] %v13614_v16  ;;  %v4226_v11 = vrot.slane %v4225_v55, 1  ;;  %v4190_v52 = vmul.f32 0.03125, %v4138_v31  ;;  %v6635_v17 = vmul.f32 %v13610_v23, %v13610_v23  ;;  %v6634_v43 = vmul.f32 %v13614_v16, %v13614_v16  ;;  %v16148_v31 = vld [vmem:[#allocation7_spill] sm:$0xff] }
 0xa3c   : > { %10486 = vrsqrt.f32 %v4282_v57  ;;  %v6563_v41 = vadd.f32 %v6562_v3, %v6561_v42  ;;  %v4209_v63 = vadd.f32 %v4208_v50, %v4207_v35  ;;  %v4184_v34 = vmul.f32 0.03125, %v4120_v27  ;;  %v16146_v35 = vld [vmem:[#allocation44_spill] sm:$0xff] }
 0xa3d   : > { %v6572_v38 = vadd.f32 %v6571_v21, %v6570_v14  ;;  %v4227_v18 = vadd.f32 %v4226_v11, %v4225_v55  ;;  %v6711_v46 = vsel %vm16141_vm7, %v6635_v17, 0.0  ;;  %v6708_v48 = vsel %vm16142_vm4, %v6634_v43, 0.0  ;;  %v4150_v20 = vpop.xlane.xlu0 %4149  ;;  %v4162_v1 = vpop.xlane.xlu1 %4161 }
 0xa3e   : > { %v4273_v24 = vmul.f32 0.03125, %v4209_v63  ;;  %v4246_v7 = vadd.f32 %v4190_v52, %v4189_v47  ;;  %6712 = vadd.xlane.f32.xlu1 %v6711_v46  ;;  %6709 = vadd.xlane.f32.xlu0 %v6708_v48  ;;  %v4230_v0 = vadd.f32 %v4229_v13, %v4184_v34  ;;  %v6632_v37 = vmul.f32 %v13601_v40, %v13601_v40  ;;  %v16152_v48 = vld [vmem:[#allocation29_spill] sm:$0xff] }
 0xa3f   : > { %v4275_v61 = vmul.f32 0.03125, %v4227_v18  ;;  %v4194_v39 = vmul.f32 0.03125, %v4150_v20  ;;  %v13629_v5 = vsub.f32 %v16143_v45, %v13590_v56  ;;  %v6579_v36 = vmul.f32 0.03125, %v6563_v41  ;;  %v16160_v45 = vld [vmem:[#allocation15_spill] sm:$0xff] }
 0xa40   : > { %v4281_v53 = vadd.f32 1e-05, %v4273_v24  ;;  %v4231_v9 = vrot.slane %v4230_v0, 4  ;;  %v6702_v22 = vsel %vm16145_vm11, %v6632_v37, 0.0  ;;  %v4198_v57 = vmul.f32 0.03125, %v4162_v1 }
 0xa41   : > { %16144 = vst [vmem:[#allocation22_spill] sm:$0xff] %v13629_v5  ;;  %v4283_v42 = vadd.f32 1e-05, %v4275_v61  ;;  %v4159_v47 = vpop.xlane.xlu0 %4158  ;;  %v6636_v13 = vmul.f32 %v13629_v5, %v13629_v5  ;;  %v4141_v14 = vpop.xlane.xlu1 %4140  ;;  %v13635_v55 = vsub.f32 %v16146_v35, %v6579_v36  ;;  %v13638_v54 = vsub.f32 %v16148_v31, %v6579_v36  ;;  %v16156_v61 = vld [vmem:[#allocation43_spill] sm:$0xff] }
 0xa42   : > { %10488 = vrsqrt.f32 %v4281_v53  ;;  %v4232_v56 = vadd.f32 %v4231_v9, %v4230_v0  ;;  %6703 = vadd.xlane.f32.xlu0 %v6702_v22  ;;  %v4197_v27 = vmul.f32 0.03125, %v4159_v47  ;;  %v4191_v3 = vmul.f32 0.03125, %v4141_v14 }
 0xa43   : > { %16147 = vst [vmem:[#allocation10_spill] sm:$0xff] %v13635_v55  ;;  %16149 = vst [vmem:[#allocation44_spill] sm:$0xff] %v13638_v54  ;;  %10490 = vrsqrt.f32 %v4283_v42  ;;  %v4255_v21 = vadd.f32 %v4194_v39, %v4193_v44  ;;  %v6714_v50 = vsel %vm16150_vm8, %v6636_v13, 0.0  ;;  %v6637_v11 = vmul.f32 %v13635_v55, %v13635_v55  ;;  %v16154_v44 = vld [vmem:[#allocation11_spill] sm:$0xff]  ;;  %v16187_v55 = vld [vmem:[#allocation46_spill] sm:$0xff] }
 0xa44   : > { %v4233_v52 = vrot.slane %v4232_v56, 2  ;;  %v4264_v17 = vadd.f32 %v4198_v57, %v4197_v27  ;;  %v6638_v43 = vmul.f32 %v13638_v54, %v13638_v54  ;;  %v6580_v41 = vmul.f32 0.03125, %v6572_v38  ;;  %v16158_v38 = vld [vmem:[#allocation40_spill] sm:$0xff]  ;;  %vm16208_vm8 = vmmov %vm16165_vm2 }
 0xa45   : > { %v13645_v63 = vadd.f32 %v4246_v7, %v4191_v3  ;;  %v4132_v34 = vpop.xlane.xlu0 %4131  ;;  %v6717_v18 = vsel %vm16151_vm9, %v6637_v11, 0.0  ;;  %v4165_v46 = vpop.xlane.xlu1 %4164  ;;  %v13649_v20 = vsub.f32 %v16152_v48, %v6579_v36  ;;  %v13652_v1 = vsub.f32 %v16154_v44, %v6579_v36  ;;  %vm16209_vm9 = vmmov %vm16165_vm2 }
 0xa46   : > { %v4234_v24 = vadd.f32 %v4233_v52, %v4232_v56  ;;  %6715 = vadd.xlane.f32.xlu0 %v6714_v50  ;;  %v4188_v0 = vmul.f32 0.03125, %v4132_v34  ;;  %6718 = vadd.xlane.f32.xlu1 %v6717_v18  ;;  %v4199_v37 = vmul.f32 0.03125, %v4165_v46  ;;  %v13655_v39 = vsub.f32 %v16156_v61, %v6580_v41  ;;  %v16167_v18 = vld [vmem:[#allocation17_spill] sm:$0xff] }
 0xa47   : > { %16153 = vst [vmem:[#allocation7_spill] sm:$0xff] %v13649_v20  ;;  %16155 = vst [vmem:[#allocation29_spill] sm:$0xff] %v13652_v1  ;;  %v13658_v7 = vsub.f32 %v16158_v38, %v6580_v41  ;;  %v13661_v53 = vsub.f32 %v16160_v45, %v6580_v41  ;;  %v6639_v9 = vmul.f32 %v13649_v20, %v13649_v20  ;;  %v6720_v42 = vsel %vm16162_vm10, %v6638_v43, 0.0 }
 0xa48   : > { %16157 = vst [vmem:[#allocation11_spill] sm:$0xff] %v13655_v39  ;;  %v6640_v36 = vmul.f32 %v13652_v1, %v13652_v1  ;;  %v4235_v22 = vrot.slane %v4234_v24, 1  ;;  %v4239_v57 = vadd.f32 %v13617_v62, %v4188_v0  ;;  %v6642_v47 = vmul.f32 %v13655_v39, %v13655_v39 }
 0xa49   : > { %16159 = vst [vmem:[#allocation43_spill] sm:$0xff] %v13658_v7  ;;  %16161 = vst [vmem:[#allocation40_spill] sm:$0xff] %v13661_v53  ;;  %v13671_v13 = vpop.eup %10486  ;;  %v4265_v14 = vadd.f32 %v4264_v17, %v4199_v37  ;;  %v4153_v35 = vpop.xlane.xlu0 %4152  ;;  %v6641_v31 = vmul.f32 %v13658_v7, %v13658_v7  ;;  %v6643_v27 = vmul.f32 %v13661_v53, %v13661_v53  ;;  %v6723_v3 = vsel %vm16163_vm12, %v6639_v9, 0.0  ;;  %v16169_v37 = vld [vmem:[#allocation55_spill] sm:$0xff]  ;;  %v16171_v9 = vld [vmem:[#allocation54_spill] sm:$0xff] }
 0xa4a   : > { %v4156_v56 = vpop.xlane.xlu1 %4155  ;;  %v4236_v50 = vadd.f32 %v4235_v22, %v4234_v24  ;;  %v4240_v62 = vrot.slane %v4239_v57, 4  ;;  %6721 = vadd.xlane.f32.xlu0 %v6720_v42  ;;  %v4195_v11 = vmul.f32 0.03125, %v4153_v35  ;;  %v6732_v52 = vsel %vm16164_vm13, %v6642_v47, 0.0  ;;  %v16172_v42 = vld [vmem:[#allocation65_spill] sm:$0xff]  ;;  %vm16210_vm12 = vmmov %vm16165_vm2 }
 0xa4b   : > { %6733 = vadd.xlane.f32.xlu1 %v6732_v52  ;;  %v6729_v43 = vsel %vm16165_vm2, %v6641_v31, 0.0  ;;  %v4196_v17 = vmul.f32 0.03125, %v4156_v56  ;;  %v6726_v34 = vsel %vm16166_vm14, %v6640_v36, 0.0  ;;  %v13682_v46 = vsub.f32 %v16167_v18, %v6580_v41  ;;  %v16174_v18 = vld [vmem:[#allocation52_spill] sm:$0xff]  ;;  %vm16211_vm14 = vmmov %vm16173_vm5 }
 0xa4c   : > { %v4276_v48 = vmul.f32 0.03125, %v4236_v50  ;;  %v4241_v44 = vadd.f32 %v4240_v62, %v4239_v57  ;;  %v4256_v0 = vadd.f32 %v4255_v21, %v4195_v11  ;;  %v4301_v24 = vmul.f32 %v13671_v13, %v16169_v37 }
 0xa4d   : > { %16168 = vst [vmem:[#allocation15_spill] sm:$0xff] %v13682_v46  ;;  %v4144_v61 = vpop.xlane.xlu0 %4143  ;;  %v6735_v38 = vsel %vm16170_vm15, %v6643_v27, 0.0  ;;  %v6644_v45 = vmul.f32 %v13682_v46, %v13682_v46  ;;  %v4302_v22 = vmul.f32 %v13671_v13, %v16171_v9  ;;  %v4303_v36 = vmul.f32 %v13671_v13, %v16172_v42  ;;  %vm16214_vm15 = vmmov %vm16173_vm5 }
 0xa4e   : > { %v4284_v41 = vadd.f32 1e-05, %v4276_v48  ;;  %v4242_v47 = vrot.slane %v4241_v44, 2  ;;  %6730 = vadd.xlane.f32.xlu0 %v6729_v43  ;;  %v4257_v57 = vadd.f32 %v4256_v0, %v4196_v17  ;;  %v4192_v21 = vmul.f32 0.03125, %v4144_v61  ;;  %v16175_v0 = vld [vmem:[#allocation28_spill] sm:$0xff] }
 0xa4f   : > { %vm4373_vm0 = vcmask 1042434   ;;  %v13693_v35 = vpop.eup %10488  ;;  %6736 = vadd.xlane.f32.xlu1 %v6735_v38  ;;  %v6738_v31 = vsel %vm16173_vm5, %v6644_v45, 0.0  ;;  %v13696_v56 = vmax.f32 %v4301_v24, 0.0  ;;  %v13698_v27 = vmax.f32 %v4302_v22, 0.0 }
 0xa50   : > { %v13700_v50 = vmax.f32 %v4303_v36, 0.0  ;;  %v13702_v62 = vpop.eup %10490  ;;  %10492 = vrsqrt.f32 %v4284_v41  ;;  %v4243_v11 = vadd.f32 %v4242_v47, %v4241_v44  ;;  %v4258_v52 = vrot.slane %v4257_v57, 4 }
 0xa51   : > { %v4248_v43 = vadd.f32 %v13645_v63, %v4192_v21  ;;  %v4168_v17 = vpop.xlane.xlu0 %4167  ;;  %v4297_v48 = vmul.f32 %v13693_v35, %v16174_v18  ;;  %v4305_v37 = vmul.f32 %v13702_v62, %v16175_v0  ;;  %v4466_v24 = vrot.slane %v13696_v56, 4 }
 0xa52   : > { %v4484_v61 = vrot.slane %v13696_v56, 5  ;;  %v4244_v38 = vrot.slane %v4243_v11, 1  ;;  %v4259_v45 = vadd.f32 %v4258_v52, %v4257_v57  ;;  %6724 = vadd.xlane.f32.xlu0 %v6723_v3  ;;  %v4200_v22 = vmul.f32 0.03125, %v4168_v17 }
 0xa53   : > { %v4249_v9 = vrot.slane %v4248_v43, 4  ;;  %6727 = vadd.xlane.f32.xlu1 %v6726_v34  ;;  %v13711_v44 = vmax.f32 %v4297_v48, 0.0  ;;  %v13713_v63 = vmax.f32 %v4305_v37, 0.0  ;;  %v4502_v42 = vrot.slane %v13696_v56, 6 }
 0xa54   : > { %v4412_v36 = vrot.slane %v13696_v56, 1  ;;  %v4245_v41 = vadd.f32 %v4244_v38, %v4243_v11  ;;  %v4260_v47 = vrot.slane %v4259_v45, 2  ;;  %v4266_v18 = vadd.f32 %v4265_v14, %v4200_v22 }
 0xa55   : > { %v4250_v21 = vadd.f32 %v4249_v9, %v4248_v43  ;;  %v4465_v0 = vrot.slane %v13711_v44, 5  ;;  %v4468_v57 = vrot.slane %v13713_v63, 3  ;;  %v4392_v3 = vrot.slane %v13711_v44, 1 }
 0xa56   : > { %v4394_v34 = vrot.slane %v13713_v63, 7  ;;  %v4277_v52 = vmul.f32 0.03125, %v4245_v41  ;;  %v4261_v17 = vadd.f32 %v4260_v47, %v4259_v45  ;;  %v4267_v37 = vrot.slane %v4266_v18, 4  ;;  %6739 = vadd.xlane.f32.xlu0 %v6738_v31 }
 0xa57   : > { %v4251_v48 = vrot.slane %v4250_v21, 2  ;;  %v4467_v46 = vsel %vm4370_vm1, %v4466_v24, %v4465_v0  ;;  %v4393_v11 = vsel %vm4370_vm1, %v13696_v56, %v4392_v3  ;;  %v4483_v14 = vrot.slane %v13711_v44, 6 }
 0xa58   : > { %v4486_v43 = vrot.slane %v13713_v63, 4  ;;  %v4285_v38 = vadd.f32 1e-05, %v4277_v52  ;;  %v4262_v9 = vrot.slane %v4261_v17, 1  ;;  %v4268_v1 = vadd.f32 %v4267_v37, %v4266_v18 }
 0xa59   : > { %v4252_v22 = vadd.f32 %v4251_v48, %v4250_v21  ;;  %vm4376_vm6 = vcmask 1043459   ;;  %v4469_v41 = vsel %vm4373_vm0, %v4468_v57, %v4467_v46  ;;  %v4395_v45 = vsel %vm4373_vm0, %v4394_v34, %v4393_v11 }
 0xa5a   : > { %v4485_v31 = vsel %vm4370_vm1, %v4484_v61, %v4483_v14  ;;  %v4501_v24 = vrot.slane %v13711_v44, 7  ;;  %10494 = vrsqrt.f32 %v4285_v38  ;;  %v4263_v47 = vadd.f32 %v4262_v9, %v4261_v17  ;;  %v16176_v9 = vld [vmem:[#allocation63_spill] sm:$0xff] }
 0xa5b   : > { %v4253_v0 = vrot.slane %v4252_v22, 1  ;;  %v4269_v3 = vrot.slane %v4268_v1, 2  ;;  %v4487_v5 = vsel %vm4373_vm0, %v4486_v43, %v4485_v31  ;;  %v4504_v21 = vrot.slane %v13713_v63, 5 }
 0xa5c   : > { %v4503_v52 = vsel %vm4370_vm1, %v4502_v42, %v4501_v24  ;;  %v4411_v18 = vrot.slane %v13711_v44, 2  ;;  %v4279_v48 = vmul.f32 0.03125, %v4263_v47  ;;  %v4430_v34 = vrot.slane %v13711_v44, 3  ;;  %v16177_v24 = vld [vmem:[#allocation21_spill] sm:$0xff] }
 0xa5d   : > { %v4254_v46 = vadd.f32 %v4253_v0, %v4252_v22  ;;  %v4270_v57 = vadd.f32 %v4269_v3, %v4268_v1  ;;  %v13735_v61 = vpop.eup %10492  ;;  %v4505_v37 = vsel %vm4373_vm0, %v4504_v21, %v4503_v52  ;;  %v4431_v11 = vrot.slane %v13696_v56, 2  ;;  %v16178_v0 = vld [vmem:[#allocation56_spill] sm:$0xff] }
 0xa5e   : > { %v4413_v17 = vsel %vm4370_vm1, %v4412_v36, %v4411_v18  ;;  %v4433_v14 = vrot.slane %v13713_v63, 1  ;;  %v4287_v42 = vadd.f32 1e-05, %v4279_v48  ;;  %v4309_v31 = vmul.f32 %v13735_v61, %v16176_v9  ;;  %v16179_v48 = vld [vmem:[#allocation60_spill] sm:$0xff] }
 0xa5f   : > { %v4278_v43 = vmul.f32 0.03125, %v4254_v46  ;;  %v4271_v38 = vrot.slane %v4270_v57, 1  ;;  %v4414_v1 = vsel %vm4373_vm0, %v13713_v63, %v4413_v17  ;;  %v4432_v22 = vsel %vm4370_vm1, %v4431_v11, %v4430_v34 }
 0xa60   : > { %v4298_v47 = vmul.f32 %v13693_v35, %v16177_v24  ;;  %v4306_v36 = vmul.f32 %v13702_v62, %v16178_v0  ;;  %10496 = vrsqrt.f32 %v4287_v42  ;;  %v13750_v21 = vmax.f32 %v4309_v31, 0.0 }
 0xa61   : > { %v4286_v3 = vadd.f32 1e-05, %v4278_v43  ;;  %v4272_v52 = vadd.f32 %v4271_v38, %v4270_v57  ;;  %v4434_v18 = vsel %vm4373_vm0, %v4433_v14, %v4432_v22  ;;  %v4310_v46 = vmul.f32 %v13735_v61, %v16179_v48 }
 0xa62   : > { %v13755_v9 = vmax.f32 %v4298_v47, 0.0  ;;  %v13757_v17 = vmax.f32 %v4306_v36, 0.0  ;;  %v4470_v11 = vrot.slane %v13750_v21, 2  ;;  %v4396_v24 = vrot.slane %v13750_v21, 6 }
 0xa63   : > { %10498 = vrsqrt.f32 %v4286_v3  ;;  %v4280_v34 = vmul.f32 0.03125, %v4272_v52  ;;  %v4488_v42 = vrot.slane %v13750_v21, 3  ;;  %v4506_v57 = vrot.slane %v13750_v21, 4 }
 0xa64   : > { %v4415_v43 = vrot.slane %v13750_v21, 7  ;;  %v4435_v14 = vsel %vm4376_vm6, %v13750_v21, %v4434_v18  ;;  %v4471_v31 = vsel %vm4376_vm6, %v4470_v11, %v4469_v41  ;;  %v4397_v22 = vsel %vm4376_vm6, %v4396_v24, %v4395_v45  ;;  %v16181_v24 = vld [vmem:[#allocation6_spill] sm:$0xff] }
 0xa65   : > { %v4288_v38 = vadd.f32 1e-05, %v4280_v34  ;;  %v13768_v47 = vmax.f32 %v4310_v46, 0.0  ;;  %vm4379_vm3 = vcmask 1044484   ;;  %v4489_v0 = vsel %vm4376_vm6, %v4488_v42, %v4487_v5 }
 0xa66   : > { %v4507_v36 = vsel %vm4376_vm6, %v4506_v57, %v4505_v37  ;;  %v4416_v3 = vsel %vm4376_vm6, %v4415_v43, %v4414_v1  ;;  %v4613_v52 = vrot.slane %v13755_v9, 5  ;;  %v4614_v48 = vrot.slane %v13698_v27, 4  ;;  %v16180_v1 = vld [vmem:[#allocation57_spill] sm:$0xff] }
 0xa67   : > { %10500 = vrsqrt.f32 %v4288_v38  ;;  %v4616_v18 = vrot.slane %v13757_v17, 3  ;;  %v4618_v41 = vrot.slane %v13768_v47, 2  ;;  %v13777_v34 = vpop.eup %10494  ;;  %v4631_v45 = vrot.slane %v13755_v9, 6 }
 0xa68   : > { %v4632_v46 = vrot.slane %v13698_v27, 5  ;;  %v4634_v5 = vrot.slane %v13757_v17, 4  ;;  %v4636_v37 = vrot.slane %v13768_v47, 3  ;;  %v4313_v11 = vmul.f32 %v13777_v34, %v16180_v1 }
 0xa69   : > { %v4314_v42 = vmul.f32 %v13777_v34, %v16181_v24  ;;  %v4615_v57 = vsel %vm4370_vm1, %v4614_v48, %v4613_v52  ;;  %v4543_v43 = vrot.slane %v13755_v9, 1  ;;  %vm4382_vm7 = vcmask 1045509  }
 0xa6a   : > { %v4617_v38 = vsel %vm4373_vm0, %v4616_v18, %v4615_v57  ;;  %v4633_v40 = vsel %vm4370_vm1, %v4632_v46, %v4631_v45  ;;  %v4545_v12 = vrot.slane %v13757_v17, 7  ;;  %v13793_v4 = vmax.f32 %v4313_v11, 0.0 }
 0xa6b   : > { %vm4385_vm4 = vcmask 1046534   ;;  %v13795_v1 = vmax.f32 %v4314_v42, 0.0  ;;  %v4619_v24 = vsel %vm4376_vm6, %v4618_v41, %v4617_v38  ;;  %v4635_v52 = vsel %vm4373_vm0, %v4634_v5, %v4633_v40  ;;  %v16182_v38 = vld [vmem:[#allocation8_spill] sm:$0xff] }
 0xa6c   : > { %v4637_v48 = vsel %vm4376_vm6, %v4636_v37, %v4635_v52  ;;  %v4544_v18 = vsel %vm4370_vm1, %v13698_v27, %v4543_v43  ;;  %v4472_v57 = vrot.slane %v13793_v4, 1  ;;  %v4398_v11 = vrot.slane %v13793_v4, 5 }
 0xa6d   : > { %v4490_v42 = vrot.slane %v13793_v4, 2  ;;  %v4508_v26 = vrot.slane %v13793_v4, 3  ;;  %v13808_v41 = vpop.eup %10496  ;;  %v4417_v40 = vrot.slane %v13793_v4, 6  ;;  %v4436_v5 = vrot.slane %v13793_v4, 7 }
 0xa6e   : > { %v4620_v37 = vrot.slane %v13795_v1, 1  ;;  %v4638_v43 = vrot.slane %v13795_v1, 2  ;;  %v4321_v52 = vmul.f32 %v13808_v41, %v16182_v38  ;;  %vm4388_vm11 = vcmask 1047559  }
 0xa6f   : > { %v4473_v46 = vsel %vm4379_vm3, %v4472_v57, %v4471_v31  ;;  %v4399_v45 = vsel %vm4379_vm3, %v4398_v11, %v4397_v22  ;;  %v4491_v49 = vsel %vm4379_vm3, %v4490_v42, %v4489_v0  ;;  %v4509_v20 = vsel %vm4379_vm3, %v4508_v26, %v4507_v36  ;;  %v16185_v31 = vld [vmem:[#allocation18_spill] sm:$0xff] }
 0xa70   : > { %v13819_v53 = vpop.eup %10498  ;;  %v4418_v23 = vsel %vm4379_vm3, %v4417_v40, %v4416_v3  ;;  %v4437_v51 = vsel %vm4379_vm3, %v4436_v5, %v4435_v14  ;;  %v4322_v8 = vmul.f32 %v13808_v41, %v16183_v29  ;;  %v13828_v15 = vmax.f32 %v4321_v52, 0.0  ;;  %v10326_v52 = vld [vmem:[%s15533_s5 + $0x78] sm:$0xff]  }
 0xa71   : > { %v4317_v38 = vmul.f32 %v13819_v53, %v16184_v6  ;;  %v4318_v22 = vmul.f32 %v13819_v53, %v16185_v31  ;;  %v13833_v0 = vsel %vm4379_vm3, %v4620_v37, %v4619_v24  ;;  %v13838_v26 = vsel %vm4379_vm3, %v4638_v43, %v4637_v48  ;;  %v10328_v31 = vld [vmem:[%s15533_s5 + $0x70] sm:$0xff]   ;;  %9600 = vmatprep.subr.bf16.mxu1 %v10326_v52 }
 0xa72   : > { %v13835_v57 = vmax.f32 %v4322_v8, 0.0  ;;  %v13841_v14 = vsel %vm4373_vm0, %v4545_v12, %v4544_v18  ;;  %v4475_v6 = vrot.slane %v13828_v15, 7  ;;  %v4402_v3 = vrot.slane %v13828_v15, 3  ;;  %v16186_v18 = vld [vmem:[#allocation19_spill] sm:$0xff] }
 0xa73   : > { %v13844_v36 = vmax.f32 %v4317_v38, 0.0  ;;  %v4512_v11 = vrot.slane %v13828_v15, 1  ;;  %v4421_v8 = vrot.slane %v13828_v15, 4  ;;  %v4440_v48 = vrot.slane %v13828_v15, 5  ;;  %v10327_v38 = vld [vmem:[%s15533_s5 + $0x38] sm:$0xff]  }
 0xa74   : > { %v13849_v24 = vpop.eup %10500  ;;  %v13853_v42 = vmax.f32 %v4318_v22, 0.0  ;;  %v4623_v12 = vrot.slane %v13835_v57, 7  ;;  %9601 = vmatpush3.bf16.msra.mxu1 %v10327_v38  ;;  %v10340_v38 = vld [vmem:[%s15533_s5 + $0xb0] sm:$0xff]   ;;  %v4780_v32 = vrot.slane %v13700_v50, 5  ;;  %vm4409_vm10 = vcmask 523520  }
 0xa75   : > { %v4325_v40 = vmul.f32 %v13849_v24, %v16186_v18  ;;  %v4474_v5 = vsel %vm4382_vm7, %v13844_v36, %v4473_v46  ;;  %v4400_v37 = vrot.slane %v13844_v36, 4  ;;  %v4492_v43 = vrot.slane %v13844_v36, 1  ;;  %9602 = vmatprep.subr.bf16.mxu1 %v10328_v31 }
 0xa76   : > { %v4476_v22 = vsel %vm4385_vm4, %v4475_v6, %v4474_v5  ;;  %v4510_v46 = vrot.slane %v13844_v36, 2  ;;  %v4419_v18 = vrot.slane %v13844_v36, 5  ;;  %v4438_v29 = vrot.slane %v13844_v36, 6  ;;  %v10334_v6 = vld [vmem:[%s15533_s5 + $0xf8] sm:$0xff]  }
 0xa77   : > { %v13875_v39 = vmax.f32 %v4325_v40, 0.0  ;;  %v4401_v7 = vsel %vm4382_vm7, %v4400_v37, %v4399_v45  ;;  %v4493_v54 = vsel %vm4382_vm7, %v4492_v43, %v4491_v49  ;;  %v4326_v16 = vmul.f32 %v13849_v24, %v16187_v55  ;;  %v10336_v49 = vld [vmem:[%s15533_s5 + $0xb8] sm:$0xff]   ;;  %9622 = vmatprep.subr.bf16.mxu0 %v10334_v6 }
 0xa78   : > { %v4403_v5 = vsel %vm4385_vm4, %v4402_v3, %v4401_v7  ;;  %v4494_v19 = vsel %vm4385_vm4, %v13828_v15, %v4493_v54  ;;  %v4511_v40 = vsel %vm4382_vm7, %v4510_v46, %v4509_v20  ;;  %v4420_v59 = vsel %vm4382_vm7, %v4419_v18, %v4418_v23  ;;  %v10329_v54 = vld [vmem:[%s15533_s5 + $0x30] sm:$0xff]   ;;  %9623 = vmatpush3.bf16.msra.mxu0 %v10336_v49 }
 0xa79   : > { %v4477_v55 = vrot.slane %v13875_v39, 6  ;;  %v4404_v45 = vrot.slane %v13875_v39, 2  ;;  %v4495_v37 = vrot.slane %v13875_v39, 7  ;;  %v4513_v7 = vsel %vm4385_vm4, %v4512_v11, %v4511_v40  ;;  %v10338_v23 = vld [vmem:[%s15533_s5 + $0xf0] sm:$0xff]   ;;  %v10330_v11 = vld [vmem:[%s15533_s5 + $0x68] sm:$0xff]   ;;  %9603 = vmatpush3.bf16.msra.mxu1 %v10329_v54 }
 0xa7a   : > { %v4514_v20 = vsel %vm4388_vm11, %v13875_v39, %v4513_v7  ;;  %v4422_v3 = vsel %vm4385_vm4, %v4421_v8, %v4420_v59  ;;  %v4423_v43 = vrot.slane %v13875_v39, 3  ;;  %v4439_v52 = vsel %vm4382_vm7, %v4438_v29, %v4437_v51  ;;  %9624 = vmatprep.subr.bf16.mxu0 %v10338_v23  ;;  %v10342_v51 = vld [vmem:[%s15533_s5 + $0xe8] sm:$0xff]   ;;  %9604 = vmatprep.subr.bf16.mxu1 %v10330_v11 }
 0xa7b   : > { %v4478_v31 = vsel %vm4388_vm11, %v4477_v55, %v4476_v22  ;;  %v4405_v46 = vsel %vm4388_vm11, %v4404_v45, %v4403_v5  ;;  %v4496_v18 = vsel %vm4388_vm11, %v4495_v37, %v4494_v19  ;;  %v4441_v59 = vsel %vm4385_vm4, %v4440_v48, %v4439_v52  ;;  %v10344_v7 = vld [vmem:[%s15533_s5 + $0xa8] sm:$0xff]   ;;  %v10346_v52 = vld [vmem:[%s15533_s5 + $0xe0] sm:$0xff]  }
 0xa7c   : > { %4479 = vrot.lane.b32.xlu1 %v4478_v31, %s10618_s25  ;;  %4406 = vrot.lane.b32.xlu0 %v4405_v46, %s10618_s25  ;;  %v4424_v29 = vsel %vm4388_vm11, %v4423_v43, %v4422_v3  ;;  %v4442_v8 = vrot.slane %v13875_v39, 4  ;;  %v13924_v22 = vmax.f32 %v4326_v16, 0.0  ;;  %v4622_v19 = vsel %vm4382_vm7, %v13853_v42, %v13833_v0  ;;  %v10331_v16 = vld [vmem:[%s15533_s5 + $0x28] sm:$0xff]  }
 0xa7d   : > { %v4624_v48 = vsel %vm4385_vm4, %v4623_v12, %v4622_v19  ;;  %v4640_v6 = vrot.slane %v13853_v42, 1  ;;  %v16188_v5 = vrot.slane %v13768_v47, 6  ;;  %v4551_v49 = vrot.slane %v13853_v42, 4  ;;  %9625 = vmatpush3.bf16.msra.mxu0 %v10340_v38  ;;  %9605 = vmatpush3.bf16.msra.mxu1 %v10331_v16  ;;  %v10333_v19 = vld [vmem:[%s15533_s5 + $0x20] sm:$0xff]  }
 0xa7e   : > { %v4443_v55 = vsel %vm4388_vm11, %v4442_v8, %v4441_v59  ;;  %v4625_v0 = vrot.slane %v13924_v22, 6  ;;  %v4643_v12 = vrot.slane %v13924_v22, 7  ;;  %v16189_v45 = vrot.slane %v13795_v1, 5  ;;  %9626 = vmatprep.subr.bf16.mxu0 %v10342_v51 }
 0xa7f   : > { %v4548_v40 = vsel %vm4376_vm6, %v16188_v5, %v13841_v14  ;;  %v10332_v14 = vld [vmem:[%s15533_s5 + $0x60] sm:$0xff]   ;;  %v4641_v54 = vsel %vm4382_vm7, %v4640_v6, %v13838_v26  ;;  %v4553_v3 = vrot.slane %v13835_v57, 3  ;;  %v4555_v43 = vrot.slane %v13924_v22, 2 }
 0xa80   : > { %v4550_v37 = vsel %vm4379_vm3, %v16189_v45, %v4548_v40  ;;  %4497 = vrot.lane.b32.xlu1 %v4496_v18, %s10619_s24  ;;  %4515 = vrot.lane.b32.xlu0 %v4514_v20, %s10617_s22  ;;  %v4626_v11 = vsel %vm4388_vm11, %v4625_v0, %v4624_v48  ;;  %v4642_v26 = vsel %vm4385_vm4, %v13835_v57, %v4641_v54  ;;  %v16190_v38 = vrot.slane %v13755_v9, 7 }
 0xa81   : > { %v4552_v23 = vsel %vm4382_vm7, %v4551_v49, %v4550_v37  ;;  %v16191_v31 = vrot.slane %v13698_v27, 6  ;;  %v4652_v59 = vrot.slane %v13757_v17, 5  ;;  %v4644_v51 = vsel %vm4388_vm11, %v4643_v12, %v4642_v26  ;;  %9606 = vmatprep.subr.bf16.mxu1 %v10332_v14  ;;  %v10335_v49 = vld [vmem:[%s15533_s5 + $0x58] sm:$0xff]   ;;  %9627 = vmatpush3.bf16.msra.mxu0 %v10344_v7  ;;  %v10348_v37 = vld [vmem:[%s15533_s5 + $0xa0] sm:$0xff]   ;;  %v16192_v26 = vld [vmem:[#allocation58_spill] sm:$0xff] }
 0xa82   : > { %v4554_v8 = vsel %vm4385_vm4, %v4553_v3, %v4552_v23  ;;  %v4654_v18 = vrot.slane %v13768_v47, 4  ;;  %v4656_v20 = vrot.slane %v13795_v1, 3  ;;  %v4658_v5 = vrot.slane %v13853_v42, 2  ;;  %9628 = vmatprep.subr.bf16.mxu0 %v10346_v52  ;;  %9607 = vmatpush3.bf16.msra.mxu1 %v10333_v19  ;;  %v10339_v19 = vld [vmem:[%s15533_s5 + $0x50] sm:$0xff]  }
 0xa83   : > { %v4651_v46 = vsel %vm4370_vm1, %v16191_v31, %v16190_v38  ;;  %v13978_v48 = vsel %vm4388_vm11, %v4555_v43, %v4554_v8  ;;  %v4660_v40 = vrot.slane %v13835_v57, 1  ;;  %v4561_v0 = vrot.slane %v13755_v9, 2  ;;  %9608 = vmatprep.subr.bf16.mxu1 %v10335_v49  ;;  %v10351_v49 = vld [vmem:[%s15533_s5 + $0x98] sm:$0xff]  }
 0xa84   : > { %v4653_v6 = vsel %vm4373_vm0, %v4652_v59, %v4651_v46  ;;  %v4562_v12 = vrot.slane %v13698_v27, 1  ;;  %v4565_v45 = vrot.slane %v13768_v47, 7  ;;  %4425 = vrot.lane.b32.xlu1 %v4424_v29, %s10619_s24  ;;  %4444 = vrot.lane.b32.xlu0 %v4443_v55, %s10617_s22  ;;  %v4567_v7 = vrot.slane %v13795_v1, 6  ;;  %v10337_v29 = vld [vmem:[%s15533_s5 + $0x18] sm:$0xff]  }
 0xa85   : > { %v4655_v16 = vsel %vm4376_vm6, %v4654_v18, %v4653_v6  ;;  %v4569_v54 = vrot.slane %v13853_v42, 5  ;;  %v4571_v23 = vrot.slane %v13835_v57, 4  ;;  %v4573_v52 = vrot.slane %v13924_v22, 3  ;;  %v10350_v55 = vld [vmem:[%s15533_s5 + $0xd8] sm:$0xff]   ;;  %v16194_v18 = vld [vmem:[#allocation12_spill] sm:$0xff]  ;;  %9629 = vmatpush3.bf16.msra.mxu0 %v10348_v37 }
 0xa86   : > { %v4657_v14 = vsel %vm4379_vm3, %v4656_v20, %v4655_v16  ;;  %v4563_v43 = vsel %vm4370_vm1, %v4562_v12, %v4561_v0  ;;  %v4299_v38 = vmul.f32 %v13693_v35, %v16192_v26  ;;  %v16193_v59 = vld [vmem:[#allocation67_spill] sm:$0xff]  ;;  %v4311_v20 = vmul.f32 %v13735_v61, %v16194_v18  ;;  %v16196_v0 = vld [vmem:[#allocation14_spill] sm:$0xff]  ;;  %9609 = vmatpush3.bf16.msra.mxu1 %v10337_v29  ;;  %v10343_v29 = vld [vmem:[%s15533_s5 + $0x48] sm:$0xff]  }
 0xa87   : > { %v4659_v3 = vsel %vm4382_vm7, %v4658_v5, %v4657_v14  ;;  %v4564_v46 = vsel %vm4373_vm0, %v13757_v17, %v4563_v43  ;;  %v4307_v8 = vmul.f32 %v13702_v62, %v16193_v59  ;;  %v4319_v12 = vmul.f32 %v13819_v53, %v16196_v0  ;;  %v16198_v43 = vld [vmem:[#allocation32_spill] sm:$0xff]  ;;  %9630 = vmatprep.subr.bf16.mxu0 %v10350_v55 }
 0xa88   : > { %v4661_v31 = vsel %vm4385_vm4, %v4660_v40, %v4659_v3  ;;  %v4566_v5 = vsel %vm4376_vm6, %v4565_v45, %v4564_v46  ;;  %v16195_v40 = vld [vmem:[#allocation61_spill] sm:$0xff]  ;;  %4627 = vrot.lane.b32.xlu1 %v4626_v11, %s10618_s25  ;;  %4645 = vrot.lane.b32.xlu0 %v4644_v51, %s10619_s24  ;;  %v16197_v3 = vld [vmem:[#allocation47_spill] sm:$0xff]  ;;  %v4327_v26 = vmul.f32 %v13849_v24, %v16198_v43  ;;  %v14042_v59 = vmax.f32 %v4311_v20, 0.0  ;;  %v10341_v11 = vld [vmem:[%s15533_s5 + $0x10] sm:$0xff]  }
 0xa89   : > { %v4662_v6 = vsel %vm4388_vm11, %v13924_v22, %v4661_v31  ;;  %v4315_v16 = vmul.f32 %v13777_v34, %v16195_v40  ;;  %v4568_v14 = vsel %vm4379_vm3, %v4567_v7, %v4566_v5  ;;  %v4323_v45 = vmul.f32 %v13808_v41, %v16197_v3  ;;  %v10354_v51 = vld [vmem:[%s15533_s5 + $0xd0] sm:$0xff]   ;;  %9610 = vmatprep.subr.bf16.mxu1 %v10339_v19  ;;  %v10345_v3 = vld [vmem:[%s15533_s5 + $0x8] sm:$0xff]  }
 0xa8a   : > { %v14037_v31 = vmax.f32 %v4299_v38, 0.0  ;;  %v4570_v37 = vsel %vm4382_vm7, %v4569_v54, %v4568_v14  ;;  %v14040_v46 = vmax.f32 %v4307_v8, 0.0  ;;  %v14053_v38 = vmax.f32 %v4319_v12, 0.0  ;;  %9631 = vmatpush3.bf16.msra.mxu0 %v10351_v49  ;;  %v10358_v12 = vld [vmem:[%s15533_s5 + $0xc8] sm:$0xff]   ;;  %9611 = vmatpush3.bf16.msra.mxu1 %v10341_v11 }
 0xa8b   : > { %v14044_v18 = vmax.f32 %v4315_v16, 0.0  ;;  %v4572_v7 = vsel %vm4385_vm4, %v4571_v23, %v4570_v37  ;;  %v14055_v54 = vmax.f32 %v4323_v45, 0.0  ;;  %v14057_v8 = vmax.f32 %v4327_v26, 0.0  ;;  %v10355_v23 = vld [vmem:[%s15533_s5 + $0x90] sm:$0xff]   ;;  %9632 = vmatprep.subr.bf16.mxu0 %v10354_v51  ;;  %9612 = vmatprep.subr.bf16.mxu1 %v10343_v29 }
 0xa8c   : > { %v4574_v20 = vsel %vm4388_vm11, %v4573_v52, %v4572_v7  ;;  %v4761_v55 = vrot.slane %v14037_v31, 5  ;;  %v4762_v5 = vrot.slane %v13700_v50, 4  ;;  %v4764_v40 = vrot.slane %v14040_v46, 3  ;;  %4557 = vrot.lane.b32.xlu1 %v13978_v48, %s10618_s25  ;;  %4663 = vrot.lane.b32.xlu0 %v4662_v6, %s10617_s22  ;;  %v10347_v7 = vld [vmem:[%s15533_s5 + $0x40] sm:$0xff]  }
 0xa8d   : > { %v4766_v19 = vrot.slane %v14042_v59, 2  ;;  %v4768_v52 = vrot.slane %v14044_v18, 1  ;;  %v4771_v16 = vrot.slane %v14055_v54, 7  ;;  %v4773_v0 = vrot.slane %v14057_v8, 6 }
 0xa8e   : > { %v4763_v49 = vsel %vm4370_vm1, %v4762_v5, %v4761_v55  ;;  %v4579_v14 = vrot.slane %v13755_v9, 3  ;;  %v4580_v48 = vrot.slane %v13698_v27, 2  ;;  %v4582_v6 = vrot.slane %v13757_v17, 1  ;;  %9633 = vmatpush3.bf16.msra.mxu0 %v10355_v23  ;;  %9613 = vmatpush3.bf16.msra.mxu1 %v10345_v3 }
 0xa8f   : > { %v4765_v45 = vsel %vm4373_vm0, %v4764_v40, %v4763_v49  ;;  %v4585_v43 = vrot.slane %v13795_v1, 7  ;;  %v4587_v26 = vrot.slane %v13853_v42, 6  ;;  %v4589_v37 = vrot.slane %v13835_v57, 5  ;;  %v10359_v40 = vld [vmem:[%s15533_s5 + $0x88] sm:$0xff]   ;;  %9634 = vmatprep.subr.bf16.mxu0 %v10358_v12  ;;  %9614 = vmatprep.subr.bf16.mxu1 %v10347_v7 }
 0xa90   : > { %v4767_v11 = vsel %vm4376_vm6, %v4766_v19, %v4765_v45  ;;  %v4581_v55 = vsel %vm4370_vm1, %v4580_v48, %v4579_v14  ;;  %v4591_v5 = vrot.slane %v13924_v22, 4  ;;  %v4779_v51 = vrot.slane %v14037_v31, 6  ;;  %4575 = vrot.lane.b32.xlu1 %v4574_v20, %s10619_s24  ;;  %v10349_v20 = vld [vmem:[%s15533_s5] sm:$0xff]  }
 0xa91   : > { %v4769_v29 = vsel %vm4379_vm3, %v4768_v52, %v4767_v11  ;;  %v4583_v49 = vsel %vm4373_vm0, %v4582_v6, %v4581_v55  ;;  %v4782_v19 = vrot.slane %v14040_v46, 4  ;;  %v4784_v48 = vrot.slane %v14042_v59, 3  ;;  %v10352_v55 = vld [vmem:[%s15533_s5 + $0x178] sm:$0xff]  }
 0xa92   : > { %v4770_v14 = vsel %vm4382_vm7, %v14053_v38, %v4769_v29  ;;  %v4584_v23 = vsel %vm4376_vm6, %v13768_v47, %v4583_v49  ;;  %v4786_v45 = vrot.slane %v14044_v18, 2  ;;  %v4781_v12 = vsel %vm4370_vm1, %v4780_v32, %v4779_v51  ;;  %9635 = vmatpush3.bf16.msra.mxu0 %v10359_v40  ;;  %9615 = vmatpush3.bf16.msra.mxu1 %v10349_v20 }
 0xa93   : > { %v4772_v52 = vsel %vm4385_vm4, %v4771_v16, %v4770_v14  ;;  %v4586_v6 = vsel %vm4379_vm3, %v4585_v43, %v4584_v23  ;;  %v4788_v11 = vrot.slane %v14053_v38, 1  ;;  %v4783_v49 = vsel %vm4373_vm0, %v4782_v19, %v4781_v12  ;;  %9644 = vmatprep.subr.bf16.mxu1 %v10352_v55 }
 0xa94   : > { %v4774_v29 = vsel %vm4388_vm11, %v4773_v0, %v4772_v52  ;;  %v4588_v3 = vsel %vm4382_vm7, %v4587_v26, %v4586_v6  ;;  %v4791_v2 = vrot.slane %v14057_v8, 7  ;;  %v4785_v16 = vsel %vm4376_vm6, %v4784_v48, %v4783_v49  ;;  %v10362_v0 = vld [vmem:[%s15533_s5 + $0xc0] sm:$0xff]  }
 0xa95   : > { %4775 = vrot.lane.b32.xlu0 %v4774_v29, %s10618_s25  ;;  %v4590_v32 = vsel %vm4385_vm4, %v4589_v37, %v4588_v3  ;;  %v4691_v43 = vrot.slane %v14037_v31, 1  ;;  %v4693_v7 = vrot.slane %v14040_v46, 7  ;;  %v10363_v26 = vld [vmem:[%s15533_s5 + $0x80] sm:$0xff]   ;;  %v4787_v40 = vsel %vm4379_vm3, %v4786_v45, %v4785_v16  ;;  %9636 = vmatprep.subr.bf16.mxu0 %v10362_v0 }
 0xa96   : > { %v4592_v51 = vsel %vm4388_vm11, %v4591_v5, %v4590_v32  ;;  %v4695_v37 = vrot.slane %v14042_v59, 6  ;;  %v4697_v19 = vrot.slane %v14044_v18, 5  ;;  %v4789_v14 = vsel %vm4382_vm7, %v4788_v11, %v4787_v40  ;;  %9637 = vmatpush3.bf16.msra.mxu0 %v10363_v26 }
 0xa97   : > { %4593 = vrot.lane.b32.xlu1 %v4592_v51, %s10617_s22  ;;  %v4692_v23 = vsel %vm4370_vm1, %v13700_v50, %v4691_v43  ;;  %v4699_v48 = vrot.slane %v14053_v38, 4  ;;  %v4701_v52 = vrot.slane %v14055_v54, 3  ;;  %v4790_v5 = vsel %vm4385_vm4, %v14055_v54, %v4789_v14  ;;  %v6650_v11 = vpop.xlane.xlu0 %6649  ;;  %v6647_v29 = vpop.xlane.xlu1 %6646 }
 0xa98   : > { %v4694_v45 = vsel %vm4373_vm0, %v4693_v7, %v4692_v23  ;;  %v4703_v6 = vrot.slane %v14057_v8, 2  ;;  %v4797_v20 = vrot.slane %v14037_v31, 7  ;;  %v4792_v12 = vsel %vm4388_vm11, %v4791_v2, %v4790_v5 }
 0xa99   : > { %v4696_v3 = vsel %vm4376_vm6, %v4695_v37, %v4694_v45  ;;  %v4798_v49 = vrot.slane %v13700_v50, 6  ;;  %v4800_v55 = vrot.slane %v14040_v46, 5  ;;  %4793 = vrot.lane.b32.xlu0 %v4792_v12, %s10619_s24  ;;  %v6742_v32 = vmul.f32 0.03125, %v6650_v11 }
 0xa9a   : > { %v6741_v16 = vmul.f32 0.03125, %v6647_v29  ;;  %v4698_v43 = vsel %vm4379_vm3, %v4697_v19, %v4696_v3  ;;  %v4802_v7 = vrot.slane %v14042_v59, 4  ;;  %v4804_v51 = vrot.slane %v14044_v18, 3 }
 0xa9b   : > { %v4700_v0 = vsel %vm4382_vm7, %v4699_v48, %v4698_v43  ;;  %v4799_v2 = vsel %vm4370_vm1, %v4798_v49, %v4797_v20  ;;  %v4806_v40 = vrot.slane %v14053_v38, 2  ;;  %v4808_v23 = vrot.slane %v14055_v54, 1  ;;  %v6656_v45 = vpop.xlane.xlu0 %6655  ;;  %v6653_v12 = vpop.xlane.xlu1 %6652 }
 0xa9c   : > { %v6773_v37 = vadd.f32 %v6742_v32, %v6741_v16  ;;  %v4702_v14 = vsel %vm4385_vm4, %v4701_v52, %v4700_v0  ;;  %v4801_v26 = vsel %vm4373_vm0, %v4800_v55, %v4799_v2  ;;  %v4709_v48 = vrot.slane %v14037_v31, 2 }
 0xa9d   : > { %v4704_v5 = vsel %vm4388_vm11, %v4703_v6, %v4702_v14  ;;  %v4803_v19 = vsel %vm4376_vm6, %v4802_v7, %v4801_v26  ;;  %v4710_v20 = vrot.slane %v13700_v50, 1  ;;  %v6744_v29 = vmul.f32 0.03125, %v6656_v45  ;;  %v10366_v6 = vld [vmem:[%s15533_s5 + $0x1f8] sm:$0xff]  }
 0xa9e   : > { %4705 = vrot.lane.b32.xlu1 %v4704_v5, %s10618_s25  ;;  %v4805_v11 = vsel %vm4379_vm3, %v4804_v51, %v4803_v19  ;;  %v6743_v52 = vmul.f32 0.03125, %v6653_v12  ;;  %v4713_v3 = vrot.slane %v14042_v59, 7  ;;  %v4715_v32 = vrot.slane %v14044_v18, 6  ;;  %9666 = vmatprep.subr.bf16.mxu0 %v10366_v6 }
 0xa9f   : > { %v4807_v49 = vsel %vm4382_vm7, %v4806_v40, %v4805_v11  ;;  %v4711_v55 = vsel %vm4370_vm1, %v4710_v20, %v4709_v48  ;;  %v4717_v16 = vrot.slane %v14053_v38, 5  ;;  %v4719_v2 = vrot.slane %v14055_v54, 4  ;;  %v6659_v5 = vpop.xlane.xlu1 %6658  ;;  %v6662_v20 = vpop.xlane.xlu0 %6661 }
 0xaa0   : > { %v4809_v43 = vsel %vm4385_vm4, %v4808_v23, %v4807_v49  ;;  %v6774_v7 = vadd.f32 %v6773_v37, %v6743_v52  ;;  %v4712_v0 = vsel %vm4373_vm0, %v14040_v46, %v4711_v55  ;;  %v4721_v14 = vrot.slane %v14057_v8, 3 }
 0xaa1   : > { %v4810_v51 = vsel %vm4388_vm11, %v14057_v8, %v4809_v43  ;;  %v4714_v40 = vsel %vm4376_vm6, %v4713_v3, %v4712_v0  ;;  %v4727_v26 = vrot.slane %v14037_v31, 3  ;;  %v4728_v19 = vrot.slane %v13700_v50, 2 }
 0xaa2   : > { %4811 = vrot.lane.b32.xlu0 %v4810_v51, %s10617_s22  ;;  %v6775_v23 = vadd.f32 %v6774_v7, %v6744_v29  ;;  %v4716_v37 = vsel %vm4379_vm3, %v4715_v32, %v4714_v40  ;;  %v4730_v45 = vrot.slane %v14040_v46, 1  ;;  %v4733_v48 = vrot.slane %v14044_v18, 7  ;;  %v16199_v32 = vld [vmem:[#allocation48_spill] sm:$0xff]  ;;  %v16201_v40 = vld [vmem:[#allocation30_spill] sm:$0xff] }
 0xaa3   : > { %v4718_v12 = vsel %vm4382_vm7, %v4717_v16, %v4716_v37  ;;  %v4729_v3 = vsel %vm4370_vm1, %v4728_v19, %v4727_v26  ;;  %v4735_v6 = vrot.slane %v14053_v38, 6  ;;  %v4739_v55 = vrot.slane %v14057_v8, 4  ;;  %v6668_v16 = vpop.xlane.xlu1 %6667  ;;  %v16202_v19 = vld [vmem:[#allocation24_spill] sm:$0xff] }
 0xaa4   : > { %v6776_v11 = vrot.slane %v6775_v23, 4  ;;  %v4720_v52 = vsel %vm4385_vm4, %v4719_v2, %v4718_v12  ;;  %v4731_v49 = vsel %vm4373_vm0, %v4730_v45, %v4729_v3  ;;  %v4304_v43 = vmul.f32 %v13671_v13, %v16199_v32  ;;  %v16200_v2 = vld [vmem:[#allocation59_spill] sm:$0xff]  ;;  %v16203_v45 = vld [vmem:[#allocation62_spill] sm:$0xff] }
 0xaa5   : > { %v4722_v29 = vsel %vm4388_vm11, %v4721_v14, %v4720_v52  ;;  %v4732_v0 = vsel %vm4376_vm6, %v14042_v59, %v4731_v49  ;;  %v4300_v51 = vmul.f32 %v13693_v35, %v16200_v2  ;;  %v4308_v14 = vmul.f32 %v13702_v62, %v16201_v40  ;;  %v16204_v52 = vld [vmem:[#allocation25_spill] sm:$0xff]  ;;  %v16205_v35 = vld [vmem:[#allocation16_spill] sm:$0xff] }
 0xaa6   : > { %v6777_v7 = vadd.f32 %v6776_v11, %v6775_v23  ;;  %4723 = vrot.lane.b32.xlu1 %v4722_v29, %s10619_s24  ;;  %v4734_v26 = vsel %vm4379_vm3, %v4733_v48, %v4732_v0  ;;  %v4737_v37 = vrot.slane %v14055_v54, 5  ;;  %v4312_v13 = vmul.f32 %v13735_v61, %v16202_v19  ;;  %v16206_v48 = vld [vmem:[#allocation64_spill] sm:$0xff]  ;;  %v6665_v0 = vpop.xlane.xlu0 %6664 }
 0xaa7   : > { %v4316_v23 = vmul.f32 %v13777_v34, %v16203_v45  ;;  %v4736_v11 = vsel %vm4382_vm7, %v4735_v6, %v4734_v26  ;;  %v4320_v3 = vmul.f32 %v13819_v53, %v16204_v52  ;;  %v4324_v29 = vmul.f32 %v13808_v41, %v16205_v35  ;;  %v14227_v34 = vpop.xlane.xlu1 %6670 }
 0xaa8   : > { %v6778_v12 = vrot.slane %v6777_v7, 2  ;;  %v4738_v62 = vsel %vm4385_vm4, %v4737_v37, %v4736_v11  ;;  %v4328_v49 = vmul.f32 %v13849_v24, %v16206_v48  ;;  %v14223_v32 = vmax.f32 %v4300_v51, 0.0 }
 0xaa9   : > { %v14225_v61 = vmax.f32 %v4304_v43, 0.0  ;;  %v4740_v6 = vsel %vm4388_vm11, %v4739_v55, %v4738_v62  ;;  %v14230_v40 = vmax.f32 %v4308_v14, 0.0  ;;  %v14232_v53 = vmax.f32 %v4312_v13, 0.0 }
 0xaaa   : > { %16207 = vst [vmem:[#allocation17_spill] sm:$0xff] %v14223_v32  ;;  %v6779_v2 = vadd.f32 %v6778_v12, %v6777_v7  ;;  %4741 = vrot.lane.b32.xlu0 %v4740_v6, %s10617_s22  ;;  %v6746_v41 = vmul.f32 0.03125, %v6662_v20  ;;  %v14235_v26 = vmax.f32 %v4316_v23, 0.0  ;;  %v14237_v24 = vmax.f32 %v4320_v3, 0.0  ;;  %v14248_v45 = vpop.xlane.xlu0 %6673 }
 0xaab   : > { %v14239_v51 = vmax.f32 %v4324_v29, 0.0  ;;  %v14241_v43 = vmax.f32 %v4328_v49, 0.0  ;;  %v4909_v37 = vrot.slane %v14223_v32, 5  ;;  %v4910_v7 = vrot.slane %v14225_v61, 4  ;;  %v14250_v23 = vpop.xlane.xlu1 %6682 }
 0xaac   : > { %v4912_v55 = vrot.slane %v14230_v40, 3  ;;  %v6780_v14 = vrot.slane %v6779_v2, 1  ;;  %v6745_v19 = vmul.f32 0.03125, %v6659_v5  ;;  %v4914_v13 = vrot.slane %v14232_v53, 2 }
 0xaad   : > { %v4916_v20 = vrot.slane %v14235_v26, 1  ;;  %v4911_v12 = vsel %vm4370_vm1, %v4910_v7, %v4909_v37  ;;  %v4919_v11 = vrot.slane %v14239_v51, 7  ;;  %v4927_v52 = vrot.slane %v14223_v32, 6 }
 0xaae   : > { %v4928_v3 = vrot.slane %v14225_v61, 5  ;;  %v4913_v35 = vsel %vm4373_vm0, %v4912_v55, %v4911_v12  ;;  %v4930_v5 = vrot.slane %v14230_v40, 4  ;;  %v4932_v29 = vrot.slane %v14232_v53, 3 }
 0xaaf   : > { %v4934_v62 = vrot.slane %v14235_v26, 2  ;;  %v4915_v48 = vsel %vm4376_vm6, %v4914_v13, %v4913_v35  ;;  %v4921_v49 = vrot.slane %v14241_v43, 6  ;;  %v4936_v37 = vrot.slane %v14237_v24, 1  ;;  %v14266_v12 = vpop.xlane.xlu1 %6676 }
 0xab0   : > { %v4929_v6 = vsel %vm4370_vm1, %v4928_v3, %v4927_v52  ;;  %v6782_v7 = vadd.f32 %v6746_v41, %v6745_v19  ;;  %v4917_v58 = vsel %vm4379_vm3, %v4916_v20, %v4915_v48  ;;  %v6747_v55 = vmul.f32 0.03125, %v6665_v0  ;;  %v14275_v20 = vpop.xlane.xlu0 %6685 }
 0xab1   : > { %v4931_v30 = vsel %vm4373_vm0, %v4930_v5, %v4929_v6  ;;  %v4918_v28 = vsel %vm4382_vm7, %v14237_v24, %v4917_v58  ;;  %v4939_v13 = vrot.slane %v14241_v43, 7  ;;  %v6748_v35 = vmul.f32 0.03125, %v6668_v16 }
 0xab2   : > { %v4933_v10 = vsel %vm4376_vm6, %v4932_v29, %v4931_v30  ;;  %v4920_v52 = vsel %vm4385_vm4, %v4919_v11, %v4918_v28  ;;  %v6783_v41 = vadd.f32 %v6782_v7, %v6747_v55  ;;  %v4839_v19 = vrot.slane %v14223_v32, 1 }
 0xab3   : > { %v4935_v3 = vsel %vm4379_vm3, %v4934_v62, %v4933_v10  ;;  %v6781_v0 = vadd.f32 %v6780_v14, %v6779_v2  ;;  %v4922_v5 = vsel %vm4388_vm11, %v4921_v49, %v4920_v52  ;;  %v4841_v58 = vrot.slane %v14230_v40, 7  ;;  %v14286_v11 = vpop.xlane.xlu1 %6679 }
 0xab4   : > { %v4937_v48 = vsel %vm4382_vm7, %v4936_v37, %v4935_v3  ;;  %4923 = vrot.lane.b32.xlu1 %v4922_v5, %s10618_s25  ;;  %v6784_v28 = vadd.f32 %v6783_v41, %v6748_v35  ;;  %v4840_v10 = vsel %vm4370_vm1, %v14225_v61, %v4839_v19  ;;  %v4843_v16 = vrot.slane %v14232_v53, 6 }
 0xab5   : > { %v4938_v30 = vsel %vm4385_vm4, %v14239_v51, %v4937_v48  ;;  %v4842_v14 = vsel %vm4373_vm0, %v4841_v58, %v4840_v10  ;;  %v4845_v29 = vrot.slane %v14235_v26, 5  ;;  %v4847_v62 = vrot.slane %v14237_v24, 4  ;;  %v6689_v48 = vpop.xlane.xlu0 %6688 }
 0xab6   : > { %v4940_v2 = vsel %vm4388_vm11, %v4939_v13, %v4938_v30  ;;  %v6785_v49 = vrot.slane %v6784_v28, 4  ;;  %v4844_v6 = vsel %vm4376_vm6, %v4843_v16, %v4842_v14  ;;  %v4849_v37 = vrot.slane %v14239_v51, 3 }
 0xab7   : > { %4941 = vrot.lane.b32.xlu0 %v4940_v2, %s10619_s24  ;;  %v4851_v7 = vrot.slane %v14241_v43, 2  ;;  %v4846_v55 = vsel %vm4379_vm3, %v4845_v29, %v4844_v6  ;;  %v4945_v35 = vrot.slane %v14223_v32, 7  ;;  %v4946_v13 = vrot.slane %v14225_v61, 6  ;;  %v14303_v58 = vpop.xlane.xlu1 %6691 }
 0xab8   : > { %v4948_v52 = vrot.slane %v14230_v40, 5  ;;  %v6786_v3 = vadd.f32 %v6785_v49, %v6784_v28  ;;  %v4848_v41 = vsel %vm4382_vm7, %v4847_v62, %v4846_v55  ;;  %v4950_v19 = vrot.slane %v14232_v53, 4 }
 0xab9   : > { %v4952_v5 = vrot.slane %v14235_v26, 3  ;;  %v6845_v30 = vmul.f32 0.03125, %v6781_v0  ;;  %v4850_v10 = vsel %vm4385_vm4, %v4849_v37, %v4848_v41  ;;  %v4947_v16 = vsel %vm4370_vm1, %v4946_v13, %v4945_v35 }
 0xaba   : > { %v4954_v2 = vrot.slane %v14237_v24, 2  ;;  %v6787_v14 = vrot.slane %v6786_v3, 2  ;;  %v4852_v29 = vsel %vm4388_vm11, %v4851_v7, %v4850_v10  ;;  %v4949_v28 = vsel %vm4373_vm0, %v4948_v52, %v4947_v16 }
 0xabb   : > { %v4857_v62 = vrot.slane %v14223_v32, 2  ;;  %4853 = vrot.lane.b32.xlu1 %v4852_v29, %s10618_s25  ;;  %v4951_v49 = vsel %vm4376_vm6, %v4950_v19, %v4949_v28  ;;  %v4956_v6 = vrot.slane %v14239_v51, 1  ;;  %v4858_v0 = vrot.slane %v14225_v61, 1  ;;  %v6695_v52 = vpop.xlane.xlu0 %6694  ;;  %v6698_v29 = vpop.xlane.xlu1 %6697 }
 0xabc   : > { %v4861_v37 = vrot.slane %v14232_v53, 7  ;;  %v6788_v55 = vadd.f32 %v6787_v14, %v6786_v3  ;;  %v4953_v35 = vsel %vm4379_vm3, %v4952_v5, %v4951_v49  ;;  %v4863_v13 = vrot.slane %v14235_v26, 6 }
 0xabd   : > { %v4865_v7 = vrot.slane %v14237_v24, 5  ;;  %v4955_v41 = vsel %vm4382_vm7, %v4954_v2, %v4953_v35  ;;  %v4859_v10 = vsel %vm4370_vm1, %v4858_v0, %v4857_v62  ;;  %v4867_v19 = vrot.slane %v14239_v51, 4 }
 0xabe   : > { %v4869_v16 = vrot.slane %v14241_v43, 3  ;;  %v6789_v28 = vrot.slane %v6788_v55, 1  ;;  %v4957_v25 = vsel %vm4385_vm4, %v4956_v6, %v4955_v41  ;;  %v4860_v3 = vsel %vm4373_vm0, %v14230_v40, %v4859_v10 }
 0xabf   : > { %v6750_v5 = vmul.f32 0.03125, %v14248_v45  ;;  %v4958_v14 = vsel %vm4388_vm11, %v14241_v43, %v4957_v25  ;;  %v4862_v2 = vsel %vm4376_vm6, %v4861_v37, %v4860_v3  ;;  %v4875_v62 = vrot.slane %v14223_v32, 3 }
 0xac0   : > { %v4876_v49 = vrot.slane %v14225_v61, 2  ;;  %v6790_v0 = vadd.f32 %v6789_v28, %v6788_v55  ;;  %4959 = vrot.lane.b32.xlu0 %v4958_v14, %s10617_s22  ;;  %v4864_v35 = vsel %vm4379_vm3, %v4863_v13, %v4862_v2  ;;  %v6749_v6 = vmul.f32 0.03125, %v14227_v34 }
 0xac1   : > { %v4878_v41 = vrot.slane %v14230_v40, 1  ;;  %v4866_v45 = vsel %vm4382_vm7, %v4865_v7, %v4864_v35  ;;  %v4881_v25 = vrot.slane %v14235_v26, 7  ;;  %v4883_v37 = vrot.slane %v14237_v24, 6  ;;  %v6701_v14 = vpop.xlane.xlu0 %6700 }
 0xac2   : > { %v4877_v10 = vsel %vm4370_vm1, %v4876_v49, %v4875_v62  ;;  %v6853_v3 = vadd.f32 1e-05, %v6845_v30  ;;  %v6846_v32 = vmul.f32 0.03125, %v6790_v0  ;;  %v4868_v55 = vsel %vm4385_vm4, %v4867_v19, %v4866_v45  ;;  %v6707_v62 = vpop.xlane.xlu1 %6706 }
 0xac3   : > { %v4879_v28 = vsel %vm4373_vm0, %v4878_v41, %v4877_v10  ;;  %v4870_v13 = vsel %vm4388_vm11, %v4869_v16, %v4868_v55  ;;  %v4887_v7 = vrot.slane %v14241_v43, 4  ;;  %v6754_v2 = vmul.f32 0.03125, %v14275_v20 }
 0xac4   : > { %v4880_v34 = vsel %vm4376_vm6, %v14232_v53, %v4879_v28  ;;  %4871 = vrot.lane.b32.xlu1 %v4870_v13, %s10619_s24  ;;  %v4885_v49 = vrot.slane %v14239_v51, 5  ;;  %v6753_v19 = vmul.f32 0.03125, %v14250_v23  ;;  %v6755_v0 = vmul.f32 0.03125, %v6689_v48 }
 0xac5   : > { %v4882_v30 = vsel %vm4379_vm3, %v4881_v25, %v4880_v34  ;;  %v6791_v35 = vadd.f32 %v6750_v5, %v6749_v6  ;;  %v6751_v41 = vmul.f32 0.03125, %v14266_v12  ;;  %v6752_v45 = vmul.f32 0.03125, %v14286_v11 }
 0xac6   : > { %v4884_v16 = vsel %vm4382_vm7, %v4883_v37, %v4882_v30  ;;  %10502 = vrsqrt.f32 %v6853_v3  ;;  %v6800_v10 = vadd.f32 %v6754_v2, %v6753_v19  ;;  %v6756_v55 = vmul.f32 0.03125, %v14303_v58 }
 0xac7   : > { %v4886_v20 = vsel %vm4385_vm4, %v4885_v49, %v4884_v16  ;;  %v6792_v28 = vadd.f32 %v6791_v35, %v6751_v41  ;;  %v6757_v13 = vmul.f32 0.03125, %v6695_v52  ;;  %v6758_v34 = vmul.f32 0.03125, %v6698_v29  ;;  %v6710_v5 = vpop.xlane.xlu0 %6709  ;;  %v6713_v30 = vpop.xlane.xlu1 %6712 }
 0xac8   : > { %v4888_v25 = vsel %vm4388_vm11, %v4887_v7, %v4886_v20  ;;  %v6854_v23 = vadd.f32 1e-05, %v6846_v32  ;;  %v6801_v48 = vadd.f32 %v6800_v10, %v6755_v0  ;;  %v4369_v12 = vrot.slane %v13696_v56, 7 }
 0xac9   : > { %4889 = vrot.lane.b32.xlu1 %v4888_v25, %s10617_s22  ;;  %v4372_v11 = vrot.slane %v13713_v63, 6  ;;  %v6793_v6 = vadd.f32 %v6792_v28, %v6752_v45  ;;  %v6759_v37 = vmul.f32 0.03125, %v6701_v14  ;;  %v6761_v3 = vmul.f32 0.03125, %v6707_v62 }
 0xaca   : > { %v6762_v2 = vmul.f32 0.03125, %v6710_v5  ;;  %v6802_v58 = vadd.f32 %v6801_v48, %v6756_v55  ;;  %v4371_v7 = vsel %vm4370_vm1, %v4369_v12, %v13711_v44  ;;  %v4375_v52 = vrot.slane %v13750_v21, 5 }
 0xacb   : > { %v4378_v32 = vrot.slane %v13793_v4, 4  ;;  %v6794_v29 = vrot.slane %v6793_v6, 4  ;;  %v6809_v49 = vadd.f32 %v6758_v34, %v6757_v13  ;;  %v4374_v0 = vsel %vm4373_vm0, %v4372_v11, %v4371_v7  ;;  %v6704_v41 = vpop.xlane.xlu0 %6703 }
 0xacc   : > { %v6818_v19 = vadd.f32 %v6762_v2, %v6761_v3  ;;  %v6803_v35 = vrot.slane %v6802_v58, 4  ;;  %v6763_v16 = vmul.f32 0.03125, %v6713_v30  ;;  %v4377_v14 = vsel %vm4376_vm6, %v4375_v52, %v4374_v0 }
 0xacd   : > { %v4381_v62 = vrot.slane %v13844_v36, 3  ;;  %v6795_v45 = vadd.f32 %v6794_v29, %v6793_v6  ;;  %v6810_v20 = vadd.f32 %v6809_v49, %v6759_v37  ;;  %v6760_v10 = vmul.f32 0.03125, %v6704_v41 }
 0xace   : > { %v4380_v55 = vsel %vm4379_vm3, %v4378_v32, %v4377_v14  ;;  %v6804_v25 = vadd.f32 %v6803_v35, %v6802_v58  ;;  %v6819_v28 = vadd.f32 %v6818_v19, %v6763_v16  ;;  %v4387_v13 = vrot.slane %v13875_v39, 1 }
 0xacf   : > { %v4383_v48 = vsel %vm4382_vm7, %v4381_v62, %v4380_v55  ;;  %v6796_v34 = vrot.slane %v6795_v45, 2  ;;  %v6811_v5 = vadd.f32 %v6810_v20, %v6760_v10  ;;  %v4384_v12 = vrot.slane %v13828_v15, 2  ;;  %v6716_v2 = vpop.xlane.xlu0 %6715  ;;  %v6719_v30 = vpop.xlane.xlu1 %6718 }
 0xad0   : > { %v4449_v11 = vrot.slane %v13711_v44, 4  ;;  %v6805_v3 = vrot.slane %v6804_v25, 2  ;;  %v4450_v6 = vrot.slane %v13696_v56, 3  ;;  %v4452_v37 = vrot.slane %v13713_v63, 2 }
 0xad1   : > { %v4454_v58 = vrot.slane %v13750_v21, 1  ;;  %v6797_v7 = vadd.f32 %v6796_v34, %v6795_v45  ;;  %v6812_v52 = vrot.slane %v6811_v5, 4  ;;  %v6764_v32 = vmul.f32 0.03125, %v6716_v2 }
 0xad2   : > { %v4386_v29 = vsel %vm4385_vm4, %v4384_v12, %v4383_v48  ;;  %10504 = vrsqrt.f32 %v6854_v23  ;;  %v6806_v49 = vadd.f32 %v6805_v3, %v6804_v25  ;;  %v4451_v44 = vsel %vm4370_vm1, %v4450_v6, %v4449_v11 }
 0xad3   : > { %v4389_v19 = vsel %vm4388_vm11, %v4387_v13, %v4386_v29  ;;  %v14378_v0 = vpop.eup %10502  ;;  %v6798_v35 = vrot.slane %v6797_v7, 1  ;;  %v6813_v16 = vadd.f32 %v6812_v52, %v6811_v5  ;;  %v6820_v56 = vadd.f32 %v6819_v28, %v6764_v32  ;;  %v6722_v14 = vpop.xlane.xlu0 %6721 }
 0xad4   : > { %4391 = vst.msk [vmem:[#allocation2] sm:$0xff] %vm16208_vm8, %v4389_v19  ;;  %v4453_v63 = vsel %vm4373_vm0, %v4452_v37, %v4451_v44  ;;  %v6807_v21 = vrot.slane %v6806_v49, 1  ;;  %v6765_v41 = vmul.f32 0.03125, %v6719_v30  ;;  %v4457_v23 = vrot.slane %v13844_v36, 7  ;;  %v6734_v25 = vpop.xlane.xlu1 %6733  ;;  %vm16228_vm8 = vmmov %vm16173_vm5 }
 0xad5   : > { %v4455_v62 = vsel %vm4376_vm6, %v4454_v58, %v4453_v63  ;;  %v6799_v45 = vadd.f32 %v6798_v35, %v6797_v7  ;;  %v6814_v20 = vrot.slane %v6813_v16, 2  ;;  %v6821_v10 = vrot.slane %v6820_v56, 4 }
 0xad6   : > { %v6766_v55 = vmul.f32 0.03125, %v6722_v14  ;;  %v6808_v48 = vadd.f32 %v6807_v21, %v6806_v49  ;;  %v6770_v13 = vmul.f32 0.03125, %v6734_v25  ;;  %v4459_v28 = vrot.slane %v13828_v15, 6 }
 0xad7   : > { %v4461_v34 = vrot.slane %v13875_v39, 5  ;;  %v6847_v5 = vmul.f32 0.03125, %v6799_v45  ;;  %v6815_v12 = vadd.f32 %v6814_v20, %v6813_v16  ;;  %v6822_v11 = vadd.f32 %v6821_v10, %v6820_v56  ;;  %v6731_v36 = vpop.xlane.xlu0 %6730 }
 0xad8   : > { %v4456_v3 = vsel %vm4379_vm3, %v13793_v4, %v4455_v62  ;;  %v6848_v2 = vmul.f32 0.03125, %v6808_v48  ;;  %v6827_v30 = vadd.f32 %v6766_v55, %v6765_v41  ;;  %v4597_v37 = vrot.slane %v13755_v9, 4  ;;  %v6737_v15 = vpop.xlane.xlu1 %6736 }
 0xad9   : > { %v4458_v6 = vsel %vm4382_vm7, %v4457_v23, %v4456_v3  ;;  %v6855_v58 = vadd.f32 1e-05, %v6847_v5  ;;  %v6816_v7 = vrot.slane %v6815_v12, 1  ;;  %v6823_v52 = vrot.slane %v6822_v11, 2 }
 0xada   : > { %v6769_v32 = vmul.f32 0.03125, %v6731_v36  ;;  %v6856_v29 = vadd.f32 1e-05, %v6848_v2  ;;  %v6771_v39 = vmul.f32 0.03125, %v6737_v15  ;;  %v4460_v49 = vsel %vm4385_vm4, %v4459_v28, %v4458_v6 }
 0xadb   : > { %v4598_v19 = vrot.slane %v13698_v27, 3  ;;  %10506 = vrsqrt.f32 %v6855_v58  ;;  %v6817_v4 = vadd.f32 %v6816_v7, %v6815_v12  ;;  %v6824_v44 = vadd.f32 %v6823_v52, %v6822_v11  ;;  %v6725_v16 = vpop.xlane.xlu0 %6724 }
 0xadc   : > { %v6836_v35 = vadd.f32 %v6770_v13, %v6769_v32  ;;  %10508 = vrsqrt.f32 %v6856_v29  ;;  %v4462_v56 = vsel %vm4388_vm11, %v4461_v34, %v4460_v49  ;;  %v4600_v21 = vrot.slane %v13757_v17, 2  ;;  %v6728_v45 = vpop.xlane.xlu1 %6727 }
 0xadd   : > { %v4599_v63 = vsel %vm4370_vm1, %v4598_v19, %v4597_v37  ;;  %v6849_v41 = vmul.f32 0.03125, %v6817_v4  ;;  %v6825_v14 = vrot.slane %v6824_v44, 1  ;;  %v6767_v23 = vmul.f32 0.03125, %v6725_v16  ;;  %4464 = vst.msk [vmem:[#allocation2 + $0x8] sm:$0xff] %vm16209_vm9, %v4462_v56  ;;  %vm16229_vm9 = vmmov %vm16173_vm5 }
 0xade   : > { %v6837_v62 = vadd.f32 %v6836_v35, %v6771_v39  ;;  %v6768_v20 = vmul.f32 0.03125, %v6728_v45  ;;  %v4601_v10 = vsel %vm4373_vm0, %v4600_v21, %v4599_v63  ;;  %v4602_v55 = vrot.slane %v13768_v47, 1 }
 0xadf   : > { %v4605_v25 = vrot.slane %v13853_v42, 7  ;;  %v14399_v48 = vpop.eup %10504  ;;  %v6857_v13 = vadd.f32 1e-05, %v6849_v41  ;;  %v6826_v28 = vadd.f32 %v6825_v14, %v6824_v44  ;;  %v6828_v34 = vadd.f32 %v6827_v30, %v6767_v23  ;;  %v6740_v12 = vpop.xlane.xlu0 %6739 }
 0xae0   : > { %v4607_v5 = vrot.slane %v13835_v57, 6  ;;  %v4603_v11 = vsel %vm4376_vm6, %v4602_v55, %v4601_v10  ;;  %v4609_v3 = vrot.slane %v13924_v22, 5  ;;  %v4527_v2 = vrot.slane %v13698_v27, 7 }
 0xae1   : > { %v4529_v36 = vrot.slane %v13757_v17, 6  ;;  %10510 = vrsqrt.f32 %v6857_v13  ;;  %v6850_v6 = vmul.f32 0.03125, %v6826_v28  ;;  %v6829_v37 = vadd.f32 %v6828_v34, %v6768_v20 }
 0xae2   : > { %v6772_v58 = vmul.f32 0.03125, %v6740_v12  ;;  %v4604_v7 = vsel %vm4379_vm3, %v13795_v1, %v4603_v11  ;;  %v4528_v30 = vsel %vm4370_vm1, %v4527_v2, %v13755_v9  ;;  %v4531_v52 = vrot.slane %v13768_v47, 5 }
 0xae3   : > { %v4533_v32 = vrot.slane %v13795_v1, 4  ;;  %v6858_v15 = vadd.f32 1e-05, %v6850_v6  ;;  %v6830_v29 = vrot.slane %v6829_v37, 4  ;;  %v4606_v27 = vsel %vm4382_vm7, %v4605_v25, %v4604_v7  ;;  %v16213_v7 = vld [vmem:[#allocation53_spill] sm:$0xff] }
 0xae4   : > { %v6838_v39 = vadd.f32 %v6837_v62, %v6772_v58  ;;  %v4608_v17 = vsel %vm4385_vm4, %v4607_v5, %v4606_v27  ;;  %v4530_v49 = vsel %vm4373_vm0, %v4529_v36, %v4528_v30  ;;  %v4535_v19 = vrot.slane %v13853_v42, 3 }
 0xae5   : > { %v4537_v4 = vrot.slane %v13835_v57, 2  ;;  %10512 = vrsqrt.f32 %v6858_v15  ;;  %v6831_v9 = vadd.f32 %v6830_v29, %v6829_v37  ;;  %v4610_v47 = vsel %vm4388_vm11, %v4609_v3, %v4608_v17  ;;  %v16212_v37 = vld [vmem:[#allocation35_spill] sm:$0xff] }
 0xae6   : > { %v6839_v44 = vrot.slane %v6838_v39, 4  ;;  %4612 = vst.msk [vmem:[#allocation2 + $0x18] sm:$0xff] %vm16210_vm12, %v4610_v47  ;;  %v4532_v1 = vsel %vm4376_vm6, %v4531_v52, %v4530_v49  ;;  %v4539_v35 = vrot.slane %v13924_v22, 1  ;;  %v4745_v16 = vrot.slane %v14037_v31, 4  ;;  %vm16246_vm12 = vmmov %vm16173_vm5 }
 0xae7   : > { %v4746_v56 = vrot.slane %v13700_v50, 3  ;;  %v6832_v63 = vrot.slane %v6831_v9, 2  ;;  %v4534_v42 = vsel %vm4379_vm3, %v4533_v32, %v4532_v1  ;;  %v4748_v57 = vrot.slane %v14040_v46, 2 }
 0xae8   : > { %v6840_v21 = vadd.f32 %v6839_v44, %v6838_v39  ;;  %v14425_v41 = vpop.eup %10506  ;;  %vm4428_vm13 = vcmask 785920   ;;  %v4536_v14 = vsel %vm4382_vm7, %v4535_v19, %v4534_v42  ;;  %v4750_v23 = vrot.slane %v14042_v59, 1  ;;  %v16215_v44 = vld [vmem:[#allocation20_spill] sm:$0xff] }
 0xae9   : > { %v4747_v62 = vsel %vm4370_vm1, %v4746_v56, %v4745_v16  ;;  %v4753_v22 = vrot.slane %v14053_v38, 7  ;;  %v14431_v45 = vpop.eup %10508  ;;  %v6833_v20 = vadd.f32 %v6832_v63, %v6831_v9  ;;  %vm4447_vm2 = vcmask 1048320  }
 0xaea   : > { %v6841_v10 = vrot.slane %v6840_v21, 2  ;;  %v4538_v55 = vsel %vm4385_vm4, %v4537_v4, %v4536_v14  ;;  %v4749_v25 = vsel %vm4373_vm0, %v4748_v57, %v4747_v62  ;;  %v4755_v34 = vrot.slane %v14055_v54, 6 }
 0xaeb   : > { %v4540_v13 = vsel %vm4388_vm11, %v4539_v35, %v4538_v55  ;;  %v4751_v28 = vsel %vm4376_vm6, %v4750_v23, %v4749_v25  ;;  %v4757_v5 = vrot.slane %v14057_v8, 5  ;;  %v6834_v12 = vrot.slane %v6833_v20, 1 }
 0xaec   : > { %v6842_v11 = vadd.f32 %v6841_v10, %v6840_v21  ;;  %4542 = vst.msk [vmem:[#allocation2 + $0x10] sm:$0xff] %vm16211_vm14, %v4540_v13  ;;  %v4752_v3 = vsel %vm4379_vm3, %v14044_v18, %v4751_v28  ;;  %v6869_v2 = vmul.f32 %v14378_v0, %v13459_v33  ;;  %v6873_v6 = vmul.f32 %v14399_v48, %v13483_v60  ;;  %v16216_v28 = vld [vmem:[#allocation45_spill] sm:$0xff]  ;;  %vm16247_vm14 = vmmov %vm16173_vm5 }
 0xaed   : > { %v4754_v36 = vsel %vm4382_vm7, %v4753_v22, %v4752_v3  ;;  %v6877_v58 = vmul.f32 %v14425_v41, %v16212_v37  ;;  %v6881_v30 = vmul.f32 %v14431_v45, %v16213_v7  ;;  %v6835_v52 = vadd.f32 %v6834_v12, %v6833_v20 }
 0xaee   : > { %v6843_v32 = vrot.slane %v6842_v11, 1  ;;  %v4756_v15 = vsel %vm4385_vm4, %v4755_v34, %v4754_v36  ;;  %v14452_v29 = vmax.f32 %v6869_v2, 0.0  ;;  %v14454_v39 = vpop.eup %10510  ;;  %v4407_v33 = vpop.permute.xlu0 %4406  ;;  %v14457_v49 = vmax.f32 %v6873_v6, 0.0 }
 0xaef   : > { %v4480_v27 = vpop.permute.xlu1 %4479  ;;  %v4758_v17 = vsel %vm4388_vm11, %v4757_v5, %v4756_v15  ;;  %v14459_v60 = vmax.f32 %v6877_v58, 0.0  ;;  %v14461_v19 = vmax.f32 %v6881_v30, 0.0  ;;  %v6851_v4 = vmul.f32 0.03125, %v6835_v52  ;;  %4410 = vst.msk [vmem:[#allocation2] sm:$0xff] %vm4409_vm10, %v4407_v33 }
 0xaf0   : > { %v6844_v9 = vadd.f32 %v6843_v32, %v6842_v11  ;;  %4482 = vst.msk [vmem:[#allocation2 + $0x8] sm:$0xff] %vm4409_vm10, %v4480_v27  ;;  %v6885_v47 = vmul.f32 %v14454_v39, %v16215_v44  ;;  %v7045_v1 = vrot.slane %v14452_v29, 6  ;;  %v7046_v35 = vrot.slane %v14457_v49, 5 }
 0xaf1   : > { %4760 = vst.msk [vmem:[#allocation2 + $0x28] sm:$0xff] %vm16214_vm15, %v4758_v17  ;;  %v7048_v16 = vrot.slane %v14459_v60, 4  ;;  %v7050_v56 = vrot.slane %v14461_v19, 3  ;;  %v6957_v63 = vrot.slane %v14452_v29, 1  ;;  %v6859_v21 = vadd.f32 1e-05, %v6851_v4  ;;  %vm16248_vm15 = vmmov %vm16173_vm5 }
 0xaf2   : > { %v6852_v42 = vmul.f32 0.03125, %v6844_v9  ;;  %v14473_v57 = vmax.f32 %v6885_v47, 0.0  ;;  %v6959_v14 = vrot.slane %v14459_v60, 7  ;;  %v14476_v62 = vpop.eup %10512  ;;  %v4516_v23 = vpop.permute.xlu0 %4515  ;;  %v7047_v20 = vsel %vm4370_vm1, %v7046_v35, %v7045_v1  ;;  %v16217_v9 = vld [vmem:[#allocation26_spill] sm:$0xff] }
 0xaf3   : > { %v4498_v22 = vpop.permute.xlu1 %4497  ;;  %v6958_v10 = vsel %vm4370_vm1, %v14457_v49, %v6957_v63  ;;  %v6961_v55 = vrot.slane %v14461_v19, 6  ;;  %v4675_v25 = vrot.slane %v13700_v50, 7  ;;  %10514 = vrsqrt.f32 %v6859_v21  ;;  %v16220_v63 = vld [vmem:[#allocation9_spill] sm:$0xff] }
 0xaf4   : > { %v6860_v13 = vadd.f32 1e-05, %v6852_v42  ;;  %4500 = vst.msk [vmem:[#allocation2 + $0x8] sm:$0xff] %vm4428_vm13, %v4498_v22  ;;  %v6889_v34 = vmul.f32 %v14476_v62, %v16216_v28  ;;  %v7049_v5 = vsel %vm4373_vm0, %v7048_v16, %v7047_v20  ;;  %v7052_v11 = vrot.slane %v14473_v57, 2  ;;  %v16221_v42 = vld [vmem:[#allocation37_spill] sm:$0xff] }
 0xaf5   : > { %4518 = vst.msk [vmem:[#allocation2 + $0x8] sm:$0xff] %vm4447_vm2, %v4516_v23  ;;  %v7051_v12 = vsel %vm4376_vm6, %v7050_v56, %v7049_v5  ;;  %v6960_v3 = vsel %vm4373_vm0, %v6959_v14, %v6958_v10  ;;  %v6963_v2 = vrot.slane %v14473_v57, 5  ;;  %v4676_v6 = vsel %vm4370_vm1, %v4675_v25, %v14037_v31  ;;  %v16219_v56 = vld [vmem:[#allocation68_spill] sm:$0xff]  ;;  %v16222_v20 = vld [vmem:[#allocation13_spill] sm:$0xff] }
 0xaf6   : > { %10516 = vrsqrt.f32 %v6860_v13  ;;  %v14492_v50 = vmax.f32 %v6889_v34, 0.0  ;;  %v6962_v36 = vsel %vm4376_vm6, %v6961_v55, %v6960_v3  ;;  %v4445_v37 = vpop.permute.xlu0 %4444  ;;  %v7053_v7 = vsel %vm4379_vm3, %v7052_v11, %v7051_v12 }
 0xaf7   : > { %v4426_v58 = vpop.permute.xlu1 %4425  ;;  %v6964_v30 = vsel %vm4379_vm3, %v6963_v2, %v6962_v36  ;;  %v4677_v52 = vrot.slane %v14040_v46, 6  ;;  %v4679_v32 = vrot.slane %v14042_v59, 5  ;;  %v4681_v27 = vrot.slane %v14044_v18, 4 }
 0xaf8   : > { %4429 = vst.msk [vmem:[#allocation2] sm:$0xff] %vm4428_vm13, %v4426_v58  ;;  %v7054_v15 = vrot.slane %v14492_v50, 1  ;;  %v6965_v33 = vrot.slane %v14492_v50, 4  ;;  %v4683_v31 = vrot.slane %v14053_v38, 3  ;;  %v4685_v4 = vrot.slane %v14055_v54, 2  ;;  %v16218_v38 = vld [vmem:[#allocation66_spill] sm:$0xff] }
 0xaf9   : > { %4448 = vst.msk [vmem:[#allocation2] sm:$0xff] %vm4447_vm2, %v4445_v37  ;;  %v4678_v17 = vsel %vm4373_vm0, %v4677_v52, %v4676_v6  ;;  %v4687_v46 = vrot.slane %v14057_v8, 1  ;;  %v6870_v59 = vmul.f32 %v14378_v0, %v16217_v9  ;;  %v6874_v1 = vmul.f32 %v14399_v48, %v16218_v38  ;;  %v16223_v38 = vld [vmem:[#allocation10_spill] sm:$0xff] }
 0xafa   : > { %v14513_v44 = vsel %vm4382_vm7, %v7054_v15, %v7053_v7  ;;  %v14516_v47 = vsel %vm4382_vm7, %v6965_v33, %v6964_v30  ;;  %v4680_v18 = vsel %vm4376_vm6, %v4679_v32, %v4678_v17  ;;  %v4646_v35 = vpop.permute.xlu0 %4645  ;;  %v6878_v8 = vmul.f32 %v14425_v41, %v16219_v56  ;;  %v10353_v32 = vld [vmem:[%s15533_s5 + $0x138] sm:$0xff]  }
 0xafb   : > { %v4628_v16 = vpop.permute.xlu1 %4627  ;;  %v4682_v54 = vsel %vm4379_vm3, %v4681_v27, %v4680_v18  ;;  %v6882_v21 = vmul.f32 %v14431_v45, %v16220_v63  ;;  %v6886_v14 = vmul.f32 %v14454_v39, %v16221_v42  ;;  %v6890_v10 = vmul.f32 %v14476_v62, %v16222_v20  ;;  %v16225_v20 = vld [vmem:[#allocation43_spill] sm:$0xff] }
 0xafc   : > { %4630 = vst.msk [vmem:[#allocation2 + $0x18] sm:$0xff] %vm4409_vm10, %v4628_v16  ;;  %v7526_v23 = vld [vmem:[#allocation2 + $0x8] sm:$0xff]  ;;  %v4684_v22 = vsel %vm4382_vm7, %v4683_v31, %v4682_v54  ;;  %v14532_v55 = vmax.f32 %v6870_v59, 0.0  ;;  %v14534_v25 = vmax.f32 %v6874_v1, 0.0  ;;  %v14538_v34 = vmax.f32 %v6878_v8, 0.0 }
 0xafd   : > { %4648 = vst.msk [vmem:[#allocation2 + $0x18] sm:$0xff] %vm4428_vm13, %v4646_v35  ;;  %v7542_v13 = vpack.c.bf16 %v7526_v23, %v7526_v23  ;;  %v4686_v28 = vsel %vm4385_vm4, %v4685_v4, %v4684_v22  ;;  %v14540_v5 = vmax.f32 %v6882_v21, 0.0  ;;  %v14543_v11 = vmax.f32 %v6886_v14, 0.0  ;;  %v16224_v35 = vld [vmem:[#allocation44_spill] sm:$0xff]  ;;  %v10357_v22 = vld [vmem:[%s15533_s5 + $0x130] sm:$0xff]  }
 0xafe   : > { %v4688_v12 = vsel %vm4388_vm11, %v4687_v46, %v4686_v28  ;;  %v14545_v3 = vmax.f32 %v6890_v10, 0.0  ;;  %v7193_v2 = vrot.slane %v14532_v55, 6  ;;  %v4664_v36 = vpop.permute.xlu0 %4663  ;;  %v7194_v37 = vrot.slane %v14534_v25, 5  ;;  %v10356_v46 = vld [vmem:[%s15533_s5 + $0x170] sm:$0xff]   ;;  %v16226_v28 = vld [vmem:[#allocation11_spill] sm:$0xff] }
 0xaff   : > { %8620 = vmatprep.mubr.bf16.mxu1 %v7542_v13  ;;  %v4558_v6 = vpop.permute.xlu1 %4557  ;;  %4690 = vst.msk [vmem:[#allocation2 + $0x20] sm:$0xff] %vm16173_vm5, %v4688_v12  ;;  %v7196_v58 = vrot.slane %v14538_v34, 4  ;;  %v7198_v7 = vrot.slane %v14540_v5, 3  ;;  %v6975_v30 = vrot.slane %v14452_v29, 2  ;;  %v7200_v15 = vrot.slane %v14543_v11, 2 }
 0xb00   : > { %4666 = vst.msk [vmem:[#allocation2 + $0x18] sm:$0xff] %vm4447_vm2, %v4664_v36  ;;  %v7525_v52 = vld [vmem:[#allocation2] sm:$0xff]  ;;  %v7202_v33 = vrot.slane %v14545_v3, 1  ;;  %v6976_v27 = vrot.slane %v14457_v49, 1  ;;  %v6979_v31 = vrot.slane %v14461_v19, 7  ;;  %v14562_v17 = vpop.eup %10514  ;;  %v7195_v9 = vsel %vm4370_vm1, %v7194_v37, %v7193_v2  ;;  %v10360_v36 = vld [vmem:[%s15533_s5 + $0x168] sm:$0xff]  }
 0xb01   : > { %4560 = vst.msk [vmem:[#allocation2 + $0x10] sm:$0xff] %vm4409_vm10, %v4558_v6  ;;  %v7541_v4 = vpack.c.bf16 %v7525_v52, %v7525_v52  ;;  %v6981_v59 = vrot.slane %v14473_v57, 6  ;;  %v6983_v18 = vrot.slane %v14492_v50, 5  ;;  %v6893_v1 = vmul.f32 %v14562_v17, %v16223_v38 }
 0xb02   : > { %v6894_v16 = vmul.f32 %v14562_v17, %v16224_v35  ;;  %v7197_v54 = vsel %vm4373_vm0, %v7196_v58, %v7195_v9  ;;  %v6977_v56 = vsel %vm4370_vm1, %v6976_v27, %v6975_v30  ;;  %v7027_v14 = vrot.slane %v14452_v29, 5 }
 0xb03   : > { %v14576_v8 = vpop.eup %10516  ;;  %8621 = vmatmul.mubr.bf16.vlgmr.msra.gmra.mxu1 %v7541_v4  ;;  %v4576_v63 = vpop.permute.xlu1 %4575  ;;  %v7199_v21 = vsel %vm4376_vm6, %v7198_v7, %v7197_v54  ;;  %v6978_v42 = vsel %vm4373_vm0, %v14459_v60, %v6977_v56  ;;  %v7028_v23 = vrot.slane %v14457_v49, 4  ;;  %v14589_v13 = vmax.f32 %v6893_v1, 0.0 }
 0xb04   : > { %9645 = vmatpush3.bf16.msra.mxu1 %v10353_v32  ;;  %4578 = vst.msk [vmem:[#allocation2 + $0x10] sm:$0xff] %vm4428_vm13, %v4576_v63  ;;  %v6897_v10 = vmul.f32 %v14576_v8, %v16225_v20  ;;  %v6898_v12 = vmul.f32 %v14576_v8, %v16226_v28  ;;  %v14593_v2 = vmax.f32 %v6894_v16, 0.0  ;;  %v7201_v6 = vsel %vm4379_vm3, %v7200_v15, %v7199_v21 }
 0xb05   : > { %9646 = vmatprep.subr.bf16.mxu1 %v10356_v46  ;;  %v6980_v37 = vsel %vm4376_vm6, %v6979_v31, %v6978_v42  ;;  %v7029_v58 = vsel %vm4370_vm1, %v7028_v23, %v7027_v14  ;;  %v7030_v7 = vrot.slane %v14459_v60, 3  ;;  %v7056_v52 = vsel %vm4385_vm4, %v14589_v13, %v14513_v44 }
 0xb06   : > { %v14602_v30 = vmax.f32 %v6897_v10, 0.0  ;;  %v6967_v32 = vrot.slane %v14589_v13, 3  ;;  %v14608_v27 = vmax.f32 %v6898_v12, 0.0  ;;  %v7203_v15 = vsel %vm4382_vm7, %v7202_v33, %v7201_v6  ;;  %v10361_v33 = vld [vmem:[%s15533_s5 + $0x128] sm:$0xff]  }
 0xb07   : > { %v4776_v4 = vpop.permute.xlu0 %4775  ;;  %v7528_v46 = vld [vmem:[#allocation2 + $0x18] sm:$0xff]  ;;  %v6982_v31 = vsel %vm4379_vm3, %v6981_v59, %v6980_v37  ;;  %v6985_v9 = vrot.slane %v14589_v13, 4  ;;  %v7031_v38 = vsel %vm4373_vm0, %v7030_v7, %v7029_v58  ;;  %v7204_v54 = vsel %vm4385_vm4, %v14593_v2, %v7203_v15 }
 0xb08   : > { %4778 = vst.msk [vmem:[#allocation2 + $0x28] sm:$0xff] %vm4409_vm10, %v4776_v4  ;;  %9647 = vmatpush3.bf16.msra.mxu1 %v10357_v22  ;;  %v7057_v1 = vrot.slane %v14602_v30, 7  ;;  %v6968_v44 = vsel %vm4385_vm4, %v6967_v32, %v14516_v47  ;;  %v6969_v35 = vrot.slane %v14602_v30, 2  ;;  %v7544_v16 = vpack.c.bf16 %v7528_v46, %v7528_v46  ;;  %v10364_v47 = vld [vmem:[%s15533_s5 + $0x160] sm:$0xff]   ;;  %v10367_v15 = vld [vmem:[%s15533_s5 + $0x158] sm:$0xff]  }
 0xb09   : > { %v4594_v59 = vpop.permute.xlu1 %4593  ;;  %9648 = vmatprep.subr.bf16.mxu1 %v10360_v36  ;;  %v7205_v56 = vrot.slane %v14608_v27, 7  ;;  %v6984_v63 = vsel %vm4382_vm7, %v6983_v18, %v6982_v31  ;;  %v6987_v21 = vrot.slane %v14602_v30, 3  ;;  %v7032_v22 = vrot.slane %v14461_v19, 2  ;;  %v10365_v36 = vld [vmem:[%s15533_s5 + $0x120] sm:$0xff]  }
 0xb0a   : > { %4596 = vst.msk [vmem:[#allocation2 + $0x10] sm:$0xff] %vm4447_vm2, %v4594_v59  ;;  %v7058_v42 = vsel %vm4388_vm11, %v7057_v1, %v7056_v52  ;;  %v6970_v14 = vsel %vm4388_vm11, %v6969_v35, %v6968_v44  ;;  %8660 = vmatprep.mubr.bf16.mxu0 %v7544_v16  ;;  %v6986_v23 = vsel %vm4385_vm4, %v6985_v9, %v6984_v63  ;;  %v7034_v10 = vrot.slane %v14473_v57, 1  ;;  %v16227_v16 = vld [vmem:[#allocation17_spill] sm:$0xff] }
 0xb0b   : > { %7059 = vrot.lane.b32.xlu0 %v7058_v42, %s10619_s24  ;;  %6971 = vrot.lane.b32.xlu1 %v6970_v14, %s10618_s25  ;;  %v7206_v18 = vsel %vm4388_vm11, %v7205_v56, %v7204_v54  ;;  %v6988_v20 = vsel %vm4388_vm11, %v6987_v21, %v6986_v23  ;;  %v7037_v28 = vrot.slane %v14589_v13, 7  ;;  %v4794_v12 = vpop.permute.xlu0 %4793  ;;  %v7033_v6 = vsel %vm4376_vm6, %v7032_v22, %v7031_v38  ;;  %v10369_v21 = vld [vmem:[%s15533_s5 + $0x118] sm:$0xff]  }
 0xb0c   : > { %9649 = vmatpush3.bf16.msra.mxu1 %v10361_v33  ;;  %v7039_v37 = vrot.slane %v14602_v30, 6  ;;  %v7175_v58 = vrot.slane %v14532_v55, 5  ;;  %v7176_v7 = vrot.slane %v14534_v25, 4  ;;  %4796 = vst.msk [vmem:[#allocation2 + $0x28] sm:$0xff] %vm4428_vm13, %v4794_v12  ;;  %v7035_v52 = vsel %vm4379_vm3, %v7034_v10, %v7033_v6  ;;  %v10368_v22 = vld [vmem:[%s15533_s5 + $0x1b8] sm:$0xff]  }
 0xb0d   : > { %9650 = vmatprep.subr.bf16.mxu1 %v10364_v47  ;;  %v7178_v32 = vrot.slane %v14538_v34, 3  ;;  %v7180_v4 = vrot.slane %v14540_v5, 2  ;;  %v7182_v46 = vrot.slane %v14543_v11, 1  ;;  %v7036_v31 = vsel %vm4382_vm7, %v14492_v50, %v7035_v52 }
 0xb0e   : > { %v7177_v9 = vsel %vm4370_vm1, %v7176_v7, %v7175_v58  ;;  %v7185_v38 = vrot.slane %v14593_v2, 7  ;;  %v7187_v1 = vrot.slane %v14608_v27, 6  ;;  %v7038_v44 = vsel %vm4385_vm4, %v7037_v28, %v7036_v31  ;;  %v10371_v58 = vld [vmem:[%s15533_s5 + $0x150] sm:$0xff]  }
 0xb0f   : > { %7207 = vrot.lane.b32.xlu0 %v7206_v18, %s10619_s24  ;;  %6989 = vrot.lane.b32.xlu1 %v6988_v20, %s10619_s24  ;;  %v7179_v35 = vsel %vm4373_vm0, %v7178_v32, %v7177_v9  ;;  %v4893_v33 = vrot.slane %v16227_v16, 4  ;;  %v4894_v59 = vrot.slane %v14225_v61, 3  ;;  %v7040_v56 = vsel %vm4388_vm11, %v7039_v37, %v7038_v44  ;;  %v10370_v37 = vld [vmem:[%s15533_s5 + $0x1f0] sm:$0xff]  }
 0xb10   : > { %v4706_v54 = vpop.permute.xlu1 %4705  ;;  %9651 = vmatpush3.bf16.msra.mxu1 %v10365_v36  ;;  %v7181_v63 = vsel %vm4376_vm6, %v7180_v4, %v7179_v35  ;;  %v4896_v47 = vrot.slane %v14230_v40, 2  ;;  %v4898_v42 = vrot.slane %v14232_v53, 1  ;;  %v4901_v20 = vrot.slane %v14237_v24, 7 }
 0xb11   : > { %4708 = vst.msk [vmem:[#allocation2 + $0x20] sm:$0xff] %vm4409_vm10, %v4706_v54  ;;  %v7183_v14 = vsel %vm4379_vm3, %v7182_v46, %v7181_v63  ;;  %v7527_v23 = vld [vmem:[#allocation2 + $0x10] sm:$0xff]  ;;  %9652 = vmatprep.subr.bf16.mxu1 %v10367_v15  ;;  %v4895_v18 = vsel %vm4370_vm1, %v4894_v59, %v4893_v33  ;;  %v4903_v10 = vrot.slane %v14239_v51, 6  ;;  %v4905_v6 = vrot.slane %v14241_v43, 5 }
 0xb12   : > { %v7184_v28 = vsel %vm4382_vm7, %v14545_v3, %v7183_v14  ;;  %v7543_v12 = vpack.c.bf16 %v7527_v23, %v7527_v23  ;;  %v4897_v36 = vsel %vm4373_vm0, %v4896_v47, %v4895_v18  ;;  %v7063_v32 = vrot.slane %v14452_v29, 7  ;;  %v10372_v54 = vld [vmem:[%s15533_s5 + $0x1b0] sm:$0xff]   ;;  %v10374_v14 = vld [vmem:[%s15533_s5 + $0x1e8] sm:$0xff]  }
 0xb13   : > { %7041 = vrot.lane.b32.xlu0 %v7040_v56, %s10618_s25  ;;  %v7186_v7 = vsel %vm4385_vm4, %v7185_v38, %v7184_v28  ;;  %v4899_v52 = vsel %vm4376_vm6, %v4898_v42, %v4897_v36  ;;  %v7064_v4 = vrot.slane %v14457_v49, 6  ;;  %v7066_v9 = vrot.slane %v14459_v60, 5  ;;  %v10373_v38 = vld [vmem:[%s15533_s5 + $0x110] sm:$0xff]   ;;  %v10375_v56 = vld [vmem:[%s15533_s5 + $0x148] sm:$0xff]  }
 0xb14   : > { %v4812_v46 = vpop.permute.xlu0 %4811  ;;  %v7188_v15 = vsel %vm4388_vm11, %v7187_v1, %v7186_v7  ;;  %8661 = vmatmul.mubr.bf16.vlgmr.msra.gmra.mxu0 %v7543_v12  ;;  %9653 = vmatpush3.bf16.msra.mxu1 %v10369_v21  ;;  %v4900_v31 = vsel %vm4379_vm3, %v14235_v26, %v4899_v52  ;;  %v7068_v44 = vrot.slane %v14461_v19, 4  ;;  %v7070_v33 = vrot.slane %v14473_v57, 3 }
 0xb15   : > { %4814 = vst.msk [vmem:[#allocation2 + $0x28] sm:$0xff] %vm4447_vm2, %v4812_v46  ;;  %7189 = vrot.lane.b32.xlu1 %v7188_v15, %s10618_s25  ;;  %9667 = vmatpush3.bf16.msra.mxu0 %v10368_v22  ;;  %v4902_v1 = vsel %vm4382_vm7, %v4901_v20, %v4900_v31  ;;  %v7065_v35 = vsel %vm4370_vm1, %v7064_v4, %v7063_v32  ;;  %v7072_v59 = vrot.slane %v14492_v50, 2  ;;  %v7074_v47 = vrot.slane %v14589_v13, 1  ;;  %v10376_v4 = vld [vmem:[%s15533_s5 + $0x1a8] sm:$0xff]   ;;  %v10379_v46 = vld [vmem:[%s15533_s5 + $0x140] sm:$0xff]  }
 0xb16   : > { %v4904_v63 = vsel %vm4385_vm4, %v4903_v10, %v4902_v1  ;;  %v7067_v21 = vsel %vm4373_vm0, %v7066_v9, %v7065_v35  ;;  %v7105_v42 = vrot.slane %v14532_v55, 1  ;;  %9668 = vmatprep.subr.bf16.mxu0 %v10370_v37  ;;  %9654 = vmatprep.subr.bf16.mxu1 %v10371_v58  ;;  %v7107_v18 = vrot.slane %v14538_v34, 7 }
 0xb17   : > { %v4906_v23 = vsel %vm4388_vm11, %v4905_v6, %v4904_v63  ;;  %v7069_v22 = vsel %vm4376_vm6, %v7068_v44, %v7067_v21  ;;  %v7109_v20 = vrot.slane %v14540_v5, 6  ;;  %v7111_v36 = vrot.slane %v14543_v11, 5  ;;  %v10377_v6 = vld [vmem:[%s15533_s5 + $0x108] sm:$0xff]   ;;  %v10381_v21 = vld [vmem:[%s15533_s5 + $0x100] sm:$0xff]  }
 0xb18   : > { %v4724_v10 = vpop.permute.xlu1 %4723  ;;  %4908 = vst.msk [vmem:[#allocation2 + $0x38] sm:$0xff] %vm16228_vm8, %v4906_v23  ;;  %v7071_v28 = vsel %vm4379_vm3, %v7070_v33, %v7069_v22  ;;  %v7106_v12 = vsel %vm4370_vm1, %v14534_v25, %v7105_v42  ;;  %v7113_v37 = vrot.slane %v14545_v3, 4  ;;  %9655 = vmatpush3.bf16.msra.mxu1 %v10373_v38  ;;  %v7115_v52 = vrot.slane %v14593_v2, 3  ;;  %v10378_v38 = vld [vmem:[%s15533_s5 + $0x1e0] sm:$0xff]   ;;  %vm16249_vm8 = vmmov %vm16173_vm5 }
 0xb19   : > { %4726 = vst.msk [vmem:[#allocation2 + $0x20] sm:$0xff] %vm4428_vm13, %v4724_v10  ;;  %v7073_v58 = vsel %vm4382_vm7, %v7072_v59, %v7071_v28  ;;  %v7108_v7 = vsel %vm4373_vm0, %v7107_v18, %v7106_v12  ;;  %v7117_v32 = vrot.slane %v14608_v27, 2  ;;  %9669 = vmatpush3.bf16.msra.mxu0 %v10372_v54  ;;  %9656 = vmatprep.subr.bf16.mxu1 %v10375_v56  ;;  %v4823_v9 = vrot.slane %v14225_v61, 7  ;;  %v10382_v18 = vld [vmem:[%s15533_s5 + $0x1d8] sm:$0xff]  }
 0xb1a   : > { %v7075_v15 = vsel %vm4385_vm4, %v7074_v47, %v7073_v58  ;;  %v7110_v31 = vsel %vm4376_vm6, %v7109_v20, %v7108_v7  ;;  %v4825_v44 = vrot.slane %v14230_v40, 6  ;;  %9670 = vmatprep.subr.bf16.mxu0 %v10374_v14  ;;  %v4827_v33 = vrot.slane %v14232_v53, 5 }
 0xb1b   : > { %v7076_v1 = vsel %vm4388_vm11, %v14602_v30, %v7075_v15  ;;  %v7112_v35 = vsel %vm4379_vm3, %v7111_v36, %v7110_v31  ;;  %v4829_v59 = vrot.slane %v14235_v26, 4  ;;  %v4824_v40 = vsel %vm4370_vm1, %v4823_v9, %v16227_v16 }
 0xb1c   : > { %7077 = vrot.lane.b32.xlu0 %v7076_v1, %s10617_s22  ;;  %v7114_v61 = vsel %vm4382_vm7, %v7113_v37, %v7112_v35  ;;  %v7530_v54 = vld [vmem:[#allocation2 + $0x28] sm:$0xff]  ;;  %v4831_v56 = vrot.slane %v14237_v24, 3  ;;  %v4833_v63 = vrot.slane %v14239_v51, 2  ;;  %9657 = vmatpush3.bf16.msra.mxu1 %v10377_v6  ;;  %v4742_v53 = vpop.permute.xlu0 %4741  ;;  %v4826_v42 = vsel %vm4373_vm0, %v4825_v44, %v4824_v40  ;;  %v10380_v24 = vld [vmem:[%s15533_s5 + $0x1a0] sm:$0xff]   ;;  %v10390_v51 = vld [vmem:[%s15533_s5 + $0x278] sm:$0xff]  }
 0xb1d   : > { %v7116_v26 = vsel %vm4385_vm4, %v7115_v52, %v7114_v61  ;;  %v7546_v47 = vpack.c.bf16 %v7530_v54, %v7530_v54  ;;  %v4835_v14 = vrot.slane %v14241_v43, 1  ;;  %9671 = vmatpush3.bf16.msra.mxu0 %v10376_v4  ;;  %9658 = vmatprep.subr.bf16.mxu1 %v10379_v46  ;;  %4744 = vst.msk [vmem:[#allocation2 + $0x20] sm:$0xff] %vm4447_vm2, %v4742_v53  ;;  %v6993_v22 = vrot.slane %v14452_v29, 3  ;;  %v10383_v46 = vld [vmem:[%s15533_s5 + $0x198] sm:$0xff]  }
 0xb1e   : > { %v7118_v16 = vsel %vm4388_vm11, %v7117_v32, %v7116_v26  ;;  %v4828_v23 = vsel %vm4376_vm6, %v4827_v33, %v4826_v42  ;;  %v6994_v43 = vrot.slane %v14457_v49, 2  ;;  %9672 = vmatprep.subr.bf16.mxu0 %v10378_v38  ;;  %v6996_v10 = vrot.slane %v14459_v60, 1  ;;  %v10384_v38 = vld [vmem:[%s15533_s5 + $0x1d0] sm:$0xff]  }
 0xb1f   : > { %7119 = vrot.lane.b32.xlu1 %v7118_v16, %s10618_s25  ;;  %8700 = vmatprep.mubr.bf16.mxu1 %v7546_v47  ;;  %v4830_v20 = vsel %vm4379_vm3, %v4829_v59, %v4828_v23  ;;  %v6999_v28 = vrot.slane %v14473_v57, 7  ;;  %v7001_v12 = vrot.slane %v14492_v50, 6  ;;  %v7003_v6 = vrot.slane %v14589_v13, 5  ;;  %v10385_v47 = vld [vmem:[%s15533_s5 + $0x190] sm:$0xff]   ;;  %v10386_v16 = vld [vmem:[%s15533_s5 + $0x1c8] sm:$0xff]  }
 0xb20   : > { %v4832_v36 = vsel %vm4382_vm7, %v4831_v56, %v4830_v20  ;;  %v6995_v37 = vsel %vm4370_vm1, %v6994_v43, %v6993_v22  ;;  %v7005_v58 = vrot.slane %v14602_v30, 4  ;;  %9659 = vmatpush3.bf16.msra.mxu1 %v10381_v21  ;;  %v7123_v32 = vrot.slane %v14532_v55, 2 }
 0xb21   : > { %v4834_v7 = vsel %vm4385_vm4, %v4833_v63, %v4832_v36  ;;  %v6997_v52 = vsel %vm4373_vm0, %v6996_v10, %v6995_v37  ;;  %v7124_v4 = vrot.slane %v14534_v25, 1  ;;  %9673 = vmatpush3.bf16.msra.mxu0 %v10380_v24  ;;  %9688 = vmatprep.subr.bf16.mxu1 %v10390_v51  ;;  %v7127_v9 = vrot.slane %v14540_v5, 7 }
 0xb22   : > { %v4836_v15 = vsel %vm4388_vm11, %v4835_v14, %v4834_v7  ;;  %v6998_v31 = vsel %vm4376_vm6, %v14461_v19, %v6997_v52  ;;  %v7129_v44 = vrot.slane %v14543_v11, 6  ;;  %9674 = vmatprep.subr.bf16.mxu0 %v10382_v18  ;;  %v7131_v33 = vrot.slane %v14545_v3, 5 }
 0xb23   : > { %4838 = vst.msk [vmem:[#allocation2 + $0x30] sm:$0xff] %vm16229_vm9, %v4836_v15  ;;  %v7000_v1 = vsel %vm4379_vm3, %v6999_v28, %v6998_v31  ;;  %v7125_v35 = vsel %vm4370_vm1, %v7124_v4, %v7123_v32  ;;  %v7133_v59 = vrot.slane %v14593_v2, 4  ;;  %v7135_v40 = vrot.slane %v14608_v27, 3  ;;  %v10387_v32 = vld [vmem:[%s15533_s5 + $0x188] sm:$0xff]   ;;  %vm16250_vm9 = vmmov %vm16173_vm5 }
 0xb24   : > { %v7002_v61 = vsel %vm4382_vm7, %v7001_v12, %v7000_v1  ;;  %v7126_v54 = vsel %vm4373_vm0, %v14538_v34, %v7125_v35  ;;  %v7211_v56 = vrot.slane %v14532_v55, 7  ;;  %v7212_v53 = vrot.slane %v14534_v25, 6  ;;  %v16230_v1 = vld [vmem:[#allocation50_spill] sm:$0xff] }
 0xb25   : > { %v7004_v63 = vsel %vm4385_vm4, %v7003_v6, %v7002_v61  ;;  %v7128_v21 = vsel %vm4376_vm6, %v7127_v9, %v7126_v54  ;;  %v7214_v26 = vrot.slane %v14538_v34, 5  ;;  %9675 = vmatpush3.bf16.msra.mxu0 %v10383_v46  ;;  %v7216_v24 = vrot.slane %v14540_v5, 4  ;;  %v16231_v54 = vld [vmem:[#allocation34_spill] sm:$0xff] }
 0xb26   : > { %v7006_v42 = vsel %vm4388_vm11, %v7005_v58, %v7004_v63  ;;  %v7130_v14 = vsel %vm4379_vm3, %v7129_v44, %v7128_v21  ;;  %v7218_v51 = vrot.slane %v14543_v11, 3  ;;  %9676 = vmatprep.subr.bf16.mxu0 %v10384_v38  ;;  %v4924_v23 = vpop.permute.xlu1 %4923  ;;  %v7213_v43 = vsel %vm4370_vm1, %v7212_v53, %v7211_v56  ;;  %v16232_v56 = vld [vmem:[#allocation49_spill] sm:$0xff] }
 0xb27   : > { %7007 = vrot.lane.b32.xlu0 %v7006_v42, %s10617_s22  ;;  %v7132_v22 = vsel %vm4382_vm7, %v7131_v33, %v7130_v14  ;;  %v7220_v18 = vrot.slane %v14545_v3, 2  ;;  %v7222_v20 = vrot.slane %v14593_v2, 1  ;;  %4926 = vst.msk [vmem:[#allocation2 + $0x38] sm:$0xff] %vm4409_vm10, %v4924_v23  ;;  %v7215_v28 = vsel %vm4373_vm0, %v7214_v26, %v7213_v43  ;;  %v10388_v33 = vld [vmem:[%s15533_s5 + $0x1c0] sm:$0xff]   ;;  %v16233_v26 = vld [vmem:[#allocation38_spill] sm:$0xff]  ;;  %v16236_v43 = vld [vmem:[#allocation7_spill] sm:$0xff] }
 0xb28   : > { %v7134_v10 = vsel %vm4385_vm4, %v7133_v59, %v7132_v22  ;;  %v7141_v12 = vrot.slane %v14532_v55, 3  ;;  %v7142_v36 = vrot.slane %v14534_v25, 2  ;;  %v7217_v58 = vsel %vm4376_vm6, %v7216_v24, %v7215_v28  ;;  %v16234_v42 = vld [vmem:[#allocation36_spill] sm:$0xff]  ;;  %v16235_v23 = vld [vmem:[#allocation42_spill] sm:$0xff]  ;;  %v10394_v28 = vld [vmem:[%s15533_s5 + $0x2f8] sm:$0xff]  }
 0xb29   : > { %v4942_v37 = vpop.permute.xlu0 %4941  ;;  %v7136_v6 = vsel %vm4388_vm11, %v7135_v40, %v7134_v10  ;;  %v7144_v7 = vrot.slane %v14538_v34, 1  ;;  %v7147_v52 = vrot.slane %v14543_v11, 7  ;;  %9677 = vmatpush3.bf16.msra.mxu0 %v10385_v47  ;;  %v7219_v4 = vsel %vm4379_vm3, %v7218_v51, %v7217_v58  ;;  %v10389_v24 = vld [vmem:[%s15533_s5 + $0x180] sm:$0xff]  }
 0xb2a   : > { %4944 = vst.msk [vmem:[#allocation2 + $0x38] sm:$0xff] %vm4428_vm13, %v4942_v37  ;;  %7137 = vrot.lane.b32.xlu1 %v7136_v6, %s10619_s24  ;;  %v7143_v46 = vsel %vm4370_vm1, %v7142_v36, %v7141_v12  ;;  %v7149_v15 = vrot.slane %v14545_v3, 6  ;;  %v7151_v31 = vrot.slane %v14593_v2, 5  ;;  %9678 = vmatprep.subr.bf16.mxu0 %v10386_v16  ;;  %v7221_v9 = vsel %vm4382_vm7, %v7220_v18, %v7219_v4 }
 0xb2b   : > { %v7145_v44 = vsel %vm4373_vm0, %v7144_v7, %v7143_v46  ;;  %v7153_v38 = vrot.slane %v14608_v27, 4  ;;  %v6871_v35 = vmul.f32 %v14378_v0, %v16230_v1  ;;  %v7223_v59 = vsel %vm4385_vm4, %v7222_v20, %v7221_v9  ;;  %v16237_v20 = vld [vmem:[#allocation40_spill] sm:$0xff] }
 0xb2c   : > { %v7146_v61 = vsel %vm4376_vm6, %v14540_v5, %v7145_v44  ;;  %v6875_v40 = vmul.f32 %v14399_v48, %v16231_v54  ;;  %v6879_v63 = vmul.f32 %v14425_v41, %v16232_v56  ;;  %v7224_v21 = vsel %vm4388_vm11, %v14608_v27, %v7223_v59 }
 0xb2d   : > { %v7148_v53 = vsel %vm4379_vm3, %v7147_v52, %v7146_v61  ;;  %v6883_v47 = vmul.f32 %v14431_v45, %v16233_v26  ;;  %v6887_v14 = vmul.f32 %v14454_v39, %v16234_v42  ;;  %9679 = vmatpush3.bf16.msra.mxu0 %v10387_v32  ;;  %v4854_v51 = vpop.permute.xlu1 %4853  ;;  %7225 = vrot.lane.b32.xlu0 %v7224_v21, %s10617_s22  ;;  %v14895_v36 = vmax.f32 %v6871_v35, 0.0 }
 0xb2e   : > { %v7150_v16 = vsel %vm4382_vm7, %v7149_v15, %v7148_v53  ;;  %v6891_v22 = vmul.f32 %v14476_v62, %v16235_v23  ;;  %v6895_v18 = vmul.f32 %v14562_v17, %v16236_v43  ;;  %v6899_v10 = vmul.f32 %v14576_v8, %v16237_v20  ;;  %4856 = vst.msk [vmem:[#allocation2 + $0x30] sm:$0xff] %vm4409_vm10, %v4854_v51 }
 0xb2f   : > { %v7152_v12 = vsel %vm4385_vm4, %v7151_v31, %v7150_v16  ;;  %v14897_v37 = vmax.f32 %v6875_v40, 0.0  ;;  %v14899_v6 = vmax.f32 %v6879_v63, 0.0  ;;  %9680 = vmatprep.subr.bf16.mxu0 %v10388_v33  ;;  %v14902_v7 = vmax.f32 %v6883_v47, 0.0  ;;  %v7529_v40 = vld [vmem:[#allocation2 + $0x20] sm:$0xff] }
 0xb30   : > { %v7154_v58 = vsel %vm4388_vm11, %v7153_v38, %v7152_v12  ;;  %v14904_v52 = vmax.f32 %v6887_v14, 0.0  ;;  %v14906_v32 = vmax.f32 %v6891_v22, 0.0  ;;  %v14909_v4 = vmax.f32 %v6895_v18, 0.0  ;;  %v16238_v22 = vld [vmem:[#allocation33_spill] sm:$0xff]  ;;  %v10392_v18 = vld [vmem:[%s15533_s5 + $0x270] sm:$0xff]   ;;  %v16239_v12 = vld [vmem:[#allocation51_spill] sm:$0xff] }
 0xb31   : > { %7155 = vrot.lane.b32.xlu1 %v7154_v58, %s10617_s22  ;;  %v14911_v46 = vmax.f32 %v6899_v10, 0.0  ;;  %v7341_v15 = vrot.slane %v14895_v36, 6  ;;  %v7342_v31 = vrot.slane %v14897_v37, 5  ;;  %9681 = vmatpush3.bf16.msra.mxu0 %v10389_v24  ;;  %v7344_v9 = vrot.slane %v14899_v6, 4  ;;  %v10391_v24 = vld [vmem:[%s15533_s5 + $0x238] sm:$0xff]  }
 0xb32   : > { %v7346_v44 = vrot.slane %v14902_v7, 3  ;;  %v7348_v38 = vrot.slane %v14904_v52, 2  ;;  %v7350_v1 = vrot.slane %v14906_v32, 1  ;;  %9710 = vmatprep.subr.bf16.mxu0 %v10394_v28  ;;  %v4960_v35 = vpop.permute.xlu0 %4959  ;;  %v7253_v61 = vrot.slane %v14895_v36, 1 }
 0xb33   : > { %v7343_v33 = vsel %vm4370_vm1, %v7342_v31, %v7341_v15  ;;  %v7353_v59 = vrot.slane %v14911_v46, 7  ;;  %v7255_v54 = vrot.slane %v14899_v6, 7  ;;  %4962 = vst.msk [vmem:[#allocation2 + $0x38] sm:$0xff] %vm4447_vm2, %v4960_v35  ;;  %v7257_v63 = vrot.slane %v14902_v7, 6  ;;  %v16240_v15 = vld [vmem:[#allocation27_spill] sm:$0xff] }
 0xb34   : > { %v7345_v56 = vsel %vm4373_vm0, %v7344_v9, %v7343_v33  ;;  %v7259_v21 = vrot.slane %v14904_v52, 5  ;;  %v7261_v53 = vrot.slane %v14906_v32, 4  ;;  %v7254_v47 = vsel %vm4370_vm1, %v14897_v37, %v7253_v61  ;;  %v16243_v61 = vld [vmem:[#allocation22_spill] sm:$0xff] }
 0xb35   : > { %v7347_v26 = vsel %vm4376_vm6, %v7346_v44, %v7345_v56  ;;  %v7263_v42 = vrot.slane %v14909_v4, 3  ;;  %v7265_v14 = vrot.slane %v14911_v46, 2  ;;  %v7256_v16 = vsel %vm4373_vm0, %v7255_v54, %v7254_v47  ;;  %v16241_v44 = vld [vmem:[#allocation39_spill] sm:$0xff]  ;;  %v16244_v54 = vld [vmem:[#allocation29_spill] sm:$0xff]  ;;  %v10393_v56 = vld [vmem:[%s15533_s5 + $0x230] sm:$0xff]  }
 0xb36   : > { %v7349_v51 = vsel %vm4379_vm3, %v7348_v38, %v7347_v26  ;;  %v7545_v23 = vpack.c.bf16 %v7529_v40, %v7529_v40  ;;  %v6872_v43 = vmul.f32 %v14378_v0, %v16238_v22  ;;  %v4872_v20 = vpop.permute.xlu1 %4871  ;;  %v7258_v28 = vsel %vm4376_vm6, %v7257_v63, %v7256_v16 }
 0xb37   : > { %v7351_v10 = vsel %vm4382_vm7, %v7350_v1, %v7349_v51  ;;  %v6876_v58 = vmul.f32 %v14399_v48, %v16239_v12  ;;  %v6880_v31 = vmul.f32 %v14425_v41, %v16240_v15  ;;  %4874 = vst.msk [vmem:[#allocation2 + $0x30] sm:$0xff] %vm4428_vm13, %v4872_v20  ;;  %v7260_v9 = vsel %vm4379_vm3, %v7259_v21, %v7258_v28  ;;  %v16242_v1 = vld [vmem:[#allocation41_spill] sm:$0xff]  ;;  %v10400_v15 = vld [vmem:[%s15533_s5 + $0x260] sm:$0xff]  }
 0xb38   : > { %v7352_v0 = vsel %vm4385_vm4, %v14909_v4, %v7351_v10  ;;  %8701 = vmatmul.mubr.bf16.vlgmr.msra.gmra.mxu1 %v7545_v23  ;;  %v6884_v38 = vmul.f32 %v14431_v45, %v16241_v44  ;;  %v6888_v35 = vmul.f32 %v14454_v39, %v16242_v1  ;;  %v7262_v48 = vsel %vm4382_vm7, %v7261_v53, %v7260_v9  ;;  %v16245_v39 = vld [vmem:[#allocation15_spill] sm:$0xff]  ;;  %v10397_v20 = vld [vmem:[%s15533_s5 + $0x228] sm:$0xff]  }
 0xb39   : > { %v7354_v33 = vsel %vm4388_vm11, %v7353_v59, %v7352_v0  ;;  %v6892_v41 = vmul.f32 %v14476_v62, %v16243_v61  ;;  %v6896_v40 = vmul.f32 %v14562_v17, %v16244_v54  ;;  %9689 = vmatpush3.bf16.msra.mxu1 %v10391_v24  ;;  %v7264_v45 = vsel %vm4385_vm4, %v7263_v42, %v7262_v48  ;;  %v10396_v62 = vld [vmem:[%s15533_s5 + $0x268] sm:$0xff]  }
 0xb3a   : > { %7355 = vrot.lane.b32.xlu0 %v7354_v33, %s10619_s24  ;;  %v6900_v59 = vmul.f32 %v14576_v8, %v16245_v39  ;;  %v14970_v63 = vmax.f32 %v6872_v43, 0.0  ;;  %v14972_v21 = vmax.f32 %v6876_v58, 0.0  ;;  %9690 = vmatprep.subr.bf16.mxu1 %v10392_v18  ;;  %v7266_v53 = vsel %vm4388_vm11, %v7265_v14, %v7264_v45  ;;  %v7532_v26 = vld [vmem:[#allocation2 + $0x38] sm:$0xff] }
 0xb3b   : > { %v4890_v17 = vpop.permute.xlu1 %4889  ;;  %v14978_v47 = vmax.f32 %v6880_v31, 0.0  ;;  %v14980_v24 = vmax.f32 %v6884_v38, 0.0  ;;  %v14982_v42 = vmax.f32 %v6888_v35, 0.0  ;;  %7267 = vrot.lane.b32.xlu1 %v7266_v53, %s10618_s25  ;;  %v7548_v8 = vpack.c.bf16 %v7532_v26, %v7532_v26 }
 0xb3c   : > { %4892 = vst.msk [vmem:[#allocation2 + $0x30] sm:$0xff] %vm4447_vm2, %v4890_v17  ;;  %v14986_v51 = vmax.f32 %v6892_v41, 0.0  ;;  %v14988_v16 = vmax.f32 %v6896_v40, 0.0  ;;  %v14990_v23 = vmax.f32 %v6900_v59, 0.0  ;;  %v7489_v14 = vrot.slane %v14970_v63, 6  ;;  %v10401_v40 = vld [vmem:[%s15533_s5 + $0x220] sm:$0xff]  }
 0xb3d   : > { %v7490_v22 = vrot.slane %v14972_v21, 5  ;;  %v7492_v43 = vrot.slane %v14978_v47, 4  ;;  %v7494_v18 = vrot.slane %v14980_v24, 3  ;;  %9691 = vmatpush3.bf16.msra.mxu1 %v10393_v56  ;;  %8740 = vmatprep.mubr.bf16.mxu0 %v7548_v8  ;;  %v7496_v10 = vrot.slane %v14982_v42, 2 }
 0xb3e   : > { %v7498_v28 = vrot.slane %v14986_v51, 1  ;;  %v7501_v12 = vrot.slane %v14990_v23, 7  ;;  %v7271_v58 = vrot.slane %v14895_v36, 2  ;;  %9692 = vmatprep.subr.bf16.mxu1 %v10396_v62  ;;  %v7272_v0 = vrot.slane %v14897_v37, 1  ;;  %v10404_v62 = vld [vmem:[%s15533_s5 + $0x258] sm:$0xff]  }
 0xb3f   : > { %v7491_v31 = vsel %vm4370_vm1, %v7490_v22, %v7489_v14  ;;  %v7275_v9 = vrot.slane %v14902_v7, 7  ;;  %v7277_v44 = vrot.slane %v14904_v52, 6  ;;  %v7279_v1 = vrot.slane %v14906_v32, 5 }
 0xb40   : > { %v7493_v38 = vsel %vm4373_vm0, %v7492_v43, %v7491_v31  ;;  %v7281_v35 = vrot.slane %v14909_v4, 4  ;;  %v7283_v33 = vrot.slane %v14911_v46, 3  ;;  %v7273_v61 = vsel %vm4370_vm1, %v7272_v0, %v7271_v58 }
 0xb41   : > { %v7495_v48 = vsel %vm4376_vm6, %v7494_v18, %v7493_v38  ;;  %v7323_v41 = vrot.slane %v14895_v36, 5  ;;  %v7324_v54 = vrot.slane %v14897_v37, 4  ;;  %9693 = vmatpush3.bf16.msra.mxu1 %v10397_v20  ;;  %v7274_v45 = vsel %vm4373_vm0, %v14899_v6, %v7273_v61 }
 0xb42   : > { %v7497_v56 = vsel %vm4379_vm3, %v7496_v10, %v7495_v48  ;;  %v7326_v39 = vrot.slane %v14899_v6, 3  ;;  %v7328_v59 = vrot.slane %v14902_v7, 2  ;;  %9694 = vmatprep.subr.bf16.mxu1 %v10400_v15  ;;  %v7276_v53 = vsel %vm4376_vm6, %v7275_v9, %v7274_v45  ;;  %v10405_v15 = vld [vmem:[%s15533_s5 + $0x218] sm:$0xff]  }
 0xb43   : > { %v7499_v17 = vsel %vm4382_vm7, %v7498_v28, %v7497_v56  ;;  %v7325_v26 = vsel %vm4370_vm1, %v7324_v54, %v7323_v41  ;;  %v7330_v8 = vrot.slane %v14904_v52, 1  ;;  %v7278_v22 = vsel %vm4379_vm3, %v7277_v44, %v7276_v53  ;;  %v10408_v44 = vld [vmem:[%s15533_s5 + $0x250] sm:$0xff]  }
 0xb44   : > { %v7500_v14 = vsel %vm4385_vm4, %v14988_v16, %v7499_v17  ;;  %v7327_v43 = vsel %vm4373_vm0, %v7326_v39, %v7325_v26  ;;  %v7333_v18 = vrot.slane %v14909_v4, 7  ;;  %v7280_v10 = vsel %vm4382_vm7, %v7279_v1, %v7278_v22 }
 0xb45   : > { %v7502_v20 = vsel %vm4388_vm11, %v7501_v12, %v7500_v14  ;;  %v7329_v28 = vsel %vm4376_vm6, %v7328_v59, %v7327_v43  ;;  %v7335_v58 = vrot.slane %v14911_v46, 6  ;;  %9695 = vmatpush3.bf16.msra.mxu1 %v10401_v40  ;;  %v7282_v31 = vsel %vm4385_vm4, %v7281_v35, %v7280_v10  ;;  %v10409_v59 = vld [vmem:[%s15533_s5 + $0x210] sm:$0xff]  }
 0xb46   : > { %7503 = vrot.lane.b32.xlu0 %v7502_v20, %s10619_s24  ;;  %v7331_v0 = vsel %vm4379_vm3, %v7330_v8, %v7329_v28  ;;  %v7471_v9 = vrot.slane %v14970_v63, 5  ;;  %v7472_v12 = vrot.slane %v14972_v21, 4  ;;  %9696 = vmatprep.subr.bf16.mxu1 %v10404_v62  ;;  %v7284_v38 = vsel %vm4388_vm11, %v7283_v33, %v7282_v31  ;;  %v10412_v8 = vld [vmem:[%s15533_s5 + $0x248] sm:$0xff]  }
 0xb47   : > { %v7332_v1 = vsel %vm4382_vm7, %v14906_v32, %v7331_v0  ;;  %v7474_v48 = vrot.slane %v14978_v47, 3  ;;  %v7476_v35 = vrot.slane %v14980_v24, 2  ;;  %7285 = vrot.lane.b32.xlu1 %v7284_v38, %s10619_s24  ;;  %v7478_v54 = vrot.slane %v14982_v42, 1 }
 0xb48   : > { %v7334_v61 = vsel %vm4385_vm4, %v7333_v18, %v7332_v1  ;;  %v7473_v41 = vsel %vm4370_vm1, %v7472_v12, %v7471_v9  ;;  %v7481_v40 = vrot.slane %v14988_v16, 7  ;;  %v7483_v45 = vrot.slane %v14990_v23, 6  ;;  %v10413_v12 = vld [vmem:[%s15533_s5 + $0x208] sm:$0xff]  }
 0xb49   : > { %v7336_v56 = vsel %vm4388_vm11, %v7335_v58, %v7334_v61  ;;  %v7475_v33 = vsel %vm4373_vm0, %v7474_v48, %v7473_v41  ;;  %v7359_v39 = vrot.slane %v14895_v36, 7  ;;  %9697 = vmatpush3.bf16.msra.mxu1 %v10405_v15  ;;  %v7360_v17 = vrot.slane %v14897_v37, 6 }
 0xb4a   : > { %7337 = vrot.lane.b32.xlu0 %v7336_v56, %s10618_s25  ;;  %v7477_v62 = vsel %vm4376_vm6, %v7476_v35, %v7475_v33  ;;  %v7362_v53 = vrot.slane %v14899_v6, 5  ;;  %v7364_v26 = vrot.slane %v14902_v7, 4  ;;  %9698 = vmatprep.subr.bf16.mxu1 %v10408_v44  ;;  %v7366_v22 = vrot.slane %v14904_v52, 3  ;;  %v10416_v35 = vld [vmem:[%s15533_s5 + $0x240] sm:$0xff]  }
 0xb4b   : > { %v7479_v14 = vsel %vm4379_vm3, %v7478_v54, %v7477_v62  ;;  %v7368_v43 = vrot.slane %v14906_v32, 2  ;;  %v7370_v18 = vrot.slane %v14909_v4, 1  ;;  %v7361_v10 = vsel %vm4370_vm1, %v7360_v17, %v7359_v39 }
 0xb4c   : > { %v7480_v20 = vsel %vm4382_vm7, %v14986_v51, %v7479_v14  ;;  %v7401_v28 = vrot.slane %v14970_v63, 1  ;;  %v7403_v58 = vrot.slane %v14978_v47, 7  ;;  %v7363_v31 = vsel %vm4373_vm0, %v7362_v53, %v7361_v10 }
 0xb4d   : > { %v7482_v15 = vsel %vm4385_vm4, %v7481_v40, %v7480_v20  ;;  %v7405_v0 = vrot.slane %v14980_v24, 6  ;;  %v7407_v9 = vrot.slane %v14982_v42, 5  ;;  %9699 = vmatpush3.bf16.msra.mxu1 %v10409_v59  ;;  %v7365_v38 = vsel %vm4376_vm6, %v7364_v26, %v7363_v31  ;;  %v10417_v26 = vld [vmem:[%s15533_s5 + $0x200] sm:$0xff]  }
 0xb4e   : > { %v7484_v44 = vsel %vm4388_vm11, %v7483_v45, %v7482_v15  ;;  %v7402_v1 = vsel %vm4370_vm1, %v14972_v21, %v7401_v28  ;;  %v7409_v48 = vrot.slane %v14986_v51, 4  ;;  %9700 = vmatprep.subr.bf16.mxu1 %v10412_v8  ;;  %v7367_v61 = vsel %vm4379_vm3, %v7366_v22, %v7365_v38 }
 0xb4f   : > { %7485 = vrot.lane.b32.xlu1 %v7484_v44, %s10618_s25  ;;  %v7404_v41 = vsel %vm4373_vm0, %v7403_v58, %v7402_v1  ;;  %v7411_v54 = vrot.slane %v14988_v16, 3  ;;  %v7413_v40 = vrot.slane %v14990_v23, 2  ;;  %v7369_v56 = vsel %vm4382_vm7, %v7368_v43, %v7367_v61 }
 0xb50   : > { %v7406_v33 = vsel %vm4376_vm6, %v7405_v0, %v7404_v41  ;;  %v7289_v45 = vrot.slane %v14895_v36, 3  ;;  %v7290_v39 = vrot.slane %v14897_v37, 2  ;;  %v7371_v59 = vsel %vm4385_vm4, %v7370_v18, %v7369_v56  ;;  %v10420_v18 = vld [vmem:[%s15533_s5 + $0x378] sm:$0xff]  }
 0xb51   : > { %v7408_v62 = vsel %vm4379_vm3, %v7407_v9, %v7406_v33  ;;  %v7292_v17 = vrot.slane %v14899_v6, 1  ;;  %v7295_v53 = vrot.slane %v14904_v52, 7  ;;  %9701 = vmatpush3.bf16.msra.mxu1 %v10413_v12  ;;  %v7372_v8 = vsel %vm4388_vm11, %v14911_v46, %v7371_v59  ;;  %v7531_v12 = vld [vmem:[#allocation2 + $0x30] sm:$0xff] }
 0xb52   : > { %v7410_v14 = vsel %vm4382_vm7, %v7409_v48, %v7408_v62  ;;  %v7291_v22 = vsel %vm4370_vm1, %v7290_v39, %v7289_v45  ;;  %v7297_v43 = vrot.slane %v14906_v32, 6  ;;  %9702 = vmatprep.subr.bf16.mxu1 %v10416_v35  ;;  %7373 = vrot.lane.b32.xlu0 %v7372_v8, %s10617_s22  ;;  %v7299_v28 = vrot.slane %v14909_v4, 5  ;;  %v10398_v59 = vld [vmem:[%s15533_s5 + $0x2f0] sm:$0xff]  }
 0xb53   : > { %v7412_v20 = vsel %vm4385_vm4, %v7411_v54, %v7410_v14  ;;  %v7293_v10 = vsel %vm4373_vm0, %v7292_v17, %v7291_v22  ;;  %v7301_v58 = vrot.slane %v14911_v46, 4  ;;  %v7419_v0 = vrot.slane %v14970_v63, 2 }
 0xb54   : > { %v7414_v15 = vsel %vm4388_vm11, %v7413_v40, %v7412_v20  ;;  %v7294_v31 = vsel %vm4376_vm6, %v14902_v7, %v7293_v10  ;;  %v7420_v9 = vrot.slane %v14972_v21, 1  ;;  %v7423_v38 = vrot.slane %v14980_v24, 7  ;;  %v10395_v40 = vld [vmem:[%s15533_s5 + $0x2b8] sm:$0xff]  }
 0xb55   : > { %7415 = vrot.lane.b32.xlu1 %v7414_v15, %s10618_s25  ;;  %v7296_v44 = vsel %vm4379_vm3, %v7295_v53, %v7294_v31  ;;  %v7425_v1 = vrot.slane %v14982_v42, 6  ;;  %v7427_v48 = vrot.slane %v14986_v51, 5  ;;  %9703 = vmatpush3.bf16.msra.mxu1 %v10417_v26  ;;  %v7429_v41 = vrot.slane %v14988_v16, 4  ;;  %s10620_s25 = smov [#allocation3]  }
 0xb56   : > { %v7298_v35 = vsel %vm4382_vm7, %v7297_v43, %v7296_v44  ;;  %v7421_v61 = vsel %vm4370_vm1, %v7420_v9, %v7419_v0  ;;  %v7431_v54 = vrot.slane %v14990_v23, 3  ;;  %9732 = vmatprep.subr.bf16.mxu1 %v10420_v18  ;;  %v7547_v45 = vpack.c.bf16 %v7531_v12, %v7531_v12  ;;  %v10402_v12 = vld [vmem:[%s15533_s5 + $0x2e8] sm:$0xff]   ;;  %s10549_s28 = sshll.u32 %s10620_s25, 4  ;;  %s10550_s28 = int_to_ptr.vmem [resolvable:$false] %s10549_s28 }
 0xb57   : > { %v7300_v56 = vsel %vm4385_vm4, %v7299_v28, %v7298_v35  ;;  %v7422_v33 = vsel %vm4373_vm0, %v14978_v47, %v7421_v61  ;;  %v7507_v39 = vrot.slane %v14970_v63, 7  ;;  %v7508_v53 = vrot.slane %v14972_v21, 6  ;;  %s10551_s13 = scalar_lea.vmem %s10550_s28, 256 }
 0xb58   : > { %v7302_v62 = vsel %vm4388_vm11, %v7301_v58, %v7300_v56  ;;  %v7424_v17 = vsel %vm4376_vm6, %v7423_v38, %v7422_v33  ;;  %v7510_v26 = vrot.slane %v14978_v47, 5  ;;  %8741 = vmatmul.mubr.bf16.vlgmr.msra.gmra.mxu0 %v7547_v45  ;;  %v7512_v14 = vrot.slane %v14980_v24, 4  ;;  %v10399_v58 = vld [vmem:[%s15533_s5 + $0x2b0] sm:$0xff]  }
 0xb59   : > { %7303 = vrot.lane.b32.xlu0 %v7302_v62, %s10617_s22  ;;  %v7426_v8 = vsel %vm4379_vm3, %v7425_v1, %v7424_v17  ;;  %v7514_v22 = vrot.slane %v14982_v42, 3  ;;  %v7516_v43 = vrot.slane %v14986_v51, 2  ;;  %v7509_v20 = vsel %vm4370_vm1, %v7508_v53, %v7507_v39  ;;  %9711 = vmatpush3.bf16.msra.mxu0 %v10395_v40  ;;  %v10403_v39 = vld [vmem:[%s15533_s5 + $0x2a8] sm:$0xff]  }
 0xb5a   : > { %v7428_v18 = vsel %vm4382_vm7, %v7427_v48, %v7426_v8  ;;  %v7518_v10 = vrot.slane %v14988_v16, 1  ;;  %v7437_v28 = vrot.slane %v14970_v63, 3  ;;  %v7511_v31 = vsel %vm4373_vm0, %v7510_v26, %v7509_v20  ;;  %9712 = vmatprep.subr.bf16.mxu0 %v10398_v59  ;;  %v10406_v26 = vld [vmem:[%s15533_s5 + $0x2e0] sm:$0xff]  }
 0xb5b   : > { %v7430_v15 = vsel %vm4385_vm4, %v7429_v41, %v7428_v18  ;;  %v7438_v0 = vrot.slane %v14972_v21, 2  ;;  %v7440_v9 = vrot.slane %v14978_v47, 1  ;;  %v7513_v38 = vsel %vm4376_vm6, %v7512_v14, %v7511_v31 }
 0xb5c   : > { %v7432_v44 = vsel %vm4388_vm11, %v7431_v54, %v7430_v15  ;;  %v7443_v1 = vrot.slane %v14982_v42, 7  ;;  %v7445_v48 = vrot.slane %v14986_v51, 6  ;;  %v7515_v35 = vsel %vm4379_vm3, %v7514_v22, %v7513_v38 }
 0xb5d   : > { %7433 = vrot.lane.b32.xlu1 %v7432_v44, %s10619_s24  ;;  %v7439_v61 = vsel %vm4370_vm1, %v7438_v0, %v7437_v28  ;;  %v7447_v41 = vrot.slane %v14988_v16, 5  ;;  %v7449_v40 = vrot.slane %v14990_v23, 4  ;;  %v7517_v56 = vsel %vm4382_vm7, %v7516_v43, %v7515_v35  ;;  %9713 = vmatpush3.bf16.msra.mxu0 %v10399_v58  ;;  %s9067_s24 = sshll.u32 %s381_s21, 3 }
 0xb5e   : > { %v7441_v54 = vsel %vm4373_vm0, %v7440_v9, %v7439_v61  ;;  %v6941_v33 = vrot.slane %v14457_v49, 7  ;;  %v6943_v45 = vrot.slane %v14459_v60, 6  ;;  %v7519_v59 = vsel %vm4385_vm4, %v7518_v10, %v7517_v56  ;;  %9714 = vmatprep.subr.bf16.mxu0 %v10402_v12  ;;  %v10407_v9 = vld [vmem:[%s15533_s5 + $0x2a0] sm:$0xff]  }
 0xb5f   : > { %v7442_v62 = vsel %vm4376_vm6, %v14980_v24, %v7441_v54  ;;  %v6945_v17 = vrot.slane %v14461_v19, 5  ;;  %v6947_v53 = vrot.slane %v14473_v57, 4  ;;  %v7520_v8 = vsel %vm4388_vm11, %v14990_v23, %v7519_v59 }
 0xb60   : > { %v7444_v14 = vsel %vm4379_vm3, %v7443_v1, %v7442_v62  ;;  %v6942_v22 = vsel %vm4370_vm1, %v6941_v33, %v14452_v29  ;;  %v6949_v43 = vrot.slane %v14492_v50, 3  ;;  %7521 = vrot.lane.b32.xlu0 %v7520_v8, %s10617_s22  ;;  %v6951_v10 = vrot.slane %v14589_v13, 2  ;;  %v10414_v62 = vld [vmem:[%s15533_s5 + $0x2d0] sm:$0xff]  }
 0xb61   : > { %v7446_v18 = vsel %vm4382_vm7, %v7445_v48, %v7444_v14  ;;  %v6944_v20 = vsel %vm4373_vm0, %v6943_v45, %v6942_v22  ;;  %v6953_v28 = vrot.slane %v14602_v30, 1  ;;  %v7011_v31 = vrot.slane %v14452_v29, 4  ;;  %9715 = vmatpush3.bf16.msra.mxu0 %v10403_v39  ;;  %v10410_v29 = vld [vmem:[%s15533_s5 + $0x2d8] sm:$0xff]  }
 0xb62   : > { %v7448_v58 = vsel %vm4385_vm4, %v7447_v41, %v7446_v18  ;;  %v6946_v15 = vsel %vm4376_vm6, %v6945_v17, %v6944_v20  ;;  %v7012_v0 = vrot.slane %v14457_v49, 3  ;;  %v7014_v38 = vrot.slane %v14459_v60, 2  ;;  %9716 = vmatprep.subr.bf16.mxu0 %v10406_v26 }
 0xb63   : > { %v7450_v12 = vsel %vm4388_vm11, %v7449_v40, %v7448_v58  ;;  %v6948_v44 = vsel %vm4379_vm3, %v6947_v53, %v6946_v15  ;;  %v7016_v1 = vrot.slane %v14461_v19, 1  ;;  %v7019_v35 = vrot.slane %v14492_v50, 7  ;;  %v10411_v50 = vld [vmem:[%s15533_s5 + $0x298] sm:$0xff]  }
 0xb64   : > { %7451 = vrot.lane.b32.xlu1 %v7450_v12, %s10617_s22  ;;  %v6950_v49 = vsel %vm4382_vm7, %v6949_v43, %v6948_v44  ;;  %v7013_v48 = vsel %vm4370_vm1, %v7012_v0, %v7011_v31  ;;  %v7023_v61 = vrot.slane %v14602_v30, 5  ;;  %v7021_v19 = vrot.slane %v14589_v13, 6  ;;  %s383_s22 = scalar_lea.vmem [#allocation3], %s9067_s24 }
 0xb65   : > { %v6952_v41 = vsel %vm4385_vm4, %v6951_v10, %v6950_v49  ;;  %v7015_v60 = vsel %vm4373_vm0, %v7014_v38, %v7013_v48  ;;  %v7159_v40 = vrot.slane %v14532_v55, 4  ;;  %v7160_v33 = vrot.slane %v14534_v25, 3  ;;  %9717 = vmatpush3.bf16.msra.mxu0 %v10407_v9  ;;  %s8956_s16 = sshll.u32 %s383_s22, 4  ;;  %s8957_s16 = int_to_ptr.vmem [resolvable:$true] %s8956_s16 }
 0xb66   : > { %v6954_v56 = vsel %vm4388_vm11, %v6953_v28, %v6952_v41  ;;  %v7017_v54 = vsel %vm4376_vm6, %v7016_v1, %v7015_v60  ;;  %v7162_v45 = vrot.slane %v14538_v34, 2  ;;  %v7164_v30 = vrot.slane %v14540_v5, 1  ;;  %9718 = vmatprep.subr.bf16.mxu0 %v10410_v29  ;;  %v10419_v29 = vld [vmem:[%s15533_s5 + $0x288] sm:$0xff]   ;;  %v10421_v60 = vld [vmem:[%s15533_s5 + $0x2c0] sm:$0xff]   ;;  %s10545_s27 = scalar_lea.vmem %s8957_s16, 128  ;;  %p10552_p0 = scmp.lt.s32.totalorder %s8957_s16, %s10550_s28 }
 0xb67   : > { %6956 = vst.msk [vmem:[#allocation2 + $0x40] sm:$0xff] %vm16246_vm12, %v6954_v56  ;;  %v7018_v13 = vsel %vm4379_vm3, %v14473_v57, %v7017_v54  ;;  %v7167_v39 = vrot.slane %v14545_v3, 7  ;;  %v7169_v59 = vrot.slane %v14593_v2, 6  ;;  %v7161_v53 = vsel %vm4370_vm1, %v7160_v33, %v7159_v40  ;;  %p10546_p11 = scmp.ne.s32.totalorder %s8957_s16, %s10545_s27  ;;  %p10553_p1 = scmp.lt.s32.totalorder %s10551_s13, %s10545_s27 }
 0xb68   : > { %v7020_v17 = vsel %vm4382_vm7, %v7019_v35, %v7018_v13  ;;  %v7171_v26 = vrot.slane %v14608_v27, 5  ;;  %v7089_v8 = vrot.slane %v14534_v25, 7  ;;  %v7163_v14 = vsel %vm4373_vm0, %v7162_v45, %v7161_v53  ;;  %v10415_v25 = vld [vmem:[%s15533_s5 + $0x290] sm:$0xff]  }
 0xb69   : > { %v7022_v57 = vsel %vm4385_vm4, %v7021_v19, %v7020_v17  ;;  %v7091_v22 = vrot.slane %v14538_v34, 6  ;;  %v7093_v43 = vrot.slane %v14540_v5, 5  ;;  %v7165_v20 = vsel %vm4376_vm6, %v7164_v30, %v7163_v14  ;;  %9719 = vmatpush3.bf16.msra.mxu0 %v10411_v50  ;;  %p10547_p12 = pnand %p10546_p11, %p10709_p5  ;;  %p10554_p2 = por %p10553_p1, %p10552_p0 }
 0xb6a   : > { %v7024_v18 = vsel %vm4388_vm11, %v7023_v61, %v7022_v57  ;;  %v7090_v10 = vsel %vm4370_vm1, %v7089_v8, %v14532_v55  ;;  %v7095_v28 = vrot.slane %v14543_v11, 4  ;;  %v7166_v34 = vsel %vm4379_vm3, %v14543_v11, %v7165_v20  ;;  %9720 = vmatprep.subr.bf16.mxu0 %v10414_v62  ;;  %v10418_v55 = vld [vmem:[%s15533_s5 + $0x2c8] sm:$0xff]  }
 0xb6b   : > { %7026 = vst.msk [vmem:[#allocation2 + $0x48] sm:$0xff] %vm16247_vm14, %v7024_v18  ;;  %v7092_v5 = vsel %vm4373_vm0, %v7091_v22, %v7090_v10  ;;  %v7097_v58 = vrot.slane %v14545_v3, 3  ;;  %v7099_v15 = vrot.slane %v14593_v2, 2  ;;  %v7168_v31 = vsel %vm4382_vm7, %v7167_v39, %v7166_v34  ;;  %v10423_v39 = vld [vmem:[%s15533_s5 + $0x280] sm:$0xff]   ;;  %p10548_p13 = pneg %p10547_p12 }
 0xb6c   : > { %v7094_v0 = vsel %vm4376_vm6, %v7093_v43, %v7092_v5  ;;  %v7101_v9 = vrot.slane %v14608_v27, 1  ;;  %v7237_v12 = vrot.slane %v14897_v37, 7  ;;  %v7170_v11 = vsel %vm4385_vm4, %v7169_v59, %v7168_v31 }
 0xb6d   : > { %v7096_v44 = vsel %vm4379_vm3, %v7095_v28, %v7094_v0  ;;  %v7239_v3 = vrot.slane %v14899_v6, 6  ;;  %v7241_v2 = vrot.slane %v14902_v7, 5  ;;  %v7172_v38 = vsel %vm4388_vm11, %v7171_v26, %v7170_v11  ;;  %9721 = vmatpush3.bf16.msra.mxu0 %v10415_v25  ;;  %p10555_p3 = pnand %p10554_p2, %p10548_p13 }
 0xb6e   : > { %v7098_v1 = vsel %vm4382_vm7, %v7097_v58, %v7096_v44  ;;  %v7238_v27 = vsel %vm4370_vm1, %v7237_v12, %v14895_v36  ;;  %v7243_v49 = vrot.slane %v14904_v52, 4  ;;  %7174 = vst.msk [vmem:[#allocation2 + $0x58] sm:$0xff] %vm16248_vm15, %v7172_v38  ;;  %9722 = vmatprep.subr.bf16.mxu0 %v10418_v55  ;;  %v7245_v61 = vrot.slane %v14906_v32, 3 }
 0xb6f   : > { %v7100_v48 = vsel %vm4385_vm4, %v7099_v15, %v7098_v1  ;;  %v7240_v35 = vsel %vm4373_vm0, %v7239_v3, %v7238_v27  ;;  %v7247_v41 = vrot.slane %v14909_v4, 2  ;;  %v7249_v56 = vrot.slane %v14911_v46, 1 }
 0xb70   : > { %v7102_v19 = vsel %vm4388_vm11, %v7101_v9, %v7100_v48  ;;  %v7242_v40 = vsel %vm4376_vm6, %v7241_v2, %v7240_v35  ;;  %v7307_v54 = vrot.slane %v14895_v36, 4  ;;  %v7308_v45 = vrot.slane %v14897_v37, 3  ;;  %v10426_v37 = vld [vmem:[%s15533_s5 + $0x3f8] sm:$0xff]  }
 0xb71   : > { %7104 = vst.msk [vmem:[#allocation2 + $0x50] sm:$0xff] %vm16173_vm5, %v7102_v19  ;;  %v7244_v33 = vsel %vm4379_vm3, %v7243_v49, %v7242_v40  ;;  %v7310_v50 = vrot.slane %v14899_v6, 2  ;;  %v7312_v13 = vrot.slane %v14902_v7, 1  ;;  %9723 = vmatpush3.bf16.msra.mxu0 %v10419_v29  ;;  %v7315_v59 = vrot.slane %v14906_v32, 7  ;;  %v10422_v40 = vld [vmem:[%s15533_s5 + $0x338] sm:$0xff]  }
 0xb72   : > { %v7246_v30 = vsel %vm4382_vm7, %v7245_v61, %v7244_v33  ;;  %v7317_v36 = vrot.slane %v14909_v4, 6  ;;  %v7319_v62 = vrot.slane %v14911_v46, 5  ;;  %9724 = vmatprep.subr.bf16.mxu0 %v10421_v60  ;;  %v7309_v6 = vsel %vm4370_vm1, %v7308_v45, %v7307_v54  ;;  %v10424_v54 = vld [vmem:[%s15533_s5 + $0x370] sm:$0xff]  }
 0xb73   : > { %v7248_v17 = vsel %vm4385_vm4, %v7247_v41, %v7246_v30  ;;  %v7455_v7 = vrot.slane %v14970_v63, 4  ;;  %v7456_v53 = vrot.slane %v14972_v21, 3  ;;  %v7311_v32 = vsel %vm4373_vm0, %v7310_v50, %v7309_v6  ;;  %v10425_v45 = vld [vmem:[%s15533_s5 + $0x330] sm:$0xff]   ;;  %v10428_v50 = vld [vmem:[%s15533_s5 + $0x368] sm:$0xff]   ;;  %v10433_v6 = vld [vmem:[%s15533_s5 + $0x320] sm:$0xff]  }
 0xb74   : > { %v7250_v26 = vsel %vm4388_vm11, %v7249_v56, %v7248_v17  ;;  %v7458_v4 = vrot.slane %v14978_v47, 2  ;;  %v7460_v46 = vrot.slane %v14980_v24, 1  ;;  %v7313_v8 = vsel %vm4376_vm6, %v7312_v13, %v7311_v32  ;;  %v10434_v32 = vld [vmem:[%s15533_s5 + $0x3e8] sm:$0xff]  }
 0xb75   : > { %7252 = vst.msk [vmem:[#allocation2 + $0x60] sm:$0xff] %vm16249_vm8, %v7250_v26  ;;  %v7457_v57 = vsel %vm4370_vm1, %v7456_v53, %v7455_v7  ;;  %v7463_v14 = vrot.slane %v14986_v51, 7  ;;  %v7465_v22 = vrot.slane %v14988_v16, 6  ;;  %9725 = vmatpush3.bf16.msra.mxu0 %v10423_v39  ;;  %v7314_v43 = vsel %vm4379_vm3, %v14904_v52, %v7313_v8  ;;  %v10429_v39 = vld [vmem:[%s15533_s5 + $0x328] sm:$0xff]   ;;  %v10436_v53 = vld [vmem:[%s15533_s5 + $0x358] sm:$0xff]   ;;  %v10431_v26 = vld [vmem:[%s15533_s5 + $0x3b0] sm:$0xff]  }
 0xb76   : > { %v7459_v18 = vsel %vm4373_vm0, %v7458_v4, %v7457_v57  ;;  %v7467_v20 = vrot.slane %v14990_v23, 5  ;;  %v7385_v10 = vrot.slane %v14972_v21, 7  ;;  %9754 = vmatprep.subr.bf16.mxu0 %v10426_v37  ;;  %v7316_v28 = vsel %vm4382_vm7, %v7315_v59, %v7314_v43  ;;  %v10432_v59 = vld [vmem:[%s15533_s5 + $0x360] sm:$0xff]   ;;  %v10430_v37 = vld [vmem:[%s15533_s5 + $0x3f0] sm:$0xff]   ;;  %v10437_v4 = vld [vmem:[%s15533_s5 + $0x318] sm:$0xff]  }
 0xb77   : > { %v7461_v25 = vsel %vm4376_vm6, %v7460_v46, %v7459_v18  ;;  %v7387_v34 = vrot.slane %v14978_v47, 6  ;;  %v7389_v5 = vrot.slane %v14980_v24, 5  ;;  %v7318_v58 = vsel %vm4385_vm4, %v7317_v36, %v7316_v28  ;;  %v10440_v8 = vld [vmem:[%s15533_s5 + $0x350] sm:$0xff]   ;;  %v10435_v57 = vld [vmem:[%s15533_s5 + $0x3a8] sm:$0xff]   ;;  %v10439_v18 = vld [vmem:[%s15533_s5 + $0x3a0] sm:$0xff]  }
 0xb78   : > { %v7462_v52 = vsel %vm4379_vm3, %v14982_v42, %v7461_v25  ;;  %v7386_v15 = vsel %vm4370_vm1, %v7385_v10, %v14970_v63  ;;  %v7391_v55 = vrot.slane %v14982_v42, 4  ;;  %v7320_v21 = vsel %vm4388_vm11, %v7319_v62, %v7318_v58  ;;  %vm16251_vm1 = vmmov %vm16173_vm5  ;;  %v10427_v62 = vld [vmem:[%s15533_s5 + $0x3b8] sm:$0xff]   ;;  %v10444_v43 = vld [vmem:[%s15533_s5 + $0x348] sm:$0xff]  }
 0xb79   : > { %v7464_v31 = vsel %vm4382_vm7, %v7463_v14, %v7462_v52  ;;  %v7388_v0 = vsel %vm4373_vm0, %v7387_v34, %v7386_v15  ;;  %v7393_v47 = vrot.slane %v14986_v51, 3  ;;  %7322 = vst.msk [vmem:[#allocation2 + $0x68] sm:$0xff] %vm16250_vm9, %v7320_v21  ;;  %v7395_v12 = vrot.slane %v14988_v16, 2  ;;  %vm16252_vm0 = vmmov %vm16251_vm1  ;;  %v10438_v14 = vld [vmem:[%s15533_s5 + $0x3e0] sm:$0xff]   ;;  %v10442_v10 = vld [vmem:[%s15533_s5 + $0x3d8] sm:$0xff]  }
 0xb7a   : > { %v7466_v24 = vsel %vm4385_vm4, %v7465_v22, %v7464_v31  ;;  %v7390_v9 = vsel %vm4376_vm6, %v7389_v5, %v7388_v0  ;;  %v7397_v63 = vrot.slane %v14990_v23, 1  ;;  %v10441_v22 = vld [vmem:[%s15533_s5 + $0x310] sm:$0xff]   ;;  %v10445_v28 = vld [vmem:[%s15533_s5 + $0x308] sm:$0xff]   ;;  %v10448_v34 = vld [vmem:[%s15533_s5 + $0x340] sm:$0xff]   ;;  %vm8910_vm6 = vcmask 523264  }
 0xb7b   : > { %v7468_v42 = vsel %vm4388_vm11, %v7467_v20, %v7466_v24  ;;  %v7392_v11 = vsel %vm4379_vm3, %v7391_v55, %v7390_v9  ;;  %v10443_v5 = vld [vmem:[%s15533_s5 + $0x398] sm:$0xff]   ;;  %v10446_v52 = vld [vmem:[%s15533_s5 + $0x3d0] sm:$0xff]   ;;  %v10449_v15 = vld [vmem:[%s15533_s5 + $0x300] sm:$0xff]  }
 0xb7c   : > { %7470 = vst.msk [vmem:[#allocation2 + $0x78] sm:$0xff] %vm16251_vm1, %v7468_v42  ;;  %v7394_v44 = vsel %vm4382_vm7, %v7393_v47, %v7392_v11  ;;  %v10447_v55 = vld [vmem:[%s15533_s5 + $0x390] sm:$0xff]   ;;  %v10450_v21 = vld [vmem:[%s15533_s5 + $0x3c8] sm:$0xff]   ;;  %v10452_v24 = vld [vmem:[%s15533_s5 + $0x3c0] sm:$0xff]  }
 0xb7d   : > { %v7060_v3 = vpop.permute.xlu0 %7059  ;;  %v6972_v51 = vpop.permute.xlu1 %6971  ;;  %v7396_v2 = vsel %vm4385_vm4, %v7395_v12, %v7394_v44  ;;  %v10451_v0 = vld [vmem:[%s15533_s5 + $0x388] sm:$0xff]   ;;  %v10453_v11 = vld [vmem:[%s15533_s5 + $0x380] sm:$0xff]  }
 0xb7e   : > { %6974 = vst.msk [vmem:[#allocation2 + $0x40] sm:$0xff] %vm4409_vm10, %v6972_v51  ;;  %v7398_v38 = vsel %vm4388_vm11, %v7397_v63, %v7396_v2 }
 0xb7f   : > { %7400 = vst.msk [vmem:[#allocation2 + $0x70] sm:$0xff] %vm16252_vm0, %v7398_v38 }
 0xb81   : > { %v7208_v16 = vpop.permute.xlu0 %7207  ;;  %v6990_v23 = vpop.permute.xlu1 %6989 }
 0xb82   : > { %6992 = vst.msk [vmem:[#allocation2 + $0x40] sm:$0xff] %vm4428_vm13, %v6990_v23 }
 0xb85   : > { %v7042_v1 = vpop.permute.xlu0 %7041 }
 0xb86   : > { %7044 = vst.msk [vmem:[#allocation2 + $0x48] sm:$0xff] %vm4409_vm10, %v7042_v1 }
 0xb87   : > { %7062 = vst.msk [vmem:[#allocation2 + $0x48] sm:$0xff] %vm4428_vm13, %v7060_v3  ;;  %v7190_v29 = vpop.permute.xlu1 %7189 }
 0xb88   : > { %7192 = vst.msk [vmem:[#allocation2 + $0x58] sm:$0xff] %vm4409_vm10, %v7190_v29 }
 0xb89   : > { %7210 = vst.msk [vmem:[#allocation2 + $0x58] sm:$0xff] %vm4428_vm13, %v7208_v16 }
 0xb8e   : > { %v7078_v27 = vpop.permute.xlu0 %7077 }
 0xb8f   : > { %7080 = vst.msk [vmem:[#allocation2 + $0x48] sm:$0xff] %vm4447_vm2, %v7078_v27  ;;  %v9253_v27 = vld [vmem:[%s15534_s6] ss:$0 sm:$0xff] }
 0xb91   : > { %v7120_v49 = vpop.permute.xlu1 %7119 }
 0xb92   : > { %7122 = vst.msk [vmem:[#allocation2 + $0x50] sm:$0xff] %vm4409_vm10, %v7120_v49 }
 0xb96   : > { %v7534_v48 = vld [vmem:[#allocation2 + $0x48] sm:$0xff] }
 0xb97   : > { %v7550_v35 = vpack.c.bf16 %v7534_v48, %v7534_v48 }
 0xb99   : > { %v7008_v61 = vpop.permute.xlu0 %7007  ;;  %8780 = vmatprep.mubr.bf16.mxu1 %v7550_v35 }
 0xb9a   : > { %7010 = vst.msk [vmem:[#allocation2 + $0x40] sm:$0xff] %vm4447_vm2, %v7008_v61 }
 0xb9c   : > { %v7138_v41 = vpop.permute.xlu1 %7137 }
 0xb9d   : > { %7140 = vst.msk [vmem:[#allocation2 + $0x50] sm:$0xff] %vm4428_vm13, %v7138_v41 }
 0xb9f   : > { %v7226_v60 = vpop.permute.xlu0 %7225 }
 0xba0   : > { %7228 = vst.msk [vmem:[#allocation2 + $0x58] sm:$0xff] %vm4447_vm2, %v7226_v60 }
 0xba1   : > { %v7533_v19 = vld [vmem:[#allocation2 + $0x40] sm:$0xff] }
 0xba2   : > { %v7549_v56 = vpack.c.bf16 %v7533_v19, %v7533_v19 }
 0xba3   : > { %v7156_v33 = vpop.permute.xlu1 %7155 }
 0xba4   : > { %7158 = vst.msk [vmem:[#allocation2 + $0x50] sm:$0xff] %vm4447_vm2, %v7156_v33  ;;  %8781 = vmatmul.mubr.bf16.vlgmr.msra.gmra.mxu1 %v7549_v56 }
 0xba5   : > { %9733 = vmatpush3.bf16.msra.mxu1 %v10422_v40 }
 0xba6   : > { %9734 = vmatprep.subr.bf16.mxu1 %v10424_v54 }
 0xba7   : > { %v7536_v13 = vld [vmem:[#allocation2 + $0x58] sm:$0xff] }
 0xba8   : > { %v7552_v30 = vpack.c.bf16 %v7536_v13, %v7536_v13 }
 0xba9   : > { %9735 = vmatpush3.bf16.msra.mxu1 %v10425_v45 }
 0xbaa   : > { %9736 = vmatprep.subr.bf16.mxu1 %v10428_v50  ;;  %8820 = vmatprep.mubr.bf16.mxu0 %v7552_v30 }
 0xbab   : > { %v7535_v36 = vld [vmem:[#allocation2 + $0x50] sm:$0xff] }
 0xbac   : > { %v7551_v17 = vpack.c.bf16 %v7535_v36, %v7535_v36  ;;  %v7356_v46 = vpop.permute.xlu0 %7355 }
 0xbad   : > { %9737 = vmatpush3.bf16.msra.mxu1 %v10429_v39  ;;  %v7268_v7 = vpop.permute.xlu1 %7267 }
 0xbae   : > { %8821 = vmatmul.mubr.bf16.vlgmr.msra.gmra.mxu0 %v7551_v17  ;;  %9738 = vmatprep.subr.bf16.mxu1 %v10432_v59  ;;  %7270 = vst.msk [vmem:[#allocation2 + $0x60] sm:$0xff] %vm4409_vm10, %v7268_v7 }
 0xbaf   : > { %9755 = vmatpush3.bf16.msra.mxu0 %v10427_v62 }
 0xbb0   : > { %9756 = vmatprep.subr.bf16.mxu0 %v10430_v37 }
 0xbb1   : > { %9739 = vmatpush3.bf16.msra.mxu1 %v10433_v6 }
 0xbb2   : > { %9740 = vmatprep.subr.bf16.mxu1 %v10436_v53 }
 0xbb3   : > { %9757 = vmatpush3.bf16.msra.mxu0 %v10431_v26 }
 0xbb4   : > { %9758 = vmatprep.subr.bf16.mxu0 %v10434_v32 }
 0xbb5   : > { %9741 = vmatpush3.bf16.msra.mxu1 %v10437_v4 }
 0xbb6   : > { %9742 = vmatprep.subr.bf16.mxu1 %v10440_v8 }
 0xbb7   : > { %9759 = vmatpush3.bf16.msra.mxu0 %v10435_v57 }
 0xbb8   : > { %v7504_v20 = vpop.permute.xlu0 %7503  ;;  %9760 = vmatprep.subr.bf16.mxu0 %v10438_v14 }
 0xbb9   : > { %9743 = vmatpush3.bf16.msra.mxu1 %v10441_v22  ;;  %v7286_v25 = vpop.permute.xlu1 %7285 }
 0xbba   : > { %9744 = vmatprep.subr.bf16.mxu1 %v10444_v43  ;;  %7288 = vst.msk [vmem:[#allocation2 + $0x60] sm:$0xff] %vm4428_vm13, %v7286_v25 }
 0xbbb   : > { %9761 = vmatpush3.bf16.msra.mxu0 %v10439_v18 }
 0xbbc   : > { %v7338_v58 = vpop.permute.xlu0 %7337  ;;  %9762 = vmatprep.subr.bf16.mxu0 %v10442_v10 }
 0xbbd   : > { %7340 = vst.msk [vmem:[#allocation2 + $0x68] sm:$0xff] %vm4409_vm10, %v7338_v58  ;;  %9745 = vmatpush3.bf16.msra.mxu1 %v10445_v28 }
 0xbbe   : > { %7358 = vst.msk [vmem:[#allocation2 + $0x68] sm:$0xff] %vm4428_vm13, %v7356_v46  ;;  %9746 = vmatprep.subr.bf16.mxu1 %v10448_v34 }
 0xbbf   : > { %9763 = vmatpush3.bf16.msra.mxu0 %v10443_v5 }
 0xbc0   : > { %9764 = vmatprep.subr.bf16.mxu0 %v10446_v52 }
 0xbc1   : > { %v7486_v31 = vpop.permute.xlu1 %7485  ;;  %9747 = vmatpush3.bf16.msra.mxu1 %v10449_v15 }
 0xbc2   : > { %7488 = vst.msk [vmem:[#allocation2 + $0x78] sm:$0xff] %vm4409_vm10, %v7486_v31 }
 0xbc3   : > { %7506 = vst.msk [vmem:[#allocation2 + $0x78] sm:$0xff] %vm4428_vm13, %v7504_v20  ;;  %9765 = vmatpush3.bf16.msra.mxu0 %v10447_v55  ;;  %v9616_v47 = vpop.f32.mrf.mxu1 }
 0xbc4   : > { %9766 = vmatprep.subr.bf16.mxu0 %v10450_v21  ;;  %v7374_v9 = vpop.permute.xlu0 %7373 }
 0xbc5   : > { %v9617_v12 = vpop.f32.mrf.mxu1  ;;  %7376 = vst.msk [vmem:[#allocation2 + $0x68] sm:$0xff] %vm4447_vm2, %v7374_v9 }
 0xbc6   : > { %v9618_v63 = vadd.f32 %v9617_v12, %v9616_v47 }
 0xbc7   : > { %v7416_v42 = vpop.permute.xlu1 %7415  ;;  %9767 = vmatpush3.bf16.msra.mxu0 %v10451_v0  ;;  %v9619_v44 = vpop.f32.mrf.mxu1  ;;  %v8908_v0 = vld [vmem:[%s407_s26] sm:$0xff]  ;;  %s8954_s26 = scalar_lea.hbm %s15537_s9, %s9385_s14 }
 0xbc8   : > { %7418 = vst.msk [vmem:[#allocation2 + $0x70] sm:$0xff] %vm4409_vm10, %v7416_v42  ;;  %9768 = vmatprep.subr.bf16.mxu0 %v10452_v24  ;;  %v8623_v61 = vadd.f32 %v9618_v63, %v9253_v27 }
 0xbc9   : > { %v9620_v3 = vpop.f32.mrf.mxu1 }
 0xbcb   : > { %v7304_v51 = vpop.permute.xlu0 %7303  ;;  %9769 = vmatpush3.bf16.msra.mxu0 %v10453_v11 }
 0xbcc   : > { %7306 = vst.msk [vmem:[#allocation2 + $0x60] sm:$0xff] %vm4447_vm2, %v7304_v51  ;;  %v7538_v2 = vld [vmem:[#allocation2 + $0x68] sm:$0xff] }
 0xbcd   : > { %v7554_v38 = vpack.c.bf16 %v7538_v2, %v7538_v2 }
 0xbcf   : > { %v7434_v16 = vpop.permute.xlu1 %7433  ;;  %8860 = vmatprep.mubr.bf16.mxu1 %v7554_v38 }
 0xbd0   : > { %7436 = vst.msk [vmem:[#allocation2 + $0x70] sm:$0xff] %vm4428_vm13, %v7434_v16 }
 0xbd2   : > { %v7522_v23 = vpop.permute.xlu0 %7521 }
 0xbd3   : > { %v7537_v1 = vld [vmem:[#allocation2 + $0x60] sm:$0xff]  ;;  %7524 = vst.msk [vmem:[#allocation2 + $0x78] sm:$0xff] %vm4447_vm2, %v7522_v23 }
 0xbd4   : > { %v7553_v29 = vpack.c.bf16 %v7537_v1, %v7537_v1  ;;  %v9638_v49 = vpop.f32.mrf.mxu0  ;;  %v9382_v23 = vld [vmem:[%s15535_s7] ss:$0 sm:$0xff] }
 0xbd6   : > { %v7452_v48 = vpop.permute.xlu1 %7451  ;;  %8861 = vmatmul.mubr.bf16.vlgmr.msra.gmra.mxu1 %v7553_v29  ;;  %v9639_v35 = vpop.f32.mrf.mxu0  ;;  %v9383_v29 = vld [vmem:[%s15536_s8] ss:$0 sm:$0xff] }
 0xbd7   : > { %7454 = vst.msk [vmem:[#allocation2 + $0x70] sm:$0xff] %vm4447_vm2, %v7452_v48  ;;  %v9640_v41 = vadd.f32 %v9639_v35, %v9638_v49 }
 0xbd8   : > { %v9641_v60 = vpop.f32.mrf.mxu0 }
 0xbd9   : > { %v8663_v19 = vadd.f32 %v9640_v41, %v8623_v61 }
 0xbda   : > { %v9642_v40 = vpop.f32.mrf.mxu0  ;;  %v7540_v56 = vld [vmem:[#allocation2 + $0x78] sm:$0xff] }
 0xbdb   : > { %v7556_v54 = vpack.c.bf16 %v7540_v56, %v7540_v56 }
 0xbdd   : > { %8900 = vmatprep.mubr.bf16.mxu0 %v7556_v54 }
 0xbde   : > { %v7539_v33 = vld [vmem:[#allocation2 + $0x70] sm:$0xff] }
 0xbdf   : > { %v7555_v45 = vpack.c.bf16 %v7539_v33, %v7539_v33 }
 0xbe1   : > { %8901 = vmatmul.mubr.bf16.vlgmr.msra.gmra.mxu0 %v7555_v45 }
 0xbf8   : > { %v9660_v50 = vpop.f32.mrf.mxu1 }
 0xbfa   : > { %v9661_v13 = vpop.f32.mrf.mxu1 }
 0xbfb   : > { %v9662_v30 = vadd.f32 %v9661_v13, %v9660_v50 }
 0xbfc   : > { %v9663_v39 = vpop.f32.mrf.mxu1 }
 0xbfd   : > { %v8703_v59 = vadd.f32 %v9662_v30, %v8663_v19 }
 0xbfe   : > { %v9664_v36 = vpop.f32.mrf.mxu1 }
 0xc18   : > { %v9682_v62 = vpop.f32.mrf.mxu0 }
 0xc1a   : > { %v9683_v17 = vpop.f32.mrf.mxu0 }
 0xc1b   : > { %v9684_v37 = vadd.f32 %v9683_v17, %v9682_v62 }
 0xc1c   : > { %v9685_v6 = vpop.f32.mrf.mxu0 }
 0xc1d   : > { %v8743_v7 = vadd.f32 %v9684_v37, %v8703_v59 }
 0xc1e   : > { %v9686_v53 = vpop.f32.mrf.mxu0 }
 0xc64   : > { %v9704_v26 = vpop.f32.mrf.mxu1 }
 0xc66   : > { %v9705_v32 = vpop.f32.mrf.mxu1 }
 0xc67   : > { %v9706_v10 = vadd.f32 %v9705_v32, %v9704_v26 }
 0xc68   : > { %v9707_v4 = vpop.f32.mrf.mxu1 }
 0xc69   : > { %v8783_v34 = vadd.f32 %v9706_v10, %v8743_v7 }
 0xc6a   : > { %v9708_v46 = vpop.f32.mrf.mxu1 }
 0xc6e   : > { %v9726_v8 = vpop.f32.mrf.mxu0 }
 0xc70   : > { %v9727_v57 = vpop.f32.mrf.mxu0 }
 0xc71   : > { %v9728_v25 = vadd.f32 %v9727_v57, %v9726_v8 }
 0xc72   : > { %v9729_v14 = vpop.f32.mrf.mxu0 }
 0xc73   : > { %v8823_v52 = vadd.f32 %v9728_v25, %v8783_v34 }
 0xc74   : > { %v9730_v22 = vpop.f32.mrf.mxu0 }
 0xc96   : > { %v9748_v43 = vpop.f32.mrf.mxu1 }
 0xc98   : > { %v9749_v18 = vpop.f32.mrf.mxu1 }
 0xc99   : > { %v9750_v5 = vadd.f32 %v9749_v18, %v9748_v43 }
 0xc9a   : > { %v9751_v20 = vpop.f32.mrf.mxu1 }
 0xc9b   : > { %v8863_v55 = vadd.f32 %v9750_v5, %v8823_v52 }
 0xc9c   : > { %v9752_v28 = vpop.f32.mrf.mxu1 }
 0xca1   : > { %v9770_v58 = vpop.f32.mrf.mxu0 }
 0xca3   : > { %v9771_v15 = vpop.f32.mrf.mxu0 }
 0xca4   : > { %v9772_v21 = vadd.f32 %v9771_v15, %v9770_v58 }
 0xca5   : > { %v9773_v31 = vpop.f32.mrf.mxu0 }
 0xca6   : > { %v8903_v47 = vadd.f32 %v9772_v21, %v8863_v55 }
 0xca7   : > { %v9774_v24 = vpop.f32.mrf.mxu0 }
 0xca8   : > { %v8909_v9 = vadd.f32 %v8908_v0, %v8903_v47 }
 0xcaa   : > { %v8911_v12 = vsel %vm8910_vm6, %v8909_v9, 0.0 }
 0xcab   : > { %8912 = vadd.xlane.f32.xlu0 %v8911_v12 }
 0xd34   : > { %v8913_v63 = vpop.xlane.xlu0 %8912 }
 0xd35   : > { %v8915_v42 = vmul.f32 0.015625, %v8913_v63 }
 0xd37   : > { %v8916_v11 = vsub.f32 %v8909_v9, %v8915_v42 }
 0xd39   : > { %v8917_v44 = vmul.f32 %v8916_v11, %v8916_v11 }
 0xd3b   : > { %v8918_v3 = vsel %vm8910_vm6, %v8917_v44, 0.0 }
 0xd3c   : > { %8919 = vadd.xlane.f32.xlu1 %v8918_v3 }
 0xdc5   : > { %v8920_v51 = vpop.xlane.xlu1 %8919 }
 0xdc6   : > { %v8921_v2 = vmul.f32 0.015625, %v8920_v51 }
 0xdc8   : > { %v8922_v38 = vadd.f32 1e-05, %v8921_v2 }
 0xdca   : > { %10518 = vrsqrt.f32 %v8922_v38 }
 0xdd7   : > { %v10519_v16 = vpop.eup %10518 }
 0xdd8   : > { %v8924_v1 = vmul.f32 %v10519_v16, %v8916_v11 }
 0xdda   : > { %v8932_v27 = vmul.f32 %v9382_v23, %v8924_v1 }
 0xddc   : > { %v8940_v49 = vadd.f32 %v9383_v29, %v8932_v27 }
 0xdde   : > { %8941 = vst.msk [vmem:[%s383_s22] sm:$0xff] %vm8910_vm6, %v8940_v49 }
 0xddf   : > { %10558 = shalt.err (!%p10555_p3)
}
 0xde0   : > { %s10559_s24 = scalar_lea.hbm %s8954_s26, 128  ;;  %s10563_s14 = scalar_lea.hbm %s15537_s9, 256 }
 0xde1   : > { %p10560_p4 = scmp.ne.s32.totalorder %s8954_s26, %s10559_s24  ;;  %p10564_p9 = scmp.lt.s32.totalorder %s8954_s26, %s15537_s9 }
 0xde2   : > { %p10565_p10 = scmp.lt.s32.totalorder %s10563_s14, %s10559_s24 }
 0xde3   : > { %p10561_p7 = pnand %p10560_p4, %p10709_p5 }
 0xde4   : > { %p10566_p11 = por %p10565_p10, %p10564_p9 }
 0xde5   : > { %p10562_p8 = pneg %p10561_p7 }
 0xde7   : > { %p10567_p12 = pnand %p10566_p11, %p10562_p8 }
 0xde9   : > { %10570 = shalt.err (!%p10567_p12)
}
 0xdea   : > { %10064 = dma.vmem_to_hbm [thread:$0]  (%p10709_p5), %s8957_s16, 128, %s8954_s26, %s8943_s0  }
 0xdeb PF: > { %p10070_p13 = scmp.ge.s32.totalorder %s10605_s12, 2  ;;  %s8968_s23 = sand.u32 1, %s10593_s30  }
 0xdec   : > { %s8969_s27 = scalar_lea.sflag [#allocation4], %s8968_s23 }
 0xded   : > { %p10067_p0 = pnand %p10070_p13, %p10713_p6 }
 0xdef   : > { %p10068_p1 = pneg %p10067_p0 }
 0xdf1   : > { %10588 = dma.done.wait (%p10068_p1), %s8969_s27, 128  }
 0xdf2   : > { %10590 = vsyncadd (%p10068_p1), %s8969_s27, 4294967168  ;;  %p19_p2 = scmp.ge.s32.totalorder %s10696_s15, 4   ;;  %s16253_s30 = smov %s10597_s10 }
 0xdf3   : > { %s16254_s10 = smov %s10601_s11  ;;  %s16255_s11 = smov %s10707_s18 }
 0xdf4   : > { %s16256_s12 = smov %s10696_s15  ;;  %21 = sbr.rel (!%p19_p2) target bundleno = 5 (0x5), region = 105 }
 0xdf9   :  { %8974 = vsyncpa [#allocation4], 1 }
 0xdfa   :  { %8976 = vsyncpa [#allocation4 + $0x1], 1 }

</bundles_post_ra>
